<compile_context>
chip_gen: v5e
topology: v5e:2x2
jax: 0.10.0
libtpu: 0.0.40
codegen_flags: <defaults>
</compile_context>

<pallas_src>
import functools

import jax
import jax.numpy as jnp
from jax.experimental import pallas as pl
from jax.experimental.pallas import tpu as pltpu


IN_FEATURES = 3 * 32 * 32      # 3072, fixed by the module definition
NUM_CLASSES = 100
PADDED_CLASSES = 128           # pad logits to a full 128-lane vreg for unmasked stores


def _mlp_kernel(x_ref, w1_ref, b1_ref, w2_ref, b2_ref, w3_ref, b3_ref, o_ref):
    """Fused Linear->ReLU->Linear->ReLU->Linear on one batch tile.

    x_ref: (TB, 3072) bf16   w1: (3072, H) bf16   b1: (1, H)   f32
    w2:    (H, H)     bf16   b2: (1, H)    f32
    w3:    (H, 128)   bf16   b3: (1, 128)  f32 (zero-padded past class 100)
    o_ref: (TB, 128)  f32
    """
    x = x_ref[...]
    # Biases read once per grid step; broadcast against the f32 accumulators.
    b1 = b1_ref[...]
    b2 = b2_ref[...]
    b3 = b3_ref[...]

    # Layer 1: bf16 operands, f32 MXU accumulation.  Dropout(0.5) eval = identity.
    h1 = jnp.dot(x, w1_ref[...], preferred_element_type=jnp.float32)
    h1 = jnp.maximum(h1 + b1, 0.0).astype(x.dtype)

    # Layer 2.
    h2 = jnp.dot(h1, w2_ref[...], preferred_element_type=jnp.float32)
    h2 = jnp.maximum(h2 + b2, 0.0).astype(x.dtype)

    # Layer 3 (logits); bias add folded into the final store.
    out = jnp.dot(h2, w3_ref[...], preferred_element_type=jnp.float32)
    o_ref[...] = (out + b3).astype(o_ref.dtype)


def _vmem_limit_bytes(tb, hidden):
    """Estimate the kernel's VMEM working set instead of hard-coding 64 MiB."""
    # Single-buffered bf16 weights + tiny f32 biases.
    w_bytes = 2 * (IN_FEATURES * hidden + hidden * hidden + hidden * PADDED_CLASSES)
    b_bytes = 4 * (2 * hidden + PADDED_CLASSES)
    # Double-buffered x tile (bf16) and out tile (f32).
    io_bytes = 2 * (tb * IN_FEATURES * 2) + 2 * (tb * PADDED_CLASSES * 4)
    # f32 intermediates (a few (TB, H) activations live at once).
    act_bytes = 3 * tb * hidden * 4
    est = w_bytes + b_bytes + io_bytes + act_bytes + (8 << 20)  # compiler scratch margin
    return int(max(32 << 20, min(est, 100 << 20)))


@functools.partial(jax.jit, static_argnames=("block_b", "single_buffer_weights"))
def mlp_cifar100_forward(x_nchw, params, block_b=256, single_buffer_weights=True):
    """Forward pass of MLPCIFAR100.  x_nchw: (N, 3, 32, 32) float32."""
    w1, b1, w2, b2, w3, b3 = params
    n = x_nchw.shape[0]
    hidden = w1.shape[1]

    # nn.Flatten: (N, 3, 32, 32) -> (N, 3072), row-major over C,H,W (matches torch).
    x = x_nchw.reshape(n, -1).astype(jnp.bfloat16)

    # bf16 operands (f32 accumulation inside the kernel).  Biases stay f32.
    w1 = w1.astype(jnp.bfloat16)
    w2 = w2.astype(jnp.bfloat16)
    w3p = jnp.pad(w3, ((0, 0), (0, PADDED_CLASSES - NUM_CLASSES))).astype(jnp.bfloat16)
    b3p = jnp.pad(b3, ((0, 0), (0, PADDED_CLASSES - NUM_CLASSES)))

    tb = min(block_b, n)
    grid = (pl.cdiv(n, tb),)

    # Weights/biases have a constant index_map (never re-fetched across the grid);
    # single-buffer them to halve their VMEM footprint when supported.
    if single_buffer_weights:
        def const_spec(shape):
            return pl.BlockSpec(shape, lambda i: (0, 0), pipeline_mode=pl.Buffered(1))
    else:
        def const_spec(shape):
            return pl.BlockSpec(shape, lambda i: (0, 0))

    out_padded = pl.pallas_call(
        _mlp_kernel,
        out_shape=jax.ShapeDtypeStruct((n, PADDED_CLASSES), jnp.float32),
        grid_spec=pltpu.PrefetchScalarGridSpec(
            num_scalar_prefetch=0,
            grid=grid,
            in_specs=[
                pl.BlockSpec((tb, IN_FEATURES), lambda i: (i, 0)),
                const_spec((IN_FEATURES, hidden)),
                const_spec((1, hidden)),
                const_spec((hidden, hidden)),
                const_spec((1, hidden)),
                const_spec((hidden, PADDED_CLASSES)),
                const_spec((1, PADDED_CLASSES)),
            ],
            out_specs=pl.BlockSpec((tb, PADDED_CLASSES), lambda i: (i, 0)),
        ),
        compiler_params=pltpu.CompilerParams(
            dimension_semantics=("parallel",),
            vmem_limit_bytes=_vmem_limit_bytes(tb, hidden),
        ),
    )(x, w1, b1, w2, b2, w3p, b3p)

    # Drop the lane padding back to the real 100 classes.
    return out_padded[:, :NUM_CLASSES]


def init_params(key, hidden_size):
    """Deterministic init mimicking nn.Linear (uniform(-1/sqrt(in), 1/sqrt(in))).

    Weights are stored as (in_features, out_features) == torch_weight.T.
    """
    ks = jax.random.split(key, 6)

    def linear(kw, kb, fin, fout):
        bound = 1.0 / jnp.sqrt(fin)
        w = jax.random.uniform(kw, (fin, fout), jnp.float32, -bound, bound)
        b = jax.random.uniform(kb, (1, fout), jnp.float32, -bound, bound)
        return w, b

    w1, b1 = linear(ks[0], ks[1], IN_FEATURES, hidden_size)
    w2, b2 = linear(ks[2], ks[3], hidden_size, hidden_size)
    w3, b3 = linear(ks[4], ks[5], hidden_size, NUM_CLASSES)
    return (w1, b1, w2, b2, w3, b3)


def _reference_forward(x_nchw, params):
    """Pure-JAX reference using the same bf16-operand / f32-accumulate math."""
    w1, b1, w2, b2, w3, b3 = params
    x = x_nchw.reshape(x_nchw.shape[0], -1).astype(jnp.bfloat16)
    h1 = jnp.dot(x, w1.astype(jnp.bfloat16), preferred_element_type=jnp.float32)
    h1 = jnp.maximum(h1 + b1, 0.0).astype(jnp.bfloat16)
    h2 = jnp.dot(h1, w2.astype(jnp.bfloat16), preferred_element_type=jnp.float32)
    h2 = jnp.maximum(h2 + b2, 0.0).astype(jnp.bfloat16)
    out = jnp.dot(h2, w3.astype(jnp.bfloat16), preferred_element_type=jnp.float32)
    return out + b3


if __name__ == "__main__":
    key = jax.random.PRNGKey(0)
    k_param, k_x = jax.random.split(key)

    hidden_size = 256           # small hidden size for the example run
    batch = 8

    params = init_params(k_param, hidden_size)
    x = jax.random.normal(k_x, (batch, 3, 32, 32), dtype=jnp.float32)

    try:
        out = mlp_cifar100_forward(x, params)  # single-buffered resident weights
    except Exception:
        # Fallback if this JAX build rejects pipeline_mode=pl.Buffered(1).
        out = mlp_cifar100_forward(x, params, single_buffer_weights=False)
    out = jax.block_until_ready(out)

    assert out.shape == (batch, NUM_CLASSES), out.shape

    ref = _reference_forward(x, params)
    max_err = float(jnp.max(jnp.abs(out - ref)))
    assert max_err < 1e-2, max_err

    print("KERNEL_OK")
</pallas_src>

<mosaic_0001>
module attributes {stable_mosaic.version = 11 : i64} {
  func.func @_mlp_kernel(%arg0: i32, %arg1: memref<8x3072xbf16, #tpu.memory_space<vmem>>, %arg2: memref<3072x256xbf16, #tpu.memory_space<vmem>>, %arg3: memref<1x256xf32, #tpu.memory_space<vmem>>, %arg4: memref<256x256xbf16, #tpu.memory_space<vmem>>, %arg5: memref<1x256xf32, #tpu.memory_space<vmem>>, %arg6: memref<256x128xbf16, #tpu.memory_space<vmem>>, %arg7: memref<1x128xf32, #tpu.memory_space<vmem>>, %arg8: memref<8x128xf32, #tpu.memory_space<vmem>>) attributes {dimension_semantics = [#tpu.dimension_semantics<parallel>], iteration_bounds = array<i64: 1>, scalar_prefetch = 0 : i64, scratch_operands = 0 : i64, tpu.core_type = #tpu.core_type<tc>, window_params = [{transform_indices = @transform_0, window_bounds = array<i64: 8, 3072>}, {pipeline_mode = #tpu.pipeline_mode<synchronous>, transform_indices = @transform_1, window_bounds = array<i64: 3072, 256>}, {pipeline_mode = #tpu.pipeline_mode<synchronous>, transform_indices = @transform_2, window_bounds = array<i64: 1, 256>}, {pipeline_mode = #tpu.pipeline_mode<synchronous>, transform_indices = @transform_3, window_bounds = array<i64: 256, 256>}, {pipeline_mode = #tpu.pipeline_mode<synchronous>, transform_indices = @transform_4, window_bounds = array<i64: 1, 256>}, {pipeline_mode = #tpu.pipeline_mode<synchronous>, transform_indices = @transform_5, window_bounds = array<i64: 256, 128>}, {pipeline_mode = #tpu.pipeline_mode<synchronous>, transform_indices = @transform_6, window_bounds = array<i64: 1, 128>}, {transform_indices = @transform_7, window_bounds = array<i64: 8, 128>}]} {
    %c0 = arith.constant 0 : index
    %c0_0 = arith.constant 0 : index
    %0 = vector.load %arg1[%c0, %c0_0] : memref<8x3072xbf16, #tpu.memory_space<vmem>>, vector<8x3072xbf16>
    %c0_1 = arith.constant 0 : index
    %c0_2 = arith.constant 0 : index
    %1 = vector.load %arg3[%c0_1, %c0_2] : memref<1x256xf32, #tpu.memory_space<vmem>>, vector<1x256xf32>
    %c0_3 = arith.constant 0 : index
    %c0_4 = arith.constant 0 : index
    %2 = vector.load %arg5[%c0_3, %c0_4] : memref<1x256xf32, #tpu.memory_space<vmem>>, vector<1x256xf32>
    %c0_5 = arith.constant 0 : index
    %c0_6 = arith.constant 0 : index
    %3 = vector.load %arg7[%c0_5, %c0_6] : memref<1x128xf32, #tpu.memory_space<vmem>>, vector<1x128xf32>
    %c0_7 = arith.constant 0 : index
    %c0_8 = arith.constant 0 : index
    %4 = vector.load %arg2[%c0_7, %c0_8] : memref<3072x256xbf16, #tpu.memory_space<vmem>>, vector<3072x256xbf16>
    %cst = arith.constant dense<0.000000e+00> : vector<8x256xf32>
    %5 = tpu.matmul %0, %4, %cst {dimension_numbers = #tpu.dot_dimension_numbers<[1], [0], [0], [1], [0, 0, 1, 1], [], []>} : vector<8x3072xbf16>, vector<3072x256xbf16>, vector<8x256xf32> -> vector<8x256xf32>
    %6 = vector.broadcast %1 : vector<1x256xf32> to vector<8x256xf32>
    %7 = arith.addf %5, %6 : vector<8x256xf32>
    %cst_9 = arith.constant 0.000000e+00 : f32
    %8 = vector.broadcast %cst_9 : f32 to vector<8x256xf32>
    %9 = arith.maximumf %7, %8 : vector<8x256xf32>
    %10 = arith.truncf %9 : vector<8x256xf32> to vector<8x256xbf16>
    %c0_10 = arith.constant 0 : index
    %c0_11 = arith.constant 0 : index
    %11 = vector.load %arg4[%c0_10, %c0_11] : memref<256x256xbf16, #tpu.memory_space<vmem>>, vector<256x256xbf16>
    %cst_12 = arith.constant dense<0.000000e+00> : vector<8x256xf32>
    %12 = tpu.matmul %10, %11, %cst_12 {dimension_numbers = #tpu.dot_dimension_numbers<[1], [0], [0], [1], [0, 0, 1, 1], [], []>} : vector<8x256xbf16>, vector<256x256xbf16>, vector<8x256xf32> -> vector<8x256xf32>
    %13 = vector.broadcast %2 : vector<1x256xf32> to vector<8x256xf32>
    %14 = arith.addf %12, %13 : vector<8x256xf32>
    %cst_13 = arith.constant 0.000000e+00 : f32
    %15 = vector.broadcast %cst_13 : f32 to vector<8x256xf32>
    %16 = arith.maximumf %14, %15 : vector<8x256xf32>
    %17 = arith.truncf %16 : vector<8x256xf32> to vector<8x256xbf16>
    %c0_14 = arith.constant 0 : index
    %c0_15 = arith.constant 0 : index
    %18 = vector.load %arg6[%c0_14, %c0_15] : memref<256x128xbf16, #tpu.memory_space<vmem>>, vector<256x128xbf16>
    %cst_16 = arith.constant dense<0.000000e+00> : vector<8x128xf32>
    %19 = tpu.matmul %17, %18, %cst_16 {dimension_numbers = #tpu.dot_dimension_numbers<[1], [0], [0], [1], [0, 0, 1, 1], [], []>} : vector<8x256xbf16>, vector<256x128xbf16>, vector<8x128xf32> -> vector<8x128xf32>
    %20 = vector.broadcast %3 : vector<1x128xf32> to vector<8x128xf32>
    %21 = arith.addf %19, %20 : vector<8x128xf32>
    %c0_17 = arith.constant 0 : index
    %c0_18 = arith.constant 0 : index
    %22 = vector.load %arg8[%c0_17, %c0_18] : memref<8x128xf32, #tpu.memory_space<vmem>>, vector<8x128xf32>
    tpu.vector_store %arg8[%c0_17, %c0_18], %21 {strides = array<i32>} : memref<8x128xf32, #tpu.memory_space<vmem>>, vector<8x128xf32>,
    return
  }
  func.func @transform_0(%arg0: i32) -> (i32, i32) {
    %c0_i32 = arith.constant 0 : i32
    %c0_i32_0 = arith.constant 0 : i32
    return %arg0, %c0_i32 : i32, i32
  }
  func.func @transform_1(%arg0: i32) -> (i32, i32) {
    %c0_i32 = arith.constant 0 : i32
    %c0_i32_0 = arith.constant 0 : i32
    %c0_i32_1 = arith.constant 0 : i32
    return %c0_i32, %c0_i32_0 : i32, i32
  }
  func.func @transform_2(%arg0: i32) -> (i32, i32) {
    %c0_i32 = arith.constant 0 : i32
    %c0_i32_0 = arith.constant 0 : i32
    %c0_i32_1 = arith.constant 0 : i32
    return %c0_i32, %c0_i32_0 : i32, i32
  }
  func.func @transform_3(%arg0: i32) -> (i32, i32) {
    %c0_i32 = arith.constant 0 : i32
    %c0_i32_0 = arith.constant 0 : i32
    %c0_i32_1 = arith.constant 0 : i32
    return %c0_i32, %c0_i32_0 : i32, i32
  }
  func.func @transform_4(%arg0: i32) -> (i32, i32) {
    %c0_i32 = arith.constant 0 : i32
    %c0_i32_0 = arith.constant 0 : i32
    %c0_i32_1 = arith.constant 0 : i32
    return %c0_i32, %c0_i32_0 : i32, i32
  }
  func.func @transform_5(%arg0: i32) -> (i32, i32) {
    %c0_i32 = arith.constant 0 : i32
    %c0_i32_0 = arith.constant 0 : i32
    %c0_i32_1 = arith.constant 0 : i32
    return %c0_i32, %c0_i32_0 : i32, i32
  }
  func.func @transform_6(%arg0: i32) -> (i32, i32) {
    %c0_i32 = arith.constant 0 : i32
    %c0_i32_0 = arith.constant 0 : i32
    %c0_i32_1 = arith.constant 0 : i32
    return %c0_i32, %c0_i32_0 : i32, i32
  }
  func.func @transform_7(%arg0: i32) -> (i32, i32) {
    %c0_i32 = arith.constant 0 : i32
    %c0_i32_0 = arith.constant 0 : i32
    return %arg0, %c0_i32 : i32, i32
  }
}

module attributes {stable_mosaic.version = 11 : i64} {
  func.func @_mlp_kernel(%arg0: i32, %arg1: memref<8x3072xbf16, #tpu.memory_space<vmem>>, %arg2: memref<3072x256xbf16, #tpu.memory_space<vmem>>, %arg3: memref<1x256xf32, #tpu.memory_space<vmem>>, %arg4: memref<256x256xbf16, #tpu.memory_space<vmem>>, %arg5: memref<1x256xf32, #tpu.memory_space<vmem>>, %arg6: memref<256x128xbf16, #tpu.memory_space<vmem>>, %arg7: memref<1x128xf32, #tpu.memory_space<vmem>>, %arg8: memref<8x128xf32, #tpu.memory_space<vmem>>) attributes {dimension_semantics = [#tpu.dimension_semantics<parallel>], iteration_bounds = array<i64: 1>, scalar_prefetch = 0 : i64, scratch_operands = 0 : i64, tpu.core_type = #tpu.core_type<tc>, window_params = [{transform_indices = @transform_0, window_bounds = array<i64: 8, 3072>}, {pipeline_mode = #tpu.pipeline_mode<synchronous>, transform_indices = @transform_1, window_bounds = array<i64: 3072, 256>}, {pipeline_mode = #tpu.pipeline_mode<synchronous>, transform_indices = @transform_2, window_bounds = array<i64: 1, 256>}, {pipeline_mode = #tpu.pipeline_mode<synchronous>, transform_indices = @transform_3, window_bounds = array<i64: 256, 256>}, {pipeline_mode = #tpu.pipeline_mode<synchronous>, transform_indices = @transform_4, window_bounds = array<i64: 1, 256>}, {pipeline_mode = #tpu.pipeline_mode<synchronous>, transform_indices = @transform_5, window_bounds = array<i64: 256, 128>}, {pipeline_mode = #tpu.pipeline_mode<synchronous>, transform_indices = @transform_6, window_bounds = array<i64: 1, 128>}, {transform_indices = @transform_7, window_bounds = array<i64: 8, 128>}]} {
    %c0 = arith.constant 0 : index
    %c0_0 = arith.constant 0 : index
    %0 = vector.load %arg1[%c0, %c0_0] : memref<8x3072xbf16, #tpu.memory_space<vmem>>, vector<8x3072xbf16>
    %c0_1 = arith.constant 0 : index
    %c0_2 = arith.constant 0 : index
    %1 = vector.load %arg3[%c0_1, %c0_2] : memref<1x256xf32, #tpu.memory_space<vmem>>, vector<1x256xf32>
    %c0_3 = arith.constant 0 : index
    %c0_4 = arith.constant 0 : index
    %2 = vector.load %arg5[%c0_3, %c0_4] : memref<1x256xf32, #tpu.memory_space<vmem>>, vector<1x256xf32>
    %c0_5 = arith.constant 0 : index
    %c0_6 = arith.constant 0 : index
    %3 = vector.load %arg7[%c0_5, %c0_6] : memref<1x128xf32, #tpu.memory_space<vmem>>, vector<1x128xf32>
    %c0_7 = arith.constant 0 : index
    %c0_8 = arith.constant 0 : index
    %4 = vector.load %arg2[%c0_7, %c0_8] : memref<3072x256xbf16, #tpu.memory_space<vmem>>, vector<3072x256xbf16>
    %cst = arith.constant dense<0.000000e+00> : vector<8x256xf32>
    %5 = tpu.matmul %0, %4, %cst {dimension_numbers = #tpu.dot_dimension_numbers<[1], [0], [0], [1], [0, 0, 1, 1], [], []>} : vector<8x3072xbf16>, vector<3072x256xbf16>, vector<8x256xf32> -> vector<8x256xf32>
    %6 = vector.broadcast %1 : vector<1x256xf32> to vector<8x256xf32>
    %7 = arith.addf %5, %6 : vector<8x256xf32>
    %cst_9 = arith.constant 0.000000e+00 : f32
    %8 = vector.broadcast %cst_9 : f32 to vector<8x256xf32>
    %9 = arith.maximumf %7, %8 : vector<8x256xf32>
    %10 = arith.truncf %9 : vector<8x256xf32> to vector<8x256xbf16>
    %c0_10 = arith.constant 0 : index
    %c0_11 = arith.constant 0 : index
    %11 = vector.load %arg4[%c0_10, %c0_11] : memref<256x256xbf16, #tpu.memory_space<vmem>>, vector<256x256xbf16>
    %cst_12 = arith.constant dense<0.000000e+00> : vector<8x256xf32>
    %12 = tpu.matmul %10, %11, %cst_12 {dimension_numbers = #tpu.dot_dimension_numbers<[1], [0], [0], [1], [0, 0, 1, 1], [], []>} : vector<8x256xbf16>, vector<256x256xbf16>, vector<8x256xf32> -> vector<8x256xf32>
    %13 = vector.broadcast %2 : vector<1x256xf32> to vector<8x256xf32>
    %14 = arith.addf %12, %13 : vector<8x256xf32>
    %cst_13 = arith.constant 0.000000e+00 : f32
    %15 = vector.broadcast %cst_13 : f32 to vector<8x256xf32>
    %16 = arith.maximumf %14, %15 : vector<8x256xf32>
    %17 = arith.truncf %16 : vector<8x256xf32> to vector<8x256xbf16>
    %c0_14 = arith.constant 0 : index
    %c0_15 = arith.constant 0 : index
    %18 = vector.load %arg6[%c0_14, %c0_15] : memref<256x128xbf16, #tpu.memory_space<vmem>>, vector<256x128xbf16>
    %cst_16 = arith.constant dense<0.000000e+00> : vector<8x128xf32>
    %19 = tpu.matmul %17, %18, %cst_16 {dimension_numbers = #tpu.dot_dimension_numbers<[1], [0], [0], [1], [0, 0, 1, 1], [], []>} : vector<8x256xbf16>, vector<256x128xbf16>, vector<8x128xf32> -> vector<8x128xf32>
    %20 = vector.broadcast %3 : vector<1x128xf32> to vector<8x128xf32>
    %21 = arith.addf %19, %20 : vector<8x128xf32>
    %c0_17 = arith.constant 0 : index
    %c0_18 = arith.constant 0 : index
    %22 = vector.load %arg8[%c0_17, %c0_18] : memref<8x128xf32, #tpu.memory_space<vmem>>, vector<8x128xf32>
    tpu.vector_store %arg8[%c0_17, %c0_18], %21 {strides = array<i32>} : memref<8x128xf32, #tpu.memory_space<vmem>>, vector<8x128xf32>,
    return
  }
  func.func @transform_0(%arg0: i32) -> (i32, i32) {
    %c0_i32 = arith.constant 0 : i32
    %c0_i32_0 = arith.constant 0 : i32
    return %arg0, %c0_i32 : i32, i32
  }
  func.func @transform_1(%arg0: i32) -> (i32, i32) {
    %c0_i32 = arith.constant 0 : i32
    %c0_i32_0 = arith.constant 0 : i32
    %c0_i32_1 = arith.constant 0 : i32
    return %c0_i32, %c0_i32_0 : i32, i32
  }
  func.func @transform_2(%arg0: i32) -> (i32, i32) {
    %c0_i32 = arith.constant 0 : i32
    %c0_i32_0 = arith.constant 0 : i32
    %c0_i32_1 = arith.constant 0 : i32
    return %c0_i32, %c0_i32_0 : i32, i32
  }
  func.func @transform_3(%arg0: i32) -> (i32, i32) {
    %c0_i32 = arith.constant 0 : i32
    %c0_i32_0 = arith.constant 0 : i32
    %c0_i32_1 = arith.constant 0 : i32
    return %c0_i32, %c0_i32_0 : i32, i32
  }
  func.func @transform_4(%arg0: i32) -> (i32, i32) {
    %c0_i32 = arith.constant 0 : i32
    %c0_i32_0 = arith.constant 0 : i32
    %c0_i32_1 = arith.constant 0 : i32
    return %c0_i32, %c0_i32_0 : i32, i32
  }
  func.func @transform_5(%arg0: i32) -> (i32, i32) {
    %c0_i32 = arith.constant 0 : i32
    %c0_i32_0 = arith.constant 0 : i32
    %c0_i32_1 = arith.constant 0 : i32
    return %c0_i32, %c0_i32_0 : i32, i32
  }
  func.func @transform_6(%arg0: i32) -> (i32, i32) {
    %c0_i32 = arith.constant 0 : i32
    %c0_i32_0 = arith.constant 0 : i32
    %c0_i32_1 = arith.constant 0 : i32
    return %c0_i32, %c0_i32_0 : i32, i32
  }
  func.func @transform_7(%arg0: i32) -> (i32, i32) {
    %c0_i32 = arith.constant 0 : i32
    %c0_i32_0 = arith.constant 0 : i32
    return %arg0, %c0_i32 : i32, i32
  }
}

</mosaic_0001>

<bundles_post_ra>
// kernel: mlp_cifar100_forward.1
= control target key start
LH: loop header
LB: loop body
LE: loop exit
PB: predicated region body
PF: predicated region fallthrough
CT: control target
= control target key end

     0   :  { %s8447_s0 = inlined_call_operand.vmem [shape: bf16[8,3072], index: 0, kind: input, shape index: {}]   ;;  %s8448_s1 = inlined_call_operand.vmem [shape: bf16[3072,256], index: 1, kind: input, shape index: {}]   ;;  %s8449_s2 = inlined_call_operand.vmem [shape: f32[1,256], index: 2, kind: input, shape index: {}]   ;;  %s8450_s3 = inlined_call_operand.vmem [shape: bf16[256,256], index: 3, kind: input, shape index: {}]   ;;  %s8451_s4 = inlined_call_operand.vmem [shape: f32[1,256], index: 4, kind: input, shape index: {}]   ;;  %s8452_s5 = inlined_call_operand.vmem [shape: bf16[256,128], index: 5, kind: input, shape index: {}]   ;;  %s8453_s6 = inlined_call_operand.vmem [shape: f32[1,128], index: 6, kind: input, shape index: {}]   ;;  %s8454_s7 = inlined_call_operand.hbm [shape: f32[8,128], index: 7, kind: output, shape index: {}]  }
   0x1   :  { %v3548_v0 = vld [vmem:[%s8448_s1 + $0x70] sm:$0xf]  ;;  %v5233_v1 = vld [vmem:[%s8448_s1 + $0x74] sm:$0xf0]  ;;  %v3540_v11 = vld [vmem:[%s8448_s1 + $0x60] sm:$0xf] }
   0x2   :  { %v3612_v2 = vld [vmem:[%s8448_s1 + $0xf0] sm:$0xf]  ;;  %v3549_v3 = vor.u32 %v5233_v1, %v3548_v0  ;;  %v5249_v4 = vld [vmem:[%s8448_s1 + $0xf4] sm:$0xf0]  ;;  %v5231_v13 = vld [vmem:[%s8448_s1 + $0x64] sm:$0xf0] }
   0x3   :  { %v3676_v5 = vld [vmem:[%s8448_s1 + $0x170] sm:$0xf]  ;;  %v5265_v6 = vld [vmem:[%s8448_s1 + $0x174] sm:$0xf0]  ;;  %v3613_v7 = vor.u32 %v5249_v4, %v3612_v2  ;;  %v3604_v14 = vld [vmem:[%s8448_s1 + $0xe0] sm:$0xf]  ;;  %v3541_v16 = vor.u32 %v5231_v13, %v3540_v11 }
   0x4   :  { %v3677_v8 = vor.u32 %v5265_v6, %v3676_v5  ;;  %v3740_v9 = vld [vmem:[%s8448_s1 + $0x1f0] sm:$0xf]  ;;  %v5281_v10 = vld [vmem:[%s8448_s1 + $0x1f4] sm:$0xf0]  ;;  %2435 = vmatpush.bf16.msra.mxu0 %v3549_v3  ;;  %v5247_v15 = vld [vmem:[%s8448_s1 + $0xe4] sm:$0xf0] }
   0x5   :  { %v3741_v12 = vor.u32 %v5281_v10, %v3740_v9  ;;  %2448 = vmatpush.bf16.msra.mxu1 %v3613_v7  ;;  %v3605_v17 = vor.u32 %v5247_v15, %v3604_v14  ;;  %v3668_v18 = vld [vmem:[%s8448_s1 + $0x160] sm:$0xf]  ;;  %v5263_v19 = vld [vmem:[%s8448_s1 + $0x164] sm:$0xf0]  ;;  %v3532_v23 = vld [vmem:[%s8448_s1 + $0x50] sm:$0xf] }
   0x6   :  { %2461 = vmatpush.bf16.msra.mxu2 %v3677_v8  ;;  %v3732_v20 = vld [vmem:[%s8448_s1 + $0x1e0] sm:$0xf]  ;;  %v3669_v21 = vor.u32 %v5263_v19, %v3668_v18  ;;  %v5279_v22 = vld [vmem:[%s8448_s1 + $0x1e4] sm:$0xf0]  ;;  %v5229_v24 = vld [vmem:[%s8448_s1 + $0x54] sm:$0xf0] }
   0x7   :  { %2474 = vmatpush.bf16.msra.mxu3 %v3741_v12  ;;  %v3733_v25 = vor.u32 %v5279_v22, %v3732_v20  ;;  %v3596_v26 = vld [vmem:[%s8448_s1 + $0xd0] sm:$0xf]  ;;  %v5245_v27 = vld [vmem:[%s8448_s1 + $0xd4] sm:$0xf0]  ;;  %v3533_v29 = vor.u32 %v5229_v24, %v3532_v23  ;;  %v3524_v35 = vld [vmem:[%s8448_s1 + $0x40] sm:$0xf] }
   0x8   :  { %v3660_v28 = vld [vmem:[%s8448_s1 + $0x150] sm:$0xf]  ;;  %2436 = vmatpush.bf16.msra.mxu0 %v3541_v16  ;;  %v5261_v30 = vld [vmem:[%s8448_s1 + $0x154] sm:$0xf0]  ;;  %v3597_v33 = vor.u32 %v5245_v27, %v3596_v26  ;;  %v5227_v36 = vld [vmem:[%s8448_s1 + $0x44] sm:$0xf0] }
   0x9   :  { %v3724_v31 = vld [vmem:[%s8448_s1 + $0x1d0] sm:$0xf]  ;;  %v5277_v32 = vld [vmem:[%s8448_s1 + $0x1d4] sm:$0xf0]  ;;  %2449 = vmatpush.bf16.msra.mxu1 %v3605_v17  ;;  %v3661_v34 = vor.u32 %v5261_v30, %v3660_v28  ;;  %v3588_v37 = vld [vmem:[%s8448_s1 + $0xc0] sm:$0xf]  ;;  %v3525_v44 = vor.u32 %v5227_v36, %v3524_v35 }
   0xa   :  { %2462 = vmatpush.bf16.msra.mxu2 %v3669_v21  ;;  %v3725_v38 = vor.u32 %v5277_v32, %v3724_v31  ;;  %v5243_v39 = vld [vmem:[%s8448_s1 + $0xc4] sm:$0xf0]  ;;  %v3652_v40 = vld [vmem:[%s8448_s1 + $0x140] sm:$0xf]  ;;  %v3516_v47 = vld [vmem:[%s8448_s1 + $0x30] sm:$0xf] }
   0xb   :  { %2475 = vmatpush.bf16.msra.mxu3 %v3733_v25  ;;  %v5259_v41 = vld [vmem:[%s8448_s1 + $0x144] sm:$0xf0]  ;;  %v3716_v42 = vld [vmem:[%s8448_s1 + $0x1c0] sm:$0xf]  ;;  %v3589_v45 = vor.u32 %v5243_v39, %v3588_v37  ;;  %v5225_v48 = vld [vmem:[%s8448_s1 + $0x34] sm:$0xf0] }
   0xc   :  { %v5275_v43 = vld [vmem:[%s8448_s1 + $0x1c4] sm:$0xf0]  ;;  %2437 = vmatpush.bf16.msra.mxu0 %v3533_v29  ;;  %v3653_v46 = vor.u32 %v5259_v41, %v3652_v40  ;;  %v3580_v49 = vld [vmem:[%s8448_s1 + $0xb0] sm:$0xf]  ;;  %v5241_v51 = vld [vmem:[%s8448_s1 + $0xb4] sm:$0xf0]  ;;  %v3517_v56 = vor.u32 %v5225_v48, %v3516_v47 }
   0xd   :  { %2450 = vmatpush.bf16.msra.mxu1 %v3597_v33  ;;  %v3717_v50 = vor.u32 %v5275_v43, %v3716_v42  ;;  %v3644_v52 = vld [vmem:[%s8448_s1 + $0x130] sm:$0xf]  ;;  %v5257_v53 = vld [vmem:[%s8448_s1 + $0x134] sm:$0xf0]  ;;  %v3581_v57 = vor.u32 %v5241_v51, %v3580_v49  ;;  %v3508_v59 = vld [vmem:[%s8448_s1 + $0x20] sm:$0xf] }
   0xe   :  { %2463 = vmatpush.bf16.msra.mxu2 %v3661_v34  ;;  %v3708_v54 = vld [vmem:[%s8448_s1 + $0x1b0] sm:$0xf]  ;;  %v5273_v55 = vld [vmem:[%s8448_s1 + $0x1b4] sm:$0xf0]  ;;  %v3645_v58 = vor.u32 %v5257_v53, %v3644_v52  ;;  %v5223_v60 = vld [vmem:[%s8448_s1 + $0x24] sm:$0xf0] }
   0xf   :  { %2476 = vmatpush.bf16.msra.mxu3 %v3725_v38  ;;  %v3572_v61 = vld [vmem:[%s8448_s1 + $0xa0] sm:$0xf]  ;;  %v3709_v62 = vor.u32 %v5273_v55, %v3708_v54  ;;  %v5239_v63 = vld [vmem:[%s8448_s1 + $0xa4] sm:$0xf0]  ;;  %v3509_v4 = vor.u32 %v5223_v60, %v3508_v59  ;;  %v3500_v7 = vld [vmem:[%s8448_s1 + $0x10] sm:$0xf] }
  0x10   :  { %2438 = vmatpush.bf16.msra.mxu0 %v3525_v44  ;;  %v3636_v0 = vld [vmem:[%s8448_s1 + $0x120] sm:$0xf]  ;;  %v5255_v1 = vld [vmem:[%s8448_s1 + $0x124] sm:$0xf0]  ;;  %v3573_v5 = vor.u32 %v5239_v63, %v3572_v61  ;;  %v5221_v8 = vld [vmem:[%s8448_s1 + $0x14] sm:$0xf0] }
  0x11   :  { %2451 = vmatpush.bf16.msra.mxu1 %v3589_v45  ;;  %v3700_v2 = vld [vmem:[%s8448_s1 + $0x1a0] sm:$0xf]  ;;  %v5271_v3 = vld [vmem:[%s8448_s1 + $0x1a4] sm:$0xf0]  ;;  %v3637_v6 = vor.u32 %v5255_v1, %v3636_v0  ;;  %v3564_v9 = vld [vmem:[%s8448_s1 + $0x90] sm:$0xf]  ;;  %v3501_v16 = vor.u32 %v5221_v8, %v3500_v7 }
  0x12   :  { %2464 = vmatpush.bf16.msra.mxu2 %v3653_v46  ;;  %v3701_v10 = vor.u32 %v5271_v3, %v3700_v2  ;;  %v5237_v11 = vld [vmem:[%s8448_s1 + $0x94] sm:$0xf0]  ;;  %v3628_v12 = vld [vmem:[%s8448_s1 + $0x110] sm:$0xf]  ;;  %v3492_v17 = vld [vmem:[%s8448_s1] sm:$0xf] }
  0x13   :  { %2477 = vmatpush.bf16.msra.mxu3 %v3717_v50  ;;  %v5253_v13 = vld [vmem:[%s8448_s1 + $0x114] sm:$0xf0]  ;;  %v3692_v14 = vld [vmem:[%s8448_s1 + $0x190] sm:$0xf]  ;;  %v5219_v18 = vld [vmem:[%s8448_s1 + $0x4] sm:$0xf0]  ;;  %v3565_v19 = vor.u32 %v5237_v11, %v3564_v9 }
  0x14   :  { %2439 = vmatpush.bf16.msra.mxu0 %v3517_v56  ;;  %v5269_v15 = vld [vmem:[%s8448_s1 + $0x194] sm:$0xf0]  ;;  %v3629_v20 = vor.u32 %v5253_v13, %v3628_v12  ;;  %v3556_v21 = vld [vmem:[%s8448_s1 + $0x80] sm:$0xf]  ;;  %v5235_v22 = vld [vmem:[%s8448_s1 + $0x84] sm:$0xf0]  ;;  %v3493_v31 = vor.u32 %v5219_v18, %v3492_v17 }
  0x15   :  { %2452 = vmatpush.bf16.msra.mxu1 %v3581_v57  ;;  %v3620_v23 = vld [vmem:[%s8448_s1 + $0x100] sm:$0xf]  ;;  %v3693_v24 = vor.u32 %v5269_v15, %v3692_v14  ;;  %v5251_v25 = vld [vmem:[%s8448_s1 + $0x104] sm:$0xf0]  ;;  %v3804_v28 = vld [vmem:[%s8448_s1 + $0x270] sm:$0xf]  ;;  %v3557_v35 = vor.u32 %v5235_v22, %v3556_v21 }
  0x16   :  { %2465 = vmatpush.bf16.msra.mxu2 %v3645_v58  ;;  %v3684_v26 = vld [vmem:[%s8448_s1 + $0x180] sm:$0xf]  ;;  %v5267_v27 = vld [vmem:[%s8448_s1 + $0x184] sm:$0xf0]  ;;  %v5297_v29 = vld [vmem:[%s8448_s1 + $0x274] sm:$0xf0]  ;;  %v3621_v36 = vor.u32 %v5251_v25, %v3620_v23 }
  0x17   :  { %2478 = vmatpush.bf16.msra.mxu3 %v3709_v62  ;;  %v3868_v30 = vld [vmem:[%s8448_s1 + $0x2f0] sm:$0xf]  ;;  %v5313_v32 = vld [vmem:[%s8448_s1 + $0x2f4] sm:$0xf0]  ;;  %v3685_v39 = vor.u32 %v5267_v27, %v3684_v26  ;;  %v3805_v40 = vor.u32 %v5297_v29, %v3804_v28  ;;  %v3796_v43 = vld [vmem:[%s8448_s1 + $0x260] sm:$0xf] }
  0x18   :  { %2440 = vmatpush.bf16.msra.mxu0 %v3509_v4  ;;  %v3932_v33 = vld [vmem:[%s8448_s1 + $0x370] sm:$0xf]  ;;  %v5329_v34 = vld [vmem:[%s8448_s1 + $0x374] sm:$0xf0]  ;;  %v3869_v41 = vor.u32 %v5313_v32, %v3868_v30  ;;  %v5295_v44 = vld [vmem:[%s8448_s1 + $0x264] sm:$0xf0] }
  0x19   :  { %2453 = vmatpush.bf16.msra.mxu1 %v3573_v5  ;;  %v3996_v37 = vld [vmem:[%s8448_s1 + $0x3f0] sm:$0xf]  ;;  %v5345_v38 = vld [vmem:[%s8448_s1 + $0x3f4] sm:$0xf0]  ;;  %v3933_v42 = vor.u32 %v5329_v34, %v3932_v33  ;;  %v3860_v45 = vld [vmem:[%s8448_s1 + $0x2e0] sm:$0xf]  ;;  %v3797_v52 = vor.u32 %v5295_v44, %v3796_v43 }
  0x1a   :  { %2466 = vmatpush.bf16.msra.mxu2 %v3637_v6  ;;  %v3997_v46 = vor.u32 %v5345_v38, %v3996_v37  ;;  %v5311_v47 = vld [vmem:[%s8448_s1 + $0x2e4] sm:$0xf0]  ;;  %v3924_v48 = vld [vmem:[%s8448_s1 + $0x360] sm:$0xf]  ;;  %v3788_v53 = vld [vmem:[%s8448_s1 + $0x250] sm:$0xf] }
  0x1b   :  { %2479 = vmatpush.bf16.msra.mxu3 %v3701_v10  ;;  %v5327_v49 = vld [vmem:[%s8448_s1 + $0x364] sm:$0xf0]  ;;  %v3988_v50 = vld [vmem:[%s8448_s1 + $0x3e0] sm:$0xf]  ;;  %v3861_v54 = vor.u32 %v5311_v47, %v3860_v45  ;;  %v5293_v56 = vld [vmem:[%s8448_s1 + $0x254] sm:$0xf0] }
  0x1c   :  { %2441 = vmatpush.bf16.msra.mxu0 %v3501_v16  ;;  %v5343_v51 = vld [vmem:[%s8448_s1 + $0x3e4] sm:$0xf0]  ;;  %v3925_v55 = vor.u32 %v5327_v49, %v3924_v48  ;;  %v3852_v57 = vld [vmem:[%s8448_s1 + $0x2d0] sm:$0xf]  ;;  %v5309_v58 = vld [vmem:[%s8448_s1 + $0x2d4] sm:$0xf0]  ;;  %v3789_v0 = vor.u32 %v5293_v56, %v3788_v53 }
  0x1d   :  { %2454 = vmatpush.bf16.msra.mxu1 %v3565_v19  ;;  %v3989_v59 = vor.u32 %v5343_v51, %v3988_v50  ;;  %v3916_v60 = vld [vmem:[%s8448_s1 + $0x350] sm:$0xf]  ;;  %v5325_v61 = vld [vmem:[%s8448_s1 + $0x354] sm:$0xf0]  ;;  %v3853_v1 = vor.u32 %v5309_v58, %v3852_v57  ;;  %v28_v2 = vld [vmem:[%s8447_s0 + $0x8] sm:$0xff] }
  0x1e   :  { %2467 = vmatpush.bf16.msra.mxu2 %v3629_v20  ;;  %v3980_v62 = vld [vmem:[%s8448_s1 + $0x3d0] sm:$0xf]  ;;  %v5341_v63 = vld [vmem:[%s8448_s1 + $0x3d4] sm:$0xf0]  ;;  %v27_v3 = vld [vmem:[%s8447_s0] sm:$0xff]  ;;  %v3917_v4 = vor.u32 %v5325_v61, %v3916_v60  ;;  %v445_v8 = vunpack.c.l.b16 %v28_v2  ;;  %v446_v10 = vunpack.c.h.b16 %v28_v2 }
  0x1f   :  { %2480 = vmatpush.bf16.msra.mxu3 %v3693_v24  ;;  %v3780_v5 = vld [vmem:[%s8448_s1 + $0x240] sm:$0xf]  ;;  %v5291_v6 = vld [vmem:[%s8448_s1 + $0x244] sm:$0xf0]  ;;  %v443_v9 = vunpack.c.l.b16 %v27_v3  ;;  %v3981_v11 = vor.u32 %v5341_v63, %v3980_v62  ;;  %v444_v15 = vunpack.c.h.b16 %v27_v3  ;;  %v3772_v25 = vld [vmem:[%s8448_s1 + $0x230] sm:$0xf] }
  0x20   :  { %2442 = vmatpush.bf16.msra.mxu0 %v3493_v31  ;;  %v3844_v7 = vld [vmem:[%s8448_s1 + $0x2c0] sm:$0xf]  ;;  %v5307_v12 = vld [vmem:[%s8448_s1 + $0x2c4] sm:$0xf0]  ;;  %v6014_v18 = vpack.c.b16 %v445_v8, %v445_v8  ;;  %v6018_v20 = vpack.c.b16 %v446_v10, %v446_v10  ;;  %v3781_v21 = vor.u32 %v5291_v6, %v3780_v5  ;;  %v5289_v26 = vld [vmem:[%s8448_s1 + $0x234] sm:$0xf0] }
  0x21   :  { %2455 = vmatpush.bf16.msra.mxu1 %v3557_v35  ;;  %v3908_v13 = vld [vmem:[%s8448_s1 + $0x340] sm:$0xf]  ;;  %v5323_v14 = vld [vmem:[%s8448_s1 + $0x344] sm:$0xf0]  ;;  %v6016_v19 = vpack.c.b16 %v443_v9, %v443_v9  ;;  %v6020_v22 = vpack.c.b16 %v444_v15, %v444_v15  ;;  %v3845_v23 = vor.u32 %v5307_v12, %v3844_v7  ;;  %v3836_v27 = vld [vmem:[%s8448_s1 + $0x2b0] sm:$0xf]  ;;  %v3773_v34 = vor.u32 %v5289_v26, %v3772_v25 }
  0x22   :  { %2468 = vmatpush.bf16.msra.mxu2 %v3621_v36  ;;  %v3972_v16 = vld [vmem:[%s8448_s1 + $0x3c0] sm:$0xf]  ;;  %v5339_v17 = vld [vmem:[%s8448_s1 + $0x3c4] sm:$0xf0]  ;;  %v3909_v24 = vor.u32 %v5323_v14, %v3908_v13  ;;  %v5305_v29 = vld [vmem:[%s8448_s1 + $0x2b4] sm:$0xf0] }
  0x23   :  { %2481 = vmatpush.bf16.msra.mxu3 %v3685_v39  ;;  %v3973_v28 = vor.u32 %v5339_v17, %v3972_v16  ;;  %v3900_v30 = vld [vmem:[%s8448_s1 + $0x330] sm:$0xf]  ;;  %v5321_v31 = vld [vmem:[%s8448_s1 + $0x334] sm:$0xf0]  ;;  %2443 = vmatmul.bf16.vlgmr.msra.gmra.mxu0 %v6016_v19  ;;  %v3837_v35 = vor.u32 %v5305_v29, %v3836_v27  ;;  %v3764_v37 = vld [vmem:[%s8448_s1 + $0x220] sm:$0xf] }
  0x24   :  { %2487 = vmatpush.bf16.msrb.mxu0 %v3805_v40  ;;  %v3964_v32 = vld [vmem:[%s8448_s1 + $0x3b0] sm:$0xf]  ;;  %v5337_v33 = vld [vmem:[%s8448_s1 + $0x3b4] sm:$0xf0]  ;;  %2456 = vmatmul.bf16.vlgmr.msra.gmra.mxu1 %v6020_v22  ;;  %v3901_v36 = vor.u32 %v5321_v31, %v3900_v30  ;;  %v5287_v38 = vld [vmem:[%s8448_s1 + $0x224] sm:$0xf0] }
  0x25   :  { %2500 = vmatpush.bf16.msrb.mxu1 %v3869_v41  ;;  %2469 = vmatmul.bf16.vlgmr.msra.gmra.mxu2 %v6014_v18  ;;  %v3828_v39 = vld [vmem:[%s8448_s1 + $0x2a0] sm:$0xf]  ;;  %v3965_v40 = vor.u32 %v5337_v33, %v3964_v32  ;;  %v5303_v41 = vld [vmem:[%s8448_s1 + $0x2a4] sm:$0xf0]  ;;  %v3756_v49 = vld [vmem:[%s8448_s1 + $0x210] sm:$0xf] }
  0x26   :  { %2513 = vmatpush.bf16.msrb.mxu2 %v3933_v42  ;;  %2482 = vmatmul.bf16.vlgmr.msra.gmra.mxu3 %v6018_v20  ;;  %v3892_v42 = vld [vmem:[%s8448_s1 + $0x320] sm:$0xf]  ;;  %v5319_v43 = vld [vmem:[%s8448_s1 + $0x324] sm:$0xf0]  ;;  %v3829_v47 = vor.u32 %v5303_v41, %v3828_v39  ;;  %v5285_v50 = vld [vmem:[%s8448_s1 + $0x214] sm:$0xf0] }
  0x27   :  { %2526 = vmatpush.bf16.msrb.mxu3 %v3997_v46  ;;  %v3956_v44 = vld [vmem:[%s8448_s1 + $0x3a0] sm:$0xf]  ;;  %v5335_v45 = vld [vmem:[%s8448_s1 + $0x3a4] sm:$0xf0]  ;;  %v3765_v46 = vor.u32 %v5287_v38, %v3764_v37  ;;  %v3893_v48 = vor.u32 %v5319_v43, %v3892_v42  ;;  %v3820_v51 = vld [vmem:[%s8448_s1 + $0x290] sm:$0xf] }
  0x28   :  { %2488 = vmatpush.bf16.msrb.mxu0 %v3797_v52  ;;  %v3957_v52 = vor.u32 %v5335_v45, %v3956_v44  ;;  %v5301_v53 = vld [vmem:[%s8448_s1 + $0x294] sm:$0xf0]  ;;  %v3948_v56 = vld [vmem:[%s8448_s1 + $0x390] sm:$0xf]  ;;  %v3748_v58 = vld [vmem:[%s8448_s1 + $0x200] sm:$0xf] }
  0x29   :  { %2501 = vmatpush.bf16.msrb.mxu1 %v3861_v54  ;;  %v3884_v54 = vld [vmem:[%s8448_s1 + $0x310] sm:$0xf]  ;;  %v5333_v57 = vld [vmem:[%s8448_s1 + $0x394] sm:$0xf0]  ;;  %v5283_v60 = vld [vmem:[%s8448_s1 + $0x204] sm:$0xf0]  ;;  %v3821_v63 = vor.u32 %v5301_v53, %v3820_v51 }
  0x2a   :  { %2514 = vmatpush.bf16.msrb.mxu2 %v3925_v55  ;;  %v5317_v55 = vld [vmem:[%s8448_s1 + $0x314] sm:$0xf0]  ;;  %v3812_v61 = vld [vmem:[%s8448_s1 + $0x280] sm:$0xf]  ;;  %v5299_v62 = vld [vmem:[%s8448_s1 + $0x284] sm:$0xf0] }
  0x2b   :  { %2527 = vmatpush.bf16.msrb.mxu3 %v3989_v59  ;;  %v3757_v59 = vor.u32 %v5285_v50, %v3756_v49  ;;  %v5315_v2 = vld [vmem:[%s8448_s1 + $0x304] sm:$0xf0]  ;;  %v30_v3 = vld [vmem:[%s8447_s0 + $0x18] sm:$0xff]  ;;  %v3940_v5 = vld [vmem:[%s8448_s1 + $0x380] sm:$0xf]  ;;  %v3813_v16 = vor.u32 %v5299_v62, %v3812_v61 }
  0x2c   :  { %2489 = vmatpush.bf16.msrb.mxu0 %v3789_v0  ;;  %v3885_v0 = vor.u32 %v5317_v55, %v3884_v54  ;;  %v5331_v6 = vld [vmem:[%s8448_s1 + $0x384] sm:$0xf0]  ;;  %v29_v7 = vld [vmem:[%s8447_s0 + $0x10] sm:$0xff]  ;;  %v5361_v9 = vld [vmem:[%s8448_s1 + $0x474] sm:$0xf0]  ;;  %v449_v15 = vunpack.c.l.b16 %v30_v3  ;;  %v450_v25 = vunpack.c.h.b16 %v30_v3 }
  0x2d   :  { %2502 = vmatpush.bf16.msrb.mxu1 %v3853_v1  ;;  %v3876_v1 = vld [vmem:[%s8448_s1 + $0x300] sm:$0xf]  ;;  %v4060_v8 = vld [vmem:[%s8448_s1 + $0x470] sm:$0xf]  ;;  %v5377_v12 = vld [vmem:[%s8448_s1 + $0x4f4] sm:$0xf0]  ;;  %v3941_v26 = vor.u32 %v5331_v6, %v3940_v5 }
  0x2e   :  { %2515 = vmatpush.bf16.msrb.mxu2 %v3917_v4  ;;  %v3949_v4 = vor.u32 %v5333_v57, %v3948_v56  ;;  %v4124_v10 = vld [vmem:[%s8448_s1 + $0x4f0] sm:$0xf]  ;;  %v5393_v14 = vld [vmem:[%s8448_s1 + $0x574] sm:$0xf0]  ;;  %v3877_v17 = vor.u32 %v5315_v2, %v3876_v1  ;;  %v4061_v27 = vor.u32 %v5361_v9, %v4060_v8  ;;  %v4052_v31 = vld [vmem:[%s8448_s1 + $0x460] sm:$0xf]  ;;  %v6170_v38 = vpack.c.b16 %v449_v15, %v449_v15 }
  0x2f   :  { %2528 = vmatpush.bf16.msrb.mxu3 %v3981_v11  ;;  %v3749_v11 = vor.u32 %v5283_v60, %v3748_v58  ;;  %v4188_v13 = vld [vmem:[%s8448_s1 + $0x570] sm:$0xf]  ;;  %v4125_v29 = vor.u32 %v5377_v12, %v4124_v10  ;;  %v5359_v32 = vld [vmem:[%s8448_s1 + $0x464] sm:$0xf0]  ;;  %v4116_v33 = vld [vmem:[%s8448_s1 + $0x4e0] sm:$0xf]  ;;  %v6180_v42 = vpack.c.b16 %v450_v25, %v450_v25 }
  0x30   :  { %2490 = vmatpush.bf16.msrb.mxu0 %v3781_v21  ;;  %v4252_v21 = vld [vmem:[%s8448_s1 + $0x5f0] sm:$0xf]  ;;  %v4189_v30 = vor.u32 %v5393_v14, %v4188_v13  ;;  %v5391_v37 = vld [vmem:[%s8448_s1 + $0x564] sm:$0xf0]  ;;  %v4244_v39 = vld [vmem:[%s8448_s1 + $0x5e0] sm:$0xf]  ;;  %v4053_v43 = vor.u32 %v5359_v32, %v4052_v31 }
  0x31   :  { %2503 = vmatpush.bf16.msrb.mxu1 %v3845_v23  ;;  %v5409_v23 = vld [vmem:[%s8448_s1 + $0x5f4] sm:$0xf0]  ;;  %v4108_v49 = vld [vmem:[%s8448_s1 + $0x4d0] sm:$0xf]  ;;  %v5355_v60 = vld [vmem:[%s8448_s1 + $0x444] sm:$0xf0] }
  0x32   :  { %2516 = vmatpush.bf16.msrb.mxu2 %v3909_v24  ;;  %v447_v24 = vunpack.c.l.b16 %v29_v7  ;;  %v5373_v51 = vld [vmem:[%s8448_s1 + $0x4d4] sm:$0xf0]  ;;  %v4236_v54 = vld [vmem:[%s8448_s1 + $0x5d0] sm:$0xf]  ;;  %v4100_v61 = vld [vmem:[%s8448_s1 + $0x4c0] sm:$0xf] }
  0x33   :  { %2529 = vmatpush.bf16.msrb.mxu3 %v3973_v28  ;;  %v448_v28 = vunpack.c.h.b16 %v29_v7  ;;  %v5389_v53 = vld [vmem:[%s8448_s1 + $0x554] sm:$0xf0]  ;;  %v4109_v57 = vor.u32 %v5373_v51, %v4108_v49  ;;  %v5387_v1 = vld [vmem:[%s8448_s1 + $0x544] sm:$0xf0]  ;;  %v4228_v2 = vld [vmem:[%s8448_s1 + $0x5c0] sm:$0xf] }
  0x34   :  { %2491 = vmatpush.bf16.msrb.mxu0 %v3773_v34  ;;  %v4253_v34 = vor.u32 %v5409_v23, %v4252_v21  ;;  %v6178_v41 = vpack.c.b16 %v447_v24, %v447_v24  ;;  %v5405_v55 = vld [vmem:[%s8448_s1 + $0x5d4] sm:$0xf0]  ;;  %v5403_v3 = vld [vmem:[%s8448_s1 + $0x5c4] sm:$0xf0]  ;;  %v4028_v7 = vld [vmem:[%s8448_s1 + $0x430] sm:$0xf] }
  0x35   :  { %2504 = vmatpush.bf16.msrb.mxu1 %v3837_v35  ;;  %v5375_v35 = vld [vmem:[%s8448_s1 + $0x4e4] sm:$0xf0]  ;;  %v6182_v44 = vpack.c.b16 %v448_v28, %v448_v28  ;;  %v4237_v62 = vor.u32 %v5405_v55, %v4236_v54  ;;  %v5353_v8 = vld [vmem:[%s8448_s1 + $0x434] sm:$0xf0]  ;;  %v4092_v9 = vld [vmem:[%s8448_s1 + $0x4b0] sm:$0xf]  ;;  %v4229_v10 = vor.u32 %v5403_v3, %v4228_v2 }
  0x36   :  { %2517 = vmatpush.bf16.msrb.mxu2 %v3901_v36  ;;  %v4180_v36 = vld [vmem:[%s8448_s1 + $0x560] sm:$0xf]  ;;  %v4117_v45 = vor.u32 %v5375_v35, %v4116_v33  ;;  %v4156_v12 = vld [vmem:[%s8448_s1 + $0x530] sm:$0xf]  ;;  %v5385_v13 = vld [vmem:[%s8448_s1 + $0x534] sm:$0xf0] }
  0x37   :  { %2530 = vmatpush.bf16.msrb.mxu3 %v3965_v40  ;;  %v5407_v40 = vld [vmem:[%s8448_s1 + $0x5e4] sm:$0xf0]  ;;  %v4220_v14 = vld [vmem:[%s8448_s1 + $0x5b0] sm:$0xf]  ;;  %v5401_v15 = vld [vmem:[%s8448_s1 + $0x5b4] sm:$0xf0]  ;;  %v4157_v21 = vor.u32 %v5385_v13, %v4156_v12 }
  0x38   :  { %2492 = vmatpush.bf16.msrb.mxu0 %v3765_v46  ;;  %v4181_v46 = vor.u32 %v5391_v37, %v4180_v36  ;;  %v4245_v50 = vor.u32 %v5407_v40, %v4244_v39  ;;  %v4020_v23 = vld [vmem:[%s8448_s1 + $0x420] sm:$0xf]  ;;  %v5351_v24 = vld [vmem:[%s8448_s1 + $0x424] sm:$0xf0]  ;;  %v4012_v33 = vld [vmem:[%s8448_s1 + $0x410] sm:$0xf] }
  0x39   :  { %2505 = vmatpush.bf16.msrb.mxu1 %v3829_v47  ;;  %v4044_v47 = vld [vmem:[%s8448_s1 + $0x450] sm:$0xf]  ;;  %v4084_v25 = vld [vmem:[%s8448_s1 + $0x4a0] sm:$0xf]  ;;  %v5399_v31 = vld [vmem:[%s8448_s1 + $0x5a4] sm:$0xf0]  ;;  %v4021_v32 = vor.u32 %v5351_v24, %v4020_v23 }
  0x3a   :  { %2518 = vmatpush.bf16.msrb.mxu2 %v3893_v48  ;;  %v5357_v48 = vld [vmem:[%s8448_s1 + $0x454] sm:$0xf0]  ;;  %v4148_v28 = vld [vmem:[%s8448_s1 + $0x520] sm:$0xf]  ;;  %v4076_v37 = vld [vmem:[%s8448_s1 + $0x490] sm:$0xf] }
  0x3b   :  { %2531 = vmatpush.bf16.msrb.mxu3 %v3957_v52  ;;  %v4172_v52 = vld [vmem:[%s8448_s1 + $0x550] sm:$0xf]  ;;  %v4045_v56 = vor.u32 %v5357_v48, %v4044_v47  ;;  %v5365_v39 = vld [vmem:[%s8448_s1 + $0x494] sm:$0xf0]  ;;  %v4004_v48 = vld [vmem:[%s8448_s1 + $0x400] sm:$0xf] }
  0x3c   :  { %2493 = vmatpush.bf16.msrb.mxu0 %v3757_v59  ;;  %v4173_v58 = vor.u32 %v5389_v53, %v4172_v52  ;;  %v4036_v59 = vld [vmem:[%s8448_s1 + $0x440] sm:$0xf]  ;;  %v4140_v40 = vld [vmem:[%s8448_s1 + $0x510] sm:$0xf]  ;;  %v5397_v47 = vld [vmem:[%s8448_s1 + $0x594] sm:$0xf0] }
  0x3d   :  { %2506 = vmatpush.bf16.msrb.mxu1 %v3821_v63  ;;  %v5371_v63 = vld [vmem:[%s8448_s1 + $0x4c4] sm:$0xf0] }
  0x3e   :  { %2519 = vmatpush.bf16.msrb.mxu2 %v3885_v0  ;;  %v4164_v0 = vld [vmem:[%s8448_s1 + $0x540] sm:$0xf]  ;;  %v4101_v5 = vor.u32 %v5371_v63, %v4100_v61 }
  0x3f   :  { %2532 = vmatpush.bf16.msrb.mxu3 %v3949_v4  ;;  %v4037_v4 = vor.u32 %v5355_v60, %v4036_v59  ;;  %v4165_v6 = vor.u32 %v5387_v1, %v4164_v0 }
  0x40   :  { %2494 = vmatpush.bf16.msrb.mxu0 %v3749_v11  ;;  %v5369_v11 = vld [vmem:[%s8448_s1 + $0x4b4] sm:$0xf0] }
  0x41   :  { %2507 = vmatpush.bf16.msrb.mxu1 %v3813_v16  ;;  %v4029_v16 = vor.u32 %v5353_v8, %v4028_v7 }
  0x42   :  { %2520 = vmatpush.bf16.msrb.mxu2 %v3877_v17  ;;  %v4093_v17 = vor.u32 %v5369_v11, %v4092_v9 }
  0x43   :  { %2533 = vmatpush.bf16.msrb.mxu3 %v3941_v26  ;;  %2495 = vmatmul.bf16.vlgmr.msrb.gmra.mxu0 %v6178_v41  ;;  %v4221_v26 = vor.u32 %v5401_v15, %v4220_v14 }
  0x44   :  { %2539 = vmatpush.bf16.msra.mxu0 %v4061_v27  ;;  %2508 = vmatmul.bf16.vlgmr.msrb.gmra.mxu1 %v6182_v44  ;;  %v5367_v27 = vld [vmem:[%s8448_s1 + $0x4a4] sm:$0xf0] }
  0x45   :  { %2552 = vmatpush.bf16.msra.mxu1 %v4125_v29  ;;  %2521 = vmatmul.bf16.vlgmr.msrb.gmra.mxu2 %v6170_v38  ;;  %v5383_v29 = vld [vmem:[%s8448_s1 + $0x524] sm:$0xf0]  ;;  %v4085_v35 = vor.u32 %v5367_v27, %v4084_v25 }
  0x46   :  { %2565 = vmatpush.bf16.msra.mxu2 %v4189_v30  ;;  %2534 = vmatmul.bf16.vlgmr.msrb.gmra.mxu3 %v6180_v42  ;;  %v4212_v30 = vld [vmem:[%s8448_s1 + $0x5a0] sm:$0xf]  ;;  %v4149_v36 = vor.u32 %v5383_v29, %v4148_v28 }
  0x47   :  { %2578 = vmatpush.bf16.msra.mxu3 %v4253_v34  ;;  %v5349_v34 = vld [vmem:[%s8448_s1 + $0x414] sm:$0xf0] }
  0x48   :  { %2540 = vmatpush.bf16.msra.mxu0 %v4053_v43  ;;  %v4213_v43 = vor.u32 %v5399_v31, %v4212_v30 }
  0x49   :  { %2553 = vmatpush.bf16.msra.mxu1 %v4117_v45  ;;  %v5381_v45 = vld [vmem:[%s8448_s1 + $0x514] sm:$0xf0] }
  0x4a   :  { %2566 = vmatpush.bf16.msra.mxu2 %v4181_v46  ;;  %v4204_v46 = vld [vmem:[%s8448_s1 + $0x590] sm:$0xf] }
  0x4b   :  { %2579 = vmatpush.bf16.msra.mxu3 %v4245_v50 }
  0x4c   :  { %2541 = vmatpush.bf16.msra.mxu0 %v4045_v56 }
  0x4d   :  { %2554 = vmatpush.bf16.msra.mxu1 %v4109_v57 }
  0x4e   :  { %2567 = vmatpush.bf16.msra.mxu2 %v4173_v58 }
  0x4f   :  { %2580 = vmatpush.bf16.msra.mxu3 %v4237_v62 }
  0x50   :  { %2542 = vmatpush.bf16.msra.mxu0 %v4037_v4 }
  0x51   :  { %2555 = vmatpush.bf16.msra.mxu1 %v4101_v5 }
  0x52   :  { %2568 = vmatpush.bf16.msra.mxu2 %v4165_v6 }
  0x53   :  { %2581 = vmatpush.bf16.msra.mxu3 %v4229_v10 }
  0x54   :  { %2543 = vmatpush.bf16.msra.mxu0 %v4029_v16 }
  0x55   :  { %2556 = vmatpush.bf16.msra.mxu1 %v4093_v17 }
  0x56   :  { %2569 = vmatpush.bf16.msra.mxu2 %v4157_v21 }
  0x57   :  { %2582 = vmatpush.bf16.msra.mxu3 %v4221_v26 }
  0x58   :  { %12 = vsyncpa [#allocation3], 0  ;;  %2544 = vmatpush.bf16.msra.mxu0 %v4021_v32  ;;  %v4013_v49 = vor.u32 %v5349_v34, %v4012_v33  ;;  %v5347_v50 = vld [vmem:[%s8448_s1 + $0x404] sm:$0xf0]  ;;  %v4068_v51 = vld [vmem:[%s8448_s1 + $0x480] sm:$0xf]  ;;  %v4077_v53 = vor.u32 %v5365_v39, %v4076_v37  ;;  %v4141_v54 = vor.u32 %v5381_v45, %v4140_v40  ;;  %v4205_v58 = vor.u32 %v5397_v47, %v4204_v46 }
  0x59   :  { %v5363_v52 = vld [vmem:[%s8448_s1 + $0x484] sm:$0xf0]  ;;  %2557 = vmatpush.bf16.msra.mxu1 %v4085_v35  ;;  %v4132_v55 = vld [vmem:[%s8448_s1 + $0x500] sm:$0xf]  ;;  %v4316_v62 = vld [vmem:[%s8448_s1 + $0x670] sm:$0xf]  ;;  %v4005_v1 = vor.u32 %v5347_v50, %v4004_v48 }
  0x5a   :  { %2570 = vmatpush.bf16.msra.mxu2 %v4149_v36  ;;  %v5379_v56 = vld [vmem:[%s8448_s1 + $0x504] sm:$0xf0]  ;;  %v31_v57 = vld [vmem:[%s8447_s0 + $0x20] sm:$0xff]  ;;  %v5425_v63 = vld [vmem:[%s8448_s1 + $0x674] sm:$0xf0]  ;;  %v4069_v6 = vor.u32 %v5363_v52, %v4068_v51 }
  0x5b   :  { %2583 = vmatpush.bf16.msra.mxu3 %v4213_v43  ;;  %v4196_v59 = vld [vmem:[%s8448_s1 + $0x580] sm:$0xf]  ;;  %v5395_v60 = vld [vmem:[%s8448_s1 + $0x584] sm:$0xf0]  ;;  %v4380_v0 = vld [vmem:[%s8448_s1 + $0x6f0] sm:$0xf]  ;;  %v451_v5 = vunpack.c.l.b16 %v31_v57  ;;  %v4133_v7 = vor.u32 %v5379_v56, %v4132_v55  ;;  %v452_v11 = vunpack.c.h.b16 %v31_v57  ;;  %v4317_v13 = vor.u32 %v5425_v63, %v4316_v62 }
  0x5c   :  { %v32_v61 = vld [vmem:[%s8447_s0 + $0x28] sm:$0xff]  ;;  %2545 = vmatpush.bf16.msra.mxu0 %v4013_v49  ;;  %v5441_v2 = vld [vmem:[%s8448_s1 + $0x6f4] sm:$0xf0]  ;;  %v4444_v3 = vld [vmem:[%s8448_s1 + $0x770] sm:$0xf]  ;;  %v4197_v12 = vor.u32 %v5395_v60, %v4196_v59 }
  0x5d   :  { %v5457_v4 = vld [vmem:[%s8448_s1 + $0x774] sm:$0xf0]  ;;  %2558 = vmatpush.bf16.msra.mxu1 %v4077_v53  ;;  %v4508_v8 = vld [vmem:[%s8448_s1 + $0x7f0] sm:$0xf]  ;;  %v453_v10 = vunpack.c.l.b16 %v32_v61  ;;  %v454_v14 = vunpack.c.h.b16 %v32_v61  ;;  %v4381_v15 = vor.u32 %v5441_v2, %v4380_v0  ;;  %v4308_v17 = vld [vmem:[%s8448_s1 + $0x660] sm:$0xf]  ;;  %v6371_v25 = vpack.c.b16 %v451_v5, %v451_v5 }
  0x5e   :  { %2571 = vmatpush.bf16.msra.mxu2 %v4141_v54  ;;  %v5473_v9 = vld [vmem:[%s8448_s1 + $0x7f4] sm:$0xf0]  ;;  %v4445_v16 = vor.u32 %v5457_v4, %v4444_v3  ;;  %v5423_v21 = vld [vmem:[%s8448_s1 + $0x664] sm:$0xf0]  ;;  %v4372_v23 = vld [vmem:[%s8448_s1 + $0x6e0] sm:$0xf]  ;;  %v6384_v30 = vpack.c.b16 %v452_v11, %v452_v11 }
  0x5f   :  { %2584 = vmatpush.bf16.msra.mxu3 %v4205_v58  ;;  %v4509_v24 = vor.u32 %v5473_v9, %v4508_v8  ;;  %v5439_v26 = vld [vmem:[%s8448_s1 + $0x6e4] sm:$0xf0]  ;;  %v4436_v27 = vld [vmem:[%s8448_s1 + $0x760] sm:$0xf]  ;;  %v6382_v29 = vpack.c.b16 %v453_v10, %v453_v10  ;;  %v6392_v33 = vpack.c.b16 %v454_v14, %v454_v14  ;;  %v4309_v34 = vor.u32 %v5423_v21, %v4308_v17  ;;  %v4300_v37 = vld [vmem:[%s8448_s1 + $0x650] sm:$0xf] }
  0x60   :  { %2546 = vmatpush.bf16.msra.mxu0 %v4005_v1  ;;  %v5455_v28 = vld [vmem:[%s8448_s1 + $0x764] sm:$0xf0]  ;;  %v4500_v31 = vld [vmem:[%s8448_s1 + $0x7e0] sm:$0xf]  ;;  %v4373_v35 = vor.u32 %v5439_v26, %v4372_v23  ;;  %v5421_v39 = vld [vmem:[%s8448_s1 + $0x654] sm:$0xf0] }
  0x61   :  { %2559 = vmatpush.bf16.msra.mxu1 %v4069_v6  ;;  %v5471_v32 = vld [vmem:[%s8448_s1 + $0x7e4] sm:$0xf0]  ;;  %v4437_v36 = vor.u32 %v5455_v28, %v4436_v27  ;;  %v4364_v40 = vld [vmem:[%s8448_s1 + $0x6d0] sm:$0xf]  ;;  %v5437_v45 = vld [vmem:[%s8448_s1 + $0x6d4] sm:$0xf0]  ;;  %v4301_v50 = vor.u32 %v5421_v39, %v4300_v37 }
  0x62   :  { %2572 = vmatpush.bf16.msra.mxu2 %v4133_v7  ;;  %v4501_v43 = vor.u32 %v5471_v32, %v4500_v31  ;;  %v4428_v46 = vld [vmem:[%s8448_s1 + $0x750] sm:$0xf]  ;;  %v5453_v47 = vld [vmem:[%s8448_s1 + $0x754] sm:$0xf0]  ;;  %v4365_v51 = vor.u32 %v5437_v45, %v4364_v40  ;;  %v4292_v53 = vld [vmem:[%s8448_s1 + $0x640] sm:$0xf] }
  0x63   :  { %2585 = vmatpush.bf16.msra.mxu3 %v4197_v12  ;;  %2547 = vmatmul.bf16.vlgmr.msra.gmra.mxu0 %v6371_v25  ;;  %v4492_v48 = vld [vmem:[%s8448_s1 + $0x7d0] sm:$0xf]  ;;  %v5469_v49 = vld [vmem:[%s8448_s1 + $0x7d4] sm:$0xf0]  ;;  %v4429_v52 = vor.u32 %v5453_v47, %v4428_v46  ;;  %v5419_v54 = vld [vmem:[%s8448_s1 + $0x644] sm:$0xf0] }
  0x64   :  { %2591 = vmatpush.bf16.msrb.mxu0 %v4317_v13  ;;  %2560 = vmatmul.bf16.vlgmr.msra.gmra.mxu1 %v6384_v30  ;;  %v4356_v55 = vld [vmem:[%s8448_s1 + $0x6c0] sm:$0xf]  ;;  %v4493_v56 = vor.u32 %v5469_v49, %v4492_v48  ;;  %v5435_v57 = vld [vmem:[%s8448_s1 + $0x6c4] sm:$0xf0]  ;;  %v4293_v62 = vor.u32 %v5419_v54, %v4292_v53  ;;  %v4284_v1 = vld [vmem:[%s8448_s1 + $0x630] sm:$0xf] }
  0x65   :  { %2604 = vmatpush.bf16.msrb.mxu1 %v4381_v15  ;;  %2573 = vmatmul.bf16.vlgmr.msra.gmra.mxu2 %v6382_v29  ;;  %v4420_v58 = vld [vmem:[%s8448_s1 + $0x740] sm:$0xf]  ;;  %v5451_v59 = vld [vmem:[%s8448_s1 + $0x744] sm:$0xf0]  ;;  %v4357_v63 = vor.u32 %v5435_v57, %v4356_v55  ;;  %v5417_v2 = vld [vmem:[%s8448_s1 + $0x634] sm:$0xf0] }
  0x66   :  { %2617 = vmatpush.bf16.msrb.mxu2 %v4445_v16  ;;  %2586 = vmatmul.bf16.vlgmr.msra.gmra.mxu3 %v6392_v33  ;;  %v4484_v60 = vld [vmem:[%s8448_s1 + $0x7c0] sm:$0xf]  ;;  %v5467_v61 = vld [vmem:[%s8448_s1 + $0x7c4] sm:$0xf0]  ;;  %v4421_v0 = vor.u32 %v5451_v59, %v4420_v58  ;;  %v4348_v3 = vld [vmem:[%s8448_s1 + $0x6b0] sm:$0xf]  ;;  %v4285_v10 = vor.u32 %v5417_v2, %v4284_v1 }
  0x67   :  { %2630 = vmatpush.bf16.msrb.mxu3 %v4509_v24  ;;  %v4485_v4 = vor.u32 %v5467_v61, %v4484_v60  ;;  %v5433_v5 = vld [vmem:[%s8448_s1 + $0x6b4] sm:$0xf0]  ;;  %v4412_v6 = vld [vmem:[%s8448_s1 + $0x730] sm:$0xf]  ;;  %v4276_v13 = vld [vmem:[%s8448_s1 + $0x620] sm:$0xf] }
  0x68   :  { %2592 = vmatpush.bf16.msrb.mxu0 %v4309_v34  ;;  %v5449_v7 = vld [vmem:[%s8448_s1 + $0x734] sm:$0xf0]  ;;  %v4476_v8 = vld [vmem:[%s8448_s1 + $0x7b0] sm:$0xf]  ;;  %v4349_v11 = vor.u32 %v5433_v5, %v4348_v3  ;;  %v5415_v14 = vld [vmem:[%s8448_s1 + $0x624] sm:$0xf0] }
  0x69   :  { %2605 = vmatpush.bf16.msrb.mxu1 %v4373_v35  ;;  %v5465_v9 = vld [vmem:[%s8448_s1 + $0x7b4] sm:$0xf0]  ;;  %v4413_v12 = vor.u32 %v5449_v7, %v4412_v6  ;;  %v4340_v15 = vld [vmem:[%s8448_s1 + $0x6a0] sm:$0xf]  ;;  %v5431_v17 = vld [vmem:[%s8448_s1 + $0x6a4] sm:$0xf0]  ;;  %v4277_v27 = vor.u32 %v5415_v14, %v4276_v13 }
  0x6a   :  { %2618 = vmatpush.bf16.msrb.mxu2 %v4437_v36  ;;  %v4477_v16 = vor.u32 %v5465_v9, %v4476_v8  ;;  %v4404_v21 = vld [vmem:[%s8448_s1 + $0x720] sm:$0xf]  ;;  %v5447_v23 = vld [vmem:[%s8448_s1 + $0x724] sm:$0xf0]  ;;  %v4341_v28 = vor.u32 %v5431_v17, %v4340_v15  ;;  %v4268_v32 = vld [vmem:[%s8448_s1 + $0x610] sm:$0xf] }
  0x6b   :  { %2631 = vmatpush.bf16.msrb.mxu3 %v4501_v43  ;;  %v4468_v24 = vld [vmem:[%s8448_s1 + $0x7a0] sm:$0xf]  ;;  %v5463_v26 = vld [vmem:[%s8448_s1 + $0x7a4] sm:$0xf0]  ;;  %v4405_v31 = vor.u32 %v5447_v23, %v4404_v21  ;;  %v5413_v34 = vld [vmem:[%s8448_s1 + $0x614] sm:$0xf0] }
  0x6c   :  { %2593 = vmatpush.bf16.msrb.mxu0 %v4301_v50  ;;  %v4332_v35 = vld [vmem:[%s8448_s1 + $0x690] sm:$0xf]  ;;  %v4469_v36 = vor.u32 %v5463_v26, %v4468_v24  ;;  %v5429_v37 = vld [vmem:[%s8448_s1 + $0x694] sm:$0xf0]  ;;  %v4260_v46 = vld [vmem:[%s8448_s1 + $0x600] sm:$0xf]  ;;  %v4269_v47 = vor.u32 %v5413_v34, %v4268_v32 }
  0x6d   :  { %2606 = vmatpush.bf16.msrb.mxu1 %v4365_v51  ;;  %v4396_v39 = vld [vmem:[%s8448_s1 + $0x710] sm:$0xf]  ;;  %v5445_v40 = vld [vmem:[%s8448_s1 + $0x714] sm:$0xf0]  ;;  %v5411_v48 = vld [vmem:[%s8448_s1 + $0x604] sm:$0xf0]  ;;  %v4333_v51 = vor.u32 %v5429_v37, %v4332_v35 }
  0x6e   :  { %2619 = vmatpush.bf16.msrb.mxu2 %v4429_v52  ;;  %v4460_v43 = vld [vmem:[%s8448_s1 + $0x790] sm:$0xf]  ;;  %v5461_v45 = vld [vmem:[%s8448_s1 + $0x794] sm:$0xf0]  ;;  %v4324_v49 = vld [vmem:[%s8448_s1 + $0x680] sm:$0xf]  ;;  %v4397_v52 = vor.u32 %v5445_v40, %v4396_v39 }
  0x6f   :  { %2632 = vmatpush.bf16.msrb.mxu3 %v4493_v56  ;;  %v5427_v50 = vld [vmem:[%s8448_s1 + $0x684] sm:$0xf0]  ;;  %v4388_v53 = vld [vmem:[%s8448_s1 + $0x700] sm:$0xf]  ;;  %v33_v55 = vld [vmem:[%s8447_s0 + $0x30] sm:$0xff]  ;;  %v4461_v56 = vor.u32 %v5461_v45, %v4460_v43 }
  0x70   :  { %2594 = vmatpush.bf16.msrb.mxu0 %v4293_v62  ;;  %v5443_v54 = vld [vmem:[%s8448_s1 + $0x704] sm:$0xf0]  ;;  %v4452_v57 = vld [vmem:[%s8448_s1 + $0x780] sm:$0xf]  ;;  %v34_v59 = vld [vmem:[%s8447_s0 + $0x38] sm:$0xff]  ;;  %v455_v3 = vunpack.c.l.b16 %v33_v55  ;;  %v456_v9 = vunpack.c.h.b16 %v33_v55 }
  0x71   :  { %2607 = vmatpush.bf16.msrb.mxu1 %v4357_v63  ;;  %v5459_v58 = vld [vmem:[%s8448_s1 + $0x784] sm:$0xf0]  ;;  %v4572_v60 = vld [vmem:[%s8448_s1 + $0x870] sm:$0xf]  ;;  %v5489_v61 = vld [vmem:[%s8448_s1 + $0x874] sm:$0xf0]  ;;  %v4261_v63 = vor.u32 %v5411_v48, %v4260_v46  ;;  %v4389_v5 = vor.u32 %v5443_v54, %v4388_v53  ;;  %v457_v8 = vunpack.c.l.b16 %v34_v59 }
  0x72   :  { %2620 = vmatpush.bf16.msrb.mxu2 %v4421_v0  ;;  %v4636_v62 = vld [vmem:[%s8448_s1 + $0x8f0] sm:$0xf]  ;;  %v5505_v0 = vld [vmem:[%s8448_s1 + $0x8f4] sm:$0xf0]  ;;  %v4564_v15 = vld [vmem:[%s8448_s1 + $0x860] sm:$0xf]  ;;  %v6581_v23 = vpack.c.b16 %v455_v3, %v455_v3 }
  0x73   :  { %2633 = vmatpush.bf16.msrb.mxu3 %v4485_v4  ;;  %v4700_v1 = vld [vmem:[%s8448_s1 + $0x970] sm:$0xf]  ;;  %v5521_v2 = vld [vmem:[%s8448_s1 + $0x974] sm:$0xf0]  ;;  %v4325_v4 = vor.u32 %v5427_v50, %v4324_v49  ;;  %v4637_v13 = vor.u32 %v5505_v0, %v4636_v62  ;;  %v4628_v17 = vld [vmem:[%s8448_s1 + $0x8e0] sm:$0xf] }
  0x74   :  { %2595 = vmatpush.bf16.msrb.mxu0 %v4285_v10  ;;  %v4764_v6 = vld [vmem:[%s8448_s1 + $0x9f0] sm:$0xf]  ;;  %v5537_v7 = vld [vmem:[%s8448_s1 + $0x9f4] sm:$0xf0]  ;;  %v4453_v10 = vor.u32 %v5459_v58, %v4452_v57  ;;  %v4701_v14 = vor.u32 %v5521_v2, %v4700_v1  ;;  %v5503_v24 = vld [vmem:[%s8448_s1 + $0x8e4] sm:$0xf0] }
  0x75   :  { %2608 = vmatpush.bf16.msrb.mxu1 %v4349_v11  ;;  %v4573_v11 = vor.u32 %v5489_v61, %v4572_v60  ;;  %v4765_v21 = vor.u32 %v5537_v7, %v4764_v6  ;;  %v4692_v26 = vld [vmem:[%s8448_s1 + $0x960] sm:$0xf]  ;;  %v5535_v34 = vld [vmem:[%s8448_s1 + $0x9e4] sm:$0xf0]  ;;  %v4629_v37 = vor.u32 %v5503_v24, %v4628_v17  ;;  %v4556_v40 = vld [vmem:[%s8448_s1 + $0x850] sm:$0xf] }
  0x76   :  { %2621 = vmatpush.bf16.msrb.mxu2 %v4413_v12  ;;  %v458_v12 = vunpack.c.h.b16 %v34_v59  ;;  %v4756_v32 = vld [vmem:[%s8448_s1 + $0x9e0] sm:$0xf]  ;;  %v5485_v43 = vld [vmem:[%s8448_s1 + $0x854] sm:$0xf0]  ;;  %v4620_v45 = vld [vmem:[%s8448_s1 + $0x8d0] sm:$0xf] }
  0x77   :  { %2634 = vmatpush.bf16.msrb.mxu3 %v4477_v16  ;;  %v5487_v16 = vld [vmem:[%s8448_s1 + $0x864] sm:$0xf0]  ;;  %v4757_v46 = vor.u32 %v5535_v34, %v4756_v32  ;;  %v4684_v48 = vld [vmem:[%s8448_s1 + $0x950] sm:$0xf]  ;;  %v5517_v49 = vld [vmem:[%s8448_s1 + $0x954] sm:$0xf0] }
  0x78   :  { %2596 = vmatpush.bf16.msrb.mxu0 %v4277_v27  ;;  %v5519_v27 = vld [vmem:[%s8448_s1 + $0x964] sm:$0xf0]  ;;  %v6602_v35 = vpack.c.b16 %v458_v12, %v458_v12  ;;  %v4748_v50 = vld [vmem:[%s8448_s1 + $0x9d0] sm:$0xf]  ;;  %v4685_v54 = vor.u32 %v5517_v49, %v4684_v48  ;;  %v4548_v55 = vld [vmem:[%s8448_s1 + $0x840] sm:$0xf] }
  0x79   :  { %2609 = vmatpush.bf16.msrb.mxu1 %v4341_v28  ;;  %v6592_v28 = vpack.c.b16 %v457_v8, %v457_v8  ;;  %v4693_v39 = vor.u32 %v5519_v27, %v4692_v26  ;;  %v4612_v57 = vld [vmem:[%s8448_s1 + $0x8c0] sm:$0xf]  ;;  %v5499_v59 = vld [vmem:[%s8448_s1 + $0x8c4] sm:$0xf0]  ;;  %v4540_v3 = vld [vmem:[%s8448_s1 + $0x830] sm:$0xf] }
  0x7a   :  { %2622 = vmatpush.bf16.msrb.mxu2 %v4405_v31  ;;  %v6594_v31 = vpack.c.b16 %v456_v9, %v456_v9  ;;  %v4676_v60 = vld [vmem:[%s8448_s1 + $0x940] sm:$0xf]  ;;  %v5515_v61 = vld [vmem:[%s8448_s1 + $0x944] sm:$0xf0]  ;;  %v4613_v1 = vor.u32 %v5499_v59, %v4612_v57  ;;  %v5497_v7 = vld [vmem:[%s8448_s1 + $0x8b4] sm:$0xf0] }
  0x7b   :  { %2635 = vmatpush.bf16.msrb.mxu3 %v4469_v36  ;;  %v4565_v36 = vor.u32 %v5487_v16, %v4564_v15  ;;  %v4740_v62 = vld [vmem:[%s8448_s1 + $0x9c0] sm:$0xf]  ;;  %v4677_v2 = vor.u32 %v5515_v61, %v4676_v60  ;;  %v4668_v8 = vld [vmem:[%s8448_s1 + $0x930] sm:$0xf]  ;;  %v5513_v9 = vld [vmem:[%s8448_s1 + $0x934] sm:$0xf0] }
  0x7c   :  { %2597 = vmatpush.bf16.msrb.mxu0 %v4269_v47  ;;  %v5501_v47 = vld [vmem:[%s8448_s1 + $0x8d4] sm:$0xf0]  ;;  %v4532_v15 = vld [vmem:[%s8448_s1 + $0x820] sm:$0xf]  ;;  %v5479_v16 = vld [vmem:[%s8448_s1 + $0x824] sm:$0xf0] }
  0x7d   :  { %2610 = vmatpush.bf16.msrb.mxu1 %v4333_v51  ;;  %v5533_v51 = vld [vmem:[%s8448_s1 + $0x9d4] sm:$0xf0]  ;;  %v4621_v53 = vor.u32 %v5501_v47, %v4620_v45  ;;  %v4596_v17 = vld [vmem:[%s8448_s1 + $0x8a0] sm:$0xf]  ;;  %v5495_v24 = vld [vmem:[%s8448_s1 + $0x8a4] sm:$0xf0] }
  0x7e   :  { %2623 = vmatpush.bf16.msrb.mxu2 %v4397_v52  ;;  %v4557_v52 = vor.u32 %v5485_v43, %v4556_v40  ;;  %v4749_v58 = vor.u32 %v5533_v51, %v4748_v50  ;;  %v4660_v26 = vld [vmem:[%s8448_s1 + $0x920] sm:$0xf]  ;;  %v5511_v27 = vld [vmem:[%s8448_s1 + $0x924] sm:$0xf0]  ;;  %v4524_v40 = vld [vmem:[%s8448_s1 + $0x810] sm:$0xf] }
  0x7f   :  { %2636 = vmatpush.bf16.msrb.mxu3 %v4461_v56  ;;  %v5483_v56 = vld [vmem:[%s8448_s1 + $0x844] sm:$0xf0]  ;;  %v4724_v32 = vld [vmem:[%s8448_s1 + $0x9a0] sm:$0xf]  ;;  %v5477_v43 = vld [vmem:[%s8448_s1 + $0x814] sm:$0xf0] }
  0x80   :  { %2598 = vmatpush.bf16.msrb.mxu0 %v4261_v63  ;;  %v5531_v63 = vld [vmem:[%s8448_s1 + $0x9c4] sm:$0xf0]  ;;  %v4549_v0 = vor.u32 %v5483_v56, %v4548_v55  ;;  %v4588_v45 = vld [vmem:[%s8448_s1 + $0x890] sm:$0xf]  ;;  %v5493_v47 = vld [vmem:[%s8448_s1 + $0x894] sm:$0xf0] }
  0x81   :  { %2611 = vmatpush.bf16.msrb.mxu1 %v4325_v4  ;;  %v5481_v4 = vld [vmem:[%s8448_s1 + $0x834] sm:$0xf0]  ;;  %v4741_v6 = vor.u32 %v5531_v63, %v4740_v62  ;;  %v5527_v34 = vld [vmem:[%s8448_s1 + $0x9a4] sm:$0xf0]  ;;  %v4652_v48 = vld [vmem:[%s8448_s1 + $0x910] sm:$0xf]  ;;  %v4589_v57 = vor.u32 %v5493_v47, %v4588_v45 }
  0x82   :  { %2624 = vmatpush.bf16.msrb.mxu2 %v4389_v5  ;;  %v4604_v5 = vld [vmem:[%s8448_s1 + $0x8b0] sm:$0xf]  ;;  %v4541_v12 = vor.u32 %v5481_v4, %v4540_v3  ;;  %v5509_v49 = vld [vmem:[%s8448_s1 + $0x914] sm:$0xf0]  ;;  %v4580_v55 = vld [vmem:[%s8448_s1 + $0x880] sm:$0xf] }
  0x83   :  { %2637 = vmatpush.bf16.msrb.mxu3 %v4453_v10  ;;  %2599 = vmatmul.bf16.vlgmr.msrb.gmra.mxu0 %v6581_v23  ;;  %v4732_v10 = vld [vmem:[%s8448_s1 + $0x9b0] sm:$0xf]  ;;  %v5525_v51 = vld [vmem:[%s8448_s1 + $0x994] sm:$0xf0]  ;;  %v5491_v56 = vld [vmem:[%s8448_s1 + $0x884] sm:$0xf0] }
  0x84   :  { %2643 = vmatpush.bf16.msra.mxu0 %v4573_v11  ;;  %2612 = vmatmul.bf16.vlgmr.msrb.gmra.mxu1 %v6594_v31  ;;  %v5529_v11 = vld [vmem:[%s8448_s1 + $0x9b4] sm:$0xf0]  ;;  %v4716_v50 = vld [vmem:[%s8448_s1 + $0x990] sm:$0xf]  ;;  %v4644_v59 = vld [vmem:[%s8448_s1 + $0x900] sm:$0xf] }
  0x85   :  { %2656 = vmatpush.bf16.msra.mxu1 %v4637_v13  ;;  %2625 = vmatmul.bf16.vlgmr.msrb.gmra.mxu2 %v6592_v28  ;;  %v4605_v13 = vor.u32 %v5497_v7, %v4604_v5  ;;  %v5507_v60 = vld [vmem:[%s8448_s1 + $0x904] sm:$0xf0]  ;;  %v35_v61 = vld [vmem:[%s8447_s0 + $0x40] sm:$0xff]  ;;  %v4717_v62 = vor.u32 %v5525_v51, %v4716_v50  ;;  %v5553_v3 = vld [vmem:[%s8448_s1 + $0xa74] sm:$0xf0] }
  0x86   :  { %2669 = vmatpush.bf16.msra.mxu2 %v4701_v14  ;;  %2638 = vmatmul.bf16.vlgmr.msrb.gmra.mxu3 %v6602_v35  ;;  %v4669_v14 = vor.u32 %v5513_v9, %v4668_v8  ;;  %v4708_v63 = vld [vmem:[%s8448_s1 + $0x980] sm:$0xf]  ;;  %v4892_v4 = vld [vmem:[%s8448_s1 + $0xaf0] sm:$0xf]  ;;  %v5585_v8 = vld [vmem:[%s8448_s1 + $0xb74] sm:$0xf0]  ;;  %v459_v9 = vunpack.c.l.b16 %v35_v61 }
  0x87   :  { %2682 = vmatpush.bf16.msra.mxu3 %v4765_v21  ;;  %v4733_v21 = vor.u32 %v5529_v11, %v4732_v10  ;;  %v4956_v7 = vld [vmem:[%s8448_s1 + $0xb70] sm:$0xf]  ;;  %v4581_v10 = vor.u32 %v5491_v56, %v4580_v55  ;;  %v4645_v11 = vor.u32 %v5507_v60, %v4644_v59  ;;  %v5012_v47 = vld [vmem:[%s8448_s1 + $0xbe0] sm:$0xf]  ;;  %v5581_v59 = vld [vmem:[%s8448_s1 + $0xb54] sm:$0xf0] }
  0x88   :  { %2644 = vmatpush.bf16.msra.mxu0 %v4565_v36  ;;  %v4533_v36 = vor.u32 %v5479_v16, %v4532_v15  ;;  %v460_v15 = vunpack.c.h.b16 %v35_v61  ;;  %v4876_v55 = vld [vmem:[%s8448_s1 + $0xad0] sm:$0xf]  ;;  %v5597_v61 = vld [vmem:[%s8448_s1 + $0xbd4] sm:$0xf0] }
  0x89   :  { %2657 = vmatpush.bf16.msra.mxu1 %v4629_v37  ;;  %v4597_v37 = vor.u32 %v5495_v24, %v4596_v17  ;;  %v5004_v60 = vld [vmem:[%s8448_s1 + $0xbd0] sm:$0xf] }
  0x8a   :  { %2670 = vmatpush.bf16.msra.mxu2 %v4693_v39  ;;  %v4661_v39 = vor.u32 %v5511_v27, %v4660_v26  ;;  %v4957_v26 = vor.u32 %v5585_v8, %v4956_v7  ;;  %v4820_v27 = vld [vmem:[%s8448_s1 + $0xa60] sm:$0xf]  ;;  %v5579_v7 = vld [vmem:[%s8448_s1 + $0xb44] sm:$0xf0] }
  0x8b   :  { %2683 = vmatpush.bf16.msra.mxu3 %v4757_v46  ;;  %v4725_v46 = vor.u32 %v5527_v34, %v4724_v32  ;;  %v5551_v32 = vld [vmem:[%s8448_s1 + $0xa64] sm:$0xf0]  ;;  %v4884_v34 = vld [vmem:[%s8448_s1 + $0xae0] sm:$0xf] }
  0x8c   :  { %2645 = vmatpush.bf16.msra.mxu0 %v4557_v52  ;;  %v4516_v52 = vld [vmem:[%s8448_s1 + $0x800] sm:$0xf]  ;;  %v4821_v50 = vor.u32 %v5551_v32, %v4820_v27  ;;  %v4988_v27 = vld [vmem:[%s8448_s1 + $0xbb0] sm:$0xf]  ;;  %v5593_v32 = vld [vmem:[%s8448_s1 + $0xbb4] sm:$0xf0] }
  0x8d   :  { %2658 = vmatpush.bf16.msra.mxu1 %v4621_v53  ;;  %v4525_v53 = vor.u32 %v5477_v43, %v4524_v40  ;;  %v4948_v40 = vld [vmem:[%s8448_s1 + $0xb60] sm:$0xf]  ;;  %v5583_v43 = vld [vmem:[%s8448_s1 + $0xb64] sm:$0xf0] }
  0x8e   :  { %2671 = vmatpush.bf16.msra.mxu2 %v4685_v54  ;;  %v5475_v54 = vld [vmem:[%s8448_s1 + $0x804] sm:$0xf0]  ;;  %v4996_v8 = vld [vmem:[%s8448_s1 + $0xbc0] sm:$0xf] }
  0x8f   :  { %2684 = vmatpush.bf16.msra.mxu3 %v4749_v58  ;;  %v4653_v58 = vor.u32 %v5509_v49, %v4652_v48  ;;  %v4517_v5 = vor.u32 %v5475_v54, %v4516_v52  ;;  %v5599_v48 = vld [vmem:[%s8448_s1 + $0xbe4] sm:$0xf0]  ;;  %v4949_v52 = vor.u32 %v5583_v43, %v4948_v40  ;;  %v5549_v54 = vld [vmem:[%s8448_s1 + $0xa54] sm:$0xf0] }
  0x90   :  { %2646 = vmatpush.bf16.msra.mxu0 %v4549_v0  ;;  %v5523_v0 = vld [vmem:[%s8448_s1 + $0x984] sm:$0xf0]  ;;  %v5013_v56 = vor.u32 %v5599_v48, %v5012_v47  ;;  %v4852_v47 = vld [vmem:[%s8448_s1 + $0xaa0] sm:$0xf] }
  0x91   :  { %2659 = vmatpush.bf16.msra.mxu1 %v4613_v1  ;;  %v36_v1 = vld [vmem:[%s8447_s0 + $0x48] sm:$0xff]  ;;  %v4709_v16 = vor.u32 %v5523_v0, %v4708_v63 }
  0x92   :  { %2672 = vmatpush.bf16.msra.mxu2 %v4677_v2  ;;  %v4828_v2 = vld [vmem:[%s8448_s1 + $0xa70] sm:$0xf]  ;;  %v5543_v43 = vld [vmem:[%s8448_s1 + $0xa24] sm:$0xf0] }
  0x93   :  { %2685 = vmatpush.bf16.msra.mxu3 %v4741_v6  ;;  %v5569_v6 = vld [vmem:[%s8448_s1 + $0xaf4] sm:$0xf0]  ;;  %v4829_v17 = vor.u32 %v5553_v3, %v4828_v2  ;;  %v5547_v2 = vld [vmem:[%s8448_s1 + $0xa44] sm:$0xf0]  ;;  %v4868_v3 = vld [vmem:[%s8448_s1 + $0xac0] sm:$0xf] }
  0x94   :  { %2647 = vmatpush.bf16.msra.mxu0 %v4541_v12  ;;  %v5020_v12 = vld [vmem:[%s8448_s1 + $0xbf0] sm:$0xf]  ;;  %v4893_v24 = vor.u32 %v5569_v6, %v4892_v4  ;;  %v5005_v4 = vor.u32 %v5597_v61, %v5004_v60  ;;  %v4932_v6 = vld [vmem:[%s8448_s1 + $0xb40] sm:$0xf]  ;;  %v5541_v61 = vld [vmem:[%s8448_s1 + $0xa14] sm:$0xf0] }
  0x95   :  { %2660 = vmatpush.bf16.msra.mxu1 %v4605_v13  ;;  %v5601_v13 = vld [vmem:[%s8448_s1 + $0xbf4] sm:$0xf0]  ;;  %v4780_v60 = vld [vmem:[%s8448_s1 + $0xa10] sm:$0xf] }
  0x96   :  { %2673 = vmatpush.bf16.msra.mxu2 %v4669_v14  ;;  %v461_v14 = vunpack.c.l.b16 %v36_v1 }
  0x97   :  { %2686 = vmatpush.bf16.msra.mxu3 %v4733_v21  ;;  %v462_v21 = vunpack.c.h.b16 %v36_v1  ;;  %v4804_v1 = vld [vmem:[%s8448_s1 + $0xa40] sm:$0xf] }
  0x98   :  { %2648 = vmatpush.bf16.msra.mxu0 %v4533_v36  ;;  %v5021_v36 = vor.u32 %v5601_v13, %v5020_v12  ;;  %v6802_v45 = vpack.c.b16 %v461_v14, %v461_v14  ;;  %v4933_v13 = vor.u32 %v5579_v7, %v4932_v6  ;;  %v5545_v14 = vld [vmem:[%s8448_s1 + $0xa34] sm:$0xf0]  ;;  %v4772_v7 = vld [vmem:[%s8448_s1 + $0xa00] sm:$0xf] }
  0x99   :  { %2661 = vmatpush.bf16.msra.mxu1 %v4597_v37  ;;  %v6791_v37 = vpack.c.b16 %v459_v9, %v459_v9  ;;  %v6812_v49 = vpack.c.b16 %v462_v21, %v462_v21  ;;  %v5595_v9 = vld [vmem:[%s8448_s1 + $0xbc4] sm:$0xf0]  ;;  %v4924_v21 = vld [vmem:[%s8448_s1 + $0xb30] sm:$0xf]  ;;  %v5589_v6 = vld [vmem:[%s8448_s1 + $0xb94] sm:$0xf0] }
  0x9a   :  { %2674 = vmatpush.bf16.msra.mxu2 %v4661_v39  ;;  %v5567_v39 = vld [vmem:[%s8448_s1 + $0xae4] sm:$0xf0] }
  0x9b   :  { %2687 = vmatpush.bf16.msra.mxu3 %v4725_v46  ;;  %v6804_v46 = vpack.c.b16 %v460_v15, %v460_v15  ;;  %v4885_v51 = vor.u32 %v5567_v39, %v4884_v34  ;;  %v4860_v15 = vld [vmem:[%s8448_s1 + $0xab0] sm:$0xf] }
  0x9c   :  { %2649 = vmatpush.bf16.msra.mxu0 %v4525_v53  ;;  %v4812_v53 = vld [vmem:[%s8448_s1 + $0xa50] sm:$0xf] }
  0x9d   :  { %2662 = vmatpush.bf16.msra.mxu1 %v4589_v57  ;;  %v5565_v57 = vld [vmem:[%s8448_s1 + $0xad4] sm:$0xf0] }
  0x9e   :  { %2675 = vmatpush.bf16.msra.mxu2 %v4653_v58  ;;  %v4940_v58 = vld [vmem:[%s8448_s1 + $0xb50] sm:$0xf]  ;;  %v4877_v63 = vor.u32 %v5565_v57, %v4876_v55  ;;  %v5591_v55 = vld [vmem:[%s8448_s1 + $0xba4] sm:$0xf0] }
  0x9f   :  { %2688 = vmatpush.bf16.msra.mxu3 %v4717_v62  ;;  %v4813_v62 = vor.u32 %v5549_v54, %v4812_v53  ;;  %v4941_v0 = vor.u32 %v5581_v59, %v4940_v58  ;;  %v5575_v53 = vld [vmem:[%s8448_s1 + $0xb24] sm:$0xf0]  ;;  %v4980_v54 = vld [vmem:[%s8448_s1 + $0xba0] sm:$0xf] }
  0xa0   :  { %2650 = vmatpush.bf16.msra.mxu0 %v4517_v5  ;;  %v5563_v5 = vld [vmem:[%s8448_s1 + $0xac4] sm:$0xf0]  ;;  %v2444_v57 = vpop.f32.mrf.mxu0 }
  0xa1   :  { %2663 = vmatpush.bf16.msra.mxu1 %v4581_v10  ;;  %v4805_v10 = vor.u32 %v5547_v2, %v4804_v1  ;;  %v4869_v12 = vor.u32 %v5563_v5, %v4868_v3  ;;  %v4981_v1 = vor.u32 %v5591_v55, %v4980_v54  ;;  %v5557_v2 = vld [vmem:[%s8448_s1 + $0xa94] sm:$0xf0]  ;;  %v4908_v3 = vld [vmem:[%s8448_s1 + $0xb10] sm:$0xf] }
  0xa2   :  { %2676 = vmatpush.bf16.msra.mxu2 %v4645_v11  ;;  %v4796_v11 = vld [vmem:[%s8448_s1 + $0xa30] sm:$0xf] }
  0xa3   :  { %2689 = vmatpush.bf16.msra.mxu3 %v4709_v16  ;;  %2651 = vmatmul.bf16.vlgmr.msra.gmra.mxu0 %v6791_v37  ;;  %v5561_v16 = vld [vmem:[%s8448_s1 + $0xab4] sm:$0xf0]  ;;  %v4797_v34 = vor.u32 %v5545_v14, %v4796_v11  ;;  %v4972_v5 = vld [vmem:[%s8448_s1 + $0xb90] sm:$0xf]  ;;  %v4836_v11 = vld [vmem:[%s8448_s1 + $0xa80] sm:$0xf] }
  0xa4   :  { %2695 = vmatpush.bf16.msrb.mxu0 %v4829_v17  ;;  %2664 = vmatmul.bf16.vlgmr.msra.gmra.mxu1 %v6804_v46  ;;  %v4997_v17 = vor.u32 %v5595_v9, %v4996_v8  ;;  %v4861_v39 = vor.u32 %v5561_v16, %v4860_v15  ;;  %v4781_v9 = vor.u32 %v5541_v61, %v4780_v60  ;;  %v4900_v15 = vld [vmem:[%s8448_s1 + $0xb00] sm:$0xf]  ;;  %v5571_v16 = vld [vmem:[%s8448_s1 + $0xb04] sm:$0xf0] }
  0xa5   :  { %2708 = vmatpush.bf16.msrb.mxu1 %v4893_v24  ;;  %2677 = vmatmul.bf16.vlgmr.msra.gmra.mxu2 %v6802_v45  ;;  %v5577_v24 = vld [vmem:[%s8448_s1 + $0xb34] sm:$0xf0] }
  0xa6   :  { %2721 = vmatpush.bf16.msrb.mxu2 %v4957_v26  ;;  %2690 = vmatmul.bf16.vlgmr.msra.gmra.mxu3 %v6812_v49  ;;  %v39_v26 = vld [vmem:[%s8449_s2] sm:$0x3]  ;;  %v4925_v40 = vor.u32 %v5577_v24, %v4924_v21  ;;  %v4973_v24 = vor.u32 %v5589_v6, %v4972_v5  ;;  %v5246_v5 = vld [vmem:[%s8448_s1 + $0xe4] sm:$0xf] }
  0xa7   :  { %2734 = vmatpush.bf16.msrb.mxu3 %v5021_v36  ;;  %v4788_v36 = vld [vmem:[%s8448_s1 + $0xa20] sm:$0xf]  ;;  %v427_v48 = vperm.slane %v39_v26, 0 }
  0xa8   :  { %2696 = vmatpush.bf16.msrb.mxu0 %v4821_v50  ;;  %v4989_v50 = vor.u32 %v5593_v32, %v4988_v27  ;;  %v2470_v21 = vpop.f32.mrf.mxu2  ;;  %v4964_v26 = vld [vmem:[%s8448_s1 + $0xb80] sm:$0xf]  ;;  %v5587_v27 = vld [vmem:[%s8448_s1 + $0xb84] sm:$0xf0]  ;;  %v38_v32 = vld [vmem:[%s8447_s0 + $0x58] sm:$0xff]  ;;  %v2446_v54 = vpop.f32.mrf.mxu0 }
  0xa9   :  { %2709 = vmatpush.bf16.msrb.mxu1 %v4885_v51  ;;  %v5559_v51 = vld [vmem:[%s8448_s1 + $0xaa4] sm:$0xf0]  ;;  %v5226_v54 = vld [vmem:[%s8448_s1 + $0x44] sm:$0xf] }
  0xaa   :  { %2722 = vmatpush.bf16.msrb.mxu2 %v4949_v52  ;;  %v4916_v52 = vld [vmem:[%s8448_s1 + $0xb20] sm:$0xf]  ;;  %v4853_v58 = vor.u32 %v5559_v51, %v4852_v47  ;;  %v3678_v51 = vld [vmem:[%s8448_s1 + $0x178] sm:$0xf0] }
  0xab   :  { %2735 = vmatpush.bf16.msrb.mxu3 %v5013_v56  ;;  %v4789_v56 = vor.u32 %v5543_v43, %v4788_v36  ;;  %v4917_v59 = vor.u32 %v5575_v53, %v4916_v52  ;;  %v2483_v36 = vpop.f32.mrf.mxu3  ;;  %v5248_v43 = vld [vmem:[%s8448_s1 + $0xf4] sm:$0xf] }
  0xac   :  { %2697 = vmatpush.bf16.msrb.mxu0 %v4813_v62  ;;  %v4844_v62 = vld [vmem:[%s8448_s1 + $0xa90] sm:$0xf] }
  0xad   :  { %2710 = vmatpush.bf16.msrb.mxu1 %v4877_v63  ;;  %v2445_v63 = vadd.f32 %v2444_v57, %v427_v48  ;;  %v3614_v48 = vld [vmem:[%s8448_s1 + $0xf8] sm:$0xf0]  ;;  %v5280_v57 = vld [vmem:[%s8448_s1 + $0x1f4] sm:$0xf] }
  0xae   :  { %2723 = vmatpush.bf16.msrb.mxu2 %v4941_v0  ;;  %v2457_v0 = vpop.f32.mrf.mxu1 }
  0xaf   :  { %2736 = vmatpush.bf16.msrb.mxu3 %v5005_v4  ;;  %v5573_v4 = vld [vmem:[%s8448_s1 + $0xb14] sm:$0xf0]  ;;  %v2458_v8 = vadd.f32 %v2457_v0, %v2445_v63  ;;  %v466_v0 = vunpack.c.h.b16 %v38_v32 }
  0xb0   :  { %2698 = vmatpush.bf16.msrb.mxu0 %v4805_v10  ;;  %v5539_v10 = vld [vmem:[%s8448_s1 + $0xa04] sm:$0xf0]  ;;  %v4909_v14 = vor.u32 %v5573_v4, %v4908_v3  ;;  %v5230_v3 = vld [vmem:[%s8448_s1 + $0x64] sm:$0xf]  ;;  %v3542_v4 = vld [vmem:[%s8448_s1 + $0x68] sm:$0xf0] }
  0xb1   :  { %2711 = vmatpush.bf16.msrb.mxu1 %v4869_v12  ;;  %v5555_v12 = vld [vmem:[%s8448_s1 + $0xa84] sm:$0xf0]  ;;  %v4773_v47 = vor.u32 %v5539_v10, %v4772_v7  ;;  %v3670_v10 = vld [vmem:[%s8448_s1 + $0x168] sm:$0xf0] }
  0xb2   :  { %2724 = vmatpush.bf16.msrb.mxu2 %v4933_v13  ;;  %v4845_v13 = vor.u32 %v5557_v2, %v4844_v62  ;;  %v4837_v55 = vor.u32 %v5555_v12, %v4836_v11  ;;  %v4965_v62 = vor.u32 %v5587_v27, %v4964_v26  ;;  %v5228_v27 = vld [vmem:[%s8448_s1 + $0x54] sm:$0xf] }
  0xb3   :  { %2737 = vmatpush.bf16.msrb.mxu3 %v4997_v17  ;;  %v37_v17 = vld [vmem:[%s8447_s0 + $0x50] sm:$0xff] }
  0xb4   :  { %2699 = vmatpush.bf16.msrb.mxu0 %v4797_v34  ;;  %v2471_v34 = vadd.f32 %v2470_v21, %v2458_v8  ;;  %v463_v52 = vunpack.c.l.b16 %v37_v17  ;;  %v464_v60 = vunpack.c.h.b16 %v37_v17  ;;  %v3606_v8 = vld [vmem:[%s8448_s1 + $0xe8] sm:$0xf0]  ;;  %v3545_v17 = vor.u32 %v5230_v3, %v3542_v4  ;;  %v2485_v21 = vpop.f32.mrf.mxu3  ;;  %v5224_v3 = vld [vmem:[%s8448_s1 + $0x34] sm:$0xf]  ;;  %v3518_v4 = vld [vmem:[%s8448_s1 + $0x38] sm:$0xf0] }
  0xb5   :  { %2712 = vmatpush.bf16.msrb.mxu1 %v4861_v39  ;;  %v5232_v39 = vld [vmem:[%s8448_s1 + $0x74] sm:$0xf]  ;;  %v3521_v21 = vor.u32 %v5224_v3, %v3518_v4  ;;  %v3694_v4 = vld [vmem:[%s8448_s1 + $0x198] sm:$0xf0] }
  0xb6   :  { %2725 = vmatpush.bf16.msrb.mxu2 %v4925_v40  ;;  %v3550_v40 = vld [vmem:[%s8448_s1 + $0x78] sm:$0xf0]  ;;  %v6989_v53 = vadd.f32 %v2483_v36, %v2471_v34  ;;  %v2459_v61 = vpop.f32.mrf.mxu1  ;;  %v7006_v7 = vpack.c.b16 %v463_v52, %v463_v52  ;;  %v7019_v12 = vpack.c.b16 %v464_v60, %v464_v60  ;;  %v5244_v34 = vld [vmem:[%s8448_s1 + $0xd4] sm:$0xf]  ;;  %v3654_v60 = vld [vmem:[%s8448_s1 + $0x148] sm:$0xf0] }
  0xb7   :  { %2738 = vmatpush.bf16.msrb.mxu3 %v4989_v50  ;;  %v5264_v50 = vld [vmem:[%s8448_s1 + $0x174] sm:$0xf]  ;;  %v3553_v63 = vor.u32 %v5232_v39, %v3550_v40  ;;  %v3598_v39 = vld [vmem:[%s8448_s1 + $0xd8] sm:$0xf0]  ;;  %v5274_v61 = vld [vmem:[%s8448_s1 + $0x1c4] sm:$0xf] }
  0xb8   :  { %2700 = vmatpush.bf16.msrb.mxu0 %v4789_v56  ;;  %v4901_v56 = vor.u32 %v5571_v16, %v4900_v15  ;;  %v3681_v2 = vor.u32 %v5264_v50, %v3678_v51  ;;  %v2472_v15 = vpop.f32.mrf.mxu2  ;;  %v7027_v16 = vpack.c.b16 %v466_v0, %v466_v0  ;;  %v5260_v40 = vld [vmem:[%s8448_s1 + $0x154] sm:$0xf]  ;;  %v3601_v51 = vor.u32 %v5244_v34, %v3598_v39  ;;  %v5238_v34 = vld [vmem:[%s8448_s1 + $0xa4] sm:$0xf] }
  0xb9   :  { %2713 = vmatpush.bf16.msrb.mxu1 %v4853_v58  ;;  %v3742_v58 = vld [vmem:[%s8448_s1 + $0x1f8] sm:$0xf0]  ;;  %v5272_v15 = vld [vmem:[%s8448_s1 + $0x1b4] sm:$0xf] }
  0xba   :  { %2726 = vmatpush.bf16.msrb.mxu2 %v4917_v59  ;;  %v465_v59 = vunpack.c.l.b16 %v38_v32  ;;  %v3745_v6 = vor.u32 %v5280_v57, %v3742_v58  ;;  %v3534_v32 = vld [vmem:[%s8448_s1 + $0x58] sm:$0xf0]  ;;  %v3590_v58 = vld [vmem:[%s8448_s1 + $0xc8] sm:$0xf0]  ;;  %v5268_v3 = vld [vmem:[%s8448_s1 + $0x194] sm:$0xf] }
  0xbb   :  { %2739 = vmatpush.bf16.msrb.mxu3 %v4981_v1  ;;  %v3617_v1 = vor.u32 %v5248_v43, %v3614_v48  ;;  %v3662_v43 = vld [vmem:[%s8448_s1 + $0x158] sm:$0xf0]  ;;  %v3537_v50 = vor.u32 %v5228_v27, %v3534_v32  ;;  %v5222_v27 = vld [vmem:[%s8448_s1 + $0x24] sm:$0xf]  ;;  %v3510_v32 = vld [vmem:[%s8448_s1 + $0x28] sm:$0xf0] }
  0xbc   :  { %2701 = vmatpush.bf16.msrb.mxu0 %v4781_v9  ;;  %v5262_v9 = vld [vmem:[%s8448_s1 + $0x164] sm:$0xf]  ;;  %v7017_v11 = vpack.c.b16 %v465_v59, %v465_v59  ;;  %v3726_v48 = vld [vmem:[%s8448_s1 + $0x1d8] sm:$0xf0]  ;;  %v3665_v52 = vor.u32 %v5260_v40, %v3662_v43  ;;  %v3574_v40 = vld [vmem:[%s8448_s1 + $0xa8] sm:$0xf0] }
  0xbd   :  { %2714 = vmatpush.bf16.msrb.mxu1 %v4845_v13  ;;  %v5278_v13 = vld [vmem:[%s8448_s1 + $0x1e4] sm:$0xf]  ;;  %v3673_v26 = vor.u32 %v5262_v9, %v3670_v10  ;;  %v3582_v10 = vld [vmem:[%s8448_s1 + $0xb8] sm:$0xf0] }
  0xbe   :  { %2727 = vmatpush.bf16.msrb.mxu2 %v4909_v14  ;;  %v3734_v14 = vld [vmem:[%s8448_s1 + $0x1e8] sm:$0xf0]  ;;  %v5258_v59 = vld [vmem:[%s8448_s1 + $0x144] sm:$0xf] }
  0xbf   :  { %2740 = vmatpush.bf16.msrb.mxu3 %v4973_v24  ;;  %v3609_v24 = vor.u32 %v5246_v5, %v3606_v8  ;;  %v3737_v36 = vor.u32 %v5278_v13, %v3734_v14  ;;  %v5240_v5 = vld [vmem:[%s8448_s1 + $0xb4] sm:$0xf]  ;;  %v3646_v14 = vld [vmem:[%s8448_s1 + $0x138] sm:$0xf0]  ;;  %v5254_v43 = vld [vmem:[%s8448_s1 + $0x124] sm:$0xf] }
  0xc0   :  { %2702 = vmatpush.bf16.msrb.mxu0 %v4773_v47  ;;  %v5276_v47 = vld [vmem:[%s8448_s1 + $0x1d4] sm:$0xf]  ;;  %v2496_v0 = vpop.f32.mrf.mxu0 }
  0xc1   :  { %2715 = vmatpush.bf16.msrb.mxu1 %v4837_v55  ;;  %v3526_v55 = vld [vmem:[%s8448_s1 + $0x48] sm:$0xf0]  ;;  %v3729_v57 = vor.u32 %v5276_v47, %v3726_v48  ;;  %v2509_v8 = vpop.f32.mrf.mxu1  ;;  %v5256_v13 = vld [vmem:[%s8448_s1 + $0x134] sm:$0xf] }
  0xc2   :  { %2728 = vmatpush.bf16.msrb.mxu2 %v4901_v56  ;;  %v5242_v56 = vld [vmem:[%s8448_s1 + $0xc4] sm:$0xf]  ;;  %v3638_v47 = vld [vmem:[%s8448_s1 + $0x128] sm:$0xf0] }
  0xc3   :  { %2741 = vmatpush.bf16.msrb.mxu3 %v4965_v62  ;;  %2703 = vmatmul.bf16.vlgmr.msrb.gmra.mxu0 %v7006_v7  ;;  %v3718_v62 = vld [vmem:[%s8448_s1 + $0x1c8] sm:$0xf0] }
  0xc4   :  { %2747 = vmatpush.bf16.msra.mxu0 %v3553_v63  ;;  %2716 = vmatmul.bf16.vlgmr.msrb.gmra.mxu1 %v7019_v12  ;;  %v3529_v63 = vor.u32 %v5226_v54, %v3526_v55  ;;  %v3721_v9 = vor.u32 %v5274_v61, %v3718_v62  ;;  %v3513_v54 = vor.u32 %v5222_v27, %v3510_v32  ;;  %v5236_v61 = vld [vmem:[%s8448_s1 + $0x94] sm:$0xf] }
  0xc5   :  { %2760 = vmatpush.bf16.msra.mxu1 %v3617_v1  ;;  %2729 = vmatmul.bf16.vlgmr.msrb.gmra.mxu2 %v7017_v11  ;;  %v3593_v1 = vor.u32 %v5242_v56, %v3590_v58  ;;  %v3641_v58 = vor.u32 %v5254_v43, %v3638_v47  ;;  %v5296_v32 = vld [vmem:[%s8448_s1 + $0x274] sm:$0xf]  ;;  %v3934_v47 = vld [vmem:[%s8448_s1 + $0x378] sm:$0xf0] }
  0xc6   :  { %2773 = vmatpush.bf16.msra.mxu2 %v3681_v2  ;;  %2742 = vmatmul.bf16.vlgmr.msrb.gmra.mxu3 %v7027_v16  ;;  %v3657_v2 = vor.u32 %v5258_v59, %v3654_v60  ;;  %v5220_v59 = vld [vmem:[%s8448_s1 + $0x14] sm:$0xf]  ;;  %v3502_v60 = vld [vmem:[%s8448_s1 + $0x18] sm:$0xf0] }
  0xc7   :  { %2786 = vmatpush.bf16.msra.mxu3 %v3745_v6  ;;  %v2497_v6 = vadd.f32 %v2496_v0, %v6989_v53  ;;  %v3710_v53 = vld [vmem:[%s8448_s1 + $0x1b8] sm:$0xf0]  ;;  %v5328_v43 = vld [vmem:[%s8448_s1 + $0x374] sm:$0xf] }
  0xc8   :  { %2748 = vmatpush.bf16.msra.mxu0 %v3545_v17  ;;  %v3713_v39 = vor.u32 %v5272_v15, %v3710_v53  ;;  %v2498_v56 = vpop.f32.mrf.mxu0  ;;  %v3566_v0 = vld [vmem:[%s8448_s1 + $0x98] sm:$0xf0]  ;;  %v5250_v15 = vld [vmem:[%s8448_s1 + $0x104] sm:$0xf] }
  0xc9   :  { %2761 = vmatpush.bf16.msra.mxu1 %v3609_v24  ;;  %v2510_v17 = vadd.f32 %v2509_v8, %v2497_v6  ;;  %v3585_v24 = vor.u32 %v5240_v5, %v3582_v10  ;;  %v2511_v62 = vpop.f32.mrf.mxu1  ;;  %v3505_v5 = vor.u32 %v5220_v59, %v3502_v60  ;;  %v5218_v6 = vld [vmem:[%s8448_s1 + $0x4] sm:$0xf]  ;;  %v3494_v8 = vld [vmem:[%s8448_s1 + $0x8] sm:$0xf0] }
  0xca   :  { %2774 = vmatpush.bf16.msra.mxu2 %v3673_v26  ;;  %v3649_v26 = vor.u32 %v5256_v13, %v3646_v14  ;;  %v5234_v13 = vld [vmem:[%s8448_s1 + $0x84] sm:$0xf]  ;;  %v3558_v14 = vld [vmem:[%s8448_s1 + $0x88] sm:$0xf0] }
  0xcb   :  { %2787 = vmatpush.bf16.msra.mxu3 %v3737_v36  ;;  %v2522_v36 = vpop.f32.mrf.mxu2  ;;  %v5294_v59 = vld [vmem:[%s8448_s1 + $0x264] sm:$0xf]  ;;  %v3798_v60 = vld [vmem:[%s8448_s1 + $0x268] sm:$0xf0] }
  0xcc   :  { %2749 = vmatpush.bf16.msra.mxu0 %v3537_v50  ;;  %v2523_v48 = vadd.f32 %v2522_v36, %v2510_v17  ;;  %v2535_v50 = vpop.f32.mrf.mxu3  ;;  %v3697_v17 = vor.u32 %v5268_v3, %v3694_v4  ;;  %v5312_v36 = vld [vmem:[%s8448_s1 + $0x2f4] sm:$0xf]  ;;  %v3990_v3 = vld [vmem:[%s8448_s1 + $0x3e8] sm:$0xf0]  ;;  %v3801_v4 = vor.u32 %v5294_v59, %v3798_v60  ;;  %v3838_v59 = vld [vmem:[%s8448_s1 + $0x2b8] sm:$0xf0] }
  0xcd   :  { %2762 = vmatpush.bf16.msra.mxu1 %v3601_v51  ;;  %v5270_v51 = vld [vmem:[%s8448_s1 + $0x1a4] sm:$0xf]  ;;  %v5320_v60 = vld [vmem:[%s8448_s1 + $0x334] sm:$0xf] }
  0xce   :  { %2775 = vmatpush.bf16.msra.mxu2 %v3665_v52  ;;  %v3702_v52 = vld [vmem:[%s8448_s1 + $0x1a8] sm:$0xf0]  ;;  %v7130_v55 = vadd.f32 %v2535_v50, %v2523_v48  ;;  %v3561_v48 = vor.u32 %v5234_v13, %v3558_v14  ;;  %v3854_v14 = vld [vmem:[%s8448_s1 + $0x2d8] sm:$0xf0] }
  0xcf   :  { %2788 = vmatpush.bf16.msra.mxu3 %v3729_v57  ;;  %v3577_v57 = vor.u32 %v5238_v34, %v3574_v40  ;;  %v3806_v34 = vld [vmem:[%s8448_s1 + $0x278] sm:$0xf0] }
  0xd0   :  { %2750 = vmatpush.bf16.msra.mxu0 %v3529_v63  ;;  %v3705_v63 = vor.u32 %v5270_v51, %v3702_v52  ;;  %v3870_v40 = vld [vmem:[%s8448_s1 + $0x2f8] sm:$0xf0]  ;;  %v5344_v51 = vld [vmem:[%s8448_s1 + $0x3f4] sm:$0xf]  ;;  %v3809_v56 = vor.u32 %v5296_v32, %v3806_v34  ;;  %v3782_v32 = vld [vmem:[%s8448_s1 + $0x248] sm:$0xf0] }
  0xd1   :  { %2763 = vmatpush.bf16.msra.mxu1 %v3593_v1  ;;  %v5252_v1 = vld [vmem:[%s8448_s1 + $0x114] sm:$0xf]  ;;  %v3998_v52 = vld [vmem:[%s8448_s1 + $0x3f8] sm:$0xf0]  ;;  %v5322_v34 = vld [vmem:[%s8448_s1 + $0x344] sm:$0xf] }
  0xd2   :  { %2776 = vmatpush.bf16.msra.mxu2 %v3657_v2  ;;  %v3630_v2 = vld [vmem:[%s8448_s1 + $0x118] sm:$0xf0]  ;;  %v4001_v62 = vor.u32 %v5344_v51, %v3998_v52 }
  0xd3   :  { %2789 = vmatpush.bf16.msra.mxu3 %v3721_v9  ;;  %v3569_v9 = vor.u32 %v5236_v61, %v3566_v0  ;;  %v3633_v10 = vor.u32 %v5252_v1, %v3630_v2  ;;  %v2524_v53 = vpop.f32.mrf.mxu2  ;;  %v5310_v61 = vld [vmem:[%s8448_s1 + $0x2e4] sm:$0xf]  ;;  %v3926_v1 = vld [vmem:[%s8448_s1 + $0x368] sm:$0xf0] }
  0xd4   :  { %2751 = vmatpush.bf16.msra.mxu0 %v3521_v21  ;;  %v3622_v21 = vld [vmem:[%s8448_s1 + $0x108] sm:$0xf0]  ;;  %v2537_v27 = vpop.f32.mrf.mxu3  ;;  %v5326_v0 = vld [vmem:[%s8448_s1 + $0x364] sm:$0xf]  ;;  %v3918_v53 = vld [vmem:[%s8448_s1 + $0x358] sm:$0xf0] }
  0xd5   :  { %2764 = vmatpush.bf16.msra.mxu1 %v3585_v24  ;;  %v5266_v24 = vld [vmem:[%s8448_s1 + $0x184] sm:$0xf]  ;;  %v3625_v50 = vor.u32 %v5250_v15, %v3622_v21  ;;  %v5324_v15 = vld [vmem:[%s8448_s1 + $0x354] sm:$0xf]  ;;  %v3982_v21 = vld [vmem:[%s8448_s1 + $0x3d8] sm:$0xf0] }
  0xd6   :  { %2777 = vmatpush.bf16.msra.mxu2 %v3649_v26  ;;  %v3686_v26 = vld [vmem:[%s8448_s1 + $0x188] sm:$0xf0]  ;;  %v5342_v2 = vld [vmem:[%s8448_s1 + $0x3e4] sm:$0xf] }
  0xd7   :  { %2790 = vmatpush.bf16.msra.mxu3 %v3713_v39  ;;  %v3497_v39 = vor.u32 %v5218_v6, %v3494_v8  ;;  %v3929_v6 = vor.u32 %v5326_v0, %v3926_v1  ;;  %v5292_v8 = vld [vmem:[%s8448_s1 + $0x254] sm:$0xf]  ;;  %v3993_v13 = vor.u32 %v5342_v2, %v3990_v3  ;;  %v5290_v27 = vld [vmem:[%s8448_s1 + $0x244] sm:$0xf] }
  0xd8   :  { %2752 = vmatpush.bf16.msra.mxu0 %v3513_v54  ;;  %v3689_v54 = vor.u32 %v5266_v24, %v3686_v26  ;;  %v5286_v3 = vld [vmem:[%s8448_s1 + $0x224] sm:$0xf] }
  0xd9   :  { %2765 = vmatpush.bf16.msra.mxu1 %v3577_v57  ;;  %v3873_v57 = vor.u32 %v5312_v36, %v3870_v40  ;;  %v3910_v36 = vld [vmem:[%s8448_s1 + $0x348] sm:$0xf0]  ;;  %v5338_v40 = vld [vmem:[%s8448_s1 + $0x3c4] sm:$0xf] }
  0xda   :  { %2778 = vmatpush.bf16.msra.mxu2 %v3641_v58  ;;  %v3937_v58 = vor.u32 %v5328_v43, %v3934_v47  ;;  %v3974_v43 = vld [vmem:[%s8448_s1 + $0x3c8] sm:$0xf0]  ;;  %v3913_v52 = vor.u32 %v5322_v34, %v3910_v36  ;;  %v3822_v36 = vld [vmem:[%s8448_s1 + $0x298] sm:$0xf0] }
  0xdb   :  { %2791 = vmatpush.bf16.msra.mxu3 %v3705_v63  ;;  %v3862_v63 = vld [vmem:[%s8448_s1 + $0x2e8] sm:$0xf0] }
  0xdc   :  { %2753 = vmatpush.bf16.msra.mxu0 %v3505_v5  ;;  %v3865_v5 = vor.u32 %v5310_v61, %v3862_v63  ;;  %v3902_v61 = vld [vmem:[%s8448_s1 + $0x338] sm:$0xf0] }
  0xdd   :  { %2766 = vmatpush.bf16.msra.mxu1 %v3569_v9  ;;  %v3790_v9 = vld [vmem:[%s8448_s1 + $0x258] sm:$0xf0]  ;;  %v3905_v2 = vor.u32 %v5320_v60, %v3902_v61  ;;  %v5330_v60 = vld [vmem:[%s8448_s1 + $0x384] sm:$0xf]  ;;  %v3942_v61 = vld [vmem:[%s8448_s1 + $0x388] sm:$0xf0] }
  0xde   :  { %2779 = vmatpush.bf16.msra.mxu2 %v3633_v10  ;;  %v5308_v10 = vld [vmem:[%s8448_s1 + $0x2d4] sm:$0xf]  ;;  %v3793_v24 = vor.u32 %v5292_v8, %v3790_v9  ;;  %v3966_v63 = vld [vmem:[%s8448_s1 + $0x3b8] sm:$0xf0]  ;;  %v3830_v9 = vld [vmem:[%s8448_s1 + $0x2a8] sm:$0xf0] }
  0xdf   :  { %2792 = vmatpush.bf16.msra.mxu3 %v3697_v17  ;;  %v5340_v17 = vld [vmem:[%s8448_s1 + $0x3d4] sm:$0xf]  ;;  %v3857_v26 = vor.u32 %v5308_v10, %v3854_v14  ;;  %v5318_v10 = vld [vmem:[%s8448_s1 + $0x324] sm:$0xf] }
  0xe0   :  { %2754 = vmatpush.bf16.msra.mxu0 %v3497_v39  ;;  %v2548_v39 = vpop.f32.mrf.mxu0 }
  0xe1   :  { %2767 = vmatpush.bf16.msra.mxu1 %v3561_v48  ;;  %v2549_v47 = vadd.f32 %v2548_v39, %v7130_v55  ;;  %v3785_v48 = vor.u32 %v5290_v27, %v3782_v32  ;;  %v3977_v55 = vor.u32 %v5338_v40, %v3974_v43  ;;  %v5316_v39 = vld [vmem:[%s8448_s1 + $0x314] sm:$0xf]  ;;  %v3886_v40 = vld [vmem:[%s8448_s1 + $0x318] sm:$0xf0] }
  0xe2   :  { %2780 = vmatpush.bf16.msra.mxu2 %v3625_v50  ;;  %v2561_v50 = vpop.f32.mrf.mxu1  ;;  %v5332_v43 = vld [vmem:[%s8448_s1 + $0x394] sm:$0xf] }
  0xe3   :  { %2793 = vmatpush.bf16.msra.mxu3 %v3689_v54  ;;  %2755 = vmatmul.bf16.vlgmr.msra.gmra.mxu0 %v6016_v19  ;;  %v5306_v19 = vld [vmem:[%s8448_s1 + $0x2c4] sm:$0xf]  ;;  %v5288_v54 = vld [vmem:[%s8448_s1 + $0x234] sm:$0xf] }
  0xe4   :  { %2799 = vmatpush.bf16.msrb.mxu0 %v3809_v56  ;;  %2768 = vmatmul.bf16.vlgmr.msra.gmra.mxu1 %v6020_v22  ;;  %v3846_v22 = vld [vmem:[%s8448_s1 + $0x2c8] sm:$0xf0]  ;;  %v3774_v56 = vld [vmem:[%s8448_s1 + $0x238] sm:$0xf0] }
  0xe5   :  { %2812 = vmatpush.bf16.msrb.mxu1 %v3873_v57  ;;  %2781 = vmatmul.bf16.vlgmr.msra.gmra.mxu2 %v6014_v18  ;;  %v3921_v18 = vor.u32 %v5324_v15, %v3918_v53  ;;  %v3849_v51 = vor.u32 %v5306_v19, %v3846_v22  ;;  %v5304_v57 = vld [vmem:[%s8448_s1 + $0x2b4] sm:$0xf]  ;;  %v3777_v0 = vor.u32 %v5288_v54, %v3774_v56  ;;  %v5334_v53 = vld [vmem:[%s8448_s1 + $0x3a4] sm:$0xf] }
  0xe6   :  { %2825 = vmatpush.bf16.msrb.mxu2 %v3937_v58  ;;  %2794 = vmatmul.bf16.vlgmr.msra.gmra.mxu3 %v6018_v20  ;;  %v3985_v20 = vor.u32 %v5340_v17, %v3982_v21  ;;  %v2562_v58 = vadd.f32 %v2561_v50, %v2549_v47  ;;  %v3841_v1 = vor.u32 %v5304_v57, %v3838_v59  ;;  %v3958_v17 = vld [vmem:[%s8448_s1 + $0x3a8] sm:$0xf0]  ;;  %v5284_v19 = vld [vmem:[%s8448_s1 + $0x214] sm:$0xf]  ;;  %v3950_v47 = vld [vmem:[%s8448_s1 + $0x398] sm:$0xf0] }
  0xe7   :  { %2838 = vmatpush.bf16.msrb.mxu3 %v4001_v62  ;;  %v5336_v62 = vld [vmem:[%s8448_s1 + $0x3b4] sm:$0xf]  ;;  %v3961_v34 = vor.u32 %v5334_v53, %v3958_v17  ;;  %v5282_v50 = vld [vmem:[%s8448_s1 + $0x204] sm:$0xf]  ;;  %v3889_v54 = vor.u32 %v5316_v39, %v3886_v40  ;;  %v3814_v57 = vld [vmem:[%s8448_s1 + $0x288] sm:$0xf0] }
  0xe8   :  { %2800 = vmatpush.bf16.msrb.mxu0 %v3801_v4  ;;  %v3766_v4 = vld [vmem:[%s8448_s1 + $0x228] sm:$0xf0]  ;;  %v2574_v8 = vpop.f32.mrf.mxu2  ;;  %v2550_v21 = vpop.f32.mrf.mxu0  ;;  %v5300_v22 = vld [vmem:[%s8448_s1 + $0x294] sm:$0xf]  ;;  %v5298_v56 = vld [vmem:[%s8448_s1 + $0x284] sm:$0xf] }
  0xe9   :  { %2813 = vmatpush.bf16.msrb.mxu1 %v3865_v5  ;;  %v5302_v5 = vld [vmem:[%s8448_s1 + $0x2a4] sm:$0xf]  ;;  %v2575_v14 = vadd.f32 %v2574_v8, %v2562_v58  ;;  %v2587_v15 = vpop.f32.mrf.mxu3  ;;  %v3953_v58 = vor.u32 %v5332_v43, %v3950_v47  ;;  %v3878_v59 = vld [vmem:[%s8448_s1 + $0x308] sm:$0xf0]  ;;  %v3817_v8 = vor.u32 %v5298_v56, %v3814_v57  ;;  %v5356_v43 = vld [vmem:[%s8448_s1 + $0x454] sm:$0xf] }
  0xea   :  { %2826 = vmatpush.bf16.msrb.mxu2 %v3929_v6  ;;  %v3969_v6 = vor.u32 %v5336_v62, %v3966_v63  ;;  %v3833_v27 = vor.u32 %v5302_v5, %v3830_v9  ;;  %v5360_v63 = vld [vmem:[%s8448_s1 + $0x474] sm:$0xf]  ;;  %v5358_v21 = vld [vmem:[%s8448_s1 + $0x464] sm:$0xf]  ;;  %v4046_v47 = vld [vmem:[%s8448_s1 + $0x458] sm:$0xf0] }
  0xeb   :  { %2839 = vmatpush.bf16.msrb.mxu3 %v3993_v13  ;;  %v3894_v13 = vld [vmem:[%s8448_s1 + $0x328] sm:$0xf0]  ;;  %v5392_v5 = vld [vmem:[%s8448_s1 + $0x574] sm:$0xf]  ;;  %v4049_v57 = vor.u32 %v5356_v43, %v4046_v47 }
  0xec   :  { %2801 = vmatpush.bf16.msrb.mxu0 %v3793_v24  ;;  %v3769_v24 = vor.u32 %v5286_v3, %v3766_v4  ;;  %v3897_v32 = vor.u32 %v5318_v10, %v3894_v13  ;;  %v4126_v4 = vld [vmem:[%s8448_s1 + $0x4f8] sm:$0xf0]  ;;  %v5408_v10 = vld [vmem:[%s8448_s1 + $0x5f4] sm:$0xf] }
  0xed   :  { %2814 = vmatpush.bf16.msrb.mxu1 %v3857_v26  ;;  %v2563_v26 = vpop.f32.mrf.mxu1  ;;  %v4254_v13 = vld [vmem:[%s8448_s1 + $0x5f8] sm:$0xf0]  ;;  %v5404_v56 = vld [vmem:[%s8448_s1 + $0x5d4] sm:$0xf] }
  0xee   :  { %2827 = vmatpush.bf16.msrb.mxu2 %v3921_v18  ;;  %v7329_v18 = vadd.f32 %v2587_v15, %v2575_v14  ;;  %v3945_v14 = vor.u32 %v5330_v60, %v3942_v61  ;;  %v5374_v26 = vld [vmem:[%s8448_s1 + $0x4e4] sm:$0xf]  ;;  %v4038_v60 = vld [vmem:[%s8448_s1 + $0x448] sm:$0xf0] }
  0xef   :  { %2840 = vmatpush.bf16.msrb.mxu3 %v3985_v20  ;;  %v3758_v20 = vld [vmem:[%s8448_s1 + $0x218] sm:$0xf0]  ;;  %v5386_v61 = vld [vmem:[%s8448_s1 + $0x544] sm:$0xf] }
  0xf0   :  { %2802 = vmatpush.bf16.msrb.mxu0 %v3785_v48  ;;  %v3761_v48 = vor.u32 %v5284_v19, %v3758_v20  ;;  %v2576_v62 = vpop.f32.mrf.mxu2  ;;  %v5390_v19 = vld [vmem:[%s8448_s1 + $0x564] sm:$0xf]  ;;  %v4182_v20 = vld [vmem:[%s8448_s1 + $0x568] sm:$0xf0] }
  0xf1   :  { %2815 = vmatpush.bf16.msrb.mxu1 %v3849_v51  ;;  %v3750_v51 = vld [vmem:[%s8448_s1 + $0x208] sm:$0xf0]  ;;  %v4185_v40 = vor.u32 %v5390_v19, %v4182_v20  ;;  %v5366_v20 = vld [vmem:[%s8448_s1 + $0x4a4] sm:$0xf] }
  0xf2   :  { %2828 = vmatpush.bf16.msrb.mxu2 %v3913_v52  ;;  %v3825_v52 = vor.u32 %v5300_v22, %v3822_v36  ;;  %v3753_v3 = vor.u32 %v5282_v50, %v3750_v51  ;;  %v5406_v22 = vld [vmem:[%s8448_s1 + $0x5e4] sm:$0xf]  ;;  %v4110_v51 = vld [vmem:[%s8448_s1 + $0x4d8] sm:$0xf0]  ;;  %v4166_v62 = vld [vmem:[%s8448_s1 + $0x548] sm:$0xf0] }
  0xf3   :  { %2841 = vmatpush.bf16.msrb.mxu3 %v3977_v55  ;;  %v5314_v55 = vld [vmem:[%s8448_s1 + $0x304] sm:$0xf]  ;;  %v4022_v19 = vld [vmem:[%s8448_s1 + $0x428] sm:$0xf0] }
  0xf4   :  { %2803 = vmatpush.bf16.msrb.mxu0 %v3777_v0  ;;  %v4062_v0 = vld [vmem:[%s8448_s1 + $0x478] sm:$0xf0]  ;;  %v3881_v9 = vor.u32 %v5314_v55, %v3878_v59  ;;  %v5354_v59 = vld [vmem:[%s8448_s1 + $0x444] sm:$0xf] }
  0xf5   :  { %2816 = vmatpush.bf16.msrb.mxu1 %v3841_v1  ;;  %v5376_v1 = vld [vmem:[%s8448_s1 + $0x4f4] sm:$0xf]  ;;  %v4065_v15 = vor.u32 %v5360_v63, %v4062_v0  ;;  %v5402_v0 = vld [vmem:[%s8448_s1 + $0x5c4] sm:$0xf] }
  0xf6   :  { %2829 = vmatpush.bf16.msrb.mxu2 %v3905_v2  ;;  %v2589_v2 = vpop.f32.mrf.mxu3  ;;  %v4129_v53 = vor.u32 %v5376_v1, %v4126_v4  ;;  %v4230_v1 = vld [vmem:[%s8448_s1 + $0x5c8] sm:$0xf0] }
  0xf7   :  { %2842 = vmatpush.bf16.msrb.mxu3 %v3969_v6  ;;  %v4190_v6 = vld [vmem:[%s8448_s1 + $0x578] sm:$0xf0] }
  0xf8   :  { %2804 = vmatpush.bf16.msrb.mxu0 %v3769_v24  ;;  %v4193_v17 = vor.u32 %v5392_v5, %v4190_v6  ;;  %v4054_v24 = vld [vmem:[%s8448_s1 + $0x468] sm:$0xf0]  ;;  %v4169_v6 = vor.u32 %v5386_v61, %v4166_v62  ;;  %v5396_v61 = vld [vmem:[%s8448_s1 + $0x594] sm:$0xf]  ;;  %v4206_v62 = vld [vmem:[%s8448_s1 + $0x598] sm:$0xf0] }
  0xf9   :  { %2817 = vmatpush.bf16.msrb.mxu1 %v3833_v27  ;;  %v4257_v27 = vor.u32 %v5408_v10, %v4254_v13  ;;  %v4057_v36 = vor.u32 %v5358_v21, %v4054_v24  ;;  %v5368_v10 = vld [vmem:[%s8448_s1 + $0x4b4] sm:$0xf]  ;;  %v4222_v21 = vld [vmem:[%s8448_s1 + $0x5b8] sm:$0xf0] }
  0xfa   :  { %2830 = vmatpush.bf16.msrb.mxu2 %v3897_v32  ;;  %v4118_v32 = vld [vmem:[%s8448_s1 + $0x4e8] sm:$0xf0] }
  0xfb   :  { %2843 = vmatpush.bf16.msrb.mxu3 %v3961_v34  ;;  %v4246_v34 = vld [vmem:[%s8448_s1 + $0x5e8] sm:$0xf0]  ;;  %v4121_v39 = vor.u32 %v5374_v26, %v4118_v32  ;;  %v5350_v32 = vld [vmem:[%s8448_s1 + $0x424] sm:$0xf] }
  0xfc   :  { %2805 = vmatpush.bf16.msrb.mxu0 %v3761_v48  ;;  %v5372_v48 = vld [vmem:[%s8448_s1 + $0x4d4] sm:$0xf]  ;;  %v4249_v50 = vor.u32 %v5406_v22, %v4246_v34 }
  0xfd   :  { %2818 = vmatpush.bf16.msrb.mxu1 %v3825_v52  ;;  %v5388_v52 = vld [vmem:[%s8448_s1 + $0x554] sm:$0xf]  ;;  %v4113_v55 = vor.u32 %v5372_v48, %v4110_v51  ;;  %v5398_v48 = vld [vmem:[%s8448_s1 + $0x5a4] sm:$0xf] }
  0xfe   :  { %2831 = vmatpush.bf16.msrb.mxu2 %v3889_v54  ;;  %v4174_v54 = vld [vmem:[%s8448_s1 + $0x558] sm:$0xf0] }
  0xff   :  { %2844 = vmatpush.bf16.msrb.mxu3 %v3953_v58  ;;  %v4177_v58 = vor.u32 %v5388_v52, %v4174_v54  ;;  %v4025_v52 = vor.u32 %v5350_v32, %v4022_v19 }
 0x100   :  { %2806 = vmatpush.bf16.msrb.mxu0 %v3753_v3  ;;  %v2600_v63 = vpop.f32.mrf.mxu0  ;;  %v4041_v3 = vor.u32 %v5354_v59, %v4038_v60  ;;  %v5364_v59 = vld [vmem:[%s8448_s1 + $0x494] sm:$0xf] }
 0x101   :  { %2819 = vmatpush.bf16.msrb.mxu1 %v3817_v8  ;;  %v2601_v2 = vadd.f32 %v2600_v63, %v7329_v18  ;;  %v2613_v4 = vpop.f32.mrf.mxu1  ;;  %v5352_v8 = vld [vmem:[%s8448_s1 + $0x434] sm:$0xf]  ;;  %v4233_v18 = vor.u32 %v5402_v0, %v4230_v1  ;;  %v5346_v0 = vld [vmem:[%s8448_s1 + $0x404] sm:$0xf]  ;;  %v4006_v1 = vld [vmem:[%s8448_s1 + $0x408] sm:$0xf0] }
 0x102   :  { %2832 = vmatpush.bf16.msrb.mxu2 %v3881_v9  ;;  %v4030_v9 = vld [vmem:[%s8448_s1 + $0x438] sm:$0xf0] }
 0x103   :  { %2845 = vmatpush.bf16.msrb.mxu3 %v3945_v14  ;;  %2807 = vmatmul.bf16.vlgmr.msrb.gmra.mxu0 %v6178_v41  ;;  %v5370_v41 = vld [vmem:[%s8448_s1 + $0x4c4] sm:$0xf]  ;;  %v2614_v13 = vadd.f32 %v2613_v4, %v2601_v2  ;;  %v4094_v14 = vld [vmem:[%s8448_s1 + $0x4b8] sm:$0xf0]  ;;  %v4033_v24 = vor.u32 %v5352_v8, %v4030_v9  ;;  %v4209_v8 = vor.u32 %v5396_v61, %v4206_v62  ;;  %v4134_v9 = vld [vmem:[%s8448_s1 + $0x508] sm:$0xf0] }
 0x104   :  { %2851 = vmatpush.bf16.msra.mxu0 %v4065_v15  ;;  %2820 = vmatmul.bf16.vlgmr.msrb.gmra.mxu1 %v6182_v44  ;;  %v4102_v44 = vld [vmem:[%s8448_s1 + $0x4c8] sm:$0xf0]  ;;  %v5384_v15 = vld [vmem:[%s8448_s1 + $0x534] sm:$0xf]  ;;  %v4097_v26 = vor.u32 %v5368_v10, %v4094_v14  ;;  %v5362_v4 = vld [vmem:[%s8448_s1 + $0x484] sm:$0xf] }
 0x105   :  { %2864 = vmatpush.bf16.msra.mxu1 %v4129_v53  ;;  %2833 = vmatmul.bf16.vlgmr.msrb.gmra.mxu2 %v6170_v38  ;;  %v4238_v38 = vld [vmem:[%s8448_s1 + $0x5d8] sm:$0xf0]  ;;  %v4105_v5 = vor.u32 %v5370_v41, %v4102_v44  ;;  %v5394_v10 = vld [vmem:[%s8448_s1 + $0x584] sm:$0xf]  ;;  %v5424_v14 = vld [vmem:[%s8448_s1 + $0x674] sm:$0xf] }
 0x106   :  { %2877 = vmatpush.bf16.msra.mxu2 %v4193_v17  ;;  %2846 = vmatmul.bf16.vlgmr.msrb.gmra.mxu3 %v6180_v42  ;;  %v4241_v42 = vor.u32 %v5404_v56, %v4238_v38  ;;  %v4158_v53 = vld [vmem:[%s8448_s1 + $0x538] sm:$0xf0]  ;;  %v5400_v17 = vld [vmem:[%s8448_s1 + $0x5b4] sm:$0xf] }
 0x107   :  { %2890 = vmatpush.bf16.msra.mxu3 %v4257_v27  ;;  %v4161_v27 = vor.u32 %v5384_v15, %v4158_v53  ;;  %v4225_v22 = vor.u32 %v5400_v17, %v4222_v21  ;;  %v4078_v41 = vld [vmem:[%s8448_s1 + $0x498] sm:$0xf0]  ;;  %v5440_v53 = vld [vmem:[%s8448_s1 + $0x6f4] sm:$0xf]  ;;  %v4009_v21 = vor.u32 %v5346_v0, %v4006_v1 }
 0x108   :  { %2852 = vmatpush.bf16.msra.mxu0 %v4057_v36  ;;  %v2626_v34 = vpop.f32.mrf.mxu2  ;;  %v4086_v36 = vld [vmem:[%s8448_s1 + $0x4a8] sm:$0xf0]  ;;  %v2602_v51 = vpop.f32.mrf.mxu0  ;;  %v4142_v44 = vld [vmem:[%s8448_s1 + $0x518] sm:$0xf0]  ;;  %v4081_v2 = vor.u32 %v5364_v59, %v4078_v41  ;;  %v5452_v62 = vld [vmem:[%s8448_s1 + $0x754] sm:$0xf] }
 0x109   :  { %2865 = vmatpush.bf16.msra.mxu1 %v4121_v39  ;;  %v5382_v39 = vld [vmem:[%s8448_s1 + $0x524] sm:$0xf]  ;;  %v2627_v43 = vadd.f32 %v2626_v34, %v2614_v13  ;;  %v2639_v47 = vpop.f32.mrf.mxu3  ;;  %v2615_v54 = vpop.f32.mrf.mxu1  ;;  %v4089_v38 = vor.u32 %v5366_v20, %v4086_v36  ;;  %v4318_v15 = vld [vmem:[%s8448_s1 + $0x678] sm:$0xf0]  ;;  %v5472_v20 = vld [vmem:[%s8448_s1 + $0x7f4] sm:$0xf] }
 0x10a   :  { %2878 = vmatpush.bf16.msra.mxu2 %v4185_v40  ;;  %v4150_v40 = vld [vmem:[%s8448_s1 + $0x528] sm:$0xf0]  ;;  %v4321_v36 = vor.u32 %v5424_v14, %v4318_v15  ;;  %v4302_v41 = vld [vmem:[%s8448_s1 + $0x658] sm:$0xf0] }
 0x10b   :  { %2891 = vmatpush.bf16.msra.mxu3 %v4249_v50  ;;  %v4214_v50 = vld [vmem:[%s8448_s1 + $0x5a8] sm:$0xf0]  ;;  %v7528_v56 = vadd.f32 %v2639_v47, %v2627_v43  ;;  %v5422_v43 = vld [vmem:[%s8448_s1 + $0x664] sm:$0xf]  ;;  %v4366_v61 = vld [vmem:[%s8448_s1 + $0x6d8] sm:$0xf0] }
 0x10c   :  { %2853 = vmatpush.bf16.msra.mxu0 %v4049_v57  ;;  %v4153_v57 = vor.u32 %v5382_v39, %v4150_v40  ;;  %v4217_v60 = vor.u32 %v5398_v48, %v4214_v50  ;;  %v4310_v47 = vld [vmem:[%s8448_s1 + $0x668] sm:$0xf0]  ;;  %v5438_v48 = vld [vmem:[%s8448_s1 + $0x6e4] sm:$0xf]  ;;  %v4494_v0 = vld [vmem:[%s8448_s1 + $0x7d8] sm:$0xf0] }
 0x10d   :  { %2866 = vmatpush.bf16.msra.mxu1 %v4113_v55  ;;  %v5348_v55 = vld [vmem:[%s8448_s1 + $0x414] sm:$0xf]  ;;  %v4374_v51 = vld [vmem:[%s8448_s1 + $0x6e8] sm:$0xf0] }
 0x10e   :  { %2879 = vmatpush.bf16.msra.mxu2 %v4177_v58  ;;  %v4014_v58 = vld [vmem:[%s8448_s1 + $0x418] sm:$0xf0]  ;;  %v4438_v54 = vld [vmem:[%s8448_s1 + $0x768] sm:$0xf0] }
 0x10f   :  { %2892 = vmatpush.bf16.msra.mxu3 %v4241_v42  ;;  %v5380_v42 = vld [vmem:[%s8448_s1 + $0x514] sm:$0xf]  ;;  %v4017_v63 = vor.u32 %v5348_v55, %v4014_v58  ;;  %v4313_v55 = vor.u32 %v5422_v43, %v4310_v47  ;;  %v4377_v58 = vor.u32 %v5438_v48, %v4374_v51  ;;  %v5414_v43 = vld [vmem:[%s8448_s1 + $0x624] sm:$0xf]  ;;  %v4278_v47 = vld [vmem:[%s8448_s1 + $0x628] sm:$0xf0] }
 0x110   :  { %2854 = vmatpush.bf16.msra.mxu0 %v4041_v3  ;;  %v4145_v3 = vor.u32 %v5380_v42, %v4142_v44  ;;  %v2628_v13 = vpop.f32.mrf.mxu2  ;;  %v5436_v42 = vld [vmem:[%s8448_s1 + $0x6d4] sm:$0xf]  ;;  %v5430_v48 = vld [vmem:[%s8448_s1 + $0x6a4] sm:$0xf] }
 0x111   :  { %2867 = vmatpush.bf16.msra.mxu1 %v4105_v5  ;;  %v4070_v5 = vld [vmem:[%s8448_s1 + $0x488] sm:$0xf0]  ;;  %v2641_v17 = vpop.f32.mrf.mxu3 }
 0x112   :  { %2880 = vmatpush.bf16.msra.mxu2 %v4169_v6  ;;  %v5378_v6 = vld [vmem:[%s8448_s1 + $0x504] sm:$0xf]  ;;  %v4073_v32 = vor.u32 %v5362_v4, %v4070_v5  ;;  %v4358_v5 = vld [vmem:[%s8448_s1 + $0x6c8] sm:$0xf0] }
 0x113   :  { %2893 = vmatpush.bf16.msra.mxu3 %v4233_v18  ;;  %v4198_v18 = vld [vmem:[%s8448_s1 + $0x588] sm:$0xf0]  ;;  %v4137_v19 = vor.u32 %v5378_v6, %v4134_v9  ;;  %v5434_v4 = vld [vmem:[%s8448_s1 + $0x6c4] sm:$0xf] }
 0x114   :  { %2855 = vmatpush.bf16.msra.mxu0 %v4033_v24  ;;  %v4382_v24 = vld [vmem:[%s8448_s1 + $0x6f8] sm:$0xf0]  ;;  %v4201_v34 = vor.u32 %v5394_v10, %v4198_v18  ;;  %v5450_v6 = vld [vmem:[%s8448_s1 + $0x744] sm:$0xf]  ;;  %v4486_v18 = vld [vmem:[%s8448_s1 + $0x7c8] sm:$0xf0] }
 0x115   :  { %2868 = vmatpush.bf16.msra.mxu1 %v4097_v26  ;;  %v5456_v26 = vld [vmem:[%s8448_s1 + $0x774] sm:$0xf]  ;;  %v4385_v39 = vor.u32 %v5440_v53, %v4382_v24  ;;  %v5466_v10 = vld [vmem:[%s8448_s1 + $0x7c4] sm:$0xf]  ;;  %v4361_v53 = vor.u32 %v5434_v4, %v4358_v5  ;;  %v4286_v24 = vld [vmem:[%s8448_s1 + $0x638] sm:$0xf0] }
 0x116   :  { %2881 = vmatpush.bf16.msra.mxu2 %v4161_v27  ;;  %v4446_v27 = vld [vmem:[%s8448_s1 + $0x778] sm:$0xf0]  ;;  %v5410_v5 = vld [vmem:[%s8448_s1 + $0x604] sm:$0xf] }
 0x117   :  { %2894 = vmatpush.bf16.msra.mxu3 %v4225_v22  ;;  %v4510_v22 = vld [vmem:[%s8448_s1 + $0x7f8] sm:$0xf0]  ;;  %v4449_v40 = vor.u32 %v5456_v26, %v4446_v27  ;;  %v5432_v26 = vld [vmem:[%s8448_s1 + $0x6b4] sm:$0xf] }
 0x118   :  { %2856 = vmatpush.bf16.msra.mxu0 %v4025_v52  ;;  %v4513_v50 = vor.u32 %v5472_v20, %v4510_v22  ;;  %v5454_v52 = vld [vmem:[%s8448_s1 + $0x764] sm:$0xf]  ;;  %v4414_v20 = vld [vmem:[%s8448_s1 + $0x738] sm:$0xf0]  ;;  %v5464_v22 = vld [vmem:[%s8448_s1 + $0x7b4] sm:$0xf] }
 0x119   :  { %2869 = vmatpush.bf16.msra.mxu1 %v4089_v38  ;;  %v5470_v38 = vld [vmem:[%s8448_s1 + $0x7e4] sm:$0xf]  ;;  %v4441_v59 = vor.u32 %v5454_v52, %v4438_v54  ;;  %v4342_v52 = vld [vmem:[%s8448_s1 + $0x6a8] sm:$0xf0]  ;;  %v4462_v4 = vld [vmem:[%s8448_s1 + $0x798] sm:$0xf0] }
 0x11a   :  { %2882 = vmatpush.bf16.msra.mxu2 %v4153_v57  ;;  %v4502_v57 = vld [vmem:[%s8448_s1 + $0x7e8] sm:$0xf0]  ;;  %v5446_v54 = vld [vmem:[%s8448_s1 + $0x724] sm:$0xf] }
 0x11b   :  { %2895 = vmatpush.bf16.msra.mxu3 %v4217_v60  ;;  %v5420_v60 = vld [vmem:[%s8448_s1 + $0x654] sm:$0xf]  ;;  %v4505_v44 = vor.u32 %v5470_v38, %v4502_v57  ;;  %v4406_v38 = vld [vmem:[%s8448_s1 + $0x728] sm:$0xf0] }
 0x11c   :  { %2857 = vmatpush.bf16.msra.mxu0 %v4017_v63  ;;  %v4430_v63 = vld [vmem:[%s8448_s1 + $0x758] sm:$0xf0]  ;;  %v4305_v1 = vor.u32 %v5420_v60, %v4302_v41  ;;  %v4281_v41 = vor.u32 %v5414_v43, %v4278_v47 }
 0x11d   :  { %2870 = vmatpush.bf16.msra.mxu1 %v4081_v2  ;;  %v4369_v2 = vor.u32 %v5436_v42, %v4366_v61  ;;  %v4345_v61 = vor.u32 %v5430_v48, %v4342_v52  ;;  %v4566_v52 = vld [vmem:[%s8448_s1 + $0x868] sm:$0xf0] }
 0x11e   :  { %2883 = vmatpush.bf16.msra.mxu2 %v4145_v3  ;;  %v4433_v3 = vor.u32 %v5452_v62, %v4430_v63  ;;  %v4409_v62 = vor.u32 %v5446_v54, %v4406_v38  ;;  %v5412_v63 = vld [vmem:[%s8448_s1 + $0x614] sm:$0xf]  ;;  %v5502_v54 = vld [vmem:[%s8448_s1 + $0x8e4] sm:$0xf] }
 0x11f   :  { %2896 = vmatpush.bf16.msra.mxu3 %v4209_v8  ;;  %v4422_v8 = vld [vmem:[%s8448_s1 + $0x748] sm:$0xf0] }
 0x120   :  { %2858 = vmatpush.bf16.msra.mxu0 %v4009_v21  ;;  %v2652_v9 = vpop.f32.mrf.mxu0  ;;  %v4425_v17 = vor.u32 %v5450_v6, %v4422_v8  ;;  %v5416_v21 = vld [vmem:[%s8448_s1 + $0x634] sm:$0xf]  ;;  %v4262_v6 = vld [vmem:[%s8448_s1 + $0x608] sm:$0xf0] }
 0x121   :  { %2871 = vmatpush.bf16.msra.mxu1 %v4073_v32  ;;  %v2653_v13 = vadd.f32 %v2652_v9, %v7528_v56  ;;  %v2665_v15 = vpop.f32.mrf.mxu1  ;;  %v4489_v56 = vor.u32 %v5466_v10, %v4486_v18  ;;  %v4350_v32 = vld [vmem:[%s8448_s1 + $0x6b8] sm:$0xf0]  ;;  %v5426_v10 = vld [vmem:[%s8448_s1 + $0x684] sm:$0xf]  ;;  %v4326_v18 = vld [vmem:[%s8448_s1 + $0x688] sm:$0xf0] }
 0x122   :  { %2884 = vmatpush.bf16.msra.mxu2 %v4137_v19  ;;  %v5448_v19 = vld [vmem:[%s8448_s1 + $0x734] sm:$0xf] }
 0x123   :  { %2897 = vmatpush.bf16.msra.mxu3 %v4201_v34  ;;  %2859 = vmatmul.bf16.vlgmr.msra.gmra.mxu0 %v6371_v25  ;;  %v5468_v25 = vld [vmem:[%s8448_s1 + $0x7d4] sm:$0xf]  ;;  %v2666_v27 = vadd.f32 %v2665_v15, %v2653_v13  ;;  %v4478_v34 = vld [vmem:[%s8448_s1 + $0x7b8] sm:$0xf0]  ;;  %v5442_v13 = vld [vmem:[%s8448_s1 + $0x704] sm:$0xf] }
 0x124   :  { %2903 = vmatpush.bf16.msrb.mxu0 %v4321_v36  ;;  %2872 = vmatmul.bf16.vlgmr.msra.gmra.mxu1 %v6384_v30  ;;  %v4294_v30 = vld [vmem:[%s8448_s1 + $0x648] sm:$0xf0]  ;;  %v4289_v36 = vor.u32 %v5416_v21, %v4286_v24  ;;  %v5488_v24 = vld [vmem:[%s8448_s1 + $0x874] sm:$0xf] }
 0x125   :  { %2916 = vmatpush.bf16.msrb.mxu1 %v4385_v39  ;;  %2885 = vmatmul.bf16.vlgmr.msra.gmra.mxu2 %v6382_v29  ;;  %v5418_v29 = vld [vmem:[%s8448_s1 + $0x644] sm:$0xf]  ;;  %v4353_v39 = vor.u32 %v5432_v26, %v4350_v32  ;;  %v4390_v15 = vld [vmem:[%s8448_s1 + $0x708] sm:$0xf0]  ;;  %v4574_v26 = vld [vmem:[%s8448_s1 + $0x878] sm:$0xf0]  ;;  %v4265_v32 = vor.u32 %v5410_v5, %v4262_v6 }
 0x126   :  { %2929 = vmatpush.bf16.msrb.mxu2 %v4449_v40  ;;  %2898 = vmatmul.bf16.vlgmr.msra.gmra.mxu3 %v6392_v33  ;;  %v4497_v33 = vor.u32 %v5468_v25, %v4494_v0  ;;  %v4297_v14 = vor.u32 %v5418_v29, %v4294_v30  ;;  %v4417_v40 = vor.u32 %v5448_v19, %v4414_v20  ;;  %v4270_v25 = vld [vmem:[%s8448_s1 + $0x618] sm:$0xf0]  ;;  %v5428_v0 = vld [vmem:[%s8448_s1 + $0x694] sm:$0xf]  ;;  %v5498_v5 = vld [vmem:[%s8448_s1 + $0x8c4] sm:$0xf] }
 0x127   :  { %2942 = vmatpush.bf16.msrb.mxu3 %v4513_v50  ;;  %v4481_v50 = vor.u32 %v5464_v22, %v4478_v34  ;;  %v4398_v29 = vld [vmem:[%s8448_s1 + $0x718] sm:$0xf0]  ;;  %v5460_v30 = vld [vmem:[%s8448_s1 + $0x794] sm:$0xf]  ;;  %v4329_v34 = vor.u32 %v5426_v10, %v4326_v18  ;;  %v4577_v47 = vor.u32 %v5488_v24, %v4574_v26  ;;  %v4614_v6 = vld [vmem:[%s8448_s1 + $0x8c8] sm:$0xf0] }
 0x128   :  { %2904 = vmatpush.bf16.msrb.mxu0 %v4313_v55  ;;  %v2678_v51 = vpop.f32.mrf.mxu2  ;;  %v2654_v60 = vpop.f32.mrf.mxu0  ;;  %v4638_v19 = vld [vmem:[%s8448_s1 + $0x8f8] sm:$0xf0]  ;;  %v5520_v20 = vld [vmem:[%s8448_s1 + $0x974] sm:$0xf]  ;;  %v5530_v18 = vld [vmem:[%s8448_s1 + $0x9c4] sm:$0xf] }
 0x129   :  { %2917 = vmatpush.bf16.msrb.mxu1 %v4377_v58  ;;  %v2679_v57 = vadd.f32 %v2678_v51, %v2666_v27  ;;  %v2691_v55 = vpop.f32.mrf.mxu3  ;;  %v5462_v58 = vld [vmem:[%s8448_s1 + $0x7a4] sm:$0xf]  ;;  %v2667_v42 = vpop.f32.mrf.mxu1  ;;  %v4702_v22 = vld [vmem:[%s8448_s1 + $0x978] sm:$0xf0]  ;;  %v4758_v60 = vld [vmem:[%s8448_s1 + $0x9e8] sm:$0xf0] }
 0x12a   :  { %2930 = vmatpush.bf16.msrb.mxu2 %v4441_v59  ;;  %v4470_v59 = vld [vmem:[%s8448_s1 + $0x7a8] sm:$0xf0]  ;;  %v5486_v51 = vld [vmem:[%s8448_s1 + $0x864] sm:$0xf]  ;;  %v5480_v24 = vld [vmem:[%s8448_s1 + $0x834] sm:$0xf] }
 0x12b   :  { %2943 = vmatpush.bf16.msrb.mxu3 %v4505_v44  ;;  %v7727_v44 = vadd.f32 %v2691_v55, %v2679_v57  ;;  %v4630_v57 = vld [vmem:[%s8448_s1 + $0x8e8] sm:$0xf0]  ;;  %v5518_v55 = vld [vmem:[%s8448_s1 + $0x964] sm:$0xf]  ;;  %v4542_v26 = vld [vmem:[%s8448_s1 + $0x838] sm:$0xf0] }
 0x12c   :  { %2905 = vmatpush.bf16.msrb.mxu0 %v4305_v1  ;;  %v4473_v1 = vor.u32 %v5462_v58, %v4470_v59  ;;  %v4694_v58 = vld [vmem:[%s8448_s1 + $0x968] sm:$0xf0]  ;;  %v5534_v59 = vld [vmem:[%s8448_s1 + $0x9e4] sm:$0xf]  ;;  %v4633_v42 = vor.u32 %v5502_v54, %v4630_v57 }
 0x12d   :  { %2918 = vmatpush.bf16.msrb.mxu1 %v4369_v2  ;;  %v4334_v2 = vld [vmem:[%s8448_s1 + $0x698] sm:$0xf0]  ;;  %v5510_v54 = vld [vmem:[%s8448_s1 + $0x924] sm:$0xf] }
 0x12e   :  { %2931 = vmatpush.bf16.msrb.mxu2 %v4433_v3  ;;  %v5444_v3 = vld [vmem:[%s8448_s1 + $0x714] sm:$0xf]  ;;  %v4337_v8 = vor.u32 %v5428_v0, %v4334_v2  ;;  %v4761_v0 = vor.u32 %v5534_v59, %v4758_v60  ;;  %v4726_v59 = vld [vmem:[%s8448_s1 + $0x9a8] sm:$0xf0] }
 0x12f   :  { %2944 = vmatpush.bf16.msrb.mxu3 %v4497_v33  ;;  %v4273_v33 = vor.u32 %v5412_v63, %v4270_v25  ;;  %v4401_v9 = vor.u32 %v5444_v3, %v4398_v29  ;;  %v4558_v63 = vld [vmem:[%s8448_s1 + $0x858] sm:$0xf0]  ;;  %v5500_v25 = vld [vmem:[%s8448_s1 + $0x8d4] sm:$0xf] }
 0x130   :  { %2906 = vmatpush.bf16.msrb.mxu0 %v4297_v14  ;;  %v4465_v14 = vor.u32 %v5460_v30, %v4462_v4  ;;  %v2680_v21 = vpop.f32.mrf.mxu2  ;;  %v5516_v2 = vld [vmem:[%s8448_s1 + $0x954] sm:$0xf]  ;;  %v4686_v3 = vld [vmem:[%s8448_s1 + $0x958] sm:$0xf0] }
 0x131   :  { %2919 = vmatpush.bf16.msrb.mxu1 %v4361_v53  ;;  %v5458_v53 = vld [vmem:[%s8448_s1 + $0x784] sm:$0xf]  ;;  %v2693_v27 = vpop.f32.mrf.mxu3  ;;  %v4750_v29 = vld [vmem:[%s8448_s1 + $0x9d8] sm:$0xf0] }
 0x132   :  { %2932 = vmatpush.bf16.msrb.mxu2 %v4425_v17  ;;  %v4454_v17 = vld [vmem:[%s8448_s1 + $0x788] sm:$0xf0] }
 0x133   :  { %2945 = vmatpush.bf16.msrb.mxu3 %v4489_v56  ;;  %v5504_v56 = vld [vmem:[%s8448_s1 + $0x8f4] sm:$0xf]  ;;  %v4457_v43 = vor.u32 %v5458_v53, %v4454_v17  ;;  %v4617_v17 = vor.u32 %v5498_v5, %v4614_v6  ;;  %v5490_v6 = vld [vmem:[%s8448_s1 + $0x884] sm:$0xf] }
 0x134   :  { %2907 = vmatpush.bf16.msrb.mxu0 %v4289_v36  ;;  %v4393_v36 = vor.u32 %v5442_v13, %v4390_v15  ;;  %v4641_v48 = vor.u32 %v5504_v56, %v4638_v19  ;;  %v4742_v13 = vld [vmem:[%s8448_s1 + $0x9c8] sm:$0xf0]  ;;  %v5496_v56 = vld [vmem:[%s8448_s1 + $0x8b4] sm:$0xf] }
 0x135   :  { %2920 = vmatpush.bf16.msrb.mxu1 %v4353_v39  ;;  %v5536_v39 = vld [vmem:[%s8448_s1 + $0x9f4] sm:$0xf] }
 0x136   :  { %2933 = vmatpush.bf16.msrb.mxu2 %v4417_v40  ;;  %v4766_v40 = vld [vmem:[%s8448_s1 + $0x9f8] sm:$0xf0]  ;;  %v5512_v19 = vld [vmem:[%s8448_s1 + $0x934] sm:$0xf] }
 0x137   :  { %2946 = vmatpush.bf16.msrb.mxu3 %v4481_v50  ;;  %v4705_v50 = vor.u32 %v5520_v20, %v4702_v22  ;;  %v4769_v38 = vor.u32 %v5536_v39, %v4766_v40  ;;  %v4670_v20 = vld [vmem:[%s8448_s1 + $0x938] sm:$0xf0]  ;;  %v5528_v22 = vld [vmem:[%s8448_s1 + $0x9b4] sm:$0xf] }
 0x138   :  { %2908 = vmatpush.bf16.msrb.mxu0 %v4281_v41  ;;  %v4569_v41 = vor.u32 %v5486_v51, %v4566_v52  ;;  %v4673_v40 = vor.u32 %v5512_v19, %v4670_v20  ;;  %v4598_v52 = vld [vmem:[%s8448_s1 + $0x8a8] sm:$0xf0]  ;;  %v5600_v20 = vld [vmem:[%s8448_s1 + $0xbf4] sm:$0xf] }
 0x139   :  { %2921 = vmatpush.bf16.msrb.mxu1 %v4345_v61  ;;  %v4697_v61 = vor.u32 %v5518_v55, %v4694_v58  ;;  %v5526_v58 = vld [vmem:[%s8448_s1 + $0x9a4] sm:$0xf] }
 0x13a   :  { %2934 = vmatpush.bf16.msrb.mxu2 %v4409_v62  ;;  %v5484_v62 = vld [vmem:[%s8448_s1 + $0x854] sm:$0xf] }
 0x13b   :  { %2947 = vmatpush.bf16.msrb.mxu3 %v4473_v1  ;;  %v4622_v1 = vld [vmem:[%s8448_s1 + $0x8d8] sm:$0xf0]  ;;  %v4561_v30 = vor.u32 %v5484_v62, %v4558_v63 }
 0x13c   :  { %2909 = vmatpush.bf16.msrb.mxu0 %v4273_v33  ;;  %v4625_v4 = vor.u32 %v5500_v25, %v4622_v1  ;;  %v4689_v33 = vor.u32 %v5516_v2, %v4686_v3  ;;  %v5476_v25 = vld [vmem:[%s8448_s1 + $0x814] sm:$0xf]  ;;  %v4729_v2 = vor.u32 %v5526_v58, %v4726_v59  ;;  %v4590_v3 = vld [vmem:[%s8448_s1 + $0x898] sm:$0xf0] }
 0x13d   :  { %2922 = vmatpush.bf16.msrb.mxu1 %v4337_v8  ;;  %v5514_v8 = vld [vmem:[%s8448_s1 + $0x944] sm:$0xf]  ;;  %v5492_v1 = vld [vmem:[%s8448_s1 + $0x894] sm:$0xf] }
 0x13e   :  { %2935 = vmatpush.bf16.msrb.mxu2 %v4401_v9  ;;  %v4678_v9 = vld [vmem:[%s8448_s1 + $0x948] sm:$0xf0]  ;;  %v4593_v5 = vor.u32 %v5492_v1, %v4590_v3  ;;  %v5006_v1 = vld [vmem:[%s8448_s1 + $0xbd8] sm:$0xf0]  ;;  %v5546_v3 = vld [vmem:[%s8448_s1 + $0xa44] sm:$0xf] }
 0x13f   :  { %2948 = vmatpush.bf16.msrb.mxu3 %v4465_v14  ;;  %v4681_v21 = vor.u32 %v5514_v8, %v4678_v9  ;;  %v4582_v8 = vld [vmem:[%s8448_s1 + $0x888] sm:$0xf0]  ;;  %v5506_v9 = vld [vmem:[%s8448_s1 + $0x904] sm:$0xf] }
 0x140   :  { %2910 = vmatpush.bf16.msrb.mxu0 %v4265_v32  ;;  %v2704_v10 = vpop.f32.mrf.mxu0  ;;  %v4606_v32 = vld [vmem:[%s8448_s1 + $0x8b8] sm:$0xf0] }
 0x141   :  { %2923 = vmatpush.bf16.msrb.mxu1 %v4329_v34  ;;  %v2705_v14 = vadd.f32 %v2704_v10, %v7727_v44  ;;  %v2717_v53 = vpop.f32.mrf.mxu1  ;;  %v4745_v44 = vor.u32 %v5530_v18, %v4742_v13  ;;  %v4734_v34 = vld [vmem:[%s8448_s1 + $0x9b8] sm:$0xf0]  ;;  %v4609_v39 = vor.u32 %v5496_v56, %v4606_v32  ;;  %v4646_v18 = vld [vmem:[%s8448_s1 + $0x908] sm:$0xf0]  ;;  %v5522_v13 = vld [vmem:[%s8448_s1 + $0x984] sm:$0xf]  ;;  %v4585_v32 = vor.u32 %v5490_v6, %v4582_v8 }
 0x142   :  { %2936 = vmatpush.bf16.msrb.mxu2 %v4393_v36  ;;  %v4545_v36 = vor.u32 %v5480_v24, %v4542_v26  ;;  %v4894_v56 = vld [vmem:[%s8448_s1 + $0xaf8] sm:$0xf0]  ;;  %v4649_v19 = vor.u32 %v5506_v9, %v4646_v18  ;;  %v5544_v18 = vld [vmem:[%s8448_s1 + $0xa34] sm:$0xf] }
 0x143   :  { %2949 = vmatpush.bf16.msrb.mxu3 %v4457_v43  ;;  %2911 = vmatmul.bf16.vlgmr.msrb.gmra.mxu0 %v6581_v23  ;;  %v5532_v23 = vld [vmem:[%s8448_s1 + $0x9d4] sm:$0xf]  ;;  %v2718_v27 = vadd.f32 %v2717_v53, %v2705_v14  ;;  %v5478_v43 = vld [vmem:[%s8448_s1 + $0x824] sm:$0xf]  ;;  %v4710_v14 = vld [vmem:[%s8448_s1 + $0x988] sm:$0xf0] }
 0x144   :  { %2955 = vmatpush.bf16.msra.mxu0 %v4577_v47  ;;  %2924 = vmatmul.bf16.vlgmr.msrb.gmra.mxu1 %v6594_v31  ;;  %v4550_v31 = vld [vmem:[%s8448_s1 + $0x848] sm:$0xf0]  ;;  %v5552_v53 = vld [vmem:[%s8448_s1 + $0xa74] sm:$0xf] }
 0x145   :  { %2968 = vmatpush.bf16.msra.mxu1 %v4641_v48  ;;  %2937 = vmatmul.bf16.vlgmr.msrb.gmra.mxu2 %v6592_v28  ;;  %v5482_v28 = vld [vmem:[%s8448_s1 + $0x844] sm:$0xf]  ;;  %v4534_v47 = vld [vmem:[%s8448_s1 + $0x828] sm:$0xf0] }
 0x146   :  { %2981 = vmatpush.bf16.msra.mxu2 %v4705_v50  ;;  %2950 = vmatmul.bf16.vlgmr.msrb.gmra.mxu3 %v6602_v35  ;;  %v4753_v35 = vor.u32 %v5532_v23, %v4750_v29  ;;  %v4553_v15 = vor.u32 %v5482_v28, %v4550_v31  ;;  %v5494_v48 = vld [vmem:[%s8448_s1 + $0x8a4] sm:$0xf]  ;;  %v4737_v50 = vor.u32 %v5528_v22, %v4734_v34  ;;  %v5508_v23 = vld [vmem:[%s8448_s1 + $0x914] sm:$0xf]  ;;  %v4654_v29 = vld [vmem:[%s8448_s1 + $0x918] sm:$0xf0] }
 0x147   :  { %2994 = vmatpush.bf16.msra.mxu3 %v4769_v38  ;;  %v4662_v38 = vld [vmem:[%s8448_s1 + $0x928] sm:$0xf0]  ;;  %v4601_v62 = vor.u32 %v5494_v48, %v4598_v52  ;;  %v5474_v28 = vld [vmem:[%s8448_s1 + $0x804] sm:$0xf]  ;;  %v5022_v22 = vld [vmem:[%s8448_s1 + $0xbf8] sm:$0xf0]  ;;  %v4713_v34 = vor.u32 %v5522_v13, %v4710_v14 }
 0x148   :  { %2956 = vmatpush.bf16.msra.mxu0 %v4569_v41  ;;  %v2730_v51 = vpop.f32.mrf.mxu2  ;;  %v2706_v60 = vpop.f32.mrf.mxu0  ;;  %v4537_v41 = vor.u32 %v5478_v43, %v4534_v47  ;;  %v4665_v63 = vor.u32 %v5510_v54, %v4662_v38  ;;  %v4518_v31 = vld [vmem:[%s8448_s1 + $0x808] sm:$0xf0]  ;;  %v5550_v43 = vld [vmem:[%s8448_s1 + $0xa64] sm:$0xf]  ;;  %v4798_v13 = vld [vmem:[%s8448_s1 + $0xa38] sm:$0xf0] }
 0x149   :  { %2969 = vmatpush.bf16.msra.mxu1 %v4633_v42  ;;  %v2731_v57 = vadd.f32 %v2730_v51, %v2718_v27  ;;  %v2743_v55 = vpop.f32.mrf.mxu3  ;;  %v2719_v42 = vpop.f32.mrf.mxu1  ;;  %v4521_v26 = vor.u32 %v5474_v28, %v4518_v31  ;;  %v4958_v27 = vld [vmem:[%s8448_s1 + $0xb78] sm:$0xf0]  ;;  %v4822_v47 = vld [vmem:[%s8448_s1 + $0xa68] sm:$0xf0]  ;;  %v5566_v48 = vld [vmem:[%s8448_s1 + $0xae4] sm:$0xf] }
 0x14a   :  { %2982 = vmatpush.bf16.msra.mxu2 %v4697_v61  ;;  %v4886_v51 = vld [vmem:[%s8448_s1 + $0xae8] sm:$0xf0]  ;;  %v5582_v52 = vld [vmem:[%s8448_s1 + $0xb64] sm:$0xf]  ;;  %v5548_v60 = vld [vmem:[%s8448_s1 + $0xa54] sm:$0xf] }
 0x14b   :  { %2995 = vmatpush.bf16.msra.mxu3 %v4761_v0  ;;  %v7926_v61 = vadd.f32 %v2743_v55, %v2731_v57  ;;  %v4526_v0 = vld [vmem:[%s8448_s1 + $0x818] sm:$0xf0]  ;;  %v4950_v54 = vld [vmem:[%s8448_s1 + $0xb68] sm:$0xf0]  ;;  %v5598_v38 = vld [vmem:[%s8448_s1 + $0xbe4] sm:$0xf]  ;;  %v4825_v55 = vor.u32 %v5550_v43, %v4822_v47  ;;  %v4889_v58 = vor.u32 %v5566_v48, %v4886_v51 }
 0x14c   :  { %2957 = vmatpush.bf16.msra.mxu0 %v4561_v30  ;;  %v5524_v30 = vld [vmem:[%s8448_s1 + $0x994] sm:$0xf]  ;;  %v5014_v57 = vld [vmem:[%s8448_s1 + $0xbe8] sm:$0xf0]  ;;  %v4953_v59 = vor.u32 %v5582_v52, %v4950_v54  ;;  %v5578_v28 = vld [vmem:[%s8448_s1 + $0xb44] sm:$0xf] }
 0x14d   :  { %2970 = vmatpush.bf16.msra.mxu1 %v4625_v4  ;;  %v4718_v4 = vld [vmem:[%s8448_s1 + $0x998] sm:$0xf0]  ;;  %v5564_v42 = vld [vmem:[%s8448_s1 + $0xad4] sm:$0xf]  ;;  %v4934_v31 = vld [vmem:[%s8448_s1 + $0xb48] sm:$0xf0] }
 0x14e   :  { %2983 = vmatpush.bf16.msra.mxu2 %v4689_v33  ;;  %v4529_v33 = vor.u32 %v5476_v25, %v4526_v0  ;;  %v4721_v10 = vor.u32 %v5524_v30, %v4718_v4  ;;  %v5580_v25 = vld [vmem:[%s8448_s1 + $0xb54] sm:$0xf]  ;;  %v4942_v0 = vld [vmem:[%s8448_s1 + $0xb58] sm:$0xf0]  ;;  %v4854_v43 = vld [vmem:[%s8448_s1 + $0xaa8] sm:$0xf0] }
 0x14f   :  { %2996 = vmatpush.bf16.msra.mxu3 %v4753_v35  ;;  %v4657_v35 = vor.u32 %v5508_v23, %v4654_v29  ;;  %v4806_v23 = vld [vmem:[%s8448_s1 + $0xa48] sm:$0xf0]  ;;  %v5562_v29 = vld [vmem:[%s8448_s1 + $0xac4] sm:$0xf]  ;;  %v5560_v14 = vld [vmem:[%s8448_s1 + $0xab4] sm:$0xf] }
 0x150   :  { %2958 = vmatpush.bf16.msra.mxu0 %v4553_v15  ;;  %v2732_v15 = vpop.f32.mrf.mxu2  ;;  %v4809_v6 = vor.u32 %v5546_v3, %v4806_v23  ;;  %v5574_v47 = vld [vmem:[%s8448_s1 + $0xb24] sm:$0xf]  ;;  %v4918_v48 = vld [vmem:[%s8448_s1 + $0xb28] sm:$0xf0] }
 0x151   :  { %2971 = vmatpush.bf16.msra.mxu1 %v4617_v17  ;;  %v4830_v17 = vld [vmem:[%s8448_s1 + $0xa78] sm:$0xf0]  ;;  %v2745_v24 = vpop.f32.mrf.mxu3  ;;  %v5590_v52 = vld [vmem:[%s8448_s1 + $0xba4] sm:$0xf]  ;;  %v4982_v54 = vld [vmem:[%s8448_s1 + $0xba8] sm:$0xf0] }
 0x152   :  { %2984 = vmatpush.bf16.msra.mxu2 %v4681_v21  ;;  %v5568_v21 = vld [vmem:[%s8448_s1 + $0xaf4] sm:$0xf] }
 0x153   :  { %2997 = vmatpush.bf16.msra.mxu3 %v4745_v44  ;;  %v5584_v44 = vld [vmem:[%s8448_s1 + $0xb74] sm:$0xf] }
 0x154   :  { %2959 = vmatpush.bf16.msra.mxu0 %v4545_v36  ;;  %v4833_v36 = vor.u32 %v5552_v53, %v4830_v17  ;;  %v5576_v24 = vld [vmem:[%s8448_s1 + $0xb34] sm:$0xf] }
 0x155   :  { %2972 = vmatpush.bf16.msra.mxu1 %v4609_v39  ;;  %v4897_v39 = vor.u32 %v5568_v21, %v4894_v56  ;;  %v4862_v21 = vld [vmem:[%s8448_s1 + $0xab8] sm:$0xf0]  ;;  %v5592_v56 = vld [vmem:[%s8448_s1 + $0xbb4] sm:$0xf] }
 0x156   :  { %2985 = vmatpush.bf16.msra.mxu2 %v4673_v40  ;;  %v4961_v40 = vor.u32 %v5584_v44, %v4958_v27  ;;  %v4990_v44 = vld [vmem:[%s8448_s1 + $0xbb8] sm:$0xf0] }
 0x157   :  { %2998 = vmatpush.bf16.msra.mxu3 %v4737_v50  ;;  %v5025_v50 = vor.u32 %v5600_v20, %v5022_v22  ;;  %v5542_v22 = vld [vmem:[%s8448_s1 + $0xa24] sm:$0xf] }
 0x158   :  { %2960 = vmatpush.bf16.msra.mxu0 %v4537_v41  ;;  %v4814_v41 = vld [vmem:[%s8448_s1 + $0xa58] sm:$0xf0] }
 0x159   :  { %2973 = vmatpush.bf16.msra.mxu1 %v4601_v62  ;;  %v5017_v62 = vor.u32 %v5598_v38, %v5014_v57 }
 0x15a   :  { %2986 = vmatpush.bf16.msra.mxu2 %v4665_v63  ;;  %v4878_v63 = vld [vmem:[%s8448_s1 + $0xad8] sm:$0xf0] }
 0x15b   :  { %2999 = vmatpush.bf16.msra.mxu3 %v4729_v2  ;;  %v4817_v2 = vor.u32 %v5548_v60, %v4814_v41  ;;  %v5540_v60 = vld [vmem:[%s8448_s1 + $0xa14] sm:$0xf]  ;;  %v4782_v41 = vld [vmem:[%s8448_s1 + $0xa18] sm:$0xf0] }
 0x15c   :  { %2961 = vmatpush.bf16.msra.mxu0 %v4529_v33  ;;  %v4870_v33 = vld [vmem:[%s8448_s1 + $0xac8] sm:$0xf0]  ;;  %v4785_v3 = vor.u32 %v5540_v60, %v4782_v41  ;;  %v5044_v60 = vld [vmem:[%s8450_s3 + $0x20] sm:$0xf] }
 0x15d   :  { %2974 = vmatpush.bf16.msra.mxu1 %v4593_v5  ;;  %v5594_v5 = vld [vmem:[%s8448_s1 + $0xbc4] sm:$0xf]  ;;  %v4873_v9 = vor.u32 %v5562_v29, %v4870_v33  ;;  %v4774_v29 = vld [vmem:[%s8448_s1 + $0xa08] sm:$0xf0] }
 0x15e   :  { %2987 = vmatpush.bf16.msra.mxu2 %v4657_v35  ;;  %v4998_v35 = vld [vmem:[%s8448_s1 + $0xbc8] sm:$0xf0] }
 0x15f   :  { %3000 = vmatpush.bf16.msra.mxu3 %v4721_v10  ;;  %v4937_v10 = vor.u32 %v5578_v28, %v4934_v31  ;;  %v5001_v17 = vor.u32 %v5594_v5, %v4998_v35  ;;  %v5570_v28 = vld [vmem:[%s8448_s1 + $0xb04] sm:$0xf]  ;;  %v4902_v31 = vld [vmem:[%s8448_s1 + $0xb08] sm:$0xf0] }
 0x160   :  { %2962 = vmatpush.bf16.msra.mxu0 %v4521_v26  ;;  %v2756_v8 = vpop.f32.mrf.mxu0  ;;  %v4926_v26 = vld [vmem:[%s8448_s1 + $0xb38] sm:$0xf0]  ;;  %v5586_v5 = vld [vmem:[%s8448_s1 + $0xb84] sm:$0xf] }
 0x161   :  { %2975 = vmatpush.bf16.msra.mxu1 %v4585_v32  ;;  %v2769_v53 = vpop.f32.mrf.mxu1  ;;  %v4801_v32 = vor.u32 %v5544_v18, %v4798_v13  ;;  %v4929_v20 = vor.u32 %v5576_v24, %v4926_v26  ;;  %v5616_v18 = vld [vmem:[%s8450_s3 + $0x74] sm:$0xf]  ;;  %v5086_v13 = vld [vmem:[%s8450_s3 + $0x78] sm:$0xf0]  ;;  %v5076_v24 = vld [vmem:[%s8450_s3 + $0x60] sm:$0xf] }
 0x162   :  { %2988 = vmatpush.bf16.msra.mxu2 %v4649_v19  ;;  %v4865_v19 = vor.u32 %v5560_v14, %v4862_v21  ;;  %v5089_v21 = vor.u32 %v5616_v18, %v5086_v13  ;;  %v5615_v26 = vld [vmem:[%s8450_s3 + $0x64] sm:$0xf0] }
 0x163   :  { %3001 = vmatpush.bf16.msra.mxu3 %v4713_v34  ;;  %2963 = vmatmul.bf16.vlgmr.msra.gmra.mxu0 %v6791_v37  ;;  %v5596_v37 = vld [vmem:[%s8448_s1 + $0xbd4] sm:$0xf]  ;;  %v4790_v34 = vld [vmem:[%s8448_s1 + $0xa28] sm:$0xf0] }
 0x164   :  { %3007 = vmatpush.bf16.msrb.mxu0 %v4833_v36  ;;  %2976 = vmatmul.bf16.vlgmr.msra.gmra.mxu1 %v6804_v46  ;;  %v4945_v46 = vor.u32 %v5580_v25, %v4942_v0  ;;  %v5009_v4 = vor.u32 %v5596_v37, %v5006_v1  ;;  %v5558_v36 = vld [vmem:[%s8448_s1 + $0xaa4] sm:$0xf]  ;;  %v4793_v38 = vor.u32 %v5542_v22, %v4790_v34  ;;  %v4846_v25 = vld [vmem:[%s8448_s1 + $0xa98] sm:$0xf0]  ;;  %v5572_v0 = vld [vmem:[%s8448_s1 + $0xb14] sm:$0xf] }
 0x165   :  { %3020 = vmatpush.bf16.msrb.mxu1 %v4897_v39  ;;  %2989 = vmatmul.bf16.vlgmr.msra.gmra.mxu2 %v6802_v45  ;;  %v4881_v45 = vor.u32 %v5564_v42, %v4878_v63  ;;  %v5556_v42 = vld [vmem:[%s8448_s1 + $0xa94] sm:$0xf]  ;;  %v4985_v63 = vor.u32 %v5590_v52, %v4982_v54  ;;  %v4910_v37 = vld [vmem:[%s8448_s1 + $0xb18] sm:$0xf0] }
 0x166   :  { %3033 = vmatpush.bf16.msrb.mxu2 %v4961_v40  ;;  %3002 = vmatmul.bf16.vlgmr.msra.gmra.mxu3 %v6812_v49  ;;  %v5652_v49 = vld [vmem:[%s8449_s2] sm:$0x3]  ;;  %v4993_v40 = vor.u32 %v5592_v56, %v4990_v44  ;;  %v5588_v1 = vld [vmem:[%s8448_s1 + $0xb94] sm:$0xf]  ;;  %v4913_v23 = vor.u32 %v5572_v0, %v4910_v37  ;;  %v5614_v56 = vld [vmem:[%s8450_s3 + $0x64] sm:$0xf] }
 0x167   :  { %3046 = vmatpush.bf16.msrb.mxu3 %v5025_v50  ;;  %v428_v30 = vperm.slane %v5652_v49, 1  ;;  %v5554_v49 = vld [vmem:[%s8448_s1 + $0xa84] sm:$0xf]  ;;  %v5078_v44 = vld [vmem:[%s8450_s3 + $0x68] sm:$0xf0] }
 0x168   :  { %3008 = vmatpush.bf16.msrb.mxu0 %v4825_v55  ;;  %v2782_v39 = vpop.f32.mrf.mxu2  ;;  %v2758_v55 = vpop.f32.mrf.mxu0  ;;  %v5612_v22 = vld [vmem:[%s8450_s3 + $0x54] sm:$0xf] }
 0x169   :  { %3021 = vmatpush.bf16.msrb.mxu1 %v4889_v58  ;;  %v2757_v15 = vadd.f32 %v2756_v8, %v428_v30  ;;  %v2795_v51 = vpop.f32.mrf.mxu3  ;;  %v4857_v58 = vor.u32 %v5558_v36, %v4854_v43  ;;  %v4838_v30 = vld [vmem:[%s8448_s1 + $0xa88] sm:$0xf0]  ;;  %v5084_v8 = vld [vmem:[%s8450_s3 + $0x70] sm:$0xf]  ;;  %v5608_v54 = vld [vmem:[%s8450_s3 + $0x34] sm:$0xf] }
 0x16a   :  { %3034 = vmatpush.bf16.msrb.mxu2 %v4953_v59  ;;  %v4921_v59 = vor.u32 %v5574_v47, %v4918_v48  ;;  %v4841_v14 = vor.u32 %v5554_v49, %v4838_v30  ;;  %v5052_v48 = vld [vmem:[%s8450_s3 + $0x30] sm:$0xf] }
 0x16b   :  { %3047 = vmatpush.bf16.msrb.mxu3 %v5017_v62  ;;  %v2770_v27 = vadd.f32 %v2769_v53, %v2757_v15  ;;  %v2771_v62 = vpop.f32.mrf.mxu1  ;;  %v4905_v15 = vor.u32 %v5570_v28, %v4902_v31  ;;  %v5602_v31 = vld [vmem:[%s8450_s3 + $0x4] sm:$0xf] }
 0x16c   :  { %3009 = vmatpush.bf16.msrb.mxu0 %v4817_v2  ;;  %v4974_v2 = vld [vmem:[%s8448_s1 + $0xb98] sm:$0xf0]  ;;  %v5046_v62 = vld [vmem:[%s8450_s3 + $0x28] sm:$0xf0] }
 0x16d   :  { %3022 = vmatpush.bf16.msrb.mxu1 %v4881_v45  ;;  %v2783_v50 = vadd.f32 %v2782_v39, %v2770_v27  ;;  %v5538_v45 = vld [vmem:[%s8448_s1 + $0xa04] sm:$0xf]  ;;  %v4977_v33 = vor.u32 %v5588_v1, %v4974_v2  ;;  %v5077_v27 = vor.u32 %v5615_v26, %v5076_v24 }
 0x16e   :  { %3035 = vmatpush.bf16.msrb.mxu2 %v4945_v46  ;;  %v4849_v46 = vor.u32 %v5556_v42, %v4846_v25  ;;  %v5610_v39 = vld [vmem:[%s8450_s3 + $0x44] sm:$0xf] }
 0x16f   :  { %3048 = vmatpush.bf16.msrb.mxu3 %v5009_v4  ;;  %v8127_v57 = vadd.f32 %v2795_v51, %v2783_v50  ;;  %v5609_v50 = vld [vmem:[%s8450_s3 + $0x34] sm:$0xf0]  ;;  %v5606_v42 = vld [vmem:[%s8450_s3 + $0x24] sm:$0xf] }
 0x170   :  { %3010 = vmatpush.bf16.msrb.mxu0 %v4809_v6  ;;  %v2784_v4 = vpop.f32.mrf.mxu2  ;;  %v4966_v6 = vld [vmem:[%s8448_s1 + $0xb88] sm:$0xf0]  ;;  %v5049_v2 = vor.u32 %v5606_v42, %v5046_v62  ;;  %v5627_v42 = vld [vmem:[%s8450_s3 + $0xc4] sm:$0xf0]  ;;  %v5626_v62 = vld [vmem:[%s8450_s3 + $0xc4] sm:$0xf] }
 0x171   :  { %3023 = vmatpush.bf16.msrb.mxu1 %v4873_v9  ;;  %v2797_v35 = vpop.f32.mrf.mxu3  ;;  %v5617_v9 = vld [vmem:[%s8450_s3 + $0x74] sm:$0xf0]  ;;  %v4969_v53 = vor.u32 %v5586_v5, %v4966_v6  ;;  %v5028_v4 = vld [vmem:[%s8450_s3] sm:$0xf]  ;;  %v5030_v5 = vld [vmem:[%s8450_s3 + $0x8] sm:$0xf0] }
 0x172   :  { %3036 = vmatpush.bf16.msrb.mxu2 %v4937_v10  ;;  %v4777_v10 = vor.u32 %v5538_v45, %v4774_v29  ;;  %v5605_v45 = vld [vmem:[%s8450_s3 + $0x14] sm:$0xf0]  ;;  %v5038_v29 = vld [vmem:[%s8450_s3 + $0x18] sm:$0xf0]  ;;  %s3481_s1 = sshll.u32 %s8454_s7, 4  ;;  %s3482_s1 = int_to_ptr.hbm [resolvable:$true] %s3481_s1 }
 0x173   :  { %3049 = vmatpush.bf16.msrb.mxu3 %v5001_v17  ;;  %v5085_v17 = vor.u32 %v5617_v9, %v5084_v8  ;;  %v3059_v8 = vmax.f32 %v7926_v61, 0.0  ;;  %v5033_v9 = vor.u32 %v5602_v31, %v5030_v5  ;;  %v5100_v5 = vld [vmem:[%s8450_s3 + $0x90] sm:$0xf] }
 0x174   :  { %3011 = vmatpush.bf16.msrb.mxu0 %v4801_v32  ;;  %v5081_v32 = vor.u32 %v5614_v56, %v5078_v44 }
 0x175   :  { %3024 = vmatpush.bf16.msrb.mxu1 %v4865_v19  ;;  %v5068_v19 = vld [vmem:[%s8450_s3 + $0x50] sm:$0xf] }
 0x176   :  { %3037 = vmatpush.bf16.msrb.mxu2 %v4929_v20  ;;  %v5613_v20 = vld [vmem:[%s8450_s3 + $0x54] sm:$0xf0] }
 0x177   :  { %3050 = vmatpush.bf16.msrb.mxu3 %v4993_v40  ;;  %v5069_v34 = vor.u32 %v5613_v20, %v5068_v19 }
 0x178   :  { %3012 = vmatpush.bf16.msrb.mxu0 %v4793_v38  ;;  %v5054_v38 = vld [vmem:[%s8450_s3 + $0x38] sm:$0xf0] }
 0x179   :  { %3025 = vmatpush.bf16.msrb.mxu1 %v4857_v58  ;;  %v5053_v58 = vor.u32 %v5609_v50, %v5052_v48  ;;  %v5142_v48 = vld [vmem:[%s8450_s3 + $0xe8] sm:$0xf0] }
 0x17a   :  { %3038 = vmatpush.bf16.msrb.mxu2 %v4921_v59  ;;  %v5057_v59 = vor.u32 %v5608_v54, %v5054_v38  ;;  %v5629_v54 = vld [vmem:[%s8450_s3 + $0xd4] sm:$0xf0]  ;;  %v5628_v38 = vld [vmem:[%s8450_s3 + $0xd4] sm:$0xf] }
 0x17b   :  { %3051 = vmatpush.bf16.msrb.mxu3 %v4985_v63 }
 0x17c   :  { %3013 = vmatpush.bf16.msrb.mxu0 %v4785_v3  ;;  %v5036_v3 = vld [vmem:[%s8450_s3 + $0x10] sm:$0xf] }
 0x17d   :  { %3026 = vmatpush.bf16.msrb.mxu1 %v4849_v46  ;;  %v5037_v49 = vor.u32 %v5605_v45, %v5036_v3  ;;  %v5118_v45 = vld [vmem:[%s8450_s3 + $0xb8] sm:$0xf0] }
 0x17e   :  { %3039 = vmatpush.bf16.msrb.mxu2 %v4913_v23  ;;  %v5604_v23 = vld [vmem:[%s8450_s3 + $0x14] sm:$0xf] }
 0x17f   :  { %3052 = vmatpush.bf16.msrb.mxu3 %v4977_v33  ;;  %v5041_v30 = vor.u32 %v5604_v23, %v5038_v29  ;;  %v5603_v33 = vld [vmem:[%s8450_s3 + $0x4] sm:$0xf0]  ;;  %v5108_v29 = vld [vmem:[%s8450_s3 + $0xa0] sm:$0xf] }
 0x180   :  { %3014 = vmatpush.bf16.msrb.mxu0 %v4777_v10  ;;  %v2808_v43 = vpop.f32.mrf.mxu0  ;;  %v5029_v6 = vor.u32 %v5603_v33, %v5028_v4  ;;  %v3061_v10 = vpack.c.bf16 %v3059_v8, %v3059_v8 }
 0x181   :  { %3027 = vmatpush.bf16.msrb.mxu1 %v4841_v14  ;;  %v2809_v51 = vadd.f32 %v2808_v43, %v8127_v57  ;;  %v2821_v52 = vpop.f32.mrf.mxu1  ;;  %v5607_v57 = vld [vmem:[%s8450_s3 + $0x24] sm:$0xf0] }
 0x182   :  { %3040 = vmatpush.bf16.msrb.mxu2 %v4905_v15  ;;  %v5045_v0 = vor.u32 %v5607_v57, %v5044_v60 }
 0x183   :  { %3053 = vmatpush.bf16.msrb.mxu3 %v4969_v53  ;;  %3015 = vmatmul.bf16.vlgmr.msrb.gmra.mxu0 %v7006_v7  ;;  %v5070_v7 = vld [vmem:[%s8450_s3 + $0x58] sm:$0xf0]  ;;  %v2822_v55 = vadd.f32 %v2821_v52, %v2809_v51  ;;  %v5132_v52 = vld [vmem:[%s8450_s3 + $0xd0] sm:$0xf] }
 0x184   :  { %3260 = vmatpush.bf16.msra.mxu0 %v5085_v17  ;;  %3028 = vmatmul.bf16.vlgmr.msrb.gmra.mxu1 %v7019_v12  ;;  %v5073_v36 = vor.u32 %v5612_v22, %v5070_v7  ;;  %v5060_v12 = vld [vmem:[%s8450_s3 + $0x40] sm:$0xf]  ;;  %v5148_v7 = vld [vmem:[%s8450_s3 + $0xf0] sm:$0xf] }
 0x185   :  { %3041 = vmatmul.bf16.vlgmr.msrb.gmra.mxu2 %v7017_v11  ;;  %v5611_v11 = vld [vmem:[%s8450_s3 + $0x44] sm:$0xf0] }
 0x186   :  { %3286 = vmatpush.bf16.msra.mxu2 %v5089_v21  ;;  %3054 = vmatmul.bf16.vlgmr.msrb.gmra.mxu3 %v7027_v16  ;;  %v5062_v16 = vld [vmem:[%s8450_s3 + $0x48] sm:$0xf0]  ;;  %v5061_v40 = vor.u32 %v5611_v11, %v5060_v12 }
 0x187   :  { %v5065_v47 = vor.u32 %v5610_v39, %v5062_v16  ;;  %v5150_v39 = vld [vmem:[%s8450_s3 + $0xf8] sm:$0xf0]  ;;  %v5140_v16 = vld [vmem:[%s8450_s3 + $0xe0] sm:$0xf] }
 0x188   :  { %3261 = vmatpush.bf16.msra.mxu0 %v5077_v27  ;;  %v2834_v41 = vpop.f32.mrf.mxu2  ;;  %v2810_v1 = vpop.f32.mrf.mxu0 }
 0x189   :  { %v2835_v63 = vadd.f32 %v2834_v41, %v2822_v55  ;;  %v2847_v25 = vpop.f32.mrf.mxu3  ;;  %v2823_v46 = vpop.f32.mrf.mxu1  ;;  %v5124_v41 = vld [vmem:[%s8450_s3 + $0xc0] sm:$0xf]  ;;  %v5625_v1 = vld [vmem:[%s8450_s3 + $0xb4] sm:$0xf0] }
 0x18a   :  { %3287 = vmatpush.bf16.msra.mxu2 %v5081_v32 }
 0x18b   :  { %v2848_v37 = vadd.f32 %v2847_v25, %v2835_v63  ;;  %v5126_v63 = vld [vmem:[%s8450_s3 + $0xc8] sm:$0xf0]  ;;  %v5125_v25 = vor.u32 %v5627_v42, %v5124_v41 }
 0x18c   :  { %3262 = vmatpush.bf16.msra.mxu0 %v5069_v34  ;;  %v5633_v34 = vld [vmem:[%s8450_s3 + $0xf4] sm:$0xf0]  ;;  %v5639_v41 = vld [vmem:[%s8452_s5 + $0x28] sm:$0xff] }
 0x18d   :  { %v5149_v11 = vor.u32 %v5633_v34, %v5148_v7  ;;  %v5647_v42 = vld [vmem:[%s8452_s5 + $0x68] sm:$0xff] }
 0x18e   :  { %3288 = vmatpush.bf16.msra.mxu2 %v5073_v36  ;;  %v5632_v36 = vld [vmem:[%s8450_s3 + $0xf4] sm:$0xf] }
 0x18f   :  { %v5153_v43 = vor.u32 %v5632_v36, %v5150_v39  ;;  %3273 = vmatpush.bf16.msra.mxu1 %v5149_v11 }
 0x190   :  { %3263 = vmatpush.bf16.msra.mxu0 %v5061_v40  ;;  %v2836_v28 = vpop.f32.mrf.mxu2  ;;  %v5631_v40 = vld [vmem:[%s8450_s3 + $0xe4] sm:$0xf0] }
 0x191   :  { %v2849_v35 = vpop.f32.mrf.mxu3  ;;  %v5141_v50 = vor.u32 %v5631_v40, %v5140_v16  ;;  %3299 = vmatpush.bf16.msra.mxu3 %v5153_v43  ;;  %v5110_v28 = vld [vmem:[%s8450_s3 + $0xa8] sm:$0xf0] }
 0x192   :  { %3289 = vmatpush.bf16.msra.mxu2 %v5065_v47  ;;  %v5630_v47 = vld [vmem:[%s8450_s3 + $0xe4] sm:$0xf]  ;;  %v5621_v35 = vld [vmem:[%s8450_s3 + $0x94] sm:$0xf0] }
 0x193   :  { %v5145_v51 = vor.u32 %v5630_v47, %v5142_v48  ;;  %3274 = vmatpush.bf16.msra.mxu1 %v5141_v50  ;;  %v5101_v8 = vor.u32 %v5621_v35, %v5100_v5 }
 0x194   :  { %3264 = vmatpush.bf16.msra.mxu0 %v5053_v58  ;;  %v5133_v58 = vor.u32 %v5629_v54, %v5132_v52 }
 0x195   :  { %3300 = vmatpush.bf16.msra.mxu3 %v5145_v51 }
 0x196   :  { %3290 = vmatpush.bf16.msra.mxu2 %v5057_v59  ;;  %v5134_v59 = vld [vmem:[%s8450_s3 + $0xd8] sm:$0xf0] }
 0x197   :  { %v5137_v57 = vor.u32 %v5628_v38, %v5134_v59  ;;  %3275 = vmatpush.bf16.msra.mxu1 %v5133_v58  ;;  %v5640_v59 = vld [vmem:[%s8452_s5 + $0x30] sm:$0xff] }
 0x198   :  { %3265 = vmatpush.bf16.msra.mxu0 %v5045_v0  ;;  %v5129_v0 = vor.u32 %v5626_v62, %v5126_v63  ;;  %v5638_v62 = vld [vmem:[%s8452_s5 + $0x20] sm:$0xff] }
 0x199   :  { %3301 = vmatpush.bf16.msra.mxu3 %v5137_v57  ;;  %v5646_v63 = vld [vmem:[%s8452_s5 + $0x60] sm:$0xff] }
 0x19a   :  { %3291 = vmatpush.bf16.msra.mxu2 %v5049_v2  ;;  %v5624_v2 = vld [vmem:[%s8450_s3 + $0xb4] sm:$0xf] }
 0x19b   :  { %3276 = vmatpush.bf16.msra.mxu1 %v5125_v25  ;;  %v5121_v46 = vor.u32 %v5624_v2, %v5118_v45  ;;  %v5637_v25 = vld [vmem:[%s8452_s5 + $0x18] sm:$0xff] }
 0x19c   :  { %3266 = vmatpush.bf16.msra.mxu0 %v5037_v49  ;;  %v5623_v49 = vld [vmem:[%s8450_s3 + $0xa4] sm:$0xf0] }
 0x19d   :  { %3302 = vmatpush.bf16.msra.mxu3 %v5129_v0  ;;  %v5109_v33 = vor.u32 %v5623_v49, %v5108_v29  ;;  %v5645_v0 = vld [vmem:[%s8452_s5 + $0x58] sm:$0xff]  ;;  %v5634_v29 = vld [vmem:[%s8452_s5] sm:$0xff]  ;;  %v5643_v49 = vld [vmem:[%s8452_s5 + $0x48] sm:$0xff] }
 0x19e   :  { %3292 = vmatpush.bf16.msra.mxu2 %v5041_v30  ;;  %v5622_v30 = vld [vmem:[%s8450_s3 + $0xa4] sm:$0xf] }
 0x19f   :  { %v5113_v31 = vor.u32 %v5622_v30, %v5110_v28  ;;  %v5642_v30 = vld [vmem:[%s8452_s5 + $0x40] sm:$0xff] }
 0x1a0   :  { %3267 = vmatpush.bf16.msra.mxu0 %v5029_v6  ;;  %v2860_v18 = vpop.f32.mrf.mxu0  ;;  %v5620_v6 = vld [vmem:[%s8450_s3 + $0x94] sm:$0xf] }
 0x1a1   :  { %v2861_v13 = vadd.f32 %v2860_v18, %v2848_v37  ;;  %v2873_v14 = vpop.f32.mrf.mxu1  ;;  %v5116_v37 = vld [vmem:[%s8450_s3 + $0xb0] sm:$0xf]  ;;  %3303 = vmatpush.bf16.msra.mxu3 %v5121_v46  ;;  %v5635_v46 = vld [vmem:[%s8452_s5 + $0x8] sm:$0xff] }
 0x1a2   :  { %3293 = vmatpush.bf16.msra.mxu2 %v5033_v9  ;;  %v5117_v3 = vor.u32 %v5625_v1, %v5116_v37  ;;  %v5102_v9 = vld [vmem:[%s8450_s3 + $0x98] sm:$0xf0]  ;;  %v5636_v1 = vld [vmem:[%s8452_s5 + $0x10] sm:$0xff] }
 0x1a3   :  { %3268 = vmatmul.bf16.vlgmr.msra.gmra.mxu0 %v3061_v10  ;;  %v2874_v15 = vadd.f32 %v2873_v14, %v2861_v13 }
 0x1a4   :  { %3277 = vmatpush.bf16.msra.mxu1 %v5117_v3 }
 0x1a5   :  { %3294 = vmatmul.bf16.vlgmr.msra.gmra.mxu2 %v3061_v10  ;;  %3304 = vmatpush.bf16.msra.mxu3 %v5113_v31  ;;  %v5105_v10 = vor.u32 %v5620_v6, %v5102_v9 }
 0x1a8   :  { %v2886_v53 = vpop.f32.mrf.mxu2  ;;  %v2862_v24 = vpop.f32.mrf.mxu0  ;;  %3278 = vmatpush.bf16.msra.mxu1 %v5109_v33 }
 0x1a9   :  { %v2887_v17 = vadd.f32 %v2886_v53, %v2874_v15  ;;  %v2899_v21 = vpop.f32.mrf.mxu3  ;;  %v2875_v26 = vpop.f32.mrf.mxu1  ;;  %3305 = vmatpush.bf16.msra.mxu3 %v5105_v10  ;;  %v5092_v53 = vld [vmem:[%s8450_s3 + $0x80] sm:$0xf] }
 0x1ab   :  { %v8279_v56 = vadd.f32 %v2899_v21, %v2887_v17  ;;  %v5619_v17 = vld [vmem:[%s8450_s3 + $0x84] sm:$0xf0]  ;;  %v5618_v21 = vld [vmem:[%s8450_s3 + $0x84] sm:$0xf] }
 0x1ac   :  { %3279 = vmatpush.bf16.msra.mxu1 %v5101_v8  ;;  %v5093_v26 = vor.u32 %v5619_v17, %v5092_v53 }
 0x1b0   :  { %v2888_v44 = vpop.f32.mrf.mxu2  ;;  %3280 = vmatpush.bf16.msra.mxu1 %v5093_v26 }
 0x1b1   :  { %v2901_v61 = vpop.f32.mrf.mxu3 }
 0x1c0   :  { %v8281_v27 = vpop.f32.mrf.mxu0 }
 0x1c1   :  { %v8283_v32 = vpop.f32.mrf.mxu1  ;;  %v2913_v18 = vadd.f32 %v8281_v27, %v8279_v56  ;;  %v5094_v56 = vld [vmem:[%s8450_s3 + $0x88] sm:$0xf0] }
 0x1c2   :  { %v5097_v44 = vor.u32 %v5618_v21, %v5094_v56  ;;  %v5651_v21 = vld [vmem:[%s8453_s6] ss:$0 sm:$0xff] }
 0x1c3   :  { %v2926_v61 = vadd.f32 %v8283_v32, %v2913_v18 }
 0x1c4   :  { %3306 = vmatpush.bf16.msra.mxu3 %v5097_v44 }
 0x1c8   :  { %v8285_v19 = vpop.f32.mrf.mxu2  ;;  %v2914_v22 = vpop.f32.mrf.mxu0 }
 0x1c9   :  { %v8287_v20 = vpop.f32.mrf.mxu3  ;;  %v2927_v12 = vpop.f32.mrf.mxu1  ;;  %v2939_v27 = vadd.f32 %v8285_v19, %v2926_v61  ;;  %v5641_v19 = vld [vmem:[%s8452_s5 + $0x38] sm:$0xff] }
 0x1ca   :  { %3447 = vmatpush.bf16.msrb.mxu0 %v5641_v19 }
 0x1cb   :  { %v2952_v34 = vadd.f32 %v8287_v20, %v2939_v27  ;;  %v5649_v20 = vld [vmem:[%s8452_s5 + $0x78] sm:$0xff] }
 0x1cc   :  { %3460 = vmatpush.bf16.msrb.mxu1 %v5649_v20 }
 0x1ce   :  { %3448 = vmatpush.bf16.msrb.mxu0 %v5640_v59 }
 0x1d0   :  { %v2940_v55 = vpop.f32.mrf.mxu2 }
 0x1d1   :  { %v2953_v60 = vpop.f32.mrf.mxu3 }
 0x1d2   :  { %v5648_v60 = vld [vmem:[%s8452_s5 + $0x70] sm:$0xff]  ;;  %3449 = vmatpush.bf16.msrb.mxu0 %v5639_v41 }
 0x1d3   :  { %3461 = vmatpush.bf16.msrb.mxu1 %v5648_v60 }
 0x1d6   :  { %3450 = vmatpush.bf16.msrb.mxu0 %v5638_v62 }
 0x1d7   :  { %3462 = vmatpush.bf16.msrb.mxu1 %v5647_v42 }
 0x1da   :  { %3451 = vmatpush.bf16.msrb.mxu0 %v5637_v25 }
 0x1db   :  { %3463 = vmatpush.bf16.msrb.mxu1 %v5646_v63 }
 0x1de   :  { %3452 = vmatpush.bf16.msrb.mxu0 %v5636_v1 }
 0x1df   :  { %3464 = vmatpush.bf16.msrb.mxu1 %v5645_v0 }
 0x1e0   :  { %v2964_v23 = vpop.f32.mrf.mxu0 }
 0x1e1   :  { %v2977_v4 = vpop.f32.mrf.mxu1  ;;  %v2965_v36 = vadd.f32 %v2964_v23, %v2952_v34  ;;  %v5644_v23 = vld [vmem:[%s8452_s5 + $0x50] sm:$0xff] }
 0x1e2   :  { %3453 = vmatpush.bf16.msrb.mxu0 %v5635_v46 }
 0x1e3   :  { %v2978_v12 = vadd.f32 %v2977_v4, %v2965_v36  ;;  %3465 = vmatpush.bf16.msrb.mxu1 %v5644_v23  ;;  %v40_v4 = vld [vmem:[%s8451_s4] sm:$0x3]  ;;  %s5679_s4 = smov [#allocation2]  }
 0x1e4   :  { %v3096_v33 = vperm.slane %v40_v4, 0  ;;  %v3097_v5 = vperm.slane %v40_v4, 1  ;;  %s3479_s17 = sshll.u32 %s5679_s4, 4  ;;  %s3480_s17 = int_to_ptr.vmem [resolvable:$true] %s3479_s17 }
 0x1e6   :  { %3454 = vmatpush.bf16.msrb.mxu0 %v5634_v29 }
 0x1e7   :  { %3466 = vmatpush.bf16.msrb.mxu1 %v5643_v49 }
 0x1e8   :  { %v2990_v13 = vpop.f32.mrf.mxu2  ;;  %v2966_v15 = vpop.f32.mrf.mxu0 }
 0x1e9   :  { %v3003_v14 = vpop.f32.mrf.mxu3  ;;  %v2979_v24 = vpop.f32.mrf.mxu1  ;;  %v2991_v11 = vadd.f32 %v2990_v13, %v2978_v12 }
 0x1eb   :  { %v3004_v39 = vadd.f32 %v3003_v14, %v2991_v11  ;;  %3467 = vmatpush.bf16.msrb.mxu1 %v5642_v30 }
 0x1f0   :  { %v2992_v22 = vpop.f32.mrf.mxu2 }
 0x1f1   :  { %v3005_v7 = vpop.f32.mrf.mxu3 }
 0x200   :  { %v3016_v16 = vpop.f32.mrf.mxu0 }
 0x201   :  { %v3029_v40 = vpop.f32.mrf.mxu1  ;;  %v3017_v43 = vadd.f32 %v3016_v16, %v3004_v39 }
 0x203   :  { %v3030_v47 = vadd.f32 %v3029_v40, %v3017_v43 }
 0x208   :  { %v3042_v48 = vpop.f32.mrf.mxu2  ;;  %v3018_v32 = vpop.f32.mrf.mxu0 }
 0x209   :  { %v3043_v50 = vadd.f32 %v3042_v48, %v3030_v47  ;;  %v3055_v51 = vpop.f32.mrf.mxu3  ;;  %v3031_v52 = vpop.f32.mrf.mxu1 }
 0x20b   :  { %v3056_v54 = vadd.f32 %v3055_v51, %v3043_v50 }
 0x20d   :  { %v3060_v38 = vmax.f32 %v3056_v54, 0.0 }
 0x20f   :  { %v3062_v55 = vpack.c.bf16 %v3060_v38, %v3060_v38 }
 0x210   :  { %v3044_v58 = vpop.f32.mrf.mxu2 }
 0x211   :  { %v3057_v57 = vpop.f32.mrf.mxu3  ;;  %3281 = vmatmul.bf16.vlgmr.msra.gmra.mxu1 %v3062_v55  ;;  %3307 = vmatmul.bf16.vlgmr.msra.gmra.mxu3 %v3062_v55 }
 0x220   :  { %v3269_v37 = vpop.f32.mrf.mxu0 }
 0x221   :  { %v3270_v28 = vadd.f32 %v3269_v37, %v3096_v33 }
 0x228   :  { %v3295_v2 = vpop.f32.mrf.mxu2  ;;  %v3271_v3 = vpop.f32.mrf.mxu0 }
 0x229   :  { %v3296_v8 = vadd.f32 %v3295_v2, %v3097_v5 }
 0x230   :  { %v3297_v45 = vpop.f32.mrf.mxu2 }
 0x28e   :  { %v3282_v31 = vpop.f32.mrf.mxu1 }
 0x28f   :  { %v3283_v35 = vadd.f32 %v3282_v31, %v3270_v28 }
 0x291   :  { %v3312_v6 = vmax.f32 %v3283_v35, 0.0 }
 0x293   :  { %v3314_v9 = vpack.c.bf16 %v3312_v6, %v3312_v6 }
 0x294   :  { %v3308_v10 = vpop.f32.mrf.mxu3 }
 0x295   :  { %v3309_v18 = vadd.f32 %v3308_v10, %v3296_v8  ;;  %3455 = vmatmul.bf16.vlgmr.msrb.gmra.mxu0 %v3314_v9 }
 0x296   :  { %v3284_v13 = vpop.f32.mrf.mxu1 }
 0x297   :  { %v3313_v14 = vmax.f32 %v3309_v18, 0.0 }
 0x299   :  { %v3315_v15 = vpack.c.bf16 %v3313_v14, %v3313_v14 }
 0x29b   :  { %3468 = vmatmul.bf16.vlgmr.msrb.gmra.mxu1 %v3315_v15 }
 0x29c   :  { %v3310_v53 = vpop.f32.mrf.mxu3 }
 0x312   :  { %v3456_v17 = vpop.f32.mrf.mxu0 }
 0x313   :  { %v3457_v24 = vadd.f32 %v5651_v21, %v3456_v17 }
 0x318   :  { %v3469_v26 = vpop.f32.mrf.mxu1 }
 0x319   :  { %v3470_v56 = vadd.f32 %v3469_v26, %v3457_v24 }
 0x31a   :  { %v3458_v44 = vpop.f32.mrf.mxu0 }
 0x31b   :  { %3473 = vst [vmem:[#allocation2] sm:$0xff] %v3470_v56 }
 0x31c   :  { %3484 = dma.vmem_to_hbm [thread:$0]  %s3480_s17, 128, %s3482_s1, [#allocation3]  }
 0x320   :  { %v3471_v61 = vpop.f32.mrf.mxu1 }
 0x321   :  { %5677 = dma.done.wait [#allocation3], 128  }
 0x322   :  { %5678 = vsyncadd [#allocation3], 4294967168 }
 0x323   :  { %3489 = vsyncpa [#allocation3], 1 }

// kernel: mlp_cifar100_forward.1
= control target key start
LH: loop header
LB: loop body
LE: loop exit
PB: predicated region body
PF: predicated region fallthrough
CT: control target
= control target key end

     0   :  { %s8447_s0 = inlined_call_operand.vmem [shape: bf16[8,3072], index: 0, kind: input, shape index: {}]   ;;  %s8448_s1 = inlined_call_operand.vmem [shape: bf16[3072,256], index: 1, kind: input, shape index: {}]   ;;  %s8449_s2 = inlined_call_operand.vmem [shape: f32[1,256], index: 2, kind: input, shape index: {}]   ;;  %s8450_s3 = inlined_call_operand.vmem [shape: bf16[256,256], index: 3, kind: input, shape index: {}]   ;;  %s8451_s4 = inlined_call_operand.vmem [shape: f32[1,256], index: 4, kind: input, shape index: {}]   ;;  %s8452_s5 = inlined_call_operand.vmem [shape: bf16[256,128], index: 5, kind: input, shape index: {}]   ;;  %s8453_s6 = inlined_call_operand.vmem [shape: f32[1,128], index: 6, kind: input, shape index: {}]   ;;  %s8454_s7 = inlined_call_operand.hbm [shape: f32[8,128], index: 7, kind: output, shape index: {}]  }
   0x1   :  { %v3548_v0 = vld [vmem:[%s8448_s1 + $0x70] sm:$0xf]  ;;  %v5233_v1 = vld [vmem:[%s8448_s1 + $0x74] sm:$0xf0]  ;;  %v3540_v11 = vld [vmem:[%s8448_s1 + $0x60] sm:$0xf] }
   0x2   :  { %v3612_v2 = vld [vmem:[%s8448_s1 + $0xf0] sm:$0xf]  ;;  %v3549_v3 = vor.u32 %v5233_v1, %v3548_v0  ;;  %v5249_v4 = vld [vmem:[%s8448_s1 + $0xf4] sm:$0xf0]  ;;  %v5231_v13 = vld [vmem:[%s8448_s1 + $0x64] sm:$0xf0] }
   0x3   :  { %v3676_v5 = vld [vmem:[%s8448_s1 + $0x170] sm:$0xf]  ;;  %v5265_v6 = vld [vmem:[%s8448_s1 + $0x174] sm:$0xf0]  ;;  %v3613_v7 = vor.u32 %v5249_v4, %v3612_v2  ;;  %v3604_v14 = vld [vmem:[%s8448_s1 + $0xe0] sm:$0xf]  ;;  %v3541_v16 = vor.u32 %v5231_v13, %v3540_v11 }
   0x4   :  { %v3677_v8 = vor.u32 %v5265_v6, %v3676_v5  ;;  %v3740_v9 = vld [vmem:[%s8448_s1 + $0x1f0] sm:$0xf]  ;;  %v5281_v10 = vld [vmem:[%s8448_s1 + $0x1f4] sm:$0xf0]  ;;  %2435 = vmatpush.bf16.msra.mxu0 %v3549_v3  ;;  %v5247_v15 = vld [vmem:[%s8448_s1 + $0xe4] sm:$0xf0] }
   0x5   :  { %v3741_v12 = vor.u32 %v5281_v10, %v3740_v9  ;;  %2448 = vmatpush.bf16.msra.mxu1 %v3613_v7  ;;  %v3605_v17 = vor.u32 %v5247_v15, %v3604_v14  ;;  %v3668_v18 = vld [vmem:[%s8448_s1 + $0x160] sm:$0xf]  ;;  %v5263_v19 = vld [vmem:[%s8448_s1 + $0x164] sm:$0xf0]  ;;  %v3532_v23 = vld [vmem:[%s8448_s1 + $0x50] sm:$0xf] }
   0x6   :  { %2461 = vmatpush.bf16.msra.mxu2 %v3677_v8  ;;  %v3732_v20 = vld [vmem:[%s8448_s1 + $0x1e0] sm:$0xf]  ;;  %v3669_v21 = vor.u32 %v5263_v19, %v3668_v18  ;;  %v5279_v22 = vld [vmem:[%s8448_s1 + $0x1e4] sm:$0xf0]  ;;  %v5229_v24 = vld [vmem:[%s8448_s1 + $0x54] sm:$0xf0] }
   0x7   :  { %2474 = vmatpush.bf16.msra.mxu3 %v3741_v12  ;;  %v3733_v25 = vor.u32 %v5279_v22, %v3732_v20  ;;  %v3596_v26 = vld [vmem:[%s8448_s1 + $0xd0] sm:$0xf]  ;;  %v5245_v27 = vld [vmem:[%s8448_s1 + $0xd4] sm:$0xf0]  ;;  %v3533_v29 = vor.u32 %v5229_v24, %v3532_v23  ;;  %v3524_v35 = vld [vmem:[%s8448_s1 + $0x40] sm:$0xf] }
   0x8   :  { %v3660_v28 = vld [vmem:[%s8448_s1 + $0x150] sm:$0xf]  ;;  %2436 = vmatpush.bf16.msra.mxu0 %v3541_v16  ;;  %v5261_v30 = vld [vmem:[%s8448_s1 + $0x154] sm:$0xf0]  ;;  %v3597_v33 = vor.u32 %v5245_v27, %v3596_v26  ;;  %v5227_v36 = vld [vmem:[%s8448_s1 + $0x44] sm:$0xf0] }
   0x9   :  { %v3724_v31 = vld [vmem:[%s8448_s1 + $0x1d0] sm:$0xf]  ;;  %v5277_v32 = vld [vmem:[%s8448_s1 + $0x1d4] sm:$0xf0]  ;;  %2449 = vmatpush.bf16.msra.mxu1 %v3605_v17  ;;  %v3661_v34 = vor.u32 %v5261_v30, %v3660_v28  ;;  %v3588_v37 = vld [vmem:[%s8448_s1 + $0xc0] sm:$0xf]  ;;  %v3525_v44 = vor.u32 %v5227_v36, %v3524_v35 }
   0xa   :  { %2462 = vmatpush.bf16.msra.mxu2 %v3669_v21  ;;  %v3725_v38 = vor.u32 %v5277_v32, %v3724_v31  ;;  %v5243_v39 = vld [vmem:[%s8448_s1 + $0xc4] sm:$0xf0]  ;;  %v3652_v40 = vld [vmem:[%s8448_s1 + $0x140] sm:$0xf]  ;;  %v3516_v47 = vld [vmem:[%s8448_s1 + $0x30] sm:$0xf] }
   0xb   :  { %2475 = vmatpush.bf16.msra.mxu3 %v3733_v25  ;;  %v5259_v41 = vld [vmem:[%s8448_s1 + $0x144] sm:$0xf0]  ;;  %v3716_v42 = vld [vmem:[%s8448_s1 + $0x1c0] sm:$0xf]  ;;  %v3589_v45 = vor.u32 %v5243_v39, %v3588_v37  ;;  %v5225_v48 = vld [vmem:[%s8448_s1 + $0x34] sm:$0xf0] }
   0xc   :  { %v5275_v43 = vld [vmem:[%s8448_s1 + $0x1c4] sm:$0xf0]  ;;  %2437 = vmatpush.bf16.msra.mxu0 %v3533_v29  ;;  %v3653_v46 = vor.u32 %v5259_v41, %v3652_v40  ;;  %v3580_v49 = vld [vmem:[%s8448_s1 + $0xb0] sm:$0xf]  ;;  %v5241_v51 = vld [vmem:[%s8448_s1 + $0xb4] sm:$0xf0]  ;;  %v3517_v56 = vor.u32 %v5225_v48, %v3516_v47 }
   0xd   :  { %2450 = vmatpush.bf16.msra.mxu1 %v3597_v33  ;;  %v3717_v50 = vor.u32 %v5275_v43, %v3716_v42  ;;  %v3644_v52 = vld [vmem:[%s8448_s1 + $0x130] sm:$0xf]  ;;  %v5257_v53 = vld [vmem:[%s8448_s1 + $0x134] sm:$0xf0]  ;;  %v3581_v57 = vor.u32 %v5241_v51, %v3580_v49  ;;  %v3508_v59 = vld [vmem:[%s8448_s1 + $0x20] sm:$0xf] }
   0xe   :  { %2463 = vmatpush.bf16.msra.mxu2 %v3661_v34  ;;  %v3708_v54 = vld [vmem:[%s8448_s1 + $0x1b0] sm:$0xf]  ;;  %v5273_v55 = vld [vmem:[%s8448_s1 + $0x1b4] sm:$0xf0]  ;;  %v3645_v58 = vor.u32 %v5257_v53, %v3644_v52  ;;  %v5223_v60 = vld [vmem:[%s8448_s1 + $0x24] sm:$0xf0] }
   0xf   :  { %2476 = vmatpush.bf16.msra.mxu3 %v3725_v38  ;;  %v3572_v61 = vld [vmem:[%s8448_s1 + $0xa0] sm:$0xf]  ;;  %v3709_v62 = vor.u32 %v5273_v55, %v3708_v54  ;;  %v5239_v63 = vld [vmem:[%s8448_s1 + $0xa4] sm:$0xf0]  ;;  %v3509_v4 = vor.u32 %v5223_v60, %v3508_v59  ;;  %v3500_v7 = vld [vmem:[%s8448_s1 + $0x10] sm:$0xf] }
  0x10   :  { %2438 = vmatpush.bf16.msra.mxu0 %v3525_v44  ;;  %v3636_v0 = vld [vmem:[%s8448_s1 + $0x120] sm:$0xf]  ;;  %v5255_v1 = vld [vmem:[%s8448_s1 + $0x124] sm:$0xf0]  ;;  %v3573_v5 = vor.u32 %v5239_v63, %v3572_v61  ;;  %v5221_v8 = vld [vmem:[%s8448_s1 + $0x14] sm:$0xf0] }
  0x11   :  { %2451 = vmatpush.bf16.msra.mxu1 %v3589_v45  ;;  %v3700_v2 = vld [vmem:[%s8448_s1 + $0x1a0] sm:$0xf]  ;;  %v5271_v3 = vld [vmem:[%s8448_s1 + $0x1a4] sm:$0xf0]  ;;  %v3637_v6 = vor.u32 %v5255_v1, %v3636_v0  ;;  %v3564_v9 = vld [vmem:[%s8448_s1 + $0x90] sm:$0xf]  ;;  %v3501_v16 = vor.u32 %v5221_v8, %v3500_v7 }
  0x12   :  { %2464 = vmatpush.bf16.msra.mxu2 %v3653_v46  ;;  %v3701_v10 = vor.u32 %v5271_v3, %v3700_v2  ;;  %v5237_v11 = vld [vmem:[%s8448_s1 + $0x94] sm:$0xf0]  ;;  %v3628_v12 = vld [vmem:[%s8448_s1 + $0x110] sm:$0xf]  ;;  %v3492_v17 = vld [vmem:[%s8448_s1] sm:$0xf] }
  0x13   :  { %2477 = vmatpush.bf16.msra.mxu3 %v3717_v50  ;;  %v5253_v13 = vld [vmem:[%s8448_s1 + $0x114] sm:$0xf0]  ;;  %v3692_v14 = vld [vmem:[%s8448_s1 + $0x190] sm:$0xf]  ;;  %v5219_v18 = vld [vmem:[%s8448_s1 + $0x4] sm:$0xf0]  ;;  %v3565_v19 = vor.u32 %v5237_v11, %v3564_v9 }
  0x14   :  { %2439 = vmatpush.bf16.msra.mxu0 %v3517_v56  ;;  %v5269_v15 = vld [vmem:[%s8448_s1 + $0x194] sm:$0xf0]  ;;  %v3629_v20 = vor.u32 %v5253_v13, %v3628_v12  ;;  %v3556_v21 = vld [vmem:[%s8448_s1 + $0x80] sm:$0xf]  ;;  %v5235_v22 = vld [vmem:[%s8448_s1 + $0x84] sm:$0xf0]  ;;  %v3493_v31 = vor.u32 %v5219_v18, %v3492_v17 }
  0x15   :  { %2452 = vmatpush.bf16.msra.mxu1 %v3581_v57  ;;  %v3620_v23 = vld [vmem:[%s8448_s1 + $0x100] sm:$0xf]  ;;  %v3693_v24 = vor.u32 %v5269_v15, %v3692_v14  ;;  %v5251_v25 = vld [vmem:[%s8448_s1 + $0x104] sm:$0xf0]  ;;  %v3804_v28 = vld [vmem:[%s8448_s1 + $0x270] sm:$0xf]  ;;  %v3557_v35 = vor.u32 %v5235_v22, %v3556_v21 }
  0x16   :  { %2465 = vmatpush.bf16.msra.mxu2 %v3645_v58  ;;  %v3684_v26 = vld [vmem:[%s8448_s1 + $0x180] sm:$0xf]  ;;  %v5267_v27 = vld [vmem:[%s8448_s1 + $0x184] sm:$0xf0]  ;;  %v5297_v29 = vld [vmem:[%s8448_s1 + $0x274] sm:$0xf0]  ;;  %v3621_v36 = vor.u32 %v5251_v25, %v3620_v23 }
  0x17   :  { %2478 = vmatpush.bf16.msra.mxu3 %v3709_v62  ;;  %v3868_v30 = vld [vmem:[%s8448_s1 + $0x2f0] sm:$0xf]  ;;  %v5313_v32 = vld [vmem:[%s8448_s1 + $0x2f4] sm:$0xf0]  ;;  %v3685_v39 = vor.u32 %v5267_v27, %v3684_v26  ;;  %v3805_v40 = vor.u32 %v5297_v29, %v3804_v28  ;;  %v3796_v43 = vld [vmem:[%s8448_s1 + $0x260] sm:$0xf] }
  0x18   :  { %2440 = vmatpush.bf16.msra.mxu0 %v3509_v4  ;;  %v3932_v33 = vld [vmem:[%s8448_s1 + $0x370] sm:$0xf]  ;;  %v5329_v34 = vld [vmem:[%s8448_s1 + $0x374] sm:$0xf0]  ;;  %v3869_v41 = vor.u32 %v5313_v32, %v3868_v30  ;;  %v5295_v44 = vld [vmem:[%s8448_s1 + $0x264] sm:$0xf0] }
  0x19   :  { %2453 = vmatpush.bf16.msra.mxu1 %v3573_v5  ;;  %v3996_v37 = vld [vmem:[%s8448_s1 + $0x3f0] sm:$0xf]  ;;  %v5345_v38 = vld [vmem:[%s8448_s1 + $0x3f4] sm:$0xf0]  ;;  %v3933_v42 = vor.u32 %v5329_v34, %v3932_v33  ;;  %v3860_v45 = vld [vmem:[%s8448_s1 + $0x2e0] sm:$0xf]  ;;  %v3797_v52 = vor.u32 %v5295_v44, %v3796_v43 }
  0x1a   :  { %2466 = vmatpush.bf16.msra.mxu2 %v3637_v6  ;;  %v3997_v46 = vor.u32 %v5345_v38, %v3996_v37  ;;  %v5311_v47 = vld [vmem:[%s8448_s1 + $0x2e4] sm:$0xf0]  ;;  %v3924_v48 = vld [vmem:[%s8448_s1 + $0x360] sm:$0xf]  ;;  %v3788_v53 = vld [vmem:[%s8448_s1 + $0x250] sm:$0xf] }
  0x1b   :  { %2479 = vmatpush.bf16.msra.mxu3 %v3701_v10  ;;  %v5327_v49 = vld [vmem:[%s8448_s1 + $0x364] sm:$0xf0]  ;;  %v3988_v50 = vld [vmem:[%s8448_s1 + $0x3e0] sm:$0xf]  ;;  %v3861_v54 = vor.u32 %v5311_v47, %v3860_v45  ;;  %v5293_v56 = vld [vmem:[%s8448_s1 + $0x254] sm:$0xf0] }
  0x1c   :  { %2441 = vmatpush.bf16.msra.mxu0 %v3501_v16  ;;  %v5343_v51 = vld [vmem:[%s8448_s1 + $0x3e4] sm:$0xf0]  ;;  %v3925_v55 = vor.u32 %v5327_v49, %v3924_v48  ;;  %v3852_v57 = vld [vmem:[%s8448_s1 + $0x2d0] sm:$0xf]  ;;  %v5309_v58 = vld [vmem:[%s8448_s1 + $0x2d4] sm:$0xf0]  ;;  %v3789_v0 = vor.u32 %v5293_v56, %v3788_v53 }
  0x1d   :  { %2454 = vmatpush.bf16.msra.mxu1 %v3565_v19  ;;  %v3989_v59 = vor.u32 %v5343_v51, %v3988_v50  ;;  %v3916_v60 = vld [vmem:[%s8448_s1 + $0x350] sm:$0xf]  ;;  %v5325_v61 = vld [vmem:[%s8448_s1 + $0x354] sm:$0xf0]  ;;  %v3853_v1 = vor.u32 %v5309_v58, %v3852_v57  ;;  %v28_v2 = vld [vmem:[%s8447_s0 + $0x8] sm:$0xff] }
  0x1e   :  { %2467 = vmatpush.bf16.msra.mxu2 %v3629_v20  ;;  %v3980_v62 = vld [vmem:[%s8448_s1 + $0x3d0] sm:$0xf]  ;;  %v5341_v63 = vld [vmem:[%s8448_s1 + $0x3d4] sm:$0xf0]  ;;  %v27_v3 = vld [vmem:[%s8447_s0] sm:$0xff]  ;;  %v3917_v4 = vor.u32 %v5325_v61, %v3916_v60  ;;  %v445_v8 = vunpack.c.l.b16 %v28_v2  ;;  %v446_v10 = vunpack.c.h.b16 %v28_v2 }
  0x1f   :  { %2480 = vmatpush.bf16.msra.mxu3 %v3693_v24  ;;  %v3780_v5 = vld [vmem:[%s8448_s1 + $0x240] sm:$0xf]  ;;  %v5291_v6 = vld [vmem:[%s8448_s1 + $0x244] sm:$0xf0]  ;;  %v443_v9 = vunpack.c.l.b16 %v27_v3  ;;  %v3981_v11 = vor.u32 %v5341_v63, %v3980_v62  ;;  %v444_v15 = vunpack.c.h.b16 %v27_v3  ;;  %v3772_v25 = vld [vmem:[%s8448_s1 + $0x230] sm:$0xf] }
  0x20   :  { %2442 = vmatpush.bf16.msra.mxu0 %v3493_v31  ;;  %v3844_v7 = vld [vmem:[%s8448_s1 + $0x2c0] sm:$0xf]  ;;  %v5307_v12 = vld [vmem:[%s8448_s1 + $0x2c4] sm:$0xf0]  ;;  %v6014_v18 = vpack.c.b16 %v445_v8, %v445_v8  ;;  %v6018_v20 = vpack.c.b16 %v446_v10, %v446_v10  ;;  %v3781_v21 = vor.u32 %v5291_v6, %v3780_v5  ;;  %v5289_v26 = vld [vmem:[%s8448_s1 + $0x234] sm:$0xf0] }
  0x21   :  { %2455 = vmatpush.bf16.msra.mxu1 %v3557_v35  ;;  %v3908_v13 = vld [vmem:[%s8448_s1 + $0x340] sm:$0xf]  ;;  %v5323_v14 = vld [vmem:[%s8448_s1 + $0x344] sm:$0xf0]  ;;  %v6016_v19 = vpack.c.b16 %v443_v9, %v443_v9  ;;  %v6020_v22 = vpack.c.b16 %v444_v15, %v444_v15  ;;  %v3845_v23 = vor.u32 %v5307_v12, %v3844_v7  ;;  %v3836_v27 = vld [vmem:[%s8448_s1 + $0x2b0] sm:$0xf]  ;;  %v3773_v34 = vor.u32 %v5289_v26, %v3772_v25 }
  0x22   :  { %2468 = vmatpush.bf16.msra.mxu2 %v3621_v36  ;;  %v3972_v16 = vld [vmem:[%s8448_s1 + $0x3c0] sm:$0xf]  ;;  %v5339_v17 = vld [vmem:[%s8448_s1 + $0x3c4] sm:$0xf0]  ;;  %v3909_v24 = vor.u32 %v5323_v14, %v3908_v13  ;;  %v5305_v29 = vld [vmem:[%s8448_s1 + $0x2b4] sm:$0xf0] }
  0x23   :  { %2481 = vmatpush.bf16.msra.mxu3 %v3685_v39  ;;  %v3973_v28 = vor.u32 %v5339_v17, %v3972_v16  ;;  %v3900_v30 = vld [vmem:[%s8448_s1 + $0x330] sm:$0xf]  ;;  %v5321_v31 = vld [vmem:[%s8448_s1 + $0x334] sm:$0xf0]  ;;  %2443 = vmatmul.bf16.vlgmr.msra.gmra.mxu0 %v6016_v19  ;;  %v3837_v35 = vor.u32 %v5305_v29, %v3836_v27  ;;  %v3764_v37 = vld [vmem:[%s8448_s1 + $0x220] sm:$0xf] }
  0x24   :  { %2487 = vmatpush.bf16.msrb.mxu0 %v3805_v40  ;;  %v3964_v32 = vld [vmem:[%s8448_s1 + $0x3b0] sm:$0xf]  ;;  %v5337_v33 = vld [vmem:[%s8448_s1 + $0x3b4] sm:$0xf0]  ;;  %2456 = vmatmul.bf16.vlgmr.msra.gmra.mxu1 %v6020_v22  ;;  %v3901_v36 = vor.u32 %v5321_v31, %v3900_v30  ;;  %v5287_v38 = vld [vmem:[%s8448_s1 + $0x224] sm:$0xf0] }
  0x25   :  { %2500 = vmatpush.bf16.msrb.mxu1 %v3869_v41  ;;  %2469 = vmatmul.bf16.vlgmr.msra.gmra.mxu2 %v6014_v18  ;;  %v3828_v39 = vld [vmem:[%s8448_s1 + $0x2a0] sm:$0xf]  ;;  %v3965_v40 = vor.u32 %v5337_v33, %v3964_v32  ;;  %v5303_v41 = vld [vmem:[%s8448_s1 + $0x2a4] sm:$0xf0]  ;;  %v3756_v49 = vld [vmem:[%s8448_s1 + $0x210] sm:$0xf] }
  0x26   :  { %2513 = vmatpush.bf16.msrb.mxu2 %v3933_v42  ;;  %2482 = vmatmul.bf16.vlgmr.msra.gmra.mxu3 %v6018_v20  ;;  %v3892_v42 = vld [vmem:[%s8448_s1 + $0x320] sm:$0xf]  ;;  %v5319_v43 = vld [vmem:[%s8448_s1 + $0x324] sm:$0xf0]  ;;  %v3829_v47 = vor.u32 %v5303_v41, %v3828_v39  ;;  %v5285_v50 = vld [vmem:[%s8448_s1 + $0x214] sm:$0xf0] }
  0x27   :  { %2526 = vmatpush.bf16.msrb.mxu3 %v3997_v46  ;;  %v3956_v44 = vld [vmem:[%s8448_s1 + $0x3a0] sm:$0xf]  ;;  %v5335_v45 = vld [vmem:[%s8448_s1 + $0x3a4] sm:$0xf0]  ;;  %v3765_v46 = vor.u32 %v5287_v38, %v3764_v37  ;;  %v3893_v48 = vor.u32 %v5319_v43, %v3892_v42  ;;  %v3820_v51 = vld [vmem:[%s8448_s1 + $0x290] sm:$0xf] }
  0x28   :  { %2488 = vmatpush.bf16.msrb.mxu0 %v3797_v52  ;;  %v3957_v52 = vor.u32 %v5335_v45, %v3956_v44  ;;  %v5301_v53 = vld [vmem:[%s8448_s1 + $0x294] sm:$0xf0]  ;;  %v3948_v56 = vld [vmem:[%s8448_s1 + $0x390] sm:$0xf]  ;;  %v3748_v58 = vld [vmem:[%s8448_s1 + $0x200] sm:$0xf] }
  0x29   :  { %2501 = vmatpush.bf16.msrb.mxu1 %v3861_v54  ;;  %v3884_v54 = vld [vmem:[%s8448_s1 + $0x310] sm:$0xf]  ;;  %v5333_v57 = vld [vmem:[%s8448_s1 + $0x394] sm:$0xf0]  ;;  %v5283_v60 = vld [vmem:[%s8448_s1 + $0x204] sm:$0xf0]  ;;  %v3821_v63 = vor.u32 %v5301_v53, %v3820_v51 }
  0x2a   :  { %2514 = vmatpush.bf16.msrb.mxu2 %v3925_v55  ;;  %v5317_v55 = vld [vmem:[%s8448_s1 + $0x314] sm:$0xf0]  ;;  %v3812_v61 = vld [vmem:[%s8448_s1 + $0x280] sm:$0xf]  ;;  %v5299_v62 = vld [vmem:[%s8448_s1 + $0x284] sm:$0xf0] }
  0x2b   :  { %2527 = vmatpush.bf16.msrb.mxu3 %v3989_v59  ;;  %v3757_v59 = vor.u32 %v5285_v50, %v3756_v49  ;;  %v5315_v2 = vld [vmem:[%s8448_s1 + $0x304] sm:$0xf0]  ;;  %v30_v3 = vld [vmem:[%s8447_s0 + $0x18] sm:$0xff]  ;;  %v3940_v5 = vld [vmem:[%s8448_s1 + $0x380] sm:$0xf]  ;;  %v3813_v16 = vor.u32 %v5299_v62, %v3812_v61 }
  0x2c   :  { %2489 = vmatpush.bf16.msrb.mxu0 %v3789_v0  ;;  %v3885_v0 = vor.u32 %v5317_v55, %v3884_v54  ;;  %v5331_v6 = vld [vmem:[%s8448_s1 + $0x384] sm:$0xf0]  ;;  %v29_v7 = vld [vmem:[%s8447_s0 + $0x10] sm:$0xff]  ;;  %v5361_v9 = vld [vmem:[%s8448_s1 + $0x474] sm:$0xf0]  ;;  %v449_v15 = vunpack.c.l.b16 %v30_v3  ;;  %v450_v25 = vunpack.c.h.b16 %v30_v3 }
  0x2d   :  { %2502 = vmatpush.bf16.msrb.mxu1 %v3853_v1  ;;  %v3876_v1 = vld [vmem:[%s8448_s1 + $0x300] sm:$0xf]  ;;  %v4060_v8 = vld [vmem:[%s8448_s1 + $0x470] sm:$0xf]  ;;  %v5377_v12 = vld [vmem:[%s8448_s1 + $0x4f4] sm:$0xf0]  ;;  %v3941_v26 = vor.u32 %v5331_v6, %v3940_v5 }
  0x2e   :  { %2515 = vmatpush.bf16.msrb.mxu2 %v3917_v4  ;;  %v3949_v4 = vor.u32 %v5333_v57, %v3948_v56  ;;  %v4124_v10 = vld [vmem:[%s8448_s1 + $0x4f0] sm:$0xf]  ;;  %v5393_v14 = vld [vmem:[%s8448_s1 + $0x574] sm:$0xf0]  ;;  %v3877_v17 = vor.u32 %v5315_v2, %v3876_v1  ;;  %v4061_v27 = vor.u32 %v5361_v9, %v4060_v8  ;;  %v4052_v31 = vld [vmem:[%s8448_s1 + $0x460] sm:$0xf]  ;;  %v6170_v38 = vpack.c.b16 %v449_v15, %v449_v15 }
  0x2f   :  { %2528 = vmatpush.bf16.msrb.mxu3 %v3981_v11  ;;  %v3749_v11 = vor.u32 %v5283_v60, %v3748_v58  ;;  %v4188_v13 = vld [vmem:[%s8448_s1 + $0x570] sm:$0xf]  ;;  %v4125_v29 = vor.u32 %v5377_v12, %v4124_v10  ;;  %v5359_v32 = vld [vmem:[%s8448_s1 + $0x464] sm:$0xf0]  ;;  %v4116_v33 = vld [vmem:[%s8448_s1 + $0x4e0] sm:$0xf]  ;;  %v6180_v42 = vpack.c.b16 %v450_v25, %v450_v25 }
  0x30   :  { %2490 = vmatpush.bf16.msrb.mxu0 %v3781_v21  ;;  %v4252_v21 = vld [vmem:[%s8448_s1 + $0x5f0] sm:$0xf]  ;;  %v4189_v30 = vor.u32 %v5393_v14, %v4188_v13  ;;  %v5391_v37 = vld [vmem:[%s8448_s1 + $0x564] sm:$0xf0]  ;;  %v4244_v39 = vld [vmem:[%s8448_s1 + $0x5e0] sm:$0xf]  ;;  %v4053_v43 = vor.u32 %v5359_v32, %v4052_v31 }
  0x31   :  { %2503 = vmatpush.bf16.msrb.mxu1 %v3845_v23  ;;  %v5409_v23 = vld [vmem:[%s8448_s1 + $0x5f4] sm:$0xf0]  ;;  %v4108_v49 = vld [vmem:[%s8448_s1 + $0x4d0] sm:$0xf]  ;;  %v5355_v60 = vld [vmem:[%s8448_s1 + $0x444] sm:$0xf0] }
  0x32   :  { %2516 = vmatpush.bf16.msrb.mxu2 %v3909_v24  ;;  %v447_v24 = vunpack.c.l.b16 %v29_v7  ;;  %v5373_v51 = vld [vmem:[%s8448_s1 + $0x4d4] sm:$0xf0]  ;;  %v4236_v54 = vld [vmem:[%s8448_s1 + $0x5d0] sm:$0xf]  ;;  %v4100_v61 = vld [vmem:[%s8448_s1 + $0x4c0] sm:$0xf] }
  0x33   :  { %2529 = vmatpush.bf16.msrb.mxu3 %v3973_v28  ;;  %v448_v28 = vunpack.c.h.b16 %v29_v7  ;;  %v5389_v53 = vld [vmem:[%s8448_s1 + $0x554] sm:$0xf0]  ;;  %v4109_v57 = vor.u32 %v5373_v51, %v4108_v49  ;;  %v5387_v1 = vld [vmem:[%s8448_s1 + $0x544] sm:$0xf0]  ;;  %v4228_v2 = vld [vmem:[%s8448_s1 + $0x5c0] sm:$0xf] }
  0x34   :  { %2491 = vmatpush.bf16.msrb.mxu0 %v3773_v34  ;;  %v4253_v34 = vor.u32 %v5409_v23, %v4252_v21  ;;  %v6178_v41 = vpack.c.b16 %v447_v24, %v447_v24  ;;  %v5405_v55 = vld [vmem:[%s8448_s1 + $0x5d4] sm:$0xf0]  ;;  %v5403_v3 = vld [vmem:[%s8448_s1 + $0x5c4] sm:$0xf0]  ;;  %v4028_v7 = vld [vmem:[%s8448_s1 + $0x430] sm:$0xf] }
  0x35   :  { %2504 = vmatpush.bf16.msrb.mxu1 %v3837_v35  ;;  %v5375_v35 = vld [vmem:[%s8448_s1 + $0x4e4] sm:$0xf0]  ;;  %v6182_v44 = vpack.c.b16 %v448_v28, %v448_v28  ;;  %v4237_v62 = vor.u32 %v5405_v55, %v4236_v54  ;;  %v5353_v8 = vld [vmem:[%s8448_s1 + $0x434] sm:$0xf0]  ;;  %v4092_v9 = vld [vmem:[%s8448_s1 + $0x4b0] sm:$0xf]  ;;  %v4229_v10 = vor.u32 %v5403_v3, %v4228_v2 }
  0x36   :  { %2517 = vmatpush.bf16.msrb.mxu2 %v3901_v36  ;;  %v4180_v36 = vld [vmem:[%s8448_s1 + $0x560] sm:$0xf]  ;;  %v4117_v45 = vor.u32 %v5375_v35, %v4116_v33  ;;  %v4156_v12 = vld [vmem:[%s8448_s1 + $0x530] sm:$0xf]  ;;  %v5385_v13 = vld [vmem:[%s8448_s1 + $0x534] sm:$0xf0] }
  0x37   :  { %2530 = vmatpush.bf16.msrb.mxu3 %v3965_v40  ;;  %v5407_v40 = vld [vmem:[%s8448_s1 + $0x5e4] sm:$0xf0]  ;;  %v4220_v14 = vld [vmem:[%s8448_s1 + $0x5b0] sm:$0xf]  ;;  %v5401_v15 = vld [vmem:[%s8448_s1 + $0x5b4] sm:$0xf0]  ;;  %v4157_v21 = vor.u32 %v5385_v13, %v4156_v12 }
  0x38   :  { %2492 = vmatpush.bf16.msrb.mxu0 %v3765_v46  ;;  %v4181_v46 = vor.u32 %v5391_v37, %v4180_v36  ;;  %v4245_v50 = vor.u32 %v5407_v40, %v4244_v39  ;;  %v4020_v23 = vld [vmem:[%s8448_s1 + $0x420] sm:$0xf]  ;;  %v5351_v24 = vld [vmem:[%s8448_s1 + $0x424] sm:$0xf0]  ;;  %v4012_v33 = vld [vmem:[%s8448_s1 + $0x410] sm:$0xf] }
  0x39   :  { %2505 = vmatpush.bf16.msrb.mxu1 %v3829_v47  ;;  %v4044_v47 = vld [vmem:[%s8448_s1 + $0x450] sm:$0xf]  ;;  %v4084_v25 = vld [vmem:[%s8448_s1 + $0x4a0] sm:$0xf]  ;;  %v5399_v31 = vld [vmem:[%s8448_s1 + $0x5a4] sm:$0xf0]  ;;  %v4021_v32 = vor.u32 %v5351_v24, %v4020_v23 }
  0x3a   :  { %2518 = vmatpush.bf16.msrb.mxu2 %v3893_v48  ;;  %v5357_v48 = vld [vmem:[%s8448_s1 + $0x454] sm:$0xf0]  ;;  %v4148_v28 = vld [vmem:[%s8448_s1 + $0x520] sm:$0xf]  ;;  %v4076_v37 = vld [vmem:[%s8448_s1 + $0x490] sm:$0xf] }
  0x3b   :  { %2531 = vmatpush.bf16.msrb.mxu3 %v3957_v52  ;;  %v4172_v52 = vld [vmem:[%s8448_s1 + $0x550] sm:$0xf]  ;;  %v4045_v56 = vor.u32 %v5357_v48, %v4044_v47  ;;  %v5365_v39 = vld [vmem:[%s8448_s1 + $0x494] sm:$0xf0]  ;;  %v4004_v48 = vld [vmem:[%s8448_s1 + $0x400] sm:$0xf] }
  0x3c   :  { %2493 = vmatpush.bf16.msrb.mxu0 %v3757_v59  ;;  %v4173_v58 = vor.u32 %v5389_v53, %v4172_v52  ;;  %v4036_v59 = vld [vmem:[%s8448_s1 + $0x440] sm:$0xf]  ;;  %v4140_v40 = vld [vmem:[%s8448_s1 + $0x510] sm:$0xf]  ;;  %v5397_v47 = vld [vmem:[%s8448_s1 + $0x594] sm:$0xf0] }
  0x3d   :  { %2506 = vmatpush.bf16.msrb.mxu1 %v3821_v63  ;;  %v5371_v63 = vld [vmem:[%s8448_s1 + $0x4c4] sm:$0xf0] }
  0x3e   :  { %2519 = vmatpush.bf16.msrb.mxu2 %v3885_v0  ;;  %v4164_v0 = vld [vmem:[%s8448_s1 + $0x540] sm:$0xf]  ;;  %v4101_v5 = vor.u32 %v5371_v63, %v4100_v61 }
  0x3f   :  { %2532 = vmatpush.bf16.msrb.mxu3 %v3949_v4  ;;  %v4037_v4 = vor.u32 %v5355_v60, %v4036_v59  ;;  %v4165_v6 = vor.u32 %v5387_v1, %v4164_v0 }
  0x40   :  { %2494 = vmatpush.bf16.msrb.mxu0 %v3749_v11  ;;  %v5369_v11 = vld [vmem:[%s8448_s1 + $0x4b4] sm:$0xf0] }
  0x41   :  { %2507 = vmatpush.bf16.msrb.mxu1 %v3813_v16  ;;  %v4029_v16 = vor.u32 %v5353_v8, %v4028_v7 }
  0x42   :  { %2520 = vmatpush.bf16.msrb.mxu2 %v3877_v17  ;;  %v4093_v17 = vor.u32 %v5369_v11, %v4092_v9 }
  0x43   :  { %2533 = vmatpush.bf16.msrb.mxu3 %v3941_v26  ;;  %2495 = vmatmul.bf16.vlgmr.msrb.gmra.mxu0 %v6178_v41  ;;  %v4221_v26 = vor.u32 %v5401_v15, %v4220_v14 }
  0x44   :  { %2539 = vmatpush.bf16.msra.mxu0 %v4061_v27  ;;  %2508 = vmatmul.bf16.vlgmr.msrb.gmra.mxu1 %v6182_v44  ;;  %v5367_v27 = vld [vmem:[%s8448_s1 + $0x4a4] sm:$0xf0] }
  0x45   :  { %2552 = vmatpush.bf16.msra.mxu1 %v4125_v29  ;;  %2521 = vmatmul.bf16.vlgmr.msrb.gmra.mxu2 %v6170_v38  ;;  %v5383_v29 = vld [vmem:[%s8448_s1 + $0x524] sm:$0xf0]  ;;  %v4085_v35 = vor.u32 %v5367_v27, %v4084_v25 }
  0x46   :  { %2565 = vmatpush.bf16.msra.mxu2 %v4189_v30  ;;  %2534 = vmatmul.bf16.vlgmr.msrb.gmra.mxu3 %v6180_v42  ;;  %v4212_v30 = vld [vmem:[%s8448_s1 + $0x5a0] sm:$0xf]  ;;  %v4149_v36 = vor.u32 %v5383_v29, %v4148_v28 }
  0x47   :  { %2578 = vmatpush.bf16.msra.mxu3 %v4253_v34  ;;  %v5349_v34 = vld [vmem:[%s8448_s1 + $0x414] sm:$0xf0] }
  0x48   :  { %2540 = vmatpush.bf16.msra.mxu0 %v4053_v43  ;;  %v4213_v43 = vor.u32 %v5399_v31, %v4212_v30 }
  0x49   :  { %2553 = vmatpush.bf16.msra.mxu1 %v4117_v45  ;;  %v5381_v45 = vld [vmem:[%s8448_s1 + $0x514] sm:$0xf0] }
  0x4a   :  { %2566 = vmatpush.bf16.msra.mxu2 %v4181_v46  ;;  %v4204_v46 = vld [vmem:[%s8448_s1 + $0x590] sm:$0xf] }
  0x4b   :  { %2579 = vmatpush.bf16.msra.mxu3 %v4245_v50 }
  0x4c   :  { %2541 = vmatpush.bf16.msra.mxu0 %v4045_v56 }
  0x4d   :  { %2554 = vmatpush.bf16.msra.mxu1 %v4109_v57 }
  0x4e   :  { %2567 = vmatpush.bf16.msra.mxu2 %v4173_v58 }
  0x4f   :  { %2580 = vmatpush.bf16.msra.mxu3 %v4237_v62 }
  0x50   :  { %2542 = vmatpush.bf16.msra.mxu0 %v4037_v4 }
  0x51   :  { %2555 = vmatpush.bf16.msra.mxu1 %v4101_v5 }
  0x52   :  { %2568 = vmatpush.bf16.msra.mxu2 %v4165_v6 }
  0x53   :  { %2581 = vmatpush.bf16.msra.mxu3 %v4229_v10 }
  0x54   :  { %2543 = vmatpush.bf16.msra.mxu0 %v4029_v16 }
  0x55   :  { %2556 = vmatpush.bf16.msra.mxu1 %v4093_v17 }
  0x56   :  { %2569 = vmatpush.bf16.msra.mxu2 %v4157_v21 }
  0x57   :  { %2582 = vmatpush.bf16.msra.mxu3 %v4221_v26 }
  0x58   :  { %12 = vsyncpa [#allocation3], 0  ;;  %2544 = vmatpush.bf16.msra.mxu0 %v4021_v32  ;;  %v4013_v49 = vor.u32 %v5349_v34, %v4012_v33  ;;  %v5347_v50 = vld [vmem:[%s8448_s1 + $0x404] sm:$0xf0]  ;;  %v4068_v51 = vld [vmem:[%s8448_s1 + $0x480] sm:$0xf]  ;;  %v4077_v53 = vor.u32 %v5365_v39, %v4076_v37  ;;  %v4141_v54 = vor.u32 %v5381_v45, %v4140_v40  ;;  %v4205_v58 = vor.u32 %v5397_v47, %v4204_v46 }
  0x59   :  { %v5363_v52 = vld [vmem:[%s8448_s1 + $0x484] sm:$0xf0]  ;;  %2557 = vmatpush.bf16.msra.mxu1 %v4085_v35  ;;  %v4132_v55 = vld [vmem:[%s8448_s1 + $0x500] sm:$0xf]  ;;  %v4316_v62 = vld [vmem:[%s8448_s1 + $0x670] sm:$0xf]  ;;  %v4005_v1 = vor.u32 %v5347_v50, %v4004_v48 }
  0x5a   :  { %2570 = vmatpush.bf16.msra.mxu2 %v4149_v36  ;;  %v5379_v56 = vld [vmem:[%s8448_s1 + $0x504] sm:$0xf0]  ;;  %v31_v57 = vld [vmem:[%s8447_s0 + $0x20] sm:$0xff]  ;;  %v5425_v63 = vld [vmem:[%s8448_s1 + $0x674] sm:$0xf0]  ;;  %v4069_v6 = vor.u32 %v5363_v52, %v4068_v51 }
  0x5b   :  { %2583 = vmatpush.bf16.msra.mxu3 %v4213_v43  ;;  %v4196_v59 = vld [vmem:[%s8448_s1 + $0x580] sm:$0xf]  ;;  %v5395_v60 = vld [vmem:[%s8448_s1 + $0x584] sm:$0xf0]  ;;  %v4380_v0 = vld [vmem:[%s8448_s1 + $0x6f0] sm:$0xf]  ;;  %v451_v5 = vunpack.c.l.b16 %v31_v57  ;;  %v4133_v7 = vor.u32 %v5379_v56, %v4132_v55  ;;  %v452_v11 = vunpack.c.h.b16 %v31_v57  ;;  %v4317_v13 = vor.u32 %v5425_v63, %v4316_v62 }
  0x5c   :  { %v32_v61 = vld [vmem:[%s8447_s0 + $0x28] sm:$0xff]  ;;  %2545 = vmatpush.bf16.msra.mxu0 %v4013_v49  ;;  %v5441_v2 = vld [vmem:[%s8448_s1 + $0x6f4] sm:$0xf0]  ;;  %v4444_v3 = vld [vmem:[%s8448_s1 + $0x770] sm:$0xf]  ;;  %v4197_v12 = vor.u32 %v5395_v60, %v4196_v59 }
  0x5d   :  { %v5457_v4 = vld [vmem:[%s8448_s1 + $0x774] sm:$0xf0]  ;;  %2558 = vmatpush.bf16.msra.mxu1 %v4077_v53  ;;  %v4508_v8 = vld [vmem:[%s8448_s1 + $0x7f0] sm:$0xf]  ;;  %v453_v10 = vunpack.c.l.b16 %v32_v61  ;;  %v454_v14 = vunpack.c.h.b16 %v32_v61  ;;  %v4381_v15 = vor.u32 %v5441_v2, %v4380_v0  ;;  %v4308_v17 = vld [vmem:[%s8448_s1 + $0x660] sm:$0xf]  ;;  %v6371_v25 = vpack.c.b16 %v451_v5, %v451_v5 }
  0x5e   :  { %2571 = vmatpush.bf16.msra.mxu2 %v4141_v54  ;;  %v5473_v9 = vld [vmem:[%s8448_s1 + $0x7f4] sm:$0xf0]  ;;  %v4445_v16 = vor.u32 %v5457_v4, %v4444_v3  ;;  %v5423_v21 = vld [vmem:[%s8448_s1 + $0x664] sm:$0xf0]  ;;  %v4372_v23 = vld [vmem:[%s8448_s1 + $0x6e0] sm:$0xf]  ;;  %v6384_v30 = vpack.c.b16 %v452_v11, %v452_v11 }
  0x5f   :  { %2584 = vmatpush.bf16.msra.mxu3 %v4205_v58  ;;  %v4509_v24 = vor.u32 %v5473_v9, %v4508_v8  ;;  %v5439_v26 = vld [vmem:[%s8448_s1 + $0x6e4] sm:$0xf0]  ;;  %v4436_v27 = vld [vmem:[%s8448_s1 + $0x760] sm:$0xf]  ;;  %v6382_v29 = vpack.c.b16 %v453_v10, %v453_v10  ;;  %v6392_v33 = vpack.c.b16 %v454_v14, %v454_v14  ;;  %v4309_v34 = vor.u32 %v5423_v21, %v4308_v17  ;;  %v4300_v37 = vld [vmem:[%s8448_s1 + $0x650] sm:$0xf] }
  0x60   :  { %2546 = vmatpush.bf16.msra.mxu0 %v4005_v1  ;;  %v5455_v28 = vld [vmem:[%s8448_s1 + $0x764] sm:$0xf0]  ;;  %v4500_v31 = vld [vmem:[%s8448_s1 + $0x7e0] sm:$0xf]  ;;  %v4373_v35 = vor.u32 %v5439_v26, %v4372_v23  ;;  %v5421_v39 = vld [vmem:[%s8448_s1 + $0x654] sm:$0xf0] }
  0x61   :  { %2559 = vmatpush.bf16.msra.mxu1 %v4069_v6  ;;  %v5471_v32 = vld [vmem:[%s8448_s1 + $0x7e4] sm:$0xf0]  ;;  %v4437_v36 = vor.u32 %v5455_v28, %v4436_v27  ;;  %v4364_v40 = vld [vmem:[%s8448_s1 + $0x6d0] sm:$0xf]  ;;  %v5437_v45 = vld [vmem:[%s8448_s1 + $0x6d4] sm:$0xf0]  ;;  %v4301_v50 = vor.u32 %v5421_v39, %v4300_v37 }
  0x62   :  { %2572 = vmatpush.bf16.msra.mxu2 %v4133_v7  ;;  %v4501_v43 = vor.u32 %v5471_v32, %v4500_v31  ;;  %v4428_v46 = vld [vmem:[%s8448_s1 + $0x750] sm:$0xf]  ;;  %v5453_v47 = vld [vmem:[%s8448_s1 + $0x754] sm:$0xf0]  ;;  %v4365_v51 = vor.u32 %v5437_v45, %v4364_v40  ;;  %v4292_v53 = vld [vmem:[%s8448_s1 + $0x640] sm:$0xf] }
  0x63   :  { %2585 = vmatpush.bf16.msra.mxu3 %v4197_v12  ;;  %2547 = vmatmul.bf16.vlgmr.msra.gmra.mxu0 %v6371_v25  ;;  %v4492_v48 = vld [vmem:[%s8448_s1 + $0x7d0] sm:$0xf]  ;;  %v5469_v49 = vld [vmem:[%s8448_s1 + $0x7d4] sm:$0xf0]  ;;  %v4429_v52 = vor.u32 %v5453_v47, %v4428_v46  ;;  %v5419_v54 = vld [vmem:[%s8448_s1 + $0x644] sm:$0xf0] }
  0x64   :  { %2591 = vmatpush.bf16.msrb.mxu0 %v4317_v13  ;;  %2560 = vmatmul.bf16.vlgmr.msra.gmra.mxu1 %v6384_v30  ;;  %v4356_v55 = vld [vmem:[%s8448_s1 + $0x6c0] sm:$0xf]  ;;  %v4493_v56 = vor.u32 %v5469_v49, %v4492_v48  ;;  %v5435_v57 = vld [vmem:[%s8448_s1 + $0x6c4] sm:$0xf0]  ;;  %v4293_v62 = vor.u32 %v5419_v54, %v4292_v53  ;;  %v4284_v1 = vld [vmem:[%s8448_s1 + $0x630] sm:$0xf] }
  0x65   :  { %2604 = vmatpush.bf16.msrb.mxu1 %v4381_v15  ;;  %2573 = vmatmul.bf16.vlgmr.msra.gmra.mxu2 %v6382_v29  ;;  %v4420_v58 = vld [vmem:[%s8448_s1 + $0x740] sm:$0xf]  ;;  %v5451_v59 = vld [vmem:[%s8448_s1 + $0x744] sm:$0xf0]  ;;  %v4357_v63 = vor.u32 %v5435_v57, %v4356_v55  ;;  %v5417_v2 = vld [vmem:[%s8448_s1 + $0x634] sm:$0xf0] }
  0x66   :  { %2617 = vmatpush.bf16.msrb.mxu2 %v4445_v16  ;;  %2586 = vmatmul.bf16.vlgmr.msra.gmra.mxu3 %v6392_v33  ;;  %v4484_v60 = vld [vmem:[%s8448_s1 + $0x7c0] sm:$0xf]  ;;  %v5467_v61 = vld [vmem:[%s8448_s1 + $0x7c4] sm:$0xf0]  ;;  %v4421_v0 = vor.u32 %v5451_v59, %v4420_v58  ;;  %v4348_v3 = vld [vmem:[%s8448_s1 + $0x6b0] sm:$0xf]  ;;  %v4285_v10 = vor.u32 %v5417_v2, %v4284_v1 }
  0x67   :  { %2630 = vmatpush.bf16.msrb.mxu3 %v4509_v24  ;;  %v4485_v4 = vor.u32 %v5467_v61, %v4484_v60  ;;  %v5433_v5 = vld [vmem:[%s8448_s1 + $0x6b4] sm:$0xf0]  ;;  %v4412_v6 = vld [vmem:[%s8448_s1 + $0x730] sm:$0xf]  ;;  %v4276_v13 = vld [vmem:[%s8448_s1 + $0x620] sm:$0xf] }
  0x68   :  { %2592 = vmatpush.bf16.msrb.mxu0 %v4309_v34  ;;  %v5449_v7 = vld [vmem:[%s8448_s1 + $0x734] sm:$0xf0]  ;;  %v4476_v8 = vld [vmem:[%s8448_s1 + $0x7b0] sm:$0xf]  ;;  %v4349_v11 = vor.u32 %v5433_v5, %v4348_v3  ;;  %v5415_v14 = vld [vmem:[%s8448_s1 + $0x624] sm:$0xf0] }
  0x69   :  { %2605 = vmatpush.bf16.msrb.mxu1 %v4373_v35  ;;  %v5465_v9 = vld [vmem:[%s8448_s1 + $0x7b4] sm:$0xf0]  ;;  %v4413_v12 = vor.u32 %v5449_v7, %v4412_v6  ;;  %v4340_v15 = vld [vmem:[%s8448_s1 + $0x6a0] sm:$0xf]  ;;  %v5431_v17 = vld [vmem:[%s8448_s1 + $0x6a4] sm:$0xf0]  ;;  %v4277_v27 = vor.u32 %v5415_v14, %v4276_v13 }
  0x6a   :  { %2618 = vmatpush.bf16.msrb.mxu2 %v4437_v36  ;;  %v4477_v16 = vor.u32 %v5465_v9, %v4476_v8  ;;  %v4404_v21 = vld [vmem:[%s8448_s1 + $0x720] sm:$0xf]  ;;  %v5447_v23 = vld [vmem:[%s8448_s1 + $0x724] sm:$0xf0]  ;;  %v4341_v28 = vor.u32 %v5431_v17, %v4340_v15  ;;  %v4268_v32 = vld [vmem:[%s8448_s1 + $0x610] sm:$0xf] }
  0x6b   :  { %2631 = vmatpush.bf16.msrb.mxu3 %v4501_v43  ;;  %v4468_v24 = vld [vmem:[%s8448_s1 + $0x7a0] sm:$0xf]  ;;  %v5463_v26 = vld [vmem:[%s8448_s1 + $0x7a4] sm:$0xf0]  ;;  %v4405_v31 = vor.u32 %v5447_v23, %v4404_v21  ;;  %v5413_v34 = vld [vmem:[%s8448_s1 + $0x614] sm:$0xf0] }
  0x6c   :  { %2593 = vmatpush.bf16.msrb.mxu0 %v4301_v50  ;;  %v4332_v35 = vld [vmem:[%s8448_s1 + $0x690] sm:$0xf]  ;;  %v4469_v36 = vor.u32 %v5463_v26, %v4468_v24  ;;  %v5429_v37 = vld [vmem:[%s8448_s1 + $0x694] sm:$0xf0]  ;;  %v4260_v46 = vld [vmem:[%s8448_s1 + $0x600] sm:$0xf]  ;;  %v4269_v47 = vor.u32 %v5413_v34, %v4268_v32 }
  0x6d   :  { %2606 = vmatpush.bf16.msrb.mxu1 %v4365_v51  ;;  %v4396_v39 = vld [vmem:[%s8448_s1 + $0x710] sm:$0xf]  ;;  %v5445_v40 = vld [vmem:[%s8448_s1 + $0x714] sm:$0xf0]  ;;  %v5411_v48 = vld [vmem:[%s8448_s1 + $0x604] sm:$0xf0]  ;;  %v4333_v51 = vor.u32 %v5429_v37, %v4332_v35 }
  0x6e   :  { %2619 = vmatpush.bf16.msrb.mxu2 %v4429_v52  ;;  %v4460_v43 = vld [vmem:[%s8448_s1 + $0x790] sm:$0xf]  ;;  %v5461_v45 = vld [vmem:[%s8448_s1 + $0x794] sm:$0xf0]  ;;  %v4324_v49 = vld [vmem:[%s8448_s1 + $0x680] sm:$0xf]  ;;  %v4397_v52 = vor.u32 %v5445_v40, %v4396_v39 }
  0x6f   :  { %2632 = vmatpush.bf16.msrb.mxu3 %v4493_v56  ;;  %v5427_v50 = vld [vmem:[%s8448_s1 + $0x684] sm:$0xf0]  ;;  %v4388_v53 = vld [vmem:[%s8448_s1 + $0x700] sm:$0xf]  ;;  %v33_v55 = vld [vmem:[%s8447_s0 + $0x30] sm:$0xff]  ;;  %v4461_v56 = vor.u32 %v5461_v45, %v4460_v43 }
  0x70   :  { %2594 = vmatpush.bf16.msrb.mxu0 %v4293_v62  ;;  %v5443_v54 = vld [vmem:[%s8448_s1 + $0x704] sm:$0xf0]  ;;  %v4452_v57 = vld [vmem:[%s8448_s1 + $0x780] sm:$0xf]  ;;  %v34_v59 = vld [vmem:[%s8447_s0 + $0x38] sm:$0xff]  ;;  %v455_v3 = vunpack.c.l.b16 %v33_v55  ;;  %v456_v9 = vunpack.c.h.b16 %v33_v55 }
  0x71   :  { %2607 = vmatpush.bf16.msrb.mxu1 %v4357_v63  ;;  %v5459_v58 = vld [vmem:[%s8448_s1 + $0x784] sm:$0xf0]  ;;  %v4572_v60 = vld [vmem:[%s8448_s1 + $0x870] sm:$0xf]  ;;  %v5489_v61 = vld [vmem:[%s8448_s1 + $0x874] sm:$0xf0]  ;;  %v4261_v63 = vor.u32 %v5411_v48, %v4260_v46  ;;  %v4389_v5 = vor.u32 %v5443_v54, %v4388_v53  ;;  %v457_v8 = vunpack.c.l.b16 %v34_v59 }
  0x72   :  { %2620 = vmatpush.bf16.msrb.mxu2 %v4421_v0  ;;  %v4636_v62 = vld [vmem:[%s8448_s1 + $0x8f0] sm:$0xf]  ;;  %v5505_v0 = vld [vmem:[%s8448_s1 + $0x8f4] sm:$0xf0]  ;;  %v4564_v15 = vld [vmem:[%s8448_s1 + $0x860] sm:$0xf]  ;;  %v6581_v23 = vpack.c.b16 %v455_v3, %v455_v3 }
  0x73   :  { %2633 = vmatpush.bf16.msrb.mxu3 %v4485_v4  ;;  %v4700_v1 = vld [vmem:[%s8448_s1 + $0x970] sm:$0xf]  ;;  %v5521_v2 = vld [vmem:[%s8448_s1 + $0x974] sm:$0xf0]  ;;  %v4325_v4 = vor.u32 %v5427_v50, %v4324_v49  ;;  %v4637_v13 = vor.u32 %v5505_v0, %v4636_v62  ;;  %v4628_v17 = vld [vmem:[%s8448_s1 + $0x8e0] sm:$0xf] }
  0x74   :  { %2595 = vmatpush.bf16.msrb.mxu0 %v4285_v10  ;;  %v4764_v6 = vld [vmem:[%s8448_s1 + $0x9f0] sm:$0xf]  ;;  %v5537_v7 = vld [vmem:[%s8448_s1 + $0x9f4] sm:$0xf0]  ;;  %v4453_v10 = vor.u32 %v5459_v58, %v4452_v57  ;;  %v4701_v14 = vor.u32 %v5521_v2, %v4700_v1  ;;  %v5503_v24 = vld [vmem:[%s8448_s1 + $0x8e4] sm:$0xf0] }
  0x75   :  { %2608 = vmatpush.bf16.msrb.mxu1 %v4349_v11  ;;  %v4573_v11 = vor.u32 %v5489_v61, %v4572_v60  ;;  %v4765_v21 = vor.u32 %v5537_v7, %v4764_v6  ;;  %v4692_v26 = vld [vmem:[%s8448_s1 + $0x960] sm:$0xf]  ;;  %v5535_v34 = vld [vmem:[%s8448_s1 + $0x9e4] sm:$0xf0]  ;;  %v4629_v37 = vor.u32 %v5503_v24, %v4628_v17  ;;  %v4556_v40 = vld [vmem:[%s8448_s1 + $0x850] sm:$0xf] }
  0x76   :  { %2621 = vmatpush.bf16.msrb.mxu2 %v4413_v12  ;;  %v458_v12 = vunpack.c.h.b16 %v34_v59  ;;  %v4756_v32 = vld [vmem:[%s8448_s1 + $0x9e0] sm:$0xf]  ;;  %v5485_v43 = vld [vmem:[%s8448_s1 + $0x854] sm:$0xf0]  ;;  %v4620_v45 = vld [vmem:[%s8448_s1 + $0x8d0] sm:$0xf] }
  0x77   :  { %2634 = vmatpush.bf16.msrb.mxu3 %v4477_v16  ;;  %v5487_v16 = vld [vmem:[%s8448_s1 + $0x864] sm:$0xf0]  ;;  %v4757_v46 = vor.u32 %v5535_v34, %v4756_v32  ;;  %v4684_v48 = vld [vmem:[%s8448_s1 + $0x950] sm:$0xf]  ;;  %v5517_v49 = vld [vmem:[%s8448_s1 + $0x954] sm:$0xf0] }
  0x78   :  { %2596 = vmatpush.bf16.msrb.mxu0 %v4277_v27  ;;  %v5519_v27 = vld [vmem:[%s8448_s1 + $0x964] sm:$0xf0]  ;;  %v6602_v35 = vpack.c.b16 %v458_v12, %v458_v12  ;;  %v4748_v50 = vld [vmem:[%s8448_s1 + $0x9d0] sm:$0xf]  ;;  %v4685_v54 = vor.u32 %v5517_v49, %v4684_v48  ;;  %v4548_v55 = vld [vmem:[%s8448_s1 + $0x840] sm:$0xf] }
  0x79   :  { %2609 = vmatpush.bf16.msrb.mxu1 %v4341_v28  ;;  %v6592_v28 = vpack.c.b16 %v457_v8, %v457_v8  ;;  %v4693_v39 = vor.u32 %v5519_v27, %v4692_v26  ;;  %v4612_v57 = vld [vmem:[%s8448_s1 + $0x8c0] sm:$0xf]  ;;  %v5499_v59 = vld [vmem:[%s8448_s1 + $0x8c4] sm:$0xf0]  ;;  %v4540_v3 = vld [vmem:[%s8448_s1 + $0x830] sm:$0xf] }
  0x7a   :  { %2622 = vmatpush.bf16.msrb.mxu2 %v4405_v31  ;;  %v6594_v31 = vpack.c.b16 %v456_v9, %v456_v9  ;;  %v4676_v60 = vld [vmem:[%s8448_s1 + $0x940] sm:$0xf]  ;;  %v5515_v61 = vld [vmem:[%s8448_s1 + $0x944] sm:$0xf0]  ;;  %v4613_v1 = vor.u32 %v5499_v59, %v4612_v57  ;;  %v5497_v7 = vld [vmem:[%s8448_s1 + $0x8b4] sm:$0xf0] }
  0x7b   :  { %2635 = vmatpush.bf16.msrb.mxu3 %v4469_v36  ;;  %v4565_v36 = vor.u32 %v5487_v16, %v4564_v15  ;;  %v4740_v62 = vld [vmem:[%s8448_s1 + $0x9c0] sm:$0xf]  ;;  %v4677_v2 = vor.u32 %v5515_v61, %v4676_v60  ;;  %v4668_v8 = vld [vmem:[%s8448_s1 + $0x930] sm:$0xf]  ;;  %v5513_v9 = vld [vmem:[%s8448_s1 + $0x934] sm:$0xf0] }
  0x7c   :  { %2597 = vmatpush.bf16.msrb.mxu0 %v4269_v47  ;;  %v5501_v47 = vld [vmem:[%s8448_s1 + $0x8d4] sm:$0xf0]  ;;  %v4532_v15 = vld [vmem:[%s8448_s1 + $0x820] sm:$0xf]  ;;  %v5479_v16 = vld [vmem:[%s8448_s1 + $0x824] sm:$0xf0] }
  0x7d   :  { %2610 = vmatpush.bf16.msrb.mxu1 %v4333_v51  ;;  %v5533_v51 = vld [vmem:[%s8448_s1 + $0x9d4] sm:$0xf0]  ;;  %v4621_v53 = vor.u32 %v5501_v47, %v4620_v45  ;;  %v4596_v17 = vld [vmem:[%s8448_s1 + $0x8a0] sm:$0xf]  ;;  %v5495_v24 = vld [vmem:[%s8448_s1 + $0x8a4] sm:$0xf0] }
  0x7e   :  { %2623 = vmatpush.bf16.msrb.mxu2 %v4397_v52  ;;  %v4557_v52 = vor.u32 %v5485_v43, %v4556_v40  ;;  %v4749_v58 = vor.u32 %v5533_v51, %v4748_v50  ;;  %v4660_v26 = vld [vmem:[%s8448_s1 + $0x920] sm:$0xf]  ;;  %v5511_v27 = vld [vmem:[%s8448_s1 + $0x924] sm:$0xf0]  ;;  %v4524_v40 = vld [vmem:[%s8448_s1 + $0x810] sm:$0xf] }
  0x7f   :  { %2636 = vmatpush.bf16.msrb.mxu3 %v4461_v56  ;;  %v5483_v56 = vld [vmem:[%s8448_s1 + $0x844] sm:$0xf0]  ;;  %v4724_v32 = vld [vmem:[%s8448_s1 + $0x9a0] sm:$0xf]  ;;  %v5477_v43 = vld [vmem:[%s8448_s1 + $0x814] sm:$0xf0] }
  0x80   :  { %2598 = vmatpush.bf16.msrb.mxu0 %v4261_v63  ;;  %v5531_v63 = vld [vmem:[%s8448_s1 + $0x9c4] sm:$0xf0]  ;;  %v4549_v0 = vor.u32 %v5483_v56, %v4548_v55  ;;  %v4588_v45 = vld [vmem:[%s8448_s1 + $0x890] sm:$0xf]  ;;  %v5493_v47 = vld [vmem:[%s8448_s1 + $0x894] sm:$0xf0] }
  0x81   :  { %2611 = vmatpush.bf16.msrb.mxu1 %v4325_v4  ;;  %v5481_v4 = vld [vmem:[%s8448_s1 + $0x834] sm:$0xf0]  ;;  %v4741_v6 = vor.u32 %v5531_v63, %v4740_v62  ;;  %v5527_v34 = vld [vmem:[%s8448_s1 + $0x9a4] sm:$0xf0]  ;;  %v4652_v48 = vld [vmem:[%s8448_s1 + $0x910] sm:$0xf]  ;;  %v4589_v57 = vor.u32 %v5493_v47, %v4588_v45 }
  0x82   :  { %2624 = vmatpush.bf16.msrb.mxu2 %v4389_v5  ;;  %v4604_v5 = vld [vmem:[%s8448_s1 + $0x8b0] sm:$0xf]  ;;  %v4541_v12 = vor.u32 %v5481_v4, %v4540_v3  ;;  %v5509_v49 = vld [vmem:[%s8448_s1 + $0x914] sm:$0xf0]  ;;  %v4580_v55 = vld [vmem:[%s8448_s1 + $0x880] sm:$0xf] }
  0x83   :  { %2637 = vmatpush.bf16.msrb.mxu3 %v4453_v10  ;;  %2599 = vmatmul.bf16.vlgmr.msrb.gmra.mxu0 %v6581_v23  ;;  %v4732_v10 = vld [vmem:[%s8448_s1 + $0x9b0] sm:$0xf]  ;;  %v5525_v51 = vld [vmem:[%s8448_s1 + $0x994] sm:$0xf0]  ;;  %v5491_v56 = vld [vmem:[%s8448_s1 + $0x884] sm:$0xf0] }
  0x84   :  { %2643 = vmatpush.bf16.msra.mxu0 %v4573_v11  ;;  %2612 = vmatmul.bf16.vlgmr.msrb.gmra.mxu1 %v6594_v31  ;;  %v5529_v11 = vld [vmem:[%s8448_s1 + $0x9b4] sm:$0xf0]  ;;  %v4716_v50 = vld [vmem:[%s8448_s1 + $0x990] sm:$0xf]  ;;  %v4644_v59 = vld [vmem:[%s8448_s1 + $0x900] sm:$0xf] }
  0x85   :  { %2656 = vmatpush.bf16.msra.mxu1 %v4637_v13  ;;  %2625 = vmatmul.bf16.vlgmr.msrb.gmra.mxu2 %v6592_v28  ;;  %v4605_v13 = vor.u32 %v5497_v7, %v4604_v5  ;;  %v5507_v60 = vld [vmem:[%s8448_s1 + $0x904] sm:$0xf0]  ;;  %v35_v61 = vld [vmem:[%s8447_s0 + $0x40] sm:$0xff]  ;;  %v4717_v62 = vor.u32 %v5525_v51, %v4716_v50  ;;  %v5553_v3 = vld [vmem:[%s8448_s1 + $0xa74] sm:$0xf0] }
  0x86   :  { %2669 = vmatpush.bf16.msra.mxu2 %v4701_v14  ;;  %2638 = vmatmul.bf16.vlgmr.msrb.gmra.mxu3 %v6602_v35  ;;  %v4669_v14 = vor.u32 %v5513_v9, %v4668_v8  ;;  %v4708_v63 = vld [vmem:[%s8448_s1 + $0x980] sm:$0xf]  ;;  %v4892_v4 = vld [vmem:[%s8448_s1 + $0xaf0] sm:$0xf]  ;;  %v5585_v8 = vld [vmem:[%s8448_s1 + $0xb74] sm:$0xf0]  ;;  %v459_v9 = vunpack.c.l.b16 %v35_v61 }
  0x87   :  { %2682 = vmatpush.bf16.msra.mxu3 %v4765_v21  ;;  %v4733_v21 = vor.u32 %v5529_v11, %v4732_v10  ;;  %v4956_v7 = vld [vmem:[%s8448_s1 + $0xb70] sm:$0xf]  ;;  %v4581_v10 = vor.u32 %v5491_v56, %v4580_v55  ;;  %v4645_v11 = vor.u32 %v5507_v60, %v4644_v59  ;;  %v5012_v47 = vld [vmem:[%s8448_s1 + $0xbe0] sm:$0xf]  ;;  %v5581_v59 = vld [vmem:[%s8448_s1 + $0xb54] sm:$0xf0] }
  0x88   :  { %2644 = vmatpush.bf16.msra.mxu0 %v4565_v36  ;;  %v4533_v36 = vor.u32 %v5479_v16, %v4532_v15  ;;  %v460_v15 = vunpack.c.h.b16 %v35_v61  ;;  %v4876_v55 = vld [vmem:[%s8448_s1 + $0xad0] sm:$0xf]  ;;  %v5597_v61 = vld [vmem:[%s8448_s1 + $0xbd4] sm:$0xf0] }
  0x89   :  { %2657 = vmatpush.bf16.msra.mxu1 %v4629_v37  ;;  %v4597_v37 = vor.u32 %v5495_v24, %v4596_v17  ;;  %v5004_v60 = vld [vmem:[%s8448_s1 + $0xbd0] sm:$0xf] }
  0x8a   :  { %2670 = vmatpush.bf16.msra.mxu2 %v4693_v39  ;;  %v4661_v39 = vor.u32 %v5511_v27, %v4660_v26  ;;  %v4957_v26 = vor.u32 %v5585_v8, %v4956_v7  ;;  %v4820_v27 = vld [vmem:[%s8448_s1 + $0xa60] sm:$0xf]  ;;  %v5579_v7 = vld [vmem:[%s8448_s1 + $0xb44] sm:$0xf0] }
  0x8b   :  { %2683 = vmatpush.bf16.msra.mxu3 %v4757_v46  ;;  %v4725_v46 = vor.u32 %v5527_v34, %v4724_v32  ;;  %v5551_v32 = vld [vmem:[%s8448_s1 + $0xa64] sm:$0xf0]  ;;  %v4884_v34 = vld [vmem:[%s8448_s1 + $0xae0] sm:$0xf] }
  0x8c   :  { %2645 = vmatpush.bf16.msra.mxu0 %v4557_v52  ;;  %v4516_v52 = vld [vmem:[%s8448_s1 + $0x800] sm:$0xf]  ;;  %v4821_v50 = vor.u32 %v5551_v32, %v4820_v27  ;;  %v4988_v27 = vld [vmem:[%s8448_s1 + $0xbb0] sm:$0xf]  ;;  %v5593_v32 = vld [vmem:[%s8448_s1 + $0xbb4] sm:$0xf0] }
  0x8d   :  { %2658 = vmatpush.bf16.msra.mxu1 %v4621_v53  ;;  %v4525_v53 = vor.u32 %v5477_v43, %v4524_v40  ;;  %v4948_v40 = vld [vmem:[%s8448_s1 + $0xb60] sm:$0xf]  ;;  %v5583_v43 = vld [vmem:[%s8448_s1 + $0xb64] sm:$0xf0] }
  0x8e   :  { %2671 = vmatpush.bf16.msra.mxu2 %v4685_v54  ;;  %v5475_v54 = vld [vmem:[%s8448_s1 + $0x804] sm:$0xf0]  ;;  %v4996_v8 = vld [vmem:[%s8448_s1 + $0xbc0] sm:$0xf] }
  0x8f   :  { %2684 = vmatpush.bf16.msra.mxu3 %v4749_v58  ;;  %v4653_v58 = vor.u32 %v5509_v49, %v4652_v48  ;;  %v4517_v5 = vor.u32 %v5475_v54, %v4516_v52  ;;  %v5599_v48 = vld [vmem:[%s8448_s1 + $0xbe4] sm:$0xf0]  ;;  %v4949_v52 = vor.u32 %v5583_v43, %v4948_v40  ;;  %v5549_v54 = vld [vmem:[%s8448_s1 + $0xa54] sm:$0xf0] }
  0x90   :  { %2646 = vmatpush.bf16.msra.mxu0 %v4549_v0  ;;  %v5523_v0 = vld [vmem:[%s8448_s1 + $0x984] sm:$0xf0]  ;;  %v5013_v56 = vor.u32 %v5599_v48, %v5012_v47  ;;  %v4852_v47 = vld [vmem:[%s8448_s1 + $0xaa0] sm:$0xf] }
  0x91   :  { %2659 = vmatpush.bf16.msra.mxu1 %v4613_v1  ;;  %v36_v1 = vld [vmem:[%s8447_s0 + $0x48] sm:$0xff]  ;;  %v4709_v16 = vor.u32 %v5523_v0, %v4708_v63 }
  0x92   :  { %2672 = vmatpush.bf16.msra.mxu2 %v4677_v2  ;;  %v4828_v2 = vld [vmem:[%s8448_s1 + $0xa70] sm:$0xf]  ;;  %v5543_v43 = vld [vmem:[%s8448_s1 + $0xa24] sm:$0xf0] }
  0x93   :  { %2685 = vmatpush.bf16.msra.mxu3 %v4741_v6  ;;  %v5569_v6 = vld [vmem:[%s8448_s1 + $0xaf4] sm:$0xf0]  ;;  %v4829_v17 = vor.u32 %v5553_v3, %v4828_v2  ;;  %v5547_v2 = vld [vmem:[%s8448_s1 + $0xa44] sm:$0xf0]  ;;  %v4868_v3 = vld [vmem:[%s8448_s1 + $0xac0] sm:$0xf] }
  0x94   :  { %2647 = vmatpush.bf16.msra.mxu0 %v4541_v12  ;;  %v5020_v12 = vld [vmem:[%s8448_s1 + $0xbf0] sm:$0xf]  ;;  %v4893_v24 = vor.u32 %v5569_v6, %v4892_v4  ;;  %v5005_v4 = vor.u32 %v5597_v61, %v5004_v60  ;;  %v4932_v6 = vld [vmem:[%s8448_s1 + $0xb40] sm:$0xf]  ;;  %v5541_v61 = vld [vmem:[%s8448_s1 + $0xa14] sm:$0xf0] }
  0x95   :  { %2660 = vmatpush.bf16.msra.mxu1 %v4605_v13  ;;  %v5601_v13 = vld [vmem:[%s8448_s1 + $0xbf4] sm:$0xf0]  ;;  %v4780_v60 = vld [vmem:[%s8448_s1 + $0xa10] sm:$0xf] }
  0x96   :  { %2673 = vmatpush.bf16.msra.mxu2 %v4669_v14  ;;  %v461_v14 = vunpack.c.l.b16 %v36_v1 }
  0x97   :  { %2686 = vmatpush.bf16.msra.mxu3 %v4733_v21  ;;  %v462_v21 = vunpack.c.h.b16 %v36_v1  ;;  %v4804_v1 = vld [vmem:[%s8448_s1 + $0xa40] sm:$0xf] }
  0x98   :  { %2648 = vmatpush.bf16.msra.mxu0 %v4533_v36  ;;  %v5021_v36 = vor.u32 %v5601_v13, %v5020_v12  ;;  %v6802_v45 = vpack.c.b16 %v461_v14, %v461_v14  ;;  %v4933_v13 = vor.u32 %v5579_v7, %v4932_v6  ;;  %v5545_v14 = vld [vmem:[%s8448_s1 + $0xa34] sm:$0xf0]  ;;  %v4772_v7 = vld [vmem:[%s8448_s1 + $0xa00] sm:$0xf] }
  0x99   :  { %2661 = vmatpush.bf16.msra.mxu1 %v4597_v37  ;;  %v6791_v37 = vpack.c.b16 %v459_v9, %v459_v9  ;;  %v6812_v49 = vpack.c.b16 %v462_v21, %v462_v21  ;;  %v5595_v9 = vld [vmem:[%s8448_s1 + $0xbc4] sm:$0xf0]  ;;  %v4924_v21 = vld [vmem:[%s8448_s1 + $0xb30] sm:$0xf]  ;;  %v5589_v6 = vld [vmem:[%s8448_s1 + $0xb94] sm:$0xf0] }
  0x9a   :  { %2674 = vmatpush.bf16.msra.mxu2 %v4661_v39  ;;  %v5567_v39 = vld [vmem:[%s8448_s1 + $0xae4] sm:$0xf0] }
  0x9b   :  { %2687 = vmatpush.bf16.msra.mxu3 %v4725_v46  ;;  %v6804_v46 = vpack.c.b16 %v460_v15, %v460_v15  ;;  %v4885_v51 = vor.u32 %v5567_v39, %v4884_v34  ;;  %v4860_v15 = vld [vmem:[%s8448_s1 + $0xab0] sm:$0xf] }
  0x9c   :  { %2649 = vmatpush.bf16.msra.mxu0 %v4525_v53  ;;  %v4812_v53 = vld [vmem:[%s8448_s1 + $0xa50] sm:$0xf] }
  0x9d   :  { %2662 = vmatpush.bf16.msra.mxu1 %v4589_v57  ;;  %v5565_v57 = vld [vmem:[%s8448_s1 + $0xad4] sm:$0xf0] }
  0x9e   :  { %2675 = vmatpush.bf16.msra.mxu2 %v4653_v58  ;;  %v4940_v58 = vld [vmem:[%s8448_s1 + $0xb50] sm:$0xf]  ;;  %v4877_v63 = vor.u32 %v5565_v57, %v4876_v55  ;;  %v5591_v55 = vld [vmem:[%s8448_s1 + $0xba4] sm:$0xf0] }
  0x9f   :  { %2688 = vmatpush.bf16.msra.mxu3 %v4717_v62  ;;  %v4813_v62 = vor.u32 %v5549_v54, %v4812_v53  ;;  %v4941_v0 = vor.u32 %v5581_v59, %v4940_v58  ;;  %v5575_v53 = vld [vmem:[%s8448_s1 + $0xb24] sm:$0xf0]  ;;  %v4980_v54 = vld [vmem:[%s8448_s1 + $0xba0] sm:$0xf] }
  0xa0   :  { %2650 = vmatpush.bf16.msra.mxu0 %v4517_v5  ;;  %v5563_v5 = vld [vmem:[%s8448_s1 + $0xac4] sm:$0xf0]  ;;  %v2444_v57 = vpop.f32.mrf.mxu0 }
  0xa1   :  { %2663 = vmatpush.bf16.msra.mxu1 %v4581_v10  ;;  %v4805_v10 = vor.u32 %v5547_v2, %v4804_v1  ;;  %v4869_v12 = vor.u32 %v5563_v5, %v4868_v3  ;;  %v4981_v1 = vor.u32 %v5591_v55, %v4980_v54  ;;  %v5557_v2 = vld [vmem:[%s8448_s1 + $0xa94] sm:$0xf0]  ;;  %v4908_v3 = vld [vmem:[%s8448_s1 + $0xb10] sm:$0xf] }
  0xa2   :  { %2676 = vmatpush.bf16.msra.mxu2 %v4645_v11  ;;  %v4796_v11 = vld [vmem:[%s8448_s1 + $0xa30] sm:$0xf] }
  0xa3   :  { %2689 = vmatpush.bf16.msra.mxu3 %v4709_v16  ;;  %2651 = vmatmul.bf16.vlgmr.msra.gmra.mxu0 %v6791_v37  ;;  %v5561_v16 = vld [vmem:[%s8448_s1 + $0xab4] sm:$0xf0]  ;;  %v4797_v34 = vor.u32 %v5545_v14, %v4796_v11  ;;  %v4972_v5 = vld [vmem:[%s8448_s1 + $0xb90] sm:$0xf]  ;;  %v4836_v11 = vld [vmem:[%s8448_s1 + $0xa80] sm:$0xf] }
  0xa4   :  { %2695 = vmatpush.bf16.msrb.mxu0 %v4829_v17  ;;  %2664 = vmatmul.bf16.vlgmr.msra.gmra.mxu1 %v6804_v46  ;;  %v4997_v17 = vor.u32 %v5595_v9, %v4996_v8  ;;  %v4861_v39 = vor.u32 %v5561_v16, %v4860_v15  ;;  %v4781_v9 = vor.u32 %v5541_v61, %v4780_v60  ;;  %v4900_v15 = vld [vmem:[%s8448_s1 + $0xb00] sm:$0xf]  ;;  %v5571_v16 = vld [vmem:[%s8448_s1 + $0xb04] sm:$0xf0] }
  0xa5   :  { %2708 = vmatpush.bf16.msrb.mxu1 %v4893_v24  ;;  %2677 = vmatmul.bf16.vlgmr.msra.gmra.mxu2 %v6802_v45  ;;  %v5577_v24 = vld [vmem:[%s8448_s1 + $0xb34] sm:$0xf0] }
  0xa6   :  { %2721 = vmatpush.bf16.msrb.mxu2 %v4957_v26  ;;  %2690 = vmatmul.bf16.vlgmr.msra.gmra.mxu3 %v6812_v49  ;;  %v39_v26 = vld [vmem:[%s8449_s2] sm:$0x3]  ;;  %v4925_v40 = vor.u32 %v5577_v24, %v4924_v21  ;;  %v4973_v24 = vor.u32 %v5589_v6, %v4972_v5  ;;  %v5246_v5 = vld [vmem:[%s8448_s1 + $0xe4] sm:$0xf] }
  0xa7   :  { %2734 = vmatpush.bf16.msrb.mxu3 %v5021_v36  ;;  %v4788_v36 = vld [vmem:[%s8448_s1 + $0xa20] sm:$0xf]  ;;  %v427_v48 = vperm.slane %v39_v26, 0 }
  0xa8   :  { %2696 = vmatpush.bf16.msrb.mxu0 %v4821_v50  ;;  %v4989_v50 = vor.u32 %v5593_v32, %v4988_v27  ;;  %v2470_v21 = vpop.f32.mrf.mxu2  ;;  %v4964_v26 = vld [vmem:[%s8448_s1 + $0xb80] sm:$0xf]  ;;  %v5587_v27 = vld [vmem:[%s8448_s1 + $0xb84] sm:$0xf0]  ;;  %v38_v32 = vld [vmem:[%s8447_s0 + $0x58] sm:$0xff]  ;;  %v2446_v54 = vpop.f32.mrf.mxu0 }
  0xa9   :  { %2709 = vmatpush.bf16.msrb.mxu1 %v4885_v51  ;;  %v5559_v51 = vld [vmem:[%s8448_s1 + $0xaa4] sm:$0xf0]  ;;  %v5226_v54 = vld [vmem:[%s8448_s1 + $0x44] sm:$0xf] }
  0xaa   :  { %2722 = vmatpush.bf16.msrb.mxu2 %v4949_v52  ;;  %v4916_v52 = vld [vmem:[%s8448_s1 + $0xb20] sm:$0xf]  ;;  %v4853_v58 = vor.u32 %v5559_v51, %v4852_v47  ;;  %v3678_v51 = vld [vmem:[%s8448_s1 + $0x178] sm:$0xf0] }
  0xab   :  { %2735 = vmatpush.bf16.msrb.mxu3 %v5013_v56  ;;  %v4789_v56 = vor.u32 %v5543_v43, %v4788_v36  ;;  %v4917_v59 = vor.u32 %v5575_v53, %v4916_v52  ;;  %v2483_v36 = vpop.f32.mrf.mxu3  ;;  %v5248_v43 = vld [vmem:[%s8448_s1 + $0xf4] sm:$0xf] }
  0xac   :  { %2697 = vmatpush.bf16.msrb.mxu0 %v4813_v62  ;;  %v4844_v62 = vld [vmem:[%s8448_s1 + $0xa90] sm:$0xf] }
  0xad   :  { %2710 = vmatpush.bf16.msrb.mxu1 %v4877_v63  ;;  %v2445_v63 = vadd.f32 %v2444_v57, %v427_v48  ;;  %v3614_v48 = vld [vmem:[%s8448_s1 + $0xf8] sm:$0xf0]  ;;  %v5280_v57 = vld [vmem:[%s8448_s1 + $0x1f4] sm:$0xf] }
  0xae   :  { %2723 = vmatpush.bf16.msrb.mxu2 %v4941_v0  ;;  %v2457_v0 = vpop.f32.mrf.mxu1 }
  0xaf   :  { %2736 = vmatpush.bf16.msrb.mxu3 %v5005_v4  ;;  %v5573_v4 = vld [vmem:[%s8448_s1 + $0xb14] sm:$0xf0]  ;;  %v2458_v8 = vadd.f32 %v2457_v0, %v2445_v63  ;;  %v466_v0 = vunpack.c.h.b16 %v38_v32 }
  0xb0   :  { %2698 = vmatpush.bf16.msrb.mxu0 %v4805_v10  ;;  %v5539_v10 = vld [vmem:[%s8448_s1 + $0xa04] sm:$0xf0]  ;;  %v4909_v14 = vor.u32 %v5573_v4, %v4908_v3  ;;  %v5230_v3 = vld [vmem:[%s8448_s1 + $0x64] sm:$0xf]  ;;  %v3542_v4 = vld [vmem:[%s8448_s1 + $0x68] sm:$0xf0] }
  0xb1   :  { %2711 = vmatpush.bf16.msrb.mxu1 %v4869_v12  ;;  %v5555_v12 = vld [vmem:[%s8448_s1 + $0xa84] sm:$0xf0]  ;;  %v4773_v47 = vor.u32 %v5539_v10, %v4772_v7  ;;  %v3670_v10 = vld [vmem:[%s8448_s1 + $0x168] sm:$0xf0] }
  0xb2   :  { %2724 = vmatpush.bf16.msrb.mxu2 %v4933_v13  ;;  %v4845_v13 = vor.u32 %v5557_v2, %v4844_v62  ;;  %v4837_v55 = vor.u32 %v5555_v12, %v4836_v11  ;;  %v4965_v62 = vor.u32 %v5587_v27, %v4964_v26  ;;  %v5228_v27 = vld [vmem:[%s8448_s1 + $0x54] sm:$0xf] }
  0xb3   :  { %2737 = vmatpush.bf16.msrb.mxu3 %v4997_v17  ;;  %v37_v17 = vld [vmem:[%s8447_s0 + $0x50] sm:$0xff] }
  0xb4   :  { %2699 = vmatpush.bf16.msrb.mxu0 %v4797_v34  ;;  %v2471_v34 = vadd.f32 %v2470_v21, %v2458_v8  ;;  %v463_v52 = vunpack.c.l.b16 %v37_v17  ;;  %v464_v60 = vunpack.c.h.b16 %v37_v17  ;;  %v3606_v8 = vld [vmem:[%s8448_s1 + $0xe8] sm:$0xf0]  ;;  %v3545_v17 = vor.u32 %v5230_v3, %v3542_v4  ;;  %v2485_v21 = vpop.f32.mrf.mxu3  ;;  %v5224_v3 = vld [vmem:[%s8448_s1 + $0x34] sm:$0xf]  ;;  %v3518_v4 = vld [vmem:[%s8448_s1 + $0x38] sm:$0xf0] }
  0xb5   :  { %2712 = vmatpush.bf16.msrb.mxu1 %v4861_v39  ;;  %v5232_v39 = vld [vmem:[%s8448_s1 + $0x74] sm:$0xf]  ;;  %v3521_v21 = vor.u32 %v5224_v3, %v3518_v4  ;;  %v3694_v4 = vld [vmem:[%s8448_s1 + $0x198] sm:$0xf0] }
  0xb6   :  { %2725 = vmatpush.bf16.msrb.mxu2 %v4925_v40  ;;  %v3550_v40 = vld [vmem:[%s8448_s1 + $0x78] sm:$0xf0]  ;;  %v6989_v53 = vadd.f32 %v2483_v36, %v2471_v34  ;;  %v2459_v61 = vpop.f32.mrf.mxu1  ;;  %v7006_v7 = vpack.c.b16 %v463_v52, %v463_v52  ;;  %v7019_v12 = vpack.c.b16 %v464_v60, %v464_v60  ;;  %v5244_v34 = vld [vmem:[%s8448_s1 + $0xd4] sm:$0xf]  ;;  %v3654_v60 = vld [vmem:[%s8448_s1 + $0x148] sm:$0xf0] }
  0xb7   :  { %2738 = vmatpush.bf16.msrb.mxu3 %v4989_v50  ;;  %v5264_v50 = vld [vmem:[%s8448_s1 + $0x174] sm:$0xf]  ;;  %v3553_v63 = vor.u32 %v5232_v39, %v3550_v40  ;;  %v3598_v39 = vld [vmem:[%s8448_s1 + $0xd8] sm:$0xf0]  ;;  %v5274_v61 = vld [vmem:[%s8448_s1 + $0x1c4] sm:$0xf] }
  0xb8   :  { %2700 = vmatpush.bf16.msrb.mxu0 %v4789_v56  ;;  %v4901_v56 = vor.u32 %v5571_v16, %v4900_v15  ;;  %v3681_v2 = vor.u32 %v5264_v50, %v3678_v51  ;;  %v2472_v15 = vpop.f32.mrf.mxu2  ;;  %v7027_v16 = vpack.c.b16 %v466_v0, %v466_v0  ;;  %v5260_v40 = vld [vmem:[%s8448_s1 + $0x154] sm:$0xf]  ;;  %v3601_v51 = vor.u32 %v5244_v34, %v3598_v39  ;;  %v5238_v34 = vld [vmem:[%s8448_s1 + $0xa4] sm:$0xf] }
  0xb9   :  { %2713 = vmatpush.bf16.msrb.mxu1 %v4853_v58  ;;  %v3742_v58 = vld [vmem:[%s8448_s1 + $0x1f8] sm:$0xf0]  ;;  %v5272_v15 = vld [vmem:[%s8448_s1 + $0x1b4] sm:$0xf] }
  0xba   :  { %2726 = vmatpush.bf16.msrb.mxu2 %v4917_v59  ;;  %v465_v59 = vunpack.c.l.b16 %v38_v32  ;;  %v3745_v6 = vor.u32 %v5280_v57, %v3742_v58  ;;  %v3534_v32 = vld [vmem:[%s8448_s1 + $0x58] sm:$0xf0]  ;;  %v3590_v58 = vld [vmem:[%s8448_s1 + $0xc8] sm:$0xf0]  ;;  %v5268_v3 = vld [vmem:[%s8448_s1 + $0x194] sm:$0xf] }
  0xbb   :  { %2739 = vmatpush.bf16.msrb.mxu3 %v4981_v1  ;;  %v3617_v1 = vor.u32 %v5248_v43, %v3614_v48  ;;  %v3662_v43 = vld [vmem:[%s8448_s1 + $0x158] sm:$0xf0]  ;;  %v3537_v50 = vor.u32 %v5228_v27, %v3534_v32  ;;  %v5222_v27 = vld [vmem:[%s8448_s1 + $0x24] sm:$0xf]  ;;  %v3510_v32 = vld [vmem:[%s8448_s1 + $0x28] sm:$0xf0] }
  0xbc   :  { %2701 = vmatpush.bf16.msrb.mxu0 %v4781_v9  ;;  %v5262_v9 = vld [vmem:[%s8448_s1 + $0x164] sm:$0xf]  ;;  %v7017_v11 = vpack.c.b16 %v465_v59, %v465_v59  ;;  %v3726_v48 = vld [vmem:[%s8448_s1 + $0x1d8] sm:$0xf0]  ;;  %v3665_v52 = vor.u32 %v5260_v40, %v3662_v43  ;;  %v3574_v40 = vld [vmem:[%s8448_s1 + $0xa8] sm:$0xf0] }
  0xbd   :  { %2714 = vmatpush.bf16.msrb.mxu1 %v4845_v13  ;;  %v5278_v13 = vld [vmem:[%s8448_s1 + $0x1e4] sm:$0xf]  ;;  %v3673_v26 = vor.u32 %v5262_v9, %v3670_v10  ;;  %v3582_v10 = vld [vmem:[%s8448_s1 + $0xb8] sm:$0xf0] }
  0xbe   :  { %2727 = vmatpush.bf16.msrb.mxu2 %v4909_v14  ;;  %v3734_v14 = vld [vmem:[%s8448_s1 + $0x1e8] sm:$0xf0]  ;;  %v5258_v59 = vld [vmem:[%s8448_s1 + $0x144] sm:$0xf] }
  0xbf   :  { %2740 = vmatpush.bf16.msrb.mxu3 %v4973_v24  ;;  %v3609_v24 = vor.u32 %v5246_v5, %v3606_v8  ;;  %v3737_v36 = vor.u32 %v5278_v13, %v3734_v14  ;;  %v5240_v5 = vld [vmem:[%s8448_s1 + $0xb4] sm:$0xf]  ;;  %v3646_v14 = vld [vmem:[%s8448_s1 + $0x138] sm:$0xf0]  ;;  %v5254_v43 = vld [vmem:[%s8448_s1 + $0x124] sm:$0xf] }
  0xc0   :  { %2702 = vmatpush.bf16.msrb.mxu0 %v4773_v47  ;;  %v5276_v47 = vld [vmem:[%s8448_s1 + $0x1d4] sm:$0xf]  ;;  %v2496_v0 = vpop.f32.mrf.mxu0 }
  0xc1   :  { %2715 = vmatpush.bf16.msrb.mxu1 %v4837_v55  ;;  %v3526_v55 = vld [vmem:[%s8448_s1 + $0x48] sm:$0xf0]  ;;  %v3729_v57 = vor.u32 %v5276_v47, %v3726_v48  ;;  %v2509_v8 = vpop.f32.mrf.mxu1  ;;  %v5256_v13 = vld [vmem:[%s8448_s1 + $0x134] sm:$0xf] }
  0xc2   :  { %2728 = vmatpush.bf16.msrb.mxu2 %v4901_v56  ;;  %v5242_v56 = vld [vmem:[%s8448_s1 + $0xc4] sm:$0xf]  ;;  %v3638_v47 = vld [vmem:[%s8448_s1 + $0x128] sm:$0xf0] }
  0xc3   :  { %2741 = vmatpush.bf16.msrb.mxu3 %v4965_v62  ;;  %2703 = vmatmul.bf16.vlgmr.msrb.gmra.mxu0 %v7006_v7  ;;  %v3718_v62 = vld [vmem:[%s8448_s1 + $0x1c8] sm:$0xf0] }
  0xc4   :  { %2747 = vmatpush.bf16.msra.mxu0 %v3553_v63  ;;  %2716 = vmatmul.bf16.vlgmr.msrb.gmra.mxu1 %v7019_v12  ;;  %v3529_v63 = vor.u32 %v5226_v54, %v3526_v55  ;;  %v3721_v9 = vor.u32 %v5274_v61, %v3718_v62  ;;  %v3513_v54 = vor.u32 %v5222_v27, %v3510_v32  ;;  %v5236_v61 = vld [vmem:[%s8448_s1 + $0x94] sm:$0xf] }
  0xc5   :  { %2760 = vmatpush.bf16.msra.mxu1 %v3617_v1  ;;  %2729 = vmatmul.bf16.vlgmr.msrb.gmra.mxu2 %v7017_v11  ;;  %v3593_v1 = vor.u32 %v5242_v56, %v3590_v58  ;;  %v3641_v58 = vor.u32 %v5254_v43, %v3638_v47  ;;  %v5296_v32 = vld [vmem:[%s8448_s1 + $0x274] sm:$0xf]  ;;  %v3934_v47 = vld [vmem:[%s8448_s1 + $0x378] sm:$0xf0] }
  0xc6   :  { %2773 = vmatpush.bf16.msra.mxu2 %v3681_v2  ;;  %2742 = vmatmul.bf16.vlgmr.msrb.gmra.mxu3 %v7027_v16  ;;  %v3657_v2 = vor.u32 %v5258_v59, %v3654_v60  ;;  %v5220_v59 = vld [vmem:[%s8448_s1 + $0x14] sm:$0xf]  ;;  %v3502_v60 = vld [vmem:[%s8448_s1 + $0x18] sm:$0xf0] }
  0xc7   :  { %2786 = vmatpush.bf16.msra.mxu3 %v3745_v6  ;;  %v2497_v6 = vadd.f32 %v2496_v0, %v6989_v53  ;;  %v3710_v53 = vld [vmem:[%s8448_s1 + $0x1b8] sm:$0xf0]  ;;  %v5328_v43 = vld [vmem:[%s8448_s1 + $0x374] sm:$0xf] }
  0xc8   :  { %2748 = vmatpush.bf16.msra.mxu0 %v3545_v17  ;;  %v3713_v39 = vor.u32 %v5272_v15, %v3710_v53  ;;  %v2498_v56 = vpop.f32.mrf.mxu0  ;;  %v3566_v0 = vld [vmem:[%s8448_s1 + $0x98] sm:$0xf0]  ;;  %v5250_v15 = vld [vmem:[%s8448_s1 + $0x104] sm:$0xf] }
  0xc9   :  { %2761 = vmatpush.bf16.msra.mxu1 %v3609_v24  ;;  %v2510_v17 = vadd.f32 %v2509_v8, %v2497_v6  ;;  %v3585_v24 = vor.u32 %v5240_v5, %v3582_v10  ;;  %v2511_v62 = vpop.f32.mrf.mxu1  ;;  %v3505_v5 = vor.u32 %v5220_v59, %v3502_v60  ;;  %v5218_v6 = vld [vmem:[%s8448_s1 + $0x4] sm:$0xf]  ;;  %v3494_v8 = vld [vmem:[%s8448_s1 + $0x8] sm:$0xf0] }
  0xca   :  { %2774 = vmatpush.bf16.msra.mxu2 %v3673_v26  ;;  %v3649_v26 = vor.u32 %v5256_v13, %v3646_v14  ;;  %v5234_v13 = vld [vmem:[%s8448_s1 + $0x84] sm:$0xf]  ;;  %v3558_v14 = vld [vmem:[%s8448_s1 + $0x88] sm:$0xf0] }
  0xcb   :  { %2787 = vmatpush.bf16.msra.mxu3 %v3737_v36  ;;  %v2522_v36 = vpop.f32.mrf.mxu2  ;;  %v5294_v59 = vld [vmem:[%s8448_s1 + $0x264] sm:$0xf]  ;;  %v3798_v60 = vld [vmem:[%s8448_s1 + $0x268] sm:$0xf0] }
  0xcc   :  { %2749 = vmatpush.bf16.msra.mxu0 %v3537_v50  ;;  %v2523_v48 = vadd.f32 %v2522_v36, %v2510_v17  ;;  %v2535_v50 = vpop.f32.mrf.mxu3  ;;  %v3697_v17 = vor.u32 %v5268_v3, %v3694_v4  ;;  %v5312_v36 = vld [vmem:[%s8448_s1 + $0x2f4] sm:$0xf]  ;;  %v3990_v3 = vld [vmem:[%s8448_s1 + $0x3e8] sm:$0xf0]  ;;  %v3801_v4 = vor.u32 %v5294_v59, %v3798_v60  ;;  %v3838_v59 = vld [vmem:[%s8448_s1 + $0x2b8] sm:$0xf0] }
  0xcd   :  { %2762 = vmatpush.bf16.msra.mxu1 %v3601_v51  ;;  %v5270_v51 = vld [vmem:[%s8448_s1 + $0x1a4] sm:$0xf]  ;;  %v5320_v60 = vld [vmem:[%s8448_s1 + $0x334] sm:$0xf] }
  0xce   :  { %2775 = vmatpush.bf16.msra.mxu2 %v3665_v52  ;;  %v3702_v52 = vld [vmem:[%s8448_s1 + $0x1a8] sm:$0xf0]  ;;  %v7130_v55 = vadd.f32 %v2535_v50, %v2523_v48  ;;  %v3561_v48 = vor.u32 %v5234_v13, %v3558_v14  ;;  %v3854_v14 = vld [vmem:[%s8448_s1 + $0x2d8] sm:$0xf0] }
  0xcf   :  { %2788 = vmatpush.bf16.msra.mxu3 %v3729_v57  ;;  %v3577_v57 = vor.u32 %v5238_v34, %v3574_v40  ;;  %v3806_v34 = vld [vmem:[%s8448_s1 + $0x278] sm:$0xf0] }
  0xd0   :  { %2750 = vmatpush.bf16.msra.mxu0 %v3529_v63  ;;  %v3705_v63 = vor.u32 %v5270_v51, %v3702_v52  ;;  %v3870_v40 = vld [vmem:[%s8448_s1 + $0x2f8] sm:$0xf0]  ;;  %v5344_v51 = vld [vmem:[%s8448_s1 + $0x3f4] sm:$0xf]  ;;  %v3809_v56 = vor.u32 %v5296_v32, %v3806_v34  ;;  %v3782_v32 = vld [vmem:[%s8448_s1 + $0x248] sm:$0xf0] }
  0xd1   :  { %2763 = vmatpush.bf16.msra.mxu1 %v3593_v1  ;;  %v5252_v1 = vld [vmem:[%s8448_s1 + $0x114] sm:$0xf]  ;;  %v3998_v52 = vld [vmem:[%s8448_s1 + $0x3f8] sm:$0xf0]  ;;  %v5322_v34 = vld [vmem:[%s8448_s1 + $0x344] sm:$0xf] }
  0xd2   :  { %2776 = vmatpush.bf16.msra.mxu2 %v3657_v2  ;;  %v3630_v2 = vld [vmem:[%s8448_s1 + $0x118] sm:$0xf0]  ;;  %v4001_v62 = vor.u32 %v5344_v51, %v3998_v52 }
  0xd3   :  { %2789 = vmatpush.bf16.msra.mxu3 %v3721_v9  ;;  %v3569_v9 = vor.u32 %v5236_v61, %v3566_v0  ;;  %v3633_v10 = vor.u32 %v5252_v1, %v3630_v2  ;;  %v2524_v53 = vpop.f32.mrf.mxu2  ;;  %v5310_v61 = vld [vmem:[%s8448_s1 + $0x2e4] sm:$0xf]  ;;  %v3926_v1 = vld [vmem:[%s8448_s1 + $0x368] sm:$0xf0] }
  0xd4   :  { %2751 = vmatpush.bf16.msra.mxu0 %v3521_v21  ;;  %v3622_v21 = vld [vmem:[%s8448_s1 + $0x108] sm:$0xf0]  ;;  %v2537_v27 = vpop.f32.mrf.mxu3  ;;  %v5326_v0 = vld [vmem:[%s8448_s1 + $0x364] sm:$0xf]  ;;  %v3918_v53 = vld [vmem:[%s8448_s1 + $0x358] sm:$0xf0] }
  0xd5   :  { %2764 = vmatpush.bf16.msra.mxu1 %v3585_v24  ;;  %v5266_v24 = vld [vmem:[%s8448_s1 + $0x184] sm:$0xf]  ;;  %v3625_v50 = vor.u32 %v5250_v15, %v3622_v21  ;;  %v5324_v15 = vld [vmem:[%s8448_s1 + $0x354] sm:$0xf]  ;;  %v3982_v21 = vld [vmem:[%s8448_s1 + $0x3d8] sm:$0xf0] }
  0xd6   :  { %2777 = vmatpush.bf16.msra.mxu2 %v3649_v26  ;;  %v3686_v26 = vld [vmem:[%s8448_s1 + $0x188] sm:$0xf0]  ;;  %v5342_v2 = vld [vmem:[%s8448_s1 + $0x3e4] sm:$0xf] }
  0xd7   :  { %2790 = vmatpush.bf16.msra.mxu3 %v3713_v39  ;;  %v3497_v39 = vor.u32 %v5218_v6, %v3494_v8  ;;  %v3929_v6 = vor.u32 %v5326_v0, %v3926_v1  ;;  %v5292_v8 = vld [vmem:[%s8448_s1 + $0x254] sm:$0xf]  ;;  %v3993_v13 = vor.u32 %v5342_v2, %v3990_v3  ;;  %v5290_v27 = vld [vmem:[%s8448_s1 + $0x244] sm:$0xf] }
  0xd8   :  { %2752 = vmatpush.bf16.msra.mxu0 %v3513_v54  ;;  %v3689_v54 = vor.u32 %v5266_v24, %v3686_v26  ;;  %v5286_v3 = vld [vmem:[%s8448_s1 + $0x224] sm:$0xf] }
  0xd9   :  { %2765 = vmatpush.bf16.msra.mxu1 %v3577_v57  ;;  %v3873_v57 = vor.u32 %v5312_v36, %v3870_v40  ;;  %v3910_v36 = vld [vmem:[%s8448_s1 + $0x348] sm:$0xf0]  ;;  %v5338_v40 = vld [vmem:[%s8448_s1 + $0x3c4] sm:$0xf] }
  0xda   :  { %2778 = vmatpush.bf16.msra.mxu2 %v3641_v58  ;;  %v3937_v58 = vor.u32 %v5328_v43, %v3934_v47  ;;  %v3974_v43 = vld [vmem:[%s8448_s1 + $0x3c8] sm:$0xf0]  ;;  %v3913_v52 = vor.u32 %v5322_v34, %v3910_v36  ;;  %v3822_v36 = vld [vmem:[%s8448_s1 + $0x298] sm:$0xf0] }
  0xdb   :  { %2791 = vmatpush.bf16.msra.mxu3 %v3705_v63  ;;  %v3862_v63 = vld [vmem:[%s8448_s1 + $0x2e8] sm:$0xf0] }
  0xdc   :  { %2753 = vmatpush.bf16.msra.mxu0 %v3505_v5  ;;  %v3865_v5 = vor.u32 %v5310_v61, %v3862_v63  ;;  %v3902_v61 = vld [vmem:[%s8448_s1 + $0x338] sm:$0xf0] }
  0xdd   :  { %2766 = vmatpush.bf16.msra.mxu1 %v3569_v9  ;;  %v3790_v9 = vld [vmem:[%s8448_s1 + $0x258] sm:$0xf0]  ;;  %v3905_v2 = vor.u32 %v5320_v60, %v3902_v61  ;;  %v5330_v60 = vld [vmem:[%s8448_s1 + $0x384] sm:$0xf]  ;;  %v3942_v61 = vld [vmem:[%s8448_s1 + $0x388] sm:$0xf0] }
  0xde   :  { %2779 = vmatpush.bf16.msra.mxu2 %v3633_v10  ;;  %v5308_v10 = vld [vmem:[%s8448_s1 + $0x2d4] sm:$0xf]  ;;  %v3793_v24 = vor.u32 %v5292_v8, %v3790_v9  ;;  %v3966_v63 = vld [vmem:[%s8448_s1 + $0x3b8] sm:$0xf0]  ;;  %v3830_v9 = vld [vmem:[%s8448_s1 + $0x2a8] sm:$0xf0] }
  0xdf   :  { %2792 = vmatpush.bf16.msra.mxu3 %v3697_v17  ;;  %v5340_v17 = vld [vmem:[%s8448_s1 + $0x3d4] sm:$0xf]  ;;  %v3857_v26 = vor.u32 %v5308_v10, %v3854_v14  ;;  %v5318_v10 = vld [vmem:[%s8448_s1 + $0x324] sm:$0xf] }
  0xe0   :  { %2754 = vmatpush.bf16.msra.mxu0 %v3497_v39  ;;  %v2548_v39 = vpop.f32.mrf.mxu0 }
  0xe1   :  { %2767 = vmatpush.bf16.msra.mxu1 %v3561_v48  ;;  %v2549_v47 = vadd.f32 %v2548_v39, %v7130_v55  ;;  %v3785_v48 = vor.u32 %v5290_v27, %v3782_v32  ;;  %v3977_v55 = vor.u32 %v5338_v40, %v3974_v43  ;;  %v5316_v39 = vld [vmem:[%s8448_s1 + $0x314] sm:$0xf]  ;;  %v3886_v40 = vld [vmem:[%s8448_s1 + $0x318] sm:$0xf0] }
  0xe2   :  { %2780 = vmatpush.bf16.msra.mxu2 %v3625_v50  ;;  %v2561_v50 = vpop.f32.mrf.mxu1  ;;  %v5332_v43 = vld [vmem:[%s8448_s1 + $0x394] sm:$0xf] }
  0xe3   :  { %2793 = vmatpush.bf16.msra.mxu3 %v3689_v54  ;;  %2755 = vmatmul.bf16.vlgmr.msra.gmra.mxu0 %v6016_v19  ;;  %v5306_v19 = vld [vmem:[%s8448_s1 + $0x2c4] sm:$0xf]  ;;  %v5288_v54 = vld [vmem:[%s8448_s1 + $0x234] sm:$0xf] }
  0xe4   :  { %2799 = vmatpush.bf16.msrb.mxu0 %v3809_v56  ;;  %2768 = vmatmul.bf16.vlgmr.msra.gmra.mxu1 %v6020_v22  ;;  %v3846_v22 = vld [vmem:[%s8448_s1 + $0x2c8] sm:$0xf0]  ;;  %v3774_v56 = vld [vmem:[%s8448_s1 + $0x238] sm:$0xf0] }
  0xe5   :  { %2812 = vmatpush.bf16.msrb.mxu1 %v3873_v57  ;;  %2781 = vmatmul.bf16.vlgmr.msra.gmra.mxu2 %v6014_v18  ;;  %v3921_v18 = vor.u32 %v5324_v15, %v3918_v53  ;;  %v3849_v51 = vor.u32 %v5306_v19, %v3846_v22  ;;  %v5304_v57 = vld [vmem:[%s8448_s1 + $0x2b4] sm:$0xf]  ;;  %v3777_v0 = vor.u32 %v5288_v54, %v3774_v56  ;;  %v5334_v53 = vld [vmem:[%s8448_s1 + $0x3a4] sm:$0xf] }
  0xe6   :  { %2825 = vmatpush.bf16.msrb.mxu2 %v3937_v58  ;;  %2794 = vmatmul.bf16.vlgmr.msra.gmra.mxu3 %v6018_v20  ;;  %v3985_v20 = vor.u32 %v5340_v17, %v3982_v21  ;;  %v2562_v58 = vadd.f32 %v2561_v50, %v2549_v47  ;;  %v3841_v1 = vor.u32 %v5304_v57, %v3838_v59  ;;  %v3958_v17 = vld [vmem:[%s8448_s1 + $0x3a8] sm:$0xf0]  ;;  %v5284_v19 = vld [vmem:[%s8448_s1 + $0x214] sm:$0xf]  ;;  %v3950_v47 = vld [vmem:[%s8448_s1 + $0x398] sm:$0xf0] }
  0xe7   :  { %2838 = vmatpush.bf16.msrb.mxu3 %v4001_v62  ;;  %v5336_v62 = vld [vmem:[%s8448_s1 + $0x3b4] sm:$0xf]  ;;  %v3961_v34 = vor.u32 %v5334_v53, %v3958_v17  ;;  %v5282_v50 = vld [vmem:[%s8448_s1 + $0x204] sm:$0xf]  ;;  %v3889_v54 = vor.u32 %v5316_v39, %v3886_v40  ;;  %v3814_v57 = vld [vmem:[%s8448_s1 + $0x288] sm:$0xf0] }
  0xe8   :  { %2800 = vmatpush.bf16.msrb.mxu0 %v3801_v4  ;;  %v3766_v4 = vld [vmem:[%s8448_s1 + $0x228] sm:$0xf0]  ;;  %v2574_v8 = vpop.f32.mrf.mxu2  ;;  %v2550_v21 = vpop.f32.mrf.mxu0  ;;  %v5300_v22 = vld [vmem:[%s8448_s1 + $0x294] sm:$0xf]  ;;  %v5298_v56 = vld [vmem:[%s8448_s1 + $0x284] sm:$0xf] }
  0xe9   :  { %2813 = vmatpush.bf16.msrb.mxu1 %v3865_v5  ;;  %v5302_v5 = vld [vmem:[%s8448_s1 + $0x2a4] sm:$0xf]  ;;  %v2575_v14 = vadd.f32 %v2574_v8, %v2562_v58  ;;  %v2587_v15 = vpop.f32.mrf.mxu3  ;;  %v3953_v58 = vor.u32 %v5332_v43, %v3950_v47  ;;  %v3878_v59 = vld [vmem:[%s8448_s1 + $0x308] sm:$0xf0]  ;;  %v3817_v8 = vor.u32 %v5298_v56, %v3814_v57  ;;  %v5356_v43 = vld [vmem:[%s8448_s1 + $0x454] sm:$0xf] }
  0xea   :  { %2826 = vmatpush.bf16.msrb.mxu2 %v3929_v6  ;;  %v3969_v6 = vor.u32 %v5336_v62, %v3966_v63  ;;  %v3833_v27 = vor.u32 %v5302_v5, %v3830_v9  ;;  %v5360_v63 = vld [vmem:[%s8448_s1 + $0x474] sm:$0xf]  ;;  %v5358_v21 = vld [vmem:[%s8448_s1 + $0x464] sm:$0xf]  ;;  %v4046_v47 = vld [vmem:[%s8448_s1 + $0x458] sm:$0xf0] }
  0xeb   :  { %2839 = vmatpush.bf16.msrb.mxu3 %v3993_v13  ;;  %v3894_v13 = vld [vmem:[%s8448_s1 + $0x328] sm:$0xf0]  ;;  %v5392_v5 = vld [vmem:[%s8448_s1 + $0x574] sm:$0xf]  ;;  %v4049_v57 = vor.u32 %v5356_v43, %v4046_v47 }
  0xec   :  { %2801 = vmatpush.bf16.msrb.mxu0 %v3793_v24  ;;  %v3769_v24 = vor.u32 %v5286_v3, %v3766_v4  ;;  %v3897_v32 = vor.u32 %v5318_v10, %v3894_v13  ;;  %v4126_v4 = vld [vmem:[%s8448_s1 + $0x4f8] sm:$0xf0]  ;;  %v5408_v10 = vld [vmem:[%s8448_s1 + $0x5f4] sm:$0xf] }
  0xed   :  { %2814 = vmatpush.bf16.msrb.mxu1 %v3857_v26  ;;  %v2563_v26 = vpop.f32.mrf.mxu1  ;;  %v4254_v13 = vld [vmem:[%s8448_s1 + $0x5f8] sm:$0xf0]  ;;  %v5404_v56 = vld [vmem:[%s8448_s1 + $0x5d4] sm:$0xf] }
  0xee   :  { %2827 = vmatpush.bf16.msrb.mxu2 %v3921_v18  ;;  %v7329_v18 = vadd.f32 %v2587_v15, %v2575_v14  ;;  %v3945_v14 = vor.u32 %v5330_v60, %v3942_v61  ;;  %v5374_v26 = vld [vmem:[%s8448_s1 + $0x4e4] sm:$0xf]  ;;  %v4038_v60 = vld [vmem:[%s8448_s1 + $0x448] sm:$0xf0] }
  0xef   :  { %2840 = vmatpush.bf16.msrb.mxu3 %v3985_v20  ;;  %v3758_v20 = vld [vmem:[%s8448_s1 + $0x218] sm:$0xf0]  ;;  %v5386_v61 = vld [vmem:[%s8448_s1 + $0x544] sm:$0xf] }
  0xf0   :  { %2802 = vmatpush.bf16.msrb.mxu0 %v3785_v48  ;;  %v3761_v48 = vor.u32 %v5284_v19, %v3758_v20  ;;  %v2576_v62 = vpop.f32.mrf.mxu2  ;;  %v5390_v19 = vld [vmem:[%s8448_s1 + $0x564] sm:$0xf]  ;;  %v4182_v20 = vld [vmem:[%s8448_s1 + $0x568] sm:$0xf0] }
  0xf1   :  { %2815 = vmatpush.bf16.msrb.mxu1 %v3849_v51  ;;  %v3750_v51 = vld [vmem:[%s8448_s1 + $0x208] sm:$0xf0]  ;;  %v4185_v40 = vor.u32 %v5390_v19, %v4182_v20  ;;  %v5366_v20 = vld [vmem:[%s8448_s1 + $0x4a4] sm:$0xf] }
  0xf2   :  { %2828 = vmatpush.bf16.msrb.mxu2 %v3913_v52  ;;  %v3825_v52 = vor.u32 %v5300_v22, %v3822_v36  ;;  %v3753_v3 = vor.u32 %v5282_v50, %v3750_v51  ;;  %v5406_v22 = vld [vmem:[%s8448_s1 + $0x5e4] sm:$0xf]  ;;  %v4110_v51 = vld [vmem:[%s8448_s1 + $0x4d8] sm:$0xf0]  ;;  %v4166_v62 = vld [vmem:[%s8448_s1 + $0x548] sm:$0xf0] }
  0xf3   :  { %2841 = vmatpush.bf16.msrb.mxu3 %v3977_v55  ;;  %v5314_v55 = vld [vmem:[%s8448_s1 + $0x304] sm:$0xf]  ;;  %v4022_v19 = vld [vmem:[%s8448_s1 + $0x428] sm:$0xf0] }
  0xf4   :  { %2803 = vmatpush.bf16.msrb.mxu0 %v3777_v0  ;;  %v4062_v0 = vld [vmem:[%s8448_s1 + $0x478] sm:$0xf0]  ;;  %v3881_v9 = vor.u32 %v5314_v55, %v3878_v59  ;;  %v5354_v59 = vld [vmem:[%s8448_s1 + $0x444] sm:$0xf] }
  0xf5   :  { %2816 = vmatpush.bf16.msrb.mxu1 %v3841_v1  ;;  %v5376_v1 = vld [vmem:[%s8448_s1 + $0x4f4] sm:$0xf]  ;;  %v4065_v15 = vor.u32 %v5360_v63, %v4062_v0  ;;  %v5402_v0 = vld [vmem:[%s8448_s1 + $0x5c4] sm:$0xf] }
  0xf6   :  { %2829 = vmatpush.bf16.msrb.mxu2 %v3905_v2  ;;  %v2589_v2 = vpop.f32.mrf.mxu3  ;;  %v4129_v53 = vor.u32 %v5376_v1, %v4126_v4  ;;  %v4230_v1 = vld [vmem:[%s8448_s1 + $0x5c8] sm:$0xf0] }
  0xf7   :  { %2842 = vmatpush.bf16.msrb.mxu3 %v3969_v6  ;;  %v4190_v6 = vld [vmem:[%s8448_s1 + $0x578] sm:$0xf0] }
  0xf8   :  { %2804 = vmatpush.bf16.msrb.mxu0 %v3769_v24  ;;  %v4193_v17 = vor.u32 %v5392_v5, %v4190_v6  ;;  %v4054_v24 = vld [vmem:[%s8448_s1 + $0x468] sm:$0xf0]  ;;  %v4169_v6 = vor.u32 %v5386_v61, %v4166_v62  ;;  %v5396_v61 = vld [vmem:[%s8448_s1 + $0x594] sm:$0xf]  ;;  %v4206_v62 = vld [vmem:[%s8448_s1 + $0x598] sm:$0xf0] }
  0xf9   :  { %2817 = vmatpush.bf16.msrb.mxu1 %v3833_v27  ;;  %v4257_v27 = vor.u32 %v5408_v10, %v4254_v13  ;;  %v4057_v36 = vor.u32 %v5358_v21, %v4054_v24  ;;  %v5368_v10 = vld [vmem:[%s8448_s1 + $0x4b4] sm:$0xf]  ;;  %v4222_v21 = vld [vmem:[%s8448_s1 + $0x5b8] sm:$0xf0] }
  0xfa   :  { %2830 = vmatpush.bf16.msrb.mxu2 %v3897_v32  ;;  %v4118_v32 = vld [vmem:[%s8448_s1 + $0x4e8] sm:$0xf0] }
  0xfb   :  { %2843 = vmatpush.bf16.msrb.mxu3 %v3961_v34  ;;  %v4246_v34 = vld [vmem:[%s8448_s1 + $0x5e8] sm:$0xf0]  ;;  %v4121_v39 = vor.u32 %v5374_v26, %v4118_v32  ;;  %v5350_v32 = vld [vmem:[%s8448_s1 + $0x424] sm:$0xf] }
  0xfc   :  { %2805 = vmatpush.bf16.msrb.mxu0 %v3761_v48  ;;  %v5372_v48 = vld [vmem:[%s8448_s1 + $0x4d4] sm:$0xf]  ;;  %v4249_v50 = vor.u32 %v5406_v22, %v4246_v34 }
  0xfd   :  { %2818 = vmatpush.bf16.msrb.mxu1 %v3825_v52  ;;  %v5388_v52 = vld [vmem:[%s8448_s1 + $0x554] sm:$0xf]  ;;  %v4113_v55 = vor.u32 %v5372_v48, %v4110_v51  ;;  %v5398_v48 = vld [vmem:[%s8448_s1 + $0x5a4] sm:$0xf] }
  0xfe   :  { %2831 = vmatpush.bf16.msrb.mxu2 %v3889_v54  ;;  %v4174_v54 = vld [vmem:[%s8448_s1 + $0x558] sm:$0xf0] }
  0xff   :  { %2844 = vmatpush.bf16.msrb.mxu3 %v3953_v58  ;;  %v4177_v58 = vor.u32 %v5388_v52, %v4174_v54  ;;  %v4025_v52 = vor.u32 %v5350_v32, %v4022_v19 }
 0x100   :  { %2806 = vmatpush.bf16.msrb.mxu0 %v3753_v3  ;;  %v2600_v63 = vpop.f32.mrf.mxu0  ;;  %v4041_v3 = vor.u32 %v5354_v59, %v4038_v60  ;;  %v5364_v59 = vld [vmem:[%s8448_s1 + $0x494] sm:$0xf] }
 0x101   :  { %2819 = vmatpush.bf16.msrb.mxu1 %v3817_v8  ;;  %v2601_v2 = vadd.f32 %v2600_v63, %v7329_v18  ;;  %v2613_v4 = vpop.f32.mrf.mxu1  ;;  %v5352_v8 = vld [vmem:[%s8448_s1 + $0x434] sm:$0xf]  ;;  %v4233_v18 = vor.u32 %v5402_v0, %v4230_v1  ;;  %v5346_v0 = vld [vmem:[%s8448_s1 + $0x404] sm:$0xf]  ;;  %v4006_v1 = vld [vmem:[%s8448_s1 + $0x408] sm:$0xf0] }
 0x102   :  { %2832 = vmatpush.bf16.msrb.mxu2 %v3881_v9  ;;  %v4030_v9 = vld [vmem:[%s8448_s1 + $0x438] sm:$0xf0] }
 0x103   :  { %2845 = vmatpush.bf16.msrb.mxu3 %v3945_v14  ;;  %2807 = vmatmul.bf16.vlgmr.msrb.gmra.mxu0 %v6178_v41  ;;  %v5370_v41 = vld [vmem:[%s8448_s1 + $0x4c4] sm:$0xf]  ;;  %v2614_v13 = vadd.f32 %v2613_v4, %v2601_v2  ;;  %v4094_v14 = vld [vmem:[%s8448_s1 + $0x4b8] sm:$0xf0]  ;;  %v4033_v24 = vor.u32 %v5352_v8, %v4030_v9  ;;  %v4209_v8 = vor.u32 %v5396_v61, %v4206_v62  ;;  %v4134_v9 = vld [vmem:[%s8448_s1 + $0x508] sm:$0xf0] }
 0x104   :  { %2851 = vmatpush.bf16.msra.mxu0 %v4065_v15  ;;  %2820 = vmatmul.bf16.vlgmr.msrb.gmra.mxu1 %v6182_v44  ;;  %v4102_v44 = vld [vmem:[%s8448_s1 + $0x4c8] sm:$0xf0]  ;;  %v5384_v15 = vld [vmem:[%s8448_s1 + $0x534] sm:$0xf]  ;;  %v4097_v26 = vor.u32 %v5368_v10, %v4094_v14  ;;  %v5362_v4 = vld [vmem:[%s8448_s1 + $0x484] sm:$0xf] }
 0x105   :  { %2864 = vmatpush.bf16.msra.mxu1 %v4129_v53  ;;  %2833 = vmatmul.bf16.vlgmr.msrb.gmra.mxu2 %v6170_v38  ;;  %v4238_v38 = vld [vmem:[%s8448_s1 + $0x5d8] sm:$0xf0]  ;;  %v4105_v5 = vor.u32 %v5370_v41, %v4102_v44  ;;  %v5394_v10 = vld [vmem:[%s8448_s1 + $0x584] sm:$0xf]  ;;  %v5424_v14 = vld [vmem:[%s8448_s1 + $0x674] sm:$0xf] }
 0x106   :  { %2877 = vmatpush.bf16.msra.mxu2 %v4193_v17  ;;  %2846 = vmatmul.bf16.vlgmr.msrb.gmra.mxu3 %v6180_v42  ;;  %v4241_v42 = vor.u32 %v5404_v56, %v4238_v38  ;;  %v4158_v53 = vld [vmem:[%s8448_s1 + $0x538] sm:$0xf0]  ;;  %v5400_v17 = vld [vmem:[%s8448_s1 + $0x5b4] sm:$0xf] }
 0x107   :  { %2890 = vmatpush.bf16.msra.mxu3 %v4257_v27  ;;  %v4161_v27 = vor.u32 %v5384_v15, %v4158_v53  ;;  %v4225_v22 = vor.u32 %v5400_v17, %v4222_v21  ;;  %v4078_v41 = vld [vmem:[%s8448_s1 + $0x498] sm:$0xf0]  ;;  %v5440_v53 = vld [vmem:[%s8448_s1 + $0x6f4] sm:$0xf]  ;;  %v4009_v21 = vor.u32 %v5346_v0, %v4006_v1 }
 0x108   :  { %2852 = vmatpush.bf16.msra.mxu0 %v4057_v36  ;;  %v2626_v34 = vpop.f32.mrf.mxu2  ;;  %v4086_v36 = vld [vmem:[%s8448_s1 + $0x4a8] sm:$0xf0]  ;;  %v2602_v51 = vpop.f32.mrf.mxu0  ;;  %v4142_v44 = vld [vmem:[%s8448_s1 + $0x518] sm:$0xf0]  ;;  %v4081_v2 = vor.u32 %v5364_v59, %v4078_v41  ;;  %v5452_v62 = vld [vmem:[%s8448_s1 + $0x754] sm:$0xf] }
 0x109   :  { %2865 = vmatpush.bf16.msra.mxu1 %v4121_v39  ;;  %v5382_v39 = vld [vmem:[%s8448_s1 + $0x524] sm:$0xf]  ;;  %v2627_v43 = vadd.f32 %v2626_v34, %v2614_v13  ;;  %v2639_v47 = vpop.f32.mrf.mxu3  ;;  %v2615_v54 = vpop.f32.mrf.mxu1  ;;  %v4089_v38 = vor.u32 %v5366_v20, %v4086_v36  ;;  %v4318_v15 = vld [vmem:[%s8448_s1 + $0x678] sm:$0xf0]  ;;  %v5472_v20 = vld [vmem:[%s8448_s1 + $0x7f4] sm:$0xf] }
 0x10a   :  { %2878 = vmatpush.bf16.msra.mxu2 %v4185_v40  ;;  %v4150_v40 = vld [vmem:[%s8448_s1 + $0x528] sm:$0xf0]  ;;  %v4321_v36 = vor.u32 %v5424_v14, %v4318_v15  ;;  %v4302_v41 = vld [vmem:[%s8448_s1 + $0x658] sm:$0xf0] }
 0x10b   :  { %2891 = vmatpush.bf16.msra.mxu3 %v4249_v50  ;;  %v4214_v50 = vld [vmem:[%s8448_s1 + $0x5a8] sm:$0xf0]  ;;  %v7528_v56 = vadd.f32 %v2639_v47, %v2627_v43  ;;  %v5422_v43 = vld [vmem:[%s8448_s1 + $0x664] sm:$0xf]  ;;  %v4366_v61 = vld [vmem:[%s8448_s1 + $0x6d8] sm:$0xf0] }
 0x10c   :  { %2853 = vmatpush.bf16.msra.mxu0 %v4049_v57  ;;  %v4153_v57 = vor.u32 %v5382_v39, %v4150_v40  ;;  %v4217_v60 = vor.u32 %v5398_v48, %v4214_v50  ;;  %v4310_v47 = vld [vmem:[%s8448_s1 + $0x668] sm:$0xf0]  ;;  %v5438_v48 = vld [vmem:[%s8448_s1 + $0x6e4] sm:$0xf]  ;;  %v4494_v0 = vld [vmem:[%s8448_s1 + $0x7d8] sm:$0xf0] }
 0x10d   :  { %2866 = vmatpush.bf16.msra.mxu1 %v4113_v55  ;;  %v5348_v55 = vld [vmem:[%s8448_s1 + $0x414] sm:$0xf]  ;;  %v4374_v51 = vld [vmem:[%s8448_s1 + $0x6e8] sm:$0xf0] }
 0x10e   :  { %2879 = vmatpush.bf16.msra.mxu2 %v4177_v58  ;;  %v4014_v58 = vld [vmem:[%s8448_s1 + $0x418] sm:$0xf0]  ;;  %v4438_v54 = vld [vmem:[%s8448_s1 + $0x768] sm:$0xf0] }
 0x10f   :  { %2892 = vmatpush.bf16.msra.mxu3 %v4241_v42  ;;  %v5380_v42 = vld [vmem:[%s8448_s1 + $0x514] sm:$0xf]  ;;  %v4017_v63 = vor.u32 %v5348_v55, %v4014_v58  ;;  %v4313_v55 = vor.u32 %v5422_v43, %v4310_v47  ;;  %v4377_v58 = vor.u32 %v5438_v48, %v4374_v51  ;;  %v5414_v43 = vld [vmem:[%s8448_s1 + $0x624] sm:$0xf]  ;;  %v4278_v47 = vld [vmem:[%s8448_s1 + $0x628] sm:$0xf0] }
 0x110   :  { %2854 = vmatpush.bf16.msra.mxu0 %v4041_v3  ;;  %v4145_v3 = vor.u32 %v5380_v42, %v4142_v44  ;;  %v2628_v13 = vpop.f32.mrf.mxu2  ;;  %v5436_v42 = vld [vmem:[%s8448_s1 + $0x6d4] sm:$0xf]  ;;  %v5430_v48 = vld [vmem:[%s8448_s1 + $0x6a4] sm:$0xf] }
 0x111   :  { %2867 = vmatpush.bf16.msra.mxu1 %v4105_v5  ;;  %v4070_v5 = vld [vmem:[%s8448_s1 + $0x488] sm:$0xf0]  ;;  %v2641_v17 = vpop.f32.mrf.mxu3 }
 0x112   :  { %2880 = vmatpush.bf16.msra.mxu2 %v4169_v6  ;;  %v5378_v6 = vld [vmem:[%s8448_s1 + $0x504] sm:$0xf]  ;;  %v4073_v32 = vor.u32 %v5362_v4, %v4070_v5  ;;  %v4358_v5 = vld [vmem:[%s8448_s1 + $0x6c8] sm:$0xf0] }
 0x113   :  { %2893 = vmatpush.bf16.msra.mxu3 %v4233_v18  ;;  %v4198_v18 = vld [vmem:[%s8448_s1 + $0x588] sm:$0xf0]  ;;  %v4137_v19 = vor.u32 %v5378_v6, %v4134_v9  ;;  %v5434_v4 = vld [vmem:[%s8448_s1 + $0x6c4] sm:$0xf] }
 0x114   :  { %2855 = vmatpush.bf16.msra.mxu0 %v4033_v24  ;;  %v4382_v24 = vld [vmem:[%s8448_s1 + $0x6f8] sm:$0xf0]  ;;  %v4201_v34 = vor.u32 %v5394_v10, %v4198_v18  ;;  %v5450_v6 = vld [vmem:[%s8448_s1 + $0x744] sm:$0xf]  ;;  %v4486_v18 = vld [vmem:[%s8448_s1 + $0x7c8] sm:$0xf0] }
 0x115   :  { %2868 = vmatpush.bf16.msra.mxu1 %v4097_v26  ;;  %v5456_v26 = vld [vmem:[%s8448_s1 + $0x774] sm:$0xf]  ;;  %v4385_v39 = vor.u32 %v5440_v53, %v4382_v24  ;;  %v5466_v10 = vld [vmem:[%s8448_s1 + $0x7c4] sm:$0xf]  ;;  %v4361_v53 = vor.u32 %v5434_v4, %v4358_v5  ;;  %v4286_v24 = vld [vmem:[%s8448_s1 + $0x638] sm:$0xf0] }
 0x116   :  { %2881 = vmatpush.bf16.msra.mxu2 %v4161_v27  ;;  %v4446_v27 = vld [vmem:[%s8448_s1 + $0x778] sm:$0xf0]  ;;  %v5410_v5 = vld [vmem:[%s8448_s1 + $0x604] sm:$0xf] }
 0x117   :  { %2894 = vmatpush.bf16.msra.mxu3 %v4225_v22  ;;  %v4510_v22 = vld [vmem:[%s8448_s1 + $0x7f8] sm:$0xf0]  ;;  %v4449_v40 = vor.u32 %v5456_v26, %v4446_v27  ;;  %v5432_v26 = vld [vmem:[%s8448_s1 + $0x6b4] sm:$0xf] }
 0x118   :  { %2856 = vmatpush.bf16.msra.mxu0 %v4025_v52  ;;  %v4513_v50 = vor.u32 %v5472_v20, %v4510_v22  ;;  %v5454_v52 = vld [vmem:[%s8448_s1 + $0x764] sm:$0xf]  ;;  %v4414_v20 = vld [vmem:[%s8448_s1 + $0x738] sm:$0xf0]  ;;  %v5464_v22 = vld [vmem:[%s8448_s1 + $0x7b4] sm:$0xf] }
 0x119   :  { %2869 = vmatpush.bf16.msra.mxu1 %v4089_v38  ;;  %v5470_v38 = vld [vmem:[%s8448_s1 + $0x7e4] sm:$0xf]  ;;  %v4441_v59 = vor.u32 %v5454_v52, %v4438_v54  ;;  %v4342_v52 = vld [vmem:[%s8448_s1 + $0x6a8] sm:$0xf0]  ;;  %v4462_v4 = vld [vmem:[%s8448_s1 + $0x798] sm:$0xf0] }
 0x11a   :  { %2882 = vmatpush.bf16.msra.mxu2 %v4153_v57  ;;  %v4502_v57 = vld [vmem:[%s8448_s1 + $0x7e8] sm:$0xf0]  ;;  %v5446_v54 = vld [vmem:[%s8448_s1 + $0x724] sm:$0xf] }
 0x11b   :  { %2895 = vmatpush.bf16.msra.mxu3 %v4217_v60  ;;  %v5420_v60 = vld [vmem:[%s8448_s1 + $0x654] sm:$0xf]  ;;  %v4505_v44 = vor.u32 %v5470_v38, %v4502_v57  ;;  %v4406_v38 = vld [vmem:[%s8448_s1 + $0x728] sm:$0xf0] }
 0x11c   :  { %2857 = vmatpush.bf16.msra.mxu0 %v4017_v63  ;;  %v4430_v63 = vld [vmem:[%s8448_s1 + $0x758] sm:$0xf0]  ;;  %v4305_v1 = vor.u32 %v5420_v60, %v4302_v41  ;;  %v4281_v41 = vor.u32 %v5414_v43, %v4278_v47 }
 0x11d   :  { %2870 = vmatpush.bf16.msra.mxu1 %v4081_v2  ;;  %v4369_v2 = vor.u32 %v5436_v42, %v4366_v61  ;;  %v4345_v61 = vor.u32 %v5430_v48, %v4342_v52  ;;  %v4566_v52 = vld [vmem:[%s8448_s1 + $0x868] sm:$0xf0] }
 0x11e   :  { %2883 = vmatpush.bf16.msra.mxu2 %v4145_v3  ;;  %v4433_v3 = vor.u32 %v5452_v62, %v4430_v63  ;;  %v4409_v62 = vor.u32 %v5446_v54, %v4406_v38  ;;  %v5412_v63 = vld [vmem:[%s8448_s1 + $0x614] sm:$0xf]  ;;  %v5502_v54 = vld [vmem:[%s8448_s1 + $0x8e4] sm:$0xf] }
 0x11f   :  { %2896 = vmatpush.bf16.msra.mxu3 %v4209_v8  ;;  %v4422_v8 = vld [vmem:[%s8448_s1 + $0x748] sm:$0xf0] }
 0x120   :  { %2858 = vmatpush.bf16.msra.mxu0 %v4009_v21  ;;  %v2652_v9 = vpop.f32.mrf.mxu0  ;;  %v4425_v17 = vor.u32 %v5450_v6, %v4422_v8  ;;  %v5416_v21 = vld [vmem:[%s8448_s1 + $0x634] sm:$0xf]  ;;  %v4262_v6 = vld [vmem:[%s8448_s1 + $0x608] sm:$0xf0] }
 0x121   :  { %2871 = vmatpush.bf16.msra.mxu1 %v4073_v32  ;;  %v2653_v13 = vadd.f32 %v2652_v9, %v7528_v56  ;;  %v2665_v15 = vpop.f32.mrf.mxu1  ;;  %v4489_v56 = vor.u32 %v5466_v10, %v4486_v18  ;;  %v4350_v32 = vld [vmem:[%s8448_s1 + $0x6b8] sm:$0xf0]  ;;  %v5426_v10 = vld [vmem:[%s8448_s1 + $0x684] sm:$0xf]  ;;  %v4326_v18 = vld [vmem:[%s8448_s1 + $0x688] sm:$0xf0] }
 0x122   :  { %2884 = vmatpush.bf16.msra.mxu2 %v4137_v19  ;;  %v5448_v19 = vld [vmem:[%s8448_s1 + $0x734] sm:$0xf] }
 0x123   :  { %2897 = vmatpush.bf16.msra.mxu3 %v4201_v34  ;;  %2859 = vmatmul.bf16.vlgmr.msra.gmra.mxu0 %v6371_v25  ;;  %v5468_v25 = vld [vmem:[%s8448_s1 + $0x7d4] sm:$0xf]  ;;  %v2666_v27 = vadd.f32 %v2665_v15, %v2653_v13  ;;  %v4478_v34 = vld [vmem:[%s8448_s1 + $0x7b8] sm:$0xf0]  ;;  %v5442_v13 = vld [vmem:[%s8448_s1 + $0x704] sm:$0xf] }
 0x124   :  { %2903 = vmatpush.bf16.msrb.mxu0 %v4321_v36  ;;  %2872 = vmatmul.bf16.vlgmr.msra.gmra.mxu1 %v6384_v30  ;;  %v4294_v30 = vld [vmem:[%s8448_s1 + $0x648] sm:$0xf0]  ;;  %v4289_v36 = vor.u32 %v5416_v21, %v4286_v24  ;;  %v5488_v24 = vld [vmem:[%s8448_s1 + $0x874] sm:$0xf] }
 0x125   :  { %2916 = vmatpush.bf16.msrb.mxu1 %v4385_v39  ;;  %2885 = vmatmul.bf16.vlgmr.msra.gmra.mxu2 %v6382_v29  ;;  %v5418_v29 = vld [vmem:[%s8448_s1 + $0x644] sm:$0xf]  ;;  %v4353_v39 = vor.u32 %v5432_v26, %v4350_v32  ;;  %v4390_v15 = vld [vmem:[%s8448_s1 + $0x708] sm:$0xf0]  ;;  %v4574_v26 = vld [vmem:[%s8448_s1 + $0x878] sm:$0xf0]  ;;  %v4265_v32 = vor.u32 %v5410_v5, %v4262_v6 }
 0x126   :  { %2929 = vmatpush.bf16.msrb.mxu2 %v4449_v40  ;;  %2898 = vmatmul.bf16.vlgmr.msra.gmra.mxu3 %v6392_v33  ;;  %v4497_v33 = vor.u32 %v5468_v25, %v4494_v0  ;;  %v4297_v14 = vor.u32 %v5418_v29, %v4294_v30  ;;  %v4417_v40 = vor.u32 %v5448_v19, %v4414_v20  ;;  %v4270_v25 = vld [vmem:[%s8448_s1 + $0x618] sm:$0xf0]  ;;  %v5428_v0 = vld [vmem:[%s8448_s1 + $0x694] sm:$0xf]  ;;  %v5498_v5 = vld [vmem:[%s8448_s1 + $0x8c4] sm:$0xf] }
 0x127   :  { %2942 = vmatpush.bf16.msrb.mxu3 %v4513_v50  ;;  %v4481_v50 = vor.u32 %v5464_v22, %v4478_v34  ;;  %v4398_v29 = vld [vmem:[%s8448_s1 + $0x718] sm:$0xf0]  ;;  %v5460_v30 = vld [vmem:[%s8448_s1 + $0x794] sm:$0xf]  ;;  %v4329_v34 = vor.u32 %v5426_v10, %v4326_v18  ;;  %v4577_v47 = vor.u32 %v5488_v24, %v4574_v26  ;;  %v4614_v6 = vld [vmem:[%s8448_s1 + $0x8c8] sm:$0xf0] }
 0x128   :  { %2904 = vmatpush.bf16.msrb.mxu0 %v4313_v55  ;;  %v2678_v51 = vpop.f32.mrf.mxu2  ;;  %v2654_v60 = vpop.f32.mrf.mxu0  ;;  %v4638_v19 = vld [vmem:[%s8448_s1 + $0x8f8] sm:$0xf0]  ;;  %v5520_v20 = vld [vmem:[%s8448_s1 + $0x974] sm:$0xf]  ;;  %v5530_v18 = vld [vmem:[%s8448_s1 + $0x9c4] sm:$0xf] }
 0x129   :  { %2917 = vmatpush.bf16.msrb.mxu1 %v4377_v58  ;;  %v2679_v57 = vadd.f32 %v2678_v51, %v2666_v27  ;;  %v2691_v55 = vpop.f32.mrf.mxu3  ;;  %v5462_v58 = vld [vmem:[%s8448_s1 + $0x7a4] sm:$0xf]  ;;  %v2667_v42 = vpop.f32.mrf.mxu1  ;;  %v4702_v22 = vld [vmem:[%s8448_s1 + $0x978] sm:$0xf0]  ;;  %v4758_v60 = vld [vmem:[%s8448_s1 + $0x9e8] sm:$0xf0] }
 0x12a   :  { %2930 = vmatpush.bf16.msrb.mxu2 %v4441_v59  ;;  %v4470_v59 = vld [vmem:[%s8448_s1 + $0x7a8] sm:$0xf0]  ;;  %v5486_v51 = vld [vmem:[%s8448_s1 + $0x864] sm:$0xf]  ;;  %v5480_v24 = vld [vmem:[%s8448_s1 + $0x834] sm:$0xf] }
 0x12b   :  { %2943 = vmatpush.bf16.msrb.mxu3 %v4505_v44  ;;  %v7727_v44 = vadd.f32 %v2691_v55, %v2679_v57  ;;  %v4630_v57 = vld [vmem:[%s8448_s1 + $0x8e8] sm:$0xf0]  ;;  %v5518_v55 = vld [vmem:[%s8448_s1 + $0x964] sm:$0xf]  ;;  %v4542_v26 = vld [vmem:[%s8448_s1 + $0x838] sm:$0xf0] }
 0x12c   :  { %2905 = vmatpush.bf16.msrb.mxu0 %v4305_v1  ;;  %v4473_v1 = vor.u32 %v5462_v58, %v4470_v59  ;;  %v4694_v58 = vld [vmem:[%s8448_s1 + $0x968] sm:$0xf0]  ;;  %v5534_v59 = vld [vmem:[%s8448_s1 + $0x9e4] sm:$0xf]  ;;  %v4633_v42 = vor.u32 %v5502_v54, %v4630_v57 }
 0x12d   :  { %2918 = vmatpush.bf16.msrb.mxu1 %v4369_v2  ;;  %v4334_v2 = vld [vmem:[%s8448_s1 + $0x698] sm:$0xf0]  ;;  %v5510_v54 = vld [vmem:[%s8448_s1 + $0x924] sm:$0xf] }
 0x12e   :  { %2931 = vmatpush.bf16.msrb.mxu2 %v4433_v3  ;;  %v5444_v3 = vld [vmem:[%s8448_s1 + $0x714] sm:$0xf]  ;;  %v4337_v8 = vor.u32 %v5428_v0, %v4334_v2  ;;  %v4761_v0 = vor.u32 %v5534_v59, %v4758_v60  ;;  %v4726_v59 = vld [vmem:[%s8448_s1 + $0x9a8] sm:$0xf0] }
 0x12f   :  { %2944 = vmatpush.bf16.msrb.mxu3 %v4497_v33  ;;  %v4273_v33 = vor.u32 %v5412_v63, %v4270_v25  ;;  %v4401_v9 = vor.u32 %v5444_v3, %v4398_v29  ;;  %v4558_v63 = vld [vmem:[%s8448_s1 + $0x858] sm:$0xf0]  ;;  %v5500_v25 = vld [vmem:[%s8448_s1 + $0x8d4] sm:$0xf] }
 0x130   :  { %2906 = vmatpush.bf16.msrb.mxu0 %v4297_v14  ;;  %v4465_v14 = vor.u32 %v5460_v30, %v4462_v4  ;;  %v2680_v21 = vpop.f32.mrf.mxu2  ;;  %v5516_v2 = vld [vmem:[%s8448_s1 + $0x954] sm:$0xf]  ;;  %v4686_v3 = vld [vmem:[%s8448_s1 + $0x958] sm:$0xf0] }
 0x131   :  { %2919 = vmatpush.bf16.msrb.mxu1 %v4361_v53  ;;  %v5458_v53 = vld [vmem:[%s8448_s1 + $0x784] sm:$0xf]  ;;  %v2693_v27 = vpop.f32.mrf.mxu3  ;;  %v4750_v29 = vld [vmem:[%s8448_s1 + $0x9d8] sm:$0xf0] }
 0x132   :  { %2932 = vmatpush.bf16.msrb.mxu2 %v4425_v17  ;;  %v4454_v17 = vld [vmem:[%s8448_s1 + $0x788] sm:$0xf0] }
 0x133   :  { %2945 = vmatpush.bf16.msrb.mxu3 %v4489_v56  ;;  %v5504_v56 = vld [vmem:[%s8448_s1 + $0x8f4] sm:$0xf]  ;;  %v4457_v43 = vor.u32 %v5458_v53, %v4454_v17  ;;  %v4617_v17 = vor.u32 %v5498_v5, %v4614_v6  ;;  %v5490_v6 = vld [vmem:[%s8448_s1 + $0x884] sm:$0xf] }
 0x134   :  { %2907 = vmatpush.bf16.msrb.mxu0 %v4289_v36  ;;  %v4393_v36 = vor.u32 %v5442_v13, %v4390_v15  ;;  %v4641_v48 = vor.u32 %v5504_v56, %v4638_v19  ;;  %v4742_v13 = vld [vmem:[%s8448_s1 + $0x9c8] sm:$0xf0]  ;;  %v5496_v56 = vld [vmem:[%s8448_s1 + $0x8b4] sm:$0xf] }
 0x135   :  { %2920 = vmatpush.bf16.msrb.mxu1 %v4353_v39  ;;  %v5536_v39 = vld [vmem:[%s8448_s1 + $0x9f4] sm:$0xf] }
 0x136   :  { %2933 = vmatpush.bf16.msrb.mxu2 %v4417_v40  ;;  %v4766_v40 = vld [vmem:[%s8448_s1 + $0x9f8] sm:$0xf0]  ;;  %v5512_v19 = vld [vmem:[%s8448_s1 + $0x934] sm:$0xf] }
 0x137   :  { %2946 = vmatpush.bf16.msrb.mxu3 %v4481_v50  ;;  %v4705_v50 = vor.u32 %v5520_v20, %v4702_v22  ;;  %v4769_v38 = vor.u32 %v5536_v39, %v4766_v40  ;;  %v4670_v20 = vld [vmem:[%s8448_s1 + $0x938] sm:$0xf0]  ;;  %v5528_v22 = vld [vmem:[%s8448_s1 + $0x9b4] sm:$0xf] }
 0x138   :  { %2908 = vmatpush.bf16.msrb.mxu0 %v4281_v41  ;;  %v4569_v41 = vor.u32 %v5486_v51, %v4566_v52  ;;  %v4673_v40 = vor.u32 %v5512_v19, %v4670_v20  ;;  %v4598_v52 = vld [vmem:[%s8448_s1 + $0x8a8] sm:$0xf0]  ;;  %v5600_v20 = vld [vmem:[%s8448_s1 + $0xbf4] sm:$0xf] }
 0x139   :  { %2921 = vmatpush.bf16.msrb.mxu1 %v4345_v61  ;;  %v4697_v61 = vor.u32 %v5518_v55, %v4694_v58  ;;  %v5526_v58 = vld [vmem:[%s8448_s1 + $0x9a4] sm:$0xf] }
 0x13a   :  { %2934 = vmatpush.bf16.msrb.mxu2 %v4409_v62  ;;  %v5484_v62 = vld [vmem:[%s8448_s1 + $0x854] sm:$0xf] }
 0x13b   :  { %2947 = vmatpush.bf16.msrb.mxu3 %v4473_v1  ;;  %v4622_v1 = vld [vmem:[%s8448_s1 + $0x8d8] sm:$0xf0]  ;;  %v4561_v30 = vor.u32 %v5484_v62, %v4558_v63 }
 0x13c   :  { %2909 = vmatpush.bf16.msrb.mxu0 %v4273_v33  ;;  %v4625_v4 = vor.u32 %v5500_v25, %v4622_v1  ;;  %v4689_v33 = vor.u32 %v5516_v2, %v4686_v3  ;;  %v5476_v25 = vld [vmem:[%s8448_s1 + $0x814] sm:$0xf]  ;;  %v4729_v2 = vor.u32 %v5526_v58, %v4726_v59  ;;  %v4590_v3 = vld [vmem:[%s8448_s1 + $0x898] sm:$0xf0] }
 0x13d   :  { %2922 = vmatpush.bf16.msrb.mxu1 %v4337_v8  ;;  %v5514_v8 = vld [vmem:[%s8448_s1 + $0x944] sm:$0xf]  ;;  %v5492_v1 = vld [vmem:[%s8448_s1 + $0x894] sm:$0xf] }
 0x13e   :  { %2935 = vmatpush.bf16.msrb.mxu2 %v4401_v9  ;;  %v4678_v9 = vld [vmem:[%s8448_s1 + $0x948] sm:$0xf0]  ;;  %v4593_v5 = vor.u32 %v5492_v1, %v4590_v3  ;;  %v5006_v1 = vld [vmem:[%s8448_s1 + $0xbd8] sm:$0xf0]  ;;  %v5546_v3 = vld [vmem:[%s8448_s1 + $0xa44] sm:$0xf] }
 0x13f   :  { %2948 = vmatpush.bf16.msrb.mxu3 %v4465_v14  ;;  %v4681_v21 = vor.u32 %v5514_v8, %v4678_v9  ;;  %v4582_v8 = vld [vmem:[%s8448_s1 + $0x888] sm:$0xf0]  ;;  %v5506_v9 = vld [vmem:[%s8448_s1 + $0x904] sm:$0xf] }
 0x140   :  { %2910 = vmatpush.bf16.msrb.mxu0 %v4265_v32  ;;  %v2704_v10 = vpop.f32.mrf.mxu0  ;;  %v4606_v32 = vld [vmem:[%s8448_s1 + $0x8b8] sm:$0xf0] }
 0x141   :  { %2923 = vmatpush.bf16.msrb.mxu1 %v4329_v34  ;;  %v2705_v14 = vadd.f32 %v2704_v10, %v7727_v44  ;;  %v2717_v53 = vpop.f32.mrf.mxu1  ;;  %v4745_v44 = vor.u32 %v5530_v18, %v4742_v13  ;;  %v4734_v34 = vld [vmem:[%s8448_s1 + $0x9b8] sm:$0xf0]  ;;  %v4609_v39 = vor.u32 %v5496_v56, %v4606_v32  ;;  %v4646_v18 = vld [vmem:[%s8448_s1 + $0x908] sm:$0xf0]  ;;  %v5522_v13 = vld [vmem:[%s8448_s1 + $0x984] sm:$0xf]  ;;  %v4585_v32 = vor.u32 %v5490_v6, %v4582_v8 }
 0x142   :  { %2936 = vmatpush.bf16.msrb.mxu2 %v4393_v36  ;;  %v4545_v36 = vor.u32 %v5480_v24, %v4542_v26  ;;  %v4894_v56 = vld [vmem:[%s8448_s1 + $0xaf8] sm:$0xf0]  ;;  %v4649_v19 = vor.u32 %v5506_v9, %v4646_v18  ;;  %v5544_v18 = vld [vmem:[%s8448_s1 + $0xa34] sm:$0xf] }
 0x143   :  { %2949 = vmatpush.bf16.msrb.mxu3 %v4457_v43  ;;  %2911 = vmatmul.bf16.vlgmr.msrb.gmra.mxu0 %v6581_v23  ;;  %v5532_v23 = vld [vmem:[%s8448_s1 + $0x9d4] sm:$0xf]  ;;  %v2718_v27 = vadd.f32 %v2717_v53, %v2705_v14  ;;  %v5478_v43 = vld [vmem:[%s8448_s1 + $0x824] sm:$0xf]  ;;  %v4710_v14 = vld [vmem:[%s8448_s1 + $0x988] sm:$0xf0] }
 0x144   :  { %2955 = vmatpush.bf16.msra.mxu0 %v4577_v47  ;;  %2924 = vmatmul.bf16.vlgmr.msrb.gmra.mxu1 %v6594_v31  ;;  %v4550_v31 = vld [vmem:[%s8448_s1 + $0x848] sm:$0xf0]  ;;  %v5552_v53 = vld [vmem:[%s8448_s1 + $0xa74] sm:$0xf] }
 0x145   :  { %2968 = vmatpush.bf16.msra.mxu1 %v4641_v48  ;;  %2937 = vmatmul.bf16.vlgmr.msrb.gmra.mxu2 %v6592_v28  ;;  %v5482_v28 = vld [vmem:[%s8448_s1 + $0x844] sm:$0xf]  ;;  %v4534_v47 = vld [vmem:[%s8448_s1 + $0x828] sm:$0xf0] }
 0x146   :  { %2981 = vmatpush.bf16.msra.mxu2 %v4705_v50  ;;  %2950 = vmatmul.bf16.vlgmr.msrb.gmra.mxu3 %v6602_v35  ;;  %v4753_v35 = vor.u32 %v5532_v23, %v4750_v29  ;;  %v4553_v15 = vor.u32 %v5482_v28, %v4550_v31  ;;  %v5494_v48 = vld [vmem:[%s8448_s1 + $0x8a4] sm:$0xf]  ;;  %v4737_v50 = vor.u32 %v5528_v22, %v4734_v34  ;;  %v5508_v23 = vld [vmem:[%s8448_s1 + $0x914] sm:$0xf]  ;;  %v4654_v29 = vld [vmem:[%s8448_s1 + $0x918] sm:$0xf0] }
 0x147   :  { %2994 = vmatpush.bf16.msra.mxu3 %v4769_v38  ;;  %v4662_v38 = vld [vmem:[%s8448_s1 + $0x928] sm:$0xf0]  ;;  %v4601_v62 = vor.u32 %v5494_v48, %v4598_v52  ;;  %v5474_v28 = vld [vmem:[%s8448_s1 + $0x804] sm:$0xf]  ;;  %v5022_v22 = vld [vmem:[%s8448_s1 + $0xbf8] sm:$0xf0]  ;;  %v4713_v34 = vor.u32 %v5522_v13, %v4710_v14 }
 0x148   :  { %2956 = vmatpush.bf16.msra.mxu0 %v4569_v41  ;;  %v2730_v51 = vpop.f32.mrf.mxu2  ;;  %v2706_v60 = vpop.f32.mrf.mxu0  ;;  %v4537_v41 = vor.u32 %v5478_v43, %v4534_v47  ;;  %v4665_v63 = vor.u32 %v5510_v54, %v4662_v38  ;;  %v4518_v31 = vld [vmem:[%s8448_s1 + $0x808] sm:$0xf0]  ;;  %v5550_v43 = vld [vmem:[%s8448_s1 + $0xa64] sm:$0xf]  ;;  %v4798_v13 = vld [vmem:[%s8448_s1 + $0xa38] sm:$0xf0] }
 0x149   :  { %2969 = vmatpush.bf16.msra.mxu1 %v4633_v42  ;;  %v2731_v57 = vadd.f32 %v2730_v51, %v2718_v27  ;;  %v2743_v55 = vpop.f32.mrf.mxu3  ;;  %v2719_v42 = vpop.f32.mrf.mxu1  ;;  %v4521_v26 = vor.u32 %v5474_v28, %v4518_v31  ;;  %v4958_v27 = vld [vmem:[%s8448_s1 + $0xb78] sm:$0xf0]  ;;  %v4822_v47 = vld [vmem:[%s8448_s1 + $0xa68] sm:$0xf0]  ;;  %v5566_v48 = vld [vmem:[%s8448_s1 + $0xae4] sm:$0xf] }
 0x14a   :  { %2982 = vmatpush.bf16.msra.mxu2 %v4697_v61  ;;  %v4886_v51 = vld [vmem:[%s8448_s1 + $0xae8] sm:$0xf0]  ;;  %v5582_v52 = vld [vmem:[%s8448_s1 + $0xb64] sm:$0xf]  ;;  %v5548_v60 = vld [vmem:[%s8448_s1 + $0xa54] sm:$0xf] }
 0x14b   :  { %2995 = vmatpush.bf16.msra.mxu3 %v4761_v0  ;;  %v7926_v61 = vadd.f32 %v2743_v55, %v2731_v57  ;;  %v4526_v0 = vld [vmem:[%s8448_s1 + $0x818] sm:$0xf0]  ;;  %v4950_v54 = vld [vmem:[%s8448_s1 + $0xb68] sm:$0xf0]  ;;  %v5598_v38 = vld [vmem:[%s8448_s1 + $0xbe4] sm:$0xf]  ;;  %v4825_v55 = vor.u32 %v5550_v43, %v4822_v47  ;;  %v4889_v58 = vor.u32 %v5566_v48, %v4886_v51 }
 0x14c   :  { %2957 = vmatpush.bf16.msra.mxu0 %v4561_v30  ;;  %v5524_v30 = vld [vmem:[%s8448_s1 + $0x994] sm:$0xf]  ;;  %v5014_v57 = vld [vmem:[%s8448_s1 + $0xbe8] sm:$0xf0]  ;;  %v4953_v59 = vor.u32 %v5582_v52, %v4950_v54  ;;  %v5578_v28 = vld [vmem:[%s8448_s1 + $0xb44] sm:$0xf] }
 0x14d   :  { %2970 = vmatpush.bf16.msra.mxu1 %v4625_v4  ;;  %v4718_v4 = vld [vmem:[%s8448_s1 + $0x998] sm:$0xf0]  ;;  %v5564_v42 = vld [vmem:[%s8448_s1 + $0xad4] sm:$0xf]  ;;  %v4934_v31 = vld [vmem:[%s8448_s1 + $0xb48] sm:$0xf0] }
 0x14e   :  { %2983 = vmatpush.bf16.msra.mxu2 %v4689_v33  ;;  %v4529_v33 = vor.u32 %v5476_v25, %v4526_v0  ;;  %v4721_v10 = vor.u32 %v5524_v30, %v4718_v4  ;;  %v5580_v25 = vld [vmem:[%s8448_s1 + $0xb54] sm:$0xf]  ;;  %v4942_v0 = vld [vmem:[%s8448_s1 + $0xb58] sm:$0xf0]  ;;  %v4854_v43 = vld [vmem:[%s8448_s1 + $0xaa8] sm:$0xf0] }
 0x14f   :  { %2996 = vmatpush.bf16.msra.mxu3 %v4753_v35  ;;  %v4657_v35 = vor.u32 %v5508_v23, %v4654_v29  ;;  %v4806_v23 = vld [vmem:[%s8448_s1 + $0xa48] sm:$0xf0]  ;;  %v5562_v29 = vld [vmem:[%s8448_s1 + $0xac4] sm:$0xf]  ;;  %v5560_v14 = vld [vmem:[%s8448_s1 + $0xab4] sm:$0xf] }
 0x150   :  { %2958 = vmatpush.bf16.msra.mxu0 %v4553_v15  ;;  %v2732_v15 = vpop.f32.mrf.mxu2  ;;  %v4809_v6 = vor.u32 %v5546_v3, %v4806_v23  ;;  %v5574_v47 = vld [vmem:[%s8448_s1 + $0xb24] sm:$0xf]  ;;  %v4918_v48 = vld [vmem:[%s8448_s1 + $0xb28] sm:$0xf0] }
 0x151   :  { %2971 = vmatpush.bf16.msra.mxu1 %v4617_v17  ;;  %v4830_v17 = vld [vmem:[%s8448_s1 + $0xa78] sm:$0xf0]  ;;  %v2745_v24 = vpop.f32.mrf.mxu3  ;;  %v5590_v52 = vld [vmem:[%s8448_s1 + $0xba4] sm:$0xf]  ;;  %v4982_v54 = vld [vmem:[%s8448_s1 + $0xba8] sm:$0xf0] }
 0x152   :  { %2984 = vmatpush.bf16.msra.mxu2 %v4681_v21  ;;  %v5568_v21 = vld [vmem:[%s8448_s1 + $0xaf4] sm:$0xf] }
 0x153   :  { %2997 = vmatpush.bf16.msra.mxu3 %v4745_v44  ;;  %v5584_v44 = vld [vmem:[%s8448_s1 + $0xb74] sm:$0xf] }
 0x154   :  { %2959 = vmatpush.bf16.msra.mxu0 %v4545_v36  ;;  %v4833_v36 = vor.u32 %v5552_v53, %v4830_v17  ;;  %v5576_v24 = vld [vmem:[%s8448_s1 + $0xb34] sm:$0xf] }
 0x155   :  { %2972 = vmatpush.bf16.msra.mxu1 %v4609_v39  ;;  %v4897_v39 = vor.u32 %v5568_v21, %v4894_v56  ;;  %v4862_v21 = vld [vmem:[%s8448_s1 + $0xab8] sm:$0xf0]  ;;  %v5592_v56 = vld [vmem:[%s8448_s1 + $0xbb4] sm:$0xf] }
 0x156   :  { %2985 = vmatpush.bf16.msra.mxu2 %v4673_v40  ;;  %v4961_v40 = vor.u32 %v5584_v44, %v4958_v27  ;;  %v4990_v44 = vld [vmem:[%s8448_s1 + $0xbb8] sm:$0xf0] }
 0x157   :  { %2998 = vmatpush.bf16.msra.mxu3 %v4737_v50  ;;  %v5025_v50 = vor.u32 %v5600_v20, %v5022_v22  ;;  %v5542_v22 = vld [vmem:[%s8448_s1 + $0xa24] sm:$0xf] }
 0x158   :  { %2960 = vmatpush.bf16.msra.mxu0 %v4537_v41  ;;  %v4814_v41 = vld [vmem:[%s8448_s1 + $0xa58] sm:$0xf0] }
 0x159   :  { %2973 = vmatpush.bf16.msra.mxu1 %v4601_v62  ;;  %v5017_v62 = vor.u32 %v5598_v38, %v5014_v57 }
 0x15a   :  { %2986 = vmatpush.bf16.msra.mxu2 %v4665_v63  ;;  %v4878_v63 = vld [vmem:[%s8448_s1 + $0xad8] sm:$0xf0] }
 0x15b   :  { %2999 = vmatpush.bf16.msra.mxu3 %v4729_v2  ;;  %v4817_v2 = vor.u32 %v5548_v60, %v4814_v41  ;;  %v5540_v60 = vld [vmem:[%s8448_s1 + $0xa14] sm:$0xf]  ;;  %v4782_v41 = vld [vmem:[%s8448_s1 + $0xa18] sm:$0xf0] }
 0x15c   :  { %2961 = vmatpush.bf16.msra.mxu0 %v4529_v33  ;;  %v4870_v33 = vld [vmem:[%s8448_s1 + $0xac8] sm:$0xf0]  ;;  %v4785_v3 = vor.u32 %v5540_v60, %v4782_v41  ;;  %v5044_v60 = vld [vmem:[%s8450_s3 + $0x20] sm:$0xf] }
 0x15d   :  { %2974 = vmatpush.bf16.msra.mxu1 %v4593_v5  ;;  %v5594_v5 = vld [vmem:[%s8448_s1 + $0xbc4] sm:$0xf]  ;;  %v4873_v9 = vor.u32 %v5562_v29, %v4870_v33  ;;  %v4774_v29 = vld [vmem:[%s8448_s1 + $0xa08] sm:$0xf0] }
 0x15e   :  { %2987 = vmatpush.bf16.msra.mxu2 %v4657_v35  ;;  %v4998_v35 = vld [vmem:[%s8448_s1 + $0xbc8] sm:$0xf0] }
 0x15f   :  { %3000 = vmatpush.bf16.msra.mxu3 %v4721_v10  ;;  %v4937_v10 = vor.u32 %v5578_v28, %v4934_v31  ;;  %v5001_v17 = vor.u32 %v5594_v5, %v4998_v35  ;;  %v5570_v28 = vld [vmem:[%s8448_s1 + $0xb04] sm:$0xf]  ;;  %v4902_v31 = vld [vmem:[%s8448_s1 + $0xb08] sm:$0xf0] }
 0x160   :  { %2962 = vmatpush.bf16.msra.mxu0 %v4521_v26  ;;  %v2756_v8 = vpop.f32.mrf.mxu0  ;;  %v4926_v26 = vld [vmem:[%s8448_s1 + $0xb38] sm:$0xf0]  ;;  %v5586_v5 = vld [vmem:[%s8448_s1 + $0xb84] sm:$0xf] }
 0x161   :  { %2975 = vmatpush.bf16.msra.mxu1 %v4585_v32  ;;  %v2769_v53 = vpop.f32.mrf.mxu1  ;;  %v4801_v32 = vor.u32 %v5544_v18, %v4798_v13  ;;  %v4929_v20 = vor.u32 %v5576_v24, %v4926_v26  ;;  %v5616_v18 = vld [vmem:[%s8450_s3 + $0x74] sm:$0xf]  ;;  %v5086_v13 = vld [vmem:[%s8450_s3 + $0x78] sm:$0xf0]  ;;  %v5076_v24 = vld [vmem:[%s8450_s3 + $0x60] sm:$0xf] }
 0x162   :  { %2988 = vmatpush.bf16.msra.mxu2 %v4649_v19  ;;  %v4865_v19 = vor.u32 %v5560_v14, %v4862_v21  ;;  %v5089_v21 = vor.u32 %v5616_v18, %v5086_v13  ;;  %v5615_v26 = vld [vmem:[%s8450_s3 + $0x64] sm:$0xf0] }
 0x163   :  { %3001 = vmatpush.bf16.msra.mxu3 %v4713_v34  ;;  %2963 = vmatmul.bf16.vlgmr.msra.gmra.mxu0 %v6791_v37  ;;  %v5596_v37 = vld [vmem:[%s8448_s1 + $0xbd4] sm:$0xf]  ;;  %v4790_v34 = vld [vmem:[%s8448_s1 + $0xa28] sm:$0xf0] }
 0x164   :  { %3007 = vmatpush.bf16.msrb.mxu0 %v4833_v36  ;;  %2976 = vmatmul.bf16.vlgmr.msra.gmra.mxu1 %v6804_v46  ;;  %v4945_v46 = vor.u32 %v5580_v25, %v4942_v0  ;;  %v5009_v4 = vor.u32 %v5596_v37, %v5006_v1  ;;  %v5558_v36 = vld [vmem:[%s8448_s1 + $0xaa4] sm:$0xf]  ;;  %v4793_v38 = vor.u32 %v5542_v22, %v4790_v34  ;;  %v4846_v25 = vld [vmem:[%s8448_s1 + $0xa98] sm:$0xf0]  ;;  %v5572_v0 = vld [vmem:[%s8448_s1 + $0xb14] sm:$0xf] }
 0x165   :  { %3020 = vmatpush.bf16.msrb.mxu1 %v4897_v39  ;;  %2989 = vmatmul.bf16.vlgmr.msra.gmra.mxu2 %v6802_v45  ;;  %v4881_v45 = vor.u32 %v5564_v42, %v4878_v63  ;;  %v5556_v42 = vld [vmem:[%s8448_s1 + $0xa94] sm:$0xf]  ;;  %v4985_v63 = vor.u32 %v5590_v52, %v4982_v54  ;;  %v4910_v37 = vld [vmem:[%s8448_s1 + $0xb18] sm:$0xf0] }
 0x166   :  { %3033 = vmatpush.bf16.msrb.mxu2 %v4961_v40  ;;  %3002 = vmatmul.bf16.vlgmr.msra.gmra.mxu3 %v6812_v49  ;;  %v5652_v49 = vld [vmem:[%s8449_s2] sm:$0x3]  ;;  %v4993_v40 = vor.u32 %v5592_v56, %v4990_v44  ;;  %v5588_v1 = vld [vmem:[%s8448_s1 + $0xb94] sm:$0xf]  ;;  %v4913_v23 = vor.u32 %v5572_v0, %v4910_v37  ;;  %v5614_v56 = vld [vmem:[%s8450_s3 + $0x64] sm:$0xf] }
 0x167   :  { %3046 = vmatpush.bf16.msrb.mxu3 %v5025_v50  ;;  %v428_v30 = vperm.slane %v5652_v49, 1  ;;  %v5554_v49 = vld [vmem:[%s8448_s1 + $0xa84] sm:$0xf]  ;;  %v5078_v44 = vld [vmem:[%s8450_s3 + $0x68] sm:$0xf0] }
 0x168   :  { %3008 = vmatpush.bf16.msrb.mxu0 %v4825_v55  ;;  %v2782_v39 = vpop.f32.mrf.mxu2  ;;  %v2758_v55 = vpop.f32.mrf.mxu0  ;;  %v5612_v22 = vld [vmem:[%s8450_s3 + $0x54] sm:$0xf] }
 0x169   :  { %3021 = vmatpush.bf16.msrb.mxu1 %v4889_v58  ;;  %v2757_v15 = vadd.f32 %v2756_v8, %v428_v30  ;;  %v2795_v51 = vpop.f32.mrf.mxu3  ;;  %v4857_v58 = vor.u32 %v5558_v36, %v4854_v43  ;;  %v4838_v30 = vld [vmem:[%s8448_s1 + $0xa88] sm:$0xf0]  ;;  %v5084_v8 = vld [vmem:[%s8450_s3 + $0x70] sm:$0xf]  ;;  %v5608_v54 = vld [vmem:[%s8450_s3 + $0x34] sm:$0xf] }
 0x16a   :  { %3034 = vmatpush.bf16.msrb.mxu2 %v4953_v59  ;;  %v4921_v59 = vor.u32 %v5574_v47, %v4918_v48  ;;  %v4841_v14 = vor.u32 %v5554_v49, %v4838_v30  ;;  %v5052_v48 = vld [vmem:[%s8450_s3 + $0x30] sm:$0xf] }
 0x16b   :  { %3047 = vmatpush.bf16.msrb.mxu3 %v5017_v62  ;;  %v2770_v27 = vadd.f32 %v2769_v53, %v2757_v15  ;;  %v2771_v62 = vpop.f32.mrf.mxu1  ;;  %v4905_v15 = vor.u32 %v5570_v28, %v4902_v31  ;;  %v5602_v31 = vld [vmem:[%s8450_s3 + $0x4] sm:$0xf] }
 0x16c   :  { %3009 = vmatpush.bf16.msrb.mxu0 %v4817_v2  ;;  %v4974_v2 = vld [vmem:[%s8448_s1 + $0xb98] sm:$0xf0]  ;;  %v5046_v62 = vld [vmem:[%s8450_s3 + $0x28] sm:$0xf0] }
 0x16d   :  { %3022 = vmatpush.bf16.msrb.mxu1 %v4881_v45  ;;  %v2783_v50 = vadd.f32 %v2782_v39, %v2770_v27  ;;  %v5538_v45 = vld [vmem:[%s8448_s1 + $0xa04] sm:$0xf]  ;;  %v4977_v33 = vor.u32 %v5588_v1, %v4974_v2  ;;  %v5077_v27 = vor.u32 %v5615_v26, %v5076_v24 }
 0x16e   :  { %3035 = vmatpush.bf16.msrb.mxu2 %v4945_v46  ;;  %v4849_v46 = vor.u32 %v5556_v42, %v4846_v25  ;;  %v5610_v39 = vld [vmem:[%s8450_s3 + $0x44] sm:$0xf] }
 0x16f   :  { %3048 = vmatpush.bf16.msrb.mxu3 %v5009_v4  ;;  %v8127_v57 = vadd.f32 %v2795_v51, %v2783_v50  ;;  %v5609_v50 = vld [vmem:[%s8450_s3 + $0x34] sm:$0xf0]  ;;  %v5606_v42 = vld [vmem:[%s8450_s3 + $0x24] sm:$0xf] }
 0x170   :  { %3010 = vmatpush.bf16.msrb.mxu0 %v4809_v6  ;;  %v2784_v4 = vpop.f32.mrf.mxu2  ;;  %v4966_v6 = vld [vmem:[%s8448_s1 + $0xb88] sm:$0xf0]  ;;  %v5049_v2 = vor.u32 %v5606_v42, %v5046_v62  ;;  %v5627_v42 = vld [vmem:[%s8450_s3 + $0xc4] sm:$0xf0]  ;;  %v5626_v62 = vld [vmem:[%s8450_s3 + $0xc4] sm:$0xf] }
 0x171   :  { %3023 = vmatpush.bf16.msrb.mxu1 %v4873_v9  ;;  %v2797_v35 = vpop.f32.mrf.mxu3  ;;  %v5617_v9 = vld [vmem:[%s8450_s3 + $0x74] sm:$0xf0]  ;;  %v4969_v53 = vor.u32 %v5586_v5, %v4966_v6  ;;  %v5028_v4 = vld [vmem:[%s8450_s3] sm:$0xf]  ;;  %v5030_v5 = vld [vmem:[%s8450_s3 + $0x8] sm:$0xf0] }
 0x172   :  { %3036 = vmatpush.bf16.msrb.mxu2 %v4937_v10  ;;  %v4777_v10 = vor.u32 %v5538_v45, %v4774_v29  ;;  %v5605_v45 = vld [vmem:[%s8450_s3 + $0x14] sm:$0xf0]  ;;  %v5038_v29 = vld [vmem:[%s8450_s3 + $0x18] sm:$0xf0]  ;;  %s3481_s1 = sshll.u32 %s8454_s7, 4  ;;  %s3482_s1 = int_to_ptr.hbm [resolvable:$true] %s3481_s1 }
 0x173   :  { %3049 = vmatpush.bf16.msrb.mxu3 %v5001_v17  ;;  %v5085_v17 = vor.u32 %v5617_v9, %v5084_v8  ;;  %v3059_v8 = vmax.f32 %v7926_v61, 0.0  ;;  %v5033_v9 = vor.u32 %v5602_v31, %v5030_v5  ;;  %v5100_v5 = vld [vmem:[%s8450_s3 + $0x90] sm:$0xf] }
 0x174   :  { %3011 = vmatpush.bf16.msrb.mxu0 %v4801_v32  ;;  %v5081_v32 = vor.u32 %v5614_v56, %v5078_v44 }
 0x175   :  { %3024 = vmatpush.bf16.msrb.mxu1 %v4865_v19  ;;  %v5068_v19 = vld [vmem:[%s8450_s3 + $0x50] sm:$0xf] }
 0x176   :  { %3037 = vmatpush.bf16.msrb.mxu2 %v4929_v20  ;;  %v5613_v20 = vld [vmem:[%s8450_s3 + $0x54] sm:$0xf0] }
 0x177   :  { %3050 = vmatpush.bf16.msrb.mxu3 %v4993_v40  ;;  %v5069_v34 = vor.u32 %v5613_v20, %v5068_v19 }
 0x178   :  { %3012 = vmatpush.bf16.msrb.mxu0 %v4793_v38  ;;  %v5054_v38 = vld [vmem:[%s8450_s3 + $0x38] sm:$0xf0] }
 0x179   :  { %3025 = vmatpush.bf16.msrb.mxu1 %v4857_v58  ;;  %v5053_v58 = vor.u32 %v5609_v50, %v5052_v48  ;;  %v5142_v48 = vld [vmem:[%s8450_s3 + $0xe8] sm:$0xf0] }
 0x17a   :  { %3038 = vmatpush.bf16.msrb.mxu2 %v4921_v59  ;;  %v5057_v59 = vor.u32 %v5608_v54, %v5054_v38  ;;  %v5629_v54 = vld [vmem:[%s8450_s3 + $0xd4] sm:$0xf0]  ;;  %v5628_v38 = vld [vmem:[%s8450_s3 + $0xd4] sm:$0xf] }
 0x17b   :  { %3051 = vmatpush.bf16.msrb.mxu3 %v4985_v63 }
 0x17c   :  { %3013 = vmatpush.bf16.msrb.mxu0 %v4785_v3  ;;  %v5036_v3 = vld [vmem:[%s8450_s3 + $0x10] sm:$0xf] }
 0x17d   :  { %3026 = vmatpush.bf16.msrb.mxu1 %v4849_v46  ;;  %v5037_v49 = vor.u32 %v5605_v45, %v5036_v3  ;;  %v5118_v45 = vld [vmem:[%s8450_s3 + $0xb8] sm:$0xf0] }
 0x17e   :  { %3039 = vmatpush.bf16.msrb.mxu2 %v4913_v23  ;;  %v5604_v23 = vld [vmem:[%s8450_s3 + $0x14] sm:$0xf] }
 0x17f   :  { %3052 = vmatpush.bf16.msrb.mxu3 %v4977_v33  ;;  %v5041_v30 = vor.u32 %v5604_v23, %v5038_v29  ;;  %v5603_v33 = vld [vmem:[%s8450_s3 + $0x4] sm:$0xf0]  ;;  %v5108_v29 = vld [vmem:[%s8450_s3 + $0xa0] sm:$0xf] }
 0x180   :  { %3014 = vmatpush.bf16.msrb.mxu0 %v4777_v10  ;;  %v2808_v43 = vpop.f32.mrf.mxu0  ;;  %v5029_v6 = vor.u32 %v5603_v33, %v5028_v4  ;;  %v3061_v10 = vpack.c.bf16 %v3059_v8, %v3059_v8 }
 0x181   :  { %3027 = vmatpush.bf16.msrb.mxu1 %v4841_v14  ;;  %v2809_v51 = vadd.f32 %v2808_v43, %v8127_v57  ;;  %v2821_v52 = vpop.f32.mrf.mxu1  ;;  %v5607_v57 = vld [vmem:[%s8450_s3 + $0x24] sm:$0xf0] }
 0x182   :  { %3040 = vmatpush.bf16.msrb.mxu2 %v4905_v15  ;;  %v5045_v0 = vor.u32 %v5607_v57, %v5044_v60 }
 0x183   :  { %3053 = vmatpush.bf16.msrb.mxu3 %v4969_v53  ;;  %3015 = vmatmul.bf16.vlgmr.msrb.gmra.mxu0 %v7006_v7  ;;  %v5070_v7 = vld [vmem:[%s8450_s3 + $0x58] sm:$0xf0]  ;;  %v2822_v55 = vadd.f32 %v2821_v52, %v2809_v51  ;;  %v5132_v52 = vld [vmem:[%s8450_s3 + $0xd0] sm:$0xf] }
 0x184   :  { %3260 = vmatpush.bf16.msra.mxu0 %v5085_v17  ;;  %3028 = vmatmul.bf16.vlgmr.msrb.gmra.mxu1 %v7019_v12  ;;  %v5073_v36 = vor.u32 %v5612_v22, %v5070_v7  ;;  %v5060_v12 = vld [vmem:[%s8450_s3 + $0x40] sm:$0xf]  ;;  %v5148_v7 = vld [vmem:[%s8450_s3 + $0xf0] sm:$0xf] }
 0x185   :  { %3041 = vmatmul.bf16.vlgmr.msrb.gmra.mxu2 %v7017_v11  ;;  %v5611_v11 = vld [vmem:[%s8450_s3 + $0x44] sm:$0xf0] }
 0x186   :  { %3286 = vmatpush.bf16.msra.mxu2 %v5089_v21  ;;  %3054 = vmatmul.bf16.vlgmr.msrb.gmra.mxu3 %v7027_v16  ;;  %v5062_v16 = vld [vmem:[%s8450_s3 + $0x48] sm:$0xf0]  ;;  %v5061_v40 = vor.u32 %v5611_v11, %v5060_v12 }
 0x187   :  { %v5065_v47 = vor.u32 %v5610_v39, %v5062_v16  ;;  %v5150_v39 = vld [vmem:[%s8450_s3 + $0xf8] sm:$0xf0]  ;;  %v5140_v16 = vld [vmem:[%s8450_s3 + $0xe0] sm:$0xf] }
 0x188   :  { %3261 = vmatpush.bf16.msra.mxu0 %v5077_v27  ;;  %v2834_v41 = vpop.f32.mrf.mxu2  ;;  %v2810_v1 = vpop.f32.mrf.mxu0 }
 0x189   :  { %v2835_v63 = vadd.f32 %v2834_v41, %v2822_v55  ;;  %v2847_v25 = vpop.f32.mrf.mxu3  ;;  %v2823_v46 = vpop.f32.mrf.mxu1  ;;  %v5124_v41 = vld [vmem:[%s8450_s3 + $0xc0] sm:$0xf]  ;;  %v5625_v1 = vld [vmem:[%s8450_s3 + $0xb4] sm:$0xf0] }
 0x18a   :  { %3287 = vmatpush.bf16.msra.mxu2 %v5081_v32 }
 0x18b   :  { %v2848_v37 = vadd.f32 %v2847_v25, %v2835_v63  ;;  %v5126_v63 = vld [vmem:[%s8450_s3 + $0xc8] sm:$0xf0]  ;;  %v5125_v25 = vor.u32 %v5627_v42, %v5124_v41 }
 0x18c   :  { %3262 = vmatpush.bf16.msra.mxu0 %v5069_v34  ;;  %v5633_v34 = vld [vmem:[%s8450_s3 + $0xf4] sm:$0xf0]  ;;  %v5639_v41 = vld [vmem:[%s8452_s5 + $0x28] sm:$0xff] }
 0x18d   :  { %v5149_v11 = vor.u32 %v5633_v34, %v5148_v7  ;;  %v5647_v42 = vld [vmem:[%s8452_s5 + $0x68] sm:$0xff] }
 0x18e   :  { %3288 = vmatpush.bf16.msra.mxu2 %v5073_v36  ;;  %v5632_v36 = vld [vmem:[%s8450_s3 + $0xf4] sm:$0xf] }
 0x18f   :  { %v5153_v43 = vor.u32 %v5632_v36, %v5150_v39  ;;  %3273 = vmatpush.bf16.msra.mxu1 %v5149_v11 }
 0x190   :  { %3263 = vmatpush.bf16.msra.mxu0 %v5061_v40  ;;  %v2836_v28 = vpop.f32.mrf.mxu2  ;;  %v5631_v40 = vld [vmem:[%s8450_s3 + $0xe4] sm:$0xf0] }
 0x191   :  { %v2849_v35 = vpop.f32.mrf.mxu3  ;;  %v5141_v50 = vor.u32 %v5631_v40, %v5140_v16  ;;  %3299 = vmatpush.bf16.msra.mxu3 %v5153_v43  ;;  %v5110_v28 = vld [vmem:[%s8450_s3 + $0xa8] sm:$0xf0] }
 0x192   :  { %3289 = vmatpush.bf16.msra.mxu2 %v5065_v47  ;;  %v5630_v47 = vld [vmem:[%s8450_s3 + $0xe4] sm:$0xf]  ;;  %v5621_v35 = vld [vmem:[%s8450_s3 + $0x94] sm:$0xf0] }
 0x193   :  { %v5145_v51 = vor.u32 %v5630_v47, %v5142_v48  ;;  %3274 = vmatpush.bf16.msra.mxu1 %v5141_v50  ;;  %v5101_v8 = vor.u32 %v5621_v35, %v5100_v5 }
 0x194   :  { %3264 = vmatpush.bf16.msra.mxu0 %v5053_v58  ;;  %v5133_v58 = vor.u32 %v5629_v54, %v5132_v52 }
 0x195   :  { %3300 = vmatpush.bf16.msra.mxu3 %v5145_v51 }
 0x196   :  { %3290 = vmatpush.bf16.msra.mxu2 %v5057_v59  ;;  %v5134_v59 = vld [vmem:[%s8450_s3 + $0xd8] sm:$0xf0] }
 0x197   :  { %v5137_v57 = vor.u32 %v5628_v38, %v5134_v59  ;;  %3275 = vmatpush.bf16.msra.mxu1 %v5133_v58  ;;  %v5640_v59 = vld [vmem:[%s8452_s5 + $0x30] sm:$0xff] }
 0x198   :  { %3265 = vmatpush.bf16.msra.mxu0 %v5045_v0  ;;  %v5129_v0 = vor.u32 %v5626_v62, %v5126_v63  ;;  %v5638_v62 = vld [vmem:[%s8452_s5 + $0x20] sm:$0xff] }
 0x199   :  { %3301 = vmatpush.bf16.msra.mxu3 %v5137_v57  ;;  %v5646_v63 = vld [vmem:[%s8452_s5 + $0x60] sm:$0xff] }
 0x19a   :  { %3291 = vmatpush.bf16.msra.mxu2 %v5049_v2  ;;  %v5624_v2 = vld [vmem:[%s8450_s3 + $0xb4] sm:$0xf] }
 0x19b   :  { %3276 = vmatpush.bf16.msra.mxu1 %v5125_v25  ;;  %v5121_v46 = vor.u32 %v5624_v2, %v5118_v45  ;;  %v5637_v25 = vld [vmem:[%s8452_s5 + $0x18] sm:$0xff] }
 0x19c   :  { %3266 = vmatpush.bf16.msra.mxu0 %v5037_v49  ;;  %v5623_v49 = vld [vmem:[%s8450_s3 + $0xa4] sm:$0xf0] }
 0x19d   :  { %3302 = vmatpush.bf16.msra.mxu3 %v5129_v0  ;;  %v5109_v33 = vor.u32 %v5623_v49, %v5108_v29  ;;  %v5645_v0 = vld [vmem:[%s8452_s5 + $0x58] sm:$0xff]  ;;  %v5634_v29 = vld [vmem:[%s8452_s5] sm:$0xff]  ;;  %v5643_v49 = vld [vmem:[%s8452_s5 + $0x48] sm:$0xff] }
 0x19e   :  { %3292 = vmatpush.bf16.msra.mxu2 %v5041_v30  ;;  %v5622_v30 = vld [vmem:[%s8450_s3 + $0xa4] sm:$0xf] }
 0x19f   :  { %v5113_v31 = vor.u32 %v5622_v30, %v5110_v28  ;;  %v5642_v30 = vld [vmem:[%s8452_s5 + $0x40] sm:$0xff] }
 0x1a0   :  { %3267 = vmatpush.bf16.msra.mxu0 %v5029_v6  ;;  %v2860_v18 = vpop.f32.mrf.mxu0  ;;  %v5620_v6 = vld [vmem:[%s8450_s3 + $0x94] sm:$0xf] }
 0x1a1   :  { %v2861_v13 = vadd.f32 %v2860_v18, %v2848_v37  ;;  %v2873_v14 = vpop.f32.mrf.mxu1  ;;  %v5116_v37 = vld [vmem:[%s8450_s3 + $0xb0] sm:$0xf]  ;;  %3303 = vmatpush.bf16.msra.mxu3 %v5121_v46  ;;  %v5635_v46 = vld [vmem:[%s8452_s5 + $0x8] sm:$0xff] }
 0x1a2   :  { %3293 = vmatpush.bf16.msra.mxu2 %v5033_v9  ;;  %v5117_v3 = vor.u32 %v5625_v1, %v5116_v37  ;;  %v5102_v9 = vld [vmem:[%s8450_s3 + $0x98] sm:$0xf0]  ;;  %v5636_v1 = vld [vmem:[%s8452_s5 + $0x10] sm:$0xff] }
 0x1a3   :  { %3268 = vmatmul.bf16.vlgmr.msra.gmra.mxu0 %v3061_v10  ;;  %v2874_v15 = vadd.f32 %v2873_v14, %v2861_v13 }
 0x1a4   :  { %3277 = vmatpush.bf16.msra.mxu1 %v5117_v3 }
 0x1a5   :  { %3294 = vmatmul.bf16.vlgmr.msra.gmra.mxu2 %v3061_v10  ;;  %3304 = vmatpush.bf16.msra.mxu3 %v5113_v31  ;;  %v5105_v10 = vor.u32 %v5620_v6, %v5102_v9 }
 0x1a8   :  { %v2886_v53 = vpop.f32.mrf.mxu2  ;;  %v2862_v24 = vpop.f32.mrf.mxu0  ;;  %3278 = vmatpush.bf16.msra.mxu1 %v5109_v33 }
 0x1a9   :  { %v2887_v17 = vadd.f32 %v2886_v53, %v2874_v15  ;;  %v2899_v21 = vpop.f32.mrf.mxu3  ;;  %v2875_v26 = vpop.f32.mrf.mxu1  ;;  %3305 = vmatpush.bf16.msra.mxu3 %v5105_v10  ;;  %v5092_v53 = vld [vmem:[%s8450_s3 + $0x80] sm:$0xf] }
 0x1ab   :  { %v8279_v56 = vadd.f32 %v2899_v21, %v2887_v17  ;;  %v5619_v17 = vld [vmem:[%s8450_s3 + $0x84] sm:$0xf0]  ;;  %v5618_v21 = vld [vmem:[%s8450_s3 + $0x84] sm:$0xf] }
 0x1ac   :  { %3279 = vmatpush.bf16.msra.mxu1 %v5101_v8  ;;  %v5093_v26 = vor.u32 %v5619_v17, %v5092_v53 }
 0x1b0   :  { %v2888_v44 = vpop.f32.mrf.mxu2  ;;  %3280 = vmatpush.bf16.msra.mxu1 %v5093_v26 }
 0x1b1   :  { %v2901_v61 = vpop.f32.mrf.mxu3 }
 0x1c0   :  { %v8281_v27 = vpop.f32.mrf.mxu0 }
 0x1c1   :  { %v8283_v32 = vpop.f32.mrf.mxu1  ;;  %v2913_v18 = vadd.f32 %v8281_v27, %v8279_v56  ;;  %v5094_v56 = vld [vmem:[%s8450_s3 + $0x88] sm:$0xf0] }
 0x1c2   :  { %v5097_v44 = vor.u32 %v5618_v21, %v5094_v56  ;;  %v5651_v21 = vld [vmem:[%s8453_s6] ss:$0 sm:$0xff] }
 0x1c3   :  { %v2926_v61 = vadd.f32 %v8283_v32, %v2913_v18 }
 0x1c4   :  { %3306 = vmatpush.bf16.msra.mxu3 %v5097_v44 }
 0x1c8   :  { %v8285_v19 = vpop.f32.mrf.mxu2  ;;  %v2914_v22 = vpop.f32.mrf.mxu0 }
 0x1c9   :  { %v8287_v20 = vpop.f32.mrf.mxu3  ;;  %v2927_v12 = vpop.f32.mrf.mxu1  ;;  %v2939_v27 = vadd.f32 %v8285_v19, %v2926_v61  ;;  %v5641_v19 = vld [vmem:[%s8452_s5 + $0x38] sm:$0xff] }
 0x1ca   :  { %3447 = vmatpush.bf16.msrb.mxu0 %v5641_v19 }
 0x1cb   :  { %v2952_v34 = vadd.f32 %v8287_v20, %v2939_v27  ;;  %v5649_v20 = vld [vmem:[%s8452_s5 + $0x78] sm:$0xff] }
 0x1cc   :  { %3460 = vmatpush.bf16.msrb.mxu1 %v5649_v20 }
 0x1ce   :  { %3448 = vmatpush.bf16.msrb.mxu0 %v5640_v59 }
 0x1d0   :  { %v2940_v55 = vpop.f32.mrf.mxu2 }
 0x1d1   :  { %v2953_v60 = vpop.f32.mrf.mxu3 }
 0x1d2   :  { %v5648_v60 = vld [vmem:[%s8452_s5 + $0x70] sm:$0xff]  ;;  %3449 = vmatpush.bf16.msrb.mxu0 %v5639_v41 }
 0x1d3   :  { %3461 = vmatpush.bf16.msrb.mxu1 %v5648_v60 }
 0x1d6   :  { %3450 = vmatpush.bf16.msrb.mxu0 %v5638_v62 }
 0x1d7   :  { %3462 = vmatpush.bf16.msrb.mxu1 %v5647_v42 }
 0x1da   :  { %3451 = vmatpush.bf16.msrb.mxu0 %v5637_v25 }
 0x1db   :  { %3463 = vmatpush.bf16.msrb.mxu1 %v5646_v63 }
 0x1de   :  { %3452 = vmatpush.bf16.msrb.mxu0 %v5636_v1 }
 0x1df   :  { %3464 = vmatpush.bf16.msrb.mxu1 %v5645_v0 }
 0x1e0   :  { %v2964_v23 = vpop.f32.mrf.mxu0 }
 0x1e1   :  { %v2977_v4 = vpop.f32.mrf.mxu1  ;;  %v2965_v36 = vadd.f32 %v2964_v23, %v2952_v34  ;;  %v5644_v23 = vld [vmem:[%s8452_s5 + $0x50] sm:$0xff] }
 0x1e2   :  { %3453 = vmatpush.bf16.msrb.mxu0 %v5635_v46 }
 0x1e3   :  { %v2978_v12 = vadd.f32 %v2977_v4, %v2965_v36  ;;  %3465 = vmatpush.bf16.msrb.mxu1 %v5644_v23  ;;  %v40_v4 = vld [vmem:[%s8451_s4] sm:$0x3]  ;;  %s5679_s4 = smov [#allocation2]  }
 0x1e4   :  { %v3096_v33 = vperm.slane %v40_v4, 0  ;;  %v3097_v5 = vperm.slane %v40_v4, 1  ;;  %s3479_s17 = sshll.u32 %s5679_s4, 4  ;;  %s3480_s17 = int_to_ptr.vmem [resolvable:$true] %s3479_s17 }
 0x1e6   :  { %3454 = vmatpush.bf16.msrb.mxu0 %v5634_v29 }
 0x1e7   :  { %3466 = vmatpush.bf16.msrb.mxu1 %v5643_v49 }
 0x1e8   :  { %v2990_v13 = vpop.f32.mrf.mxu2  ;;  %v2966_v15 = vpop.f32.mrf.mxu0 }
 0x1e9   :  { %v3003_v14 = vpop.f32.mrf.mxu3  ;;  %v2979_v24 = vpop.f32.mrf.mxu1  ;;  %v2991_v11 = vadd.f32 %v2990_v13, %v2978_v12 }
 0x1eb   :  { %v3004_v39 = vadd.f32 %v3003_v14, %v2991_v11  ;;  %3467 = vmatpush.bf16.msrb.mxu1 %v5642_v30 }
 0x1f0   :  { %v2992_v22 = vpop.f32.mrf.mxu2 }
 0x1f1   :  { %v3005_v7 = vpop.f32.mrf.mxu3 }
 0x200   :  { %v3016_v16 = vpop.f32.mrf.mxu0 }
 0x201   :  { %v3029_v40 = vpop.f32.mrf.mxu1  ;;  %v3017_v43 = vadd.f32 %v3016_v16, %v3004_v39 }
 0x203   :  { %v3030_v47 = vadd.f32 %v3029_v40, %v3017_v43 }
 0x208   :  { %v3042_v48 = vpop.f32.mrf.mxu2  ;;  %v3018_v32 = vpop.f32.mrf.mxu0 }
 0x209   :  { %v3043_v50 = vadd.f32 %v3042_v48, %v3030_v47  ;;  %v3055_v51 = vpop.f32.mrf.mxu3  ;;  %v3031_v52 = vpop.f32.mrf.mxu1 }
 0x20b   :  { %v3056_v54 = vadd.f32 %v3055_v51, %v3043_v50 }
 0x20d   :  { %v3060_v38 = vmax.f32 %v3056_v54, 0.0 }
 0x20f   :  { %v3062_v55 = vpack.c.bf16 %v3060_v38, %v3060_v38 }
 0x210   :  { %v3044_v58 = vpop.f32.mrf.mxu2 }
 0x211   :  { %v3057_v57 = vpop.f32.mrf.mxu3  ;;  %3281 = vmatmul.bf16.vlgmr.msra.gmra.mxu1 %v3062_v55  ;;  %3307 = vmatmul.bf16.vlgmr.msra.gmra.mxu3 %v3062_v55 }
 0x220   :  { %v3269_v37 = vpop.f32.mrf.mxu0 }
 0x221   :  { %v3270_v28 = vadd.f32 %v3269_v37, %v3096_v33 }
 0x228   :  { %v3295_v2 = vpop.f32.mrf.mxu2  ;;  %v3271_v3 = vpop.f32.mrf.mxu0 }
 0x229   :  { %v3296_v8 = vadd.f32 %v3295_v2, %v3097_v5 }
 0x230   :  { %v3297_v45 = vpop.f32.mrf.mxu2 }
 0x28e   :  { %v3282_v31 = vpop.f32.mrf.mxu1 }
 0x28f   :  { %v3283_v35 = vadd.f32 %v3282_v31, %v3270_v28 }
 0x291   :  { %v3312_v6 = vmax.f32 %v3283_v35, 0.0 }
 0x293   :  { %v3314_v9 = vpack.c.bf16 %v3312_v6, %v3312_v6 }
 0x294   :  { %v3308_v10 = vpop.f32.mrf.mxu3 }
 0x295   :  { %v3309_v18 = vadd.f32 %v3308_v10, %v3296_v8  ;;  %3455 = vmatmul.bf16.vlgmr.msrb.gmra.mxu0 %v3314_v9 }
 0x296   :  { %v3284_v13 = vpop.f32.mrf.mxu1 }
 0x297   :  { %v3313_v14 = vmax.f32 %v3309_v18, 0.0 }
 0x299   :  { %v3315_v15 = vpack.c.bf16 %v3313_v14, %v3313_v14 }
 0x29b   :  { %3468 = vmatmul.bf16.vlgmr.msrb.gmra.mxu1 %v3315_v15 }
 0x29c   :  { %v3310_v53 = vpop.f32.mrf.mxu3 }
 0x312   :  { %v3456_v17 = vpop.f32.mrf.mxu0 }
 0x313   :  { %v3457_v24 = vadd.f32 %v5651_v21, %v3456_v17 }
 0x318   :  { %v3469_v26 = vpop.f32.mrf.mxu1 }
 0x319   :  { %v3470_v56 = vadd.f32 %v3469_v26, %v3457_v24 }
 0x31a   :  { %v3458_v44 = vpop.f32.mrf.mxu0 }
 0x31b   :  { %3473 = vst [vmem:[#allocation2] sm:$0xff] %v3470_v56 }
 0x31c   :  { %3484 = dma.vmem_to_hbm [thread:$0]  %s3480_s17, 128, %s3482_s1, [#allocation3]  }
 0x320   :  { %v3471_v61 = vpop.f32.mrf.mxu1 }
 0x321   :  { %5677 = dma.done.wait [#allocation3], 128  }
 0x322   :  { %5678 = vsyncadd [#allocation3], 4294967168 }
 0x323   :  { %3489 = vsyncpa [#allocation3], 1 }

</bundles_post_ra>
